<compile_context>
chip_gen: v5e
topology: v5e:2x2
jax: 0.10.0
libtpu: 0.0.40
codegen_flags: <defaults>
</compile_context>

<pallas_src>
import functools

import jax
import jax.numpy as jnp
from jax import lax
from jax.experimental import pallas as pl
from jax.experimental.pallas import tpu as pltpu


# ----------------------------------------------------------------------------
# Phase-decomposed length axis.
#
# An activation of length l = P * M is carried as a list of P arrays ("phases")
# of shape (M, C), with phases[r][m] = h[P * m + r].  Shifting by +/-1 in the
# original index space is a rotation of the phase list plus a pltpu.roll of the
# wrapping phase (edge rows masked to zero -> 'same' padding), and MaxPool(2,2)
# collapses adjacent phase pairs with an elementwise max (P -> P/2).
# ----------------------------------------------------------------------------
def _phase_shift_up(phases):
    """y[i] = x[i-1] (zero at i = -1), in phase representation."""
    last = phases[-1]
    rolled = pltpu.roll(last, 1, axis=0)                    # row m <- row m-1
    idx = lax.broadcasted_iota(jnp.int32, last.shape, 0)
    rolled = jnp.where(idx == 0, 0.0, rolled)               # x[-1] = 0
    return [rolled] + list(phases[:-1])


def _phase_shift_dn(phases):
    """y[i] = x[i+1] (zero at i = l), in phase representation."""
    first = phases[0]
    m = first.shape[0]
    rolled = pltpu.roll(first, m - 1, axis=0)               # row m <- row m+1
    idx = lax.broadcasted_iota(jnp.int32, first.shape, 0)
    rolled = jnp.where(idx == m - 1, 0.0, rolled)           # x[l] = 0
    return list(phases[1:]) + [rolled]


def _conv3_relu_phased(phases, w_bf16, b_f32):
    """k=3 'same' conv + bias + ReLU.  w_bf16: (3*Cin, Cout) im2col, b: (1, Cout)."""
    up = _phase_shift_up(phases)
    dn = _phase_shift_dn(phases)
    out = []
    for u, c, d in zip(up, phases, dn):
        x3 = jnp.concatenate([u, c, d], axis=1).astype(jnp.bfloat16)  # (M, 3Cin)
        g = jnp.dot(x3, w_bf16, preferred_element_type=jnp.float32)   # MXU, f32 acc
        out.append(jnp.maximum(g + b_f32, 0.0))
    return out


def _maxpool2_phased(phases):
    """MaxPool1d(2, 2): pooled phase s = max(phase 2s, phase 2s+1)."""
    return [jnp.maximum(phases[2 * s], phases[2 * s + 1])
            for s in range(len(phases) // 2)]


# ----------------------------------------------------------------------------
# Fused conv trunk: conv1_1 .. pool3 in a single kernel per batch element.
# Input block  : (1, L/8, 8)   -- phase r lives in lane column r.
# Output block : (1, L/8, 128) -- lane-dense, the only activation written to HBM.
# ----------------------------------------------------------------------------
def _conv_trunk_kernel(x_ref, w11_ref, b11_ref, w12_ref, b12_ref,
                       w21_ref, b21_ref, w22_ref, b22_ref,
                       w31_ref, b31_ref, w32_ref, b32_ref, o_ref):
    x = x_ref[0]                                   # (L/8, 8) f32
    phases = [x[:, r:r + 1] for r in range(8)]     # 8 x (L/8, 1)

    # conv1_1 (Cin=1) + ReLU: VPU broadcast multiply-adds (a K=1 matmul would
    # waste MXU passes).  w11 rows are the 3 taps (t=0 multiplies x[l-1]).
    w11 = w11_ref[...]                             # (3, 32) f32
    b11 = b11_ref[...]                             # (1, 32) f32
    up = _phase_shift_up(phases)
    dn = _phase_shift_dn(phases)
    phases = [jnp.maximum(u * w11[0:1, :] + c * w11[1:2, :] + d * w11[2:3, :]
                          + b11, 0.0)
              for u, c, d in zip(up, phases, dn)]  # 8 x (L/8, 32)

    # conv1_2 + ReLU, pool1
    phases = _conv3_relu_phased(phases, w12_ref[...], b12_ref[...])
    phases = _maxpool2_phased(phases)              # 4 x (L/8, 32)
    # stage 2
    phases = _conv3_relu_phased(phases, w21_ref[...], b21_ref[...])
    phases = _conv3_relu_phased(phases, w22_ref[...], b22_ref[...])
    phases = _maxpool2_phased(phases)              # 2 x (L/8, 64)
    # stage 3
    phases = _conv3_relu_phased(phases, w31_ref[...], b31_ref[...])
    phases = _conv3_relu_phased(phases, w32_ref[...], b32_ref[...])
    phases = _maxpool2_phased(phases)              # 1 x (L/8, 128)

    o_ref[0] = phases[0]                           # lane-dense store


def conv_trunk(x_ncl, params):
    n, cin, length = x_ncl.shape
    assert cin == 1 and length % 8 == 0
    lf = length // 8
    # (N, 1, L) -> (N, L/8, 8): a free row-major reshape in HBM.  Column r of the
    # last dim is length-phase r (x[8m + r]); the VMEM block carries 8 real lanes
    # instead of the 1-of-128 lane-padded (L, 1) block of the previous version.
    xp = x_ncl.reshape(n, lf, 8).astype(jnp.float32)
    return pl.pallas_call(
        _conv_trunk_kernel,
        out_shape=jax.ShapeDtypeStruct((n, lf, 128), jnp.float32),
        grid=(n,),
        in_specs=[
            pl.BlockSpec((1, lf, 8), lambda i: (i, 0, 0)),
            pl.BlockSpec((3, 32), lambda i: (0, 0)),     # conv1_1 (f32, VPU)
            pl.BlockSpec((1, 32), lambda i: (0, 0)),
            pl.BlockSpec((96, 32), lambda i: (0, 0)),    # conv1_2 (bf16)
            pl.BlockSpec((1, 32), lambda i: (0, 0)),
            pl.BlockSpec((96, 64), lambda i: (0, 0)),    # conv2_1
            pl.BlockSpec((1, 64), lambda i: (0, 0)),
            pl.BlockSpec((192, 64), lambda i: (0, 0)),   # conv2_2
            pl.BlockSpec((1, 64), lambda i: (0, 0)),
            pl.BlockSpec((192, 128), lambda i: (0, 0)),  # conv3_1
            pl.BlockSpec((1, 128), lambda i: (0, 0)),
            pl.BlockSpec((384, 128), lambda i: (0, 0)),  # conv3_2
            pl.BlockSpec((1, 128), lambda i: (0, 0)),
        ],
        out_specs=pl.BlockSpec((1, lf, 128), lambda i: (i, 0, 0)),
        compiler_params=pltpu.CompilerParams(
            dimension_semantics=("parallel",),
            vmem_limit_bytes=32 * 1024 * 1024),
    )(xp,
      params["s1_w1"], params["s1_b1"], params["s1_w2"], params["s1_b2"],
      params["s2_w1"], params["s2_b1"], params["s2_w2"], params["s2_b2"],
      params["s3_w1"], params["s3_b1"], params["s3_w2"], params["s3_b2"])


# ----------------------------------------------------------------------------
# fc1: K-tiled streaming matmul (bf16 weight, f32 VMEM accumulator).
# grid = (dout tiles, K tiles); K is the innermost reduction ("arbitrary"),
# dout tiles are "parallel" (megacore-shardable on v7x).
# ----------------------------------------------------------------------------
def _linear_kernel(x_ref, w_ref, b_ref, o_ref, acc_ref, *, activation):
    k = pl.program_id(1)

    @pl.when(k == 0)
    def _():
        acc_ref[...] = jnp.zeros_like(acc_ref)

    acc_ref[...] += jnp.dot(x_ref[...].astype(jnp.bfloat16), w_ref[...],
                            preferred_element_type=jnp.float32)

    @pl.when(k == pl.num_programs(1) - 1)
    def _():
        y = acc_ref[...] + b_ref[...]
        if activation == "relu":
            y = jnp.maximum(y, 0.0)
        o_ref[...] = y


def linear(x, w, b, activation="none", tk=1024, tn=1024):
    n, din = x.shape
    din_w, dout = w.shape
    assert din_w == din
    tn = min(tn, dout)
    assert dout % tn == 0
    tk = min(tk, din)
    kt = pl.cdiv(din, tk)
    din_p = kt * tk
    if din_p != din:
        # Real-scale fc1 has din = 379136 = 256 * 1481 (1481 prime): zero-pad
        # the K axis so any tile size works (zero rows/cols add nothing).
        x = jnp.pad(x, ((0, 0), (0, din_p - din)))
        w = jnp.pad(w, ((0, din_p - din), (0, 0)))
    nt = dout // tn
    kernel = functools.partial(_linear_kernel, activation=activation)
    return pl.pallas_call(
        kernel,
        out_shape=jax.ShapeDtypeStruct((n, dout), jnp.float32),
        grid=(nt, kt),
        in_specs=[
            pl.BlockSpec((n, tk), lambda j, k: (0, k)),
            pl.BlockSpec((tk, tn), lambda j, k: (k, j)),
            pl.BlockSpec((1, tn), lambda j, k: (0, j)),
        ],
        out_specs=pl.BlockSpec((n, tn), lambda j, k: (0, j)),
        scratch_shapes=[pltpu.VMEM((n, tn), jnp.float32)],
        compiler_params=pltpu.CompilerParams(
            dimension_semantics=("parallel", "arbitrary"),
            vmem_limit_bytes=32 * 1024 * 1024),
    )(x, w, b)


# ----------------------------------------------------------------------------
# Fused head: fc2 + ReLU + fc3 (+ softmax) in one VMEM-resident kernel.
# ----------------------------------------------------------------------------
def _head_kernel(x_ref, w2_ref, b2_ref, w3_ref, b3_ref, o_ref, *, softmax):
    h = jnp.dot(x_ref[...].astype(jnp.bfloat16), w2_ref[...],
                preferred_element_type=jnp.float32)
    h = jnp.maximum(h + b2_ref[...], 0.0)
    y = jnp.dot(h.astype(jnp.bfloat16), w3_ref[...],
                preferred_element_type=jnp.float32) + b3_ref[...]
    if softmax:
        y = y - jnp.max(y, axis=-1, keepdims=True)
        e = jnp.exp(y)
        y = e / jnp.sum(e, axis=-1, keepdims=True)
    o_ref[...] = y


def mlp_head(x, w2, b2, w3, b3, softmax=True):
    n = x.shape[0]
    nb = w3.shape[1]
    kernel = functools.partial(_head_kernel, softmax=softmax)
    return pl.pallas_call(
        kernel,
        out_shape=jax.ShapeDtypeStruct((n, nb), jnp.float32),
    )(x, w2, b2, w3, b3)


# ----------------------------------------------------------------------------
# Parameters (deterministic, synthetic) and forward pass.
# ----------------------------------------------------------------------------
def init_params(key, nb_classes=2, lf=16):
    c3 = 128
    in_linear = c3 * lf
    ks = jax.random.split(key, 18)

    def conv_w(k, cin, cout):
        # torch Conv1d weight (Cout, Cin, 3) mapped to im2col (3*Cin, Cout):
        # row t*Cin + ci  <->  w_torch[co, ci, t]; tap t=0 multiplies x[l-1].
        s = (3.0 * cin) ** -0.5
        w = jax.random.uniform(k, (3, cin, cout), jnp.float32, -s, s)
        return w.reshape(3 * cin, cout).astype(jnp.bfloat16)   # MXU operand

    def bias(k, c, fan_in):
        s = float(fan_in) ** -0.5
        return jax.random.uniform(k, (1, c), jnp.float32, -s, s)

    def lin_w(k, din, dout):
        s = float(din) ** -0.5
        return jax.random.uniform(k, (din, dout), jnp.float32, -s, s)

    # conv1_1 (Cin=1) runs on the VPU -> keep f32, (3, 32) tap-major.
    s = 3.0 ** -0.5
    s1_w1 = jax.random.uniform(ks[0], (3, 32), jnp.float32, -s, s)

    # torch.flatten(x, 1) on (N, C, Lf) is channel-major (row = c*Lf + l); our
    # activation (N, Lf, C) flattens length-major (row = l*C + c).  Permute
    # fc1's rows ONCE at init so no runtime transpose is needed before fc1.
    fc1_torch = lin_w(ks[12], in_linear, 1024)
    fc1_lc = fc1_torch.reshape(c3, lf, 1024).transpose(1, 0, 2)
    fc1_lc = fc1_lc.reshape(in_linear, 1024)

    return {
        "s1_w1": s1_w1,                    "s1_b1": bias(ks[1], 32, 3 * 1),
        "s1_w2": conv_w(ks[2], 32, 32),    "s1_b2": bias(ks[3], 32, 3 * 32),
        "s2_w1": conv_w(ks[4], 32, 64),    "s2_b1": bias(ks[5], 64, 3 * 32),
        "s2_w2": conv_w(ks[6], 64, 64),    "s2_b2": bias(ks[7], 64, 3 * 64),
        "s3_w1": conv_w(ks[8], 64, 128),   "s3_b1": bias(ks[9], 128, 3 * 64),
        "s3_w2": conv_w(ks[10], 128, 128), "s3_b2": bias(ks[11], 128, 3 * 128),
        "fc1_w": fc1_lc.astype(jnp.bfloat16), "fc1_b": bias(ks[13], 1024, in_linear),
        "fc2_w": lin_w(ks[14], 1024, 512).astype(jnp.bfloat16),
        "fc2_b": bias(ks[15], 512, 1024),
        "fc3_w": lin_w(ks[16], 512, nb_classes).astype(jnp.bfloat16),
        "fc3_b": bias(ks[17], nb_classes, 512),
    }


def cnn1d_forward(params, x_ncl, softmax=True):
    # x_ncl: (N, 1, L) -- the PyTorch Conv1d NCL layout at the boundary.
    feat = conv_trunk(x_ncl, params)                 # (N, L/8, 128) lane-dense
    flat = feat.reshape(feat.shape[0], -1)           # length-major flatten
    h = linear(flat, params["fc1_w"], params["fc1_b"], activation="relu")
    out = mlp_head(h, params["fc2_w"], params["fc2_b"],
                   params["fc3_w"], params["fc3_b"], softmax=softmax)
    return out


# ----------------------------------------------------------------------------
# Pure-JAX f32 reference (same synthetic weights / layouts) for validation.
# ----------------------------------------------------------------------------
def _ref_forward(params, x_ncl, softmax=True):
    f32 = jnp.float32
    a = jnp.transpose(x_ncl, (0, 2, 1)).astype(f32)          # (N, L, 1)

    def sup(t):
        return jnp.concatenate([jnp.zeros_like(t[:, :1, :]), t[:, :-1, :]], axis=1)

    def sdn(t):
        return jnp.concatenate([t[:, 1:, :], jnp.zeros_like(t[:, :1, :])], axis=1)

    def conv3(t, w, b):
        t3 = jnp.concatenate([sup(t), t, sdn(t)], axis=-1)
        y = jnp.einsum("nlk,kc->nlc", t3, w.astype(f32)) + b.astype(f32)
        return jnp.maximum(y, 0.0)

    def pool(t):
        n, l, c = t.shape
        return jnp.max(t.reshape(n, l // 2, 2, c), axis=2)

    a = conv3(a, params["s1_w1"], params["s1_b1"])
    a = conv3(a, params["s1_w2"], params["s1_b2"]); a = pool(a)
    a = conv3(a, params["s2_w1"], params["s2_b1"])
    a = conv3(a, params["s2_w2"], params["s2_b2"]); a = pool(a)
    a = conv3(a, params["s3_w1"], params["s3_b1"])
    a = conv3(a, params["s3_w2"], params["s3_b2"]); a = pool(a)
    feat = a
    h = a.reshape(a.shape[0], -1)
    h = jnp.maximum(h @ params["fc1_w"].astype(f32) + params["fc1_b"].astype(f32), 0.0)
    h = jnp.maximum(h @ params["fc2_w"].astype(f32) + params["fc2_b"].astype(f32), 0.0)
    y = h @ params["fc3_w"].astype(f32) + params["fc3_b"].astype(f32)
    if softmax:
        y = jax.nn.softmax(y, axis=-1)
    return feat, y


if __name__ == "__main__":
    N, L, NB_CLASSES = 2, 128, 2       # L divisible by 8 (three 2x pools)
    LF = L // 8                         # in_linear = 128 * LF = 2048 here

    key = jax.random.PRNGKey(0)
    pkey, xkey = jax.random.split(key)
    params = init_params(pkey, nb_classes=NB_CLASSES, lf=LF)
    x = jax.random.normal(xkey, (N, 1, L), jnp.float32)

    fwd = jax.jit(functools.partial(cnn1d_forward, softmax=True))
    out = fwd(params, x)
    jax.block_until_ready(out)

    assert out.shape == (N, NB_CLASSES)
    assert bool(jnp.all(jnp.isfinite(out)))

    # Validate against the pure-JAX f32 reference (loose bounds: the kernels run
    # their matmuls in bf16).
    feat = jax.jit(conv_trunk)(x, params)
    feat_ref, out_ref = _ref_forward(params, x, softmax=True)
    rel = jnp.linalg.norm(feat - feat_ref) / (jnp.linalg.norm(feat_ref) + 1e-6)
    assert float(rel) < 0.05, f"conv trunk relative error too large: {float(rel)}"
    assert bool(jnp.allclose(out, out_ref, atol=2e-2)), "head output mismatch"
    assert bool(jnp.allclose(jnp.sum(out, axis=-1), 1.0, atol=1e-3))

    print("KERNEL_OK")
</pallas_src>

<mosaic_0001>
module attributes {stable_mosaic.version = 11 : i64} {
  func.func @_conv_trunk_kernel(%arg0: i32, %arg1: memref<1x16x8xf32, #tpu.memory_space<vmem>>, %arg2: memref<3x32xf32, #tpu.memory_space<vmem>>, %arg3: memref<1x32xf32, #tpu.memory_space<vmem>>, %arg4: memref<96x32xbf16, #tpu.memory_space<vmem>>, %arg5: memref<1x32xf32, #tpu.memory_space<vmem>>, %arg6: memref<96x64xbf16, #tpu.memory_space<vmem>>, %arg7: memref<1x64xf32, #tpu.memory_space<vmem>>, %arg8: memref<192x64xbf16, #tpu.memory_space<vmem>>, %arg9: memref<1x64xf32, #tpu.memory_space<vmem>>, %arg10: memref<192x128xbf16, #tpu.memory_space<vmem>>, %arg11: memref<1x128xf32, #tpu.memory_space<vmem>>, %arg12: memref<384x128xbf16, #tpu.memory_space<vmem>>, %arg13: memref<1x128xf32, #tpu.memory_space<vmem>>, %arg14: memref<1x16x128xf32, #tpu.memory_space<vmem>>) attributes {dimension_semantics = [#tpu.dimension_semantics<parallel>], iteration_bounds = array<i64: 2>, scalar_prefetch = 0 : i64, scratch_operands = 0 : i64, tpu.core_type = #tpu.core_type<tc>, window_params = [{transform_indices = @transform_0, window_bounds = array<i64: 1, 16, 8>}, {pipeline_mode = #tpu.pipeline_mode<synchronous>, transform_indices = @transform_1, window_bounds = array<i64: 3, 32>}, {pipeline_mode = #tpu.pipeline_mode<synchronous>, transform_indices = @transform_2, window_bounds = array<i64: 1, 32>}, {pipeline_mode = #tpu.pipeline_mode<synchronous>, transform_indices = @transform_3, window_bounds = array<i64: 96, 32>}, {pipeline_mode = #tpu.pipeline_mode<synchronous>, transform_indices = @transform_4, window_bounds = array<i64: 1, 32>}, {pipeline_mode = #tpu.pipeline_mode<synchronous>, transform_indices = @transform_5, window_bounds = array<i64: 96, 64>}, {pipeline_mode = #tpu.pipeline_mode<synchronous>, transform_indices = @transform_6, window_bounds = array<i64: 1, 64>}, {pipeline_mode = #tpu.pipeline_mode<synchronous>, transform_indices = @transform_7, window_bounds = array<i64: 192, 64>}, {pipeline_mode = #tpu.pipeline_mode<synchronous>, transform_indices = @transform_8, window_bounds = array<i64: 1, 64>}, {pipeline_mode = #tpu.pipeline_mode<synchronous>, transform_indices = @transform_9, window_bounds = array<i64: 192, 128>}, {pipeline_mode = #tpu.pipeline_mode<synchronous>, transform_indices = @transform_10, window_bounds = array<i64: 1, 128>}, {pipeline_mode = #tpu.pipeline_mode<synchronous>, transform_indices = @transform_11, window_bounds = array<i64: 384, 128>}, {pipeline_mode = #tpu.pipeline_mode<synchronous>, transform_indices = @transform_12, window_bounds = array<i64: 1, 128>}, {transform_indices = @transform_13, window_bounds = array<i64: 1, 16, 128>}]} {
    %c0 = arith.constant 0 : index
    %c0_0 = arith.constant 0 : index
    %c0_1 = arith.constant 0 : index
    %0 = vector.load %arg1[%c0, %c0_0, %c0_1] : memref<1x16x8xf32, #tpu.memory_space<vmem>>, vector<1x16x8xf32>
    %1 = vector.shape_cast %0 : vector<1x16x8xf32> to vector<16x8xf32>
    %2 = vector.extract_strided_slice %1 {offsets = [0, 0], sizes = [16, 1], strides = [1, 1]} : vector<16x8xf32> to vector<16x1xf32>
    %3 = vector.extract_strided_slice %1 {offsets = [0, 1], sizes = [16, 1], strides = [1, 1]} : vector<16x8xf32> to vector<16x1xf32>
    %4 = vector.extract_strided_slice %1 {offsets = [0, 2], sizes = [16, 1], strides = [1, 1]} : vector<16x8xf32> to vector<16x1xf32>
    %5 = vector.extract_strided_slice %1 {offsets = [0, 3], sizes = [16, 1], strides = [1, 1]} : vector<16x8xf32> to vector<16x1xf32>
    %6 = vector.extract_strided_slice %1 {offsets = [0, 4], sizes = [16, 1], strides = [1, 1]} : vector<16x8xf32> to vector<16x1xf32>
    %7 = vector.extract_strided_slice %1 {offsets = [0, 5], sizes = [16, 1], strides = [1, 1]} : vector<16x8xf32> to vector<16x1xf32>
    %8 = vector.extract_strided_slice %1 {offsets = [0, 6], sizes = [16, 1], strides = [1, 1]} : vector<16x8xf32> to vector<16x1xf32>
    %9 = vector.extract_strided_slice %1 {offsets = [0, 7], sizes = [16, 1], strides = [1, 1]} : vector<16x8xf32> to vector<16x1xf32>
    %c0_2 = arith.constant 0 : index
    %c0_3 = arith.constant 0 : index
    %10 = vector.load %arg2[%c0_2, %c0_3] : memref<3x32xf32, #tpu.memory_space<vmem>>, vector<3x32xf32>
    %c0_4 = arith.constant 0 : index
    %c0_5 = arith.constant 0 : index
    %11 = vector.load %arg3[%c0_4, %c0_5] : memref<1x32xf32, #tpu.memory_space<vmem>>, vector<1x32xf32>
    %c1_i32 = arith.constant 1 : i32
    %12 = tpu.dynamic_rotate %9 by %c1_i32 dim 0 : vector<16x1xf32>, i32 -> vector<16x1xf32>
    %13 = tpu.iota {dimensions = array<i32: 0>} : vector<16x1xi32>
    %c0_i32 = arith.constant 0 : i32
    %14 = vector.broadcast %c0_i32 : i32 to vector<16x1xi32>
    %15 = arith.cmpi eq, %13, %14 : vector<16x1xi32>
    %cst = arith.constant 0.000000e+00 : f32
    %16 = vector.broadcast %cst : f32 to vector<16x1xf32>
    %17 = arith.select %15, %16, %12 : vector<16x1xi1>, vector<16x1xf32>
    %c15_i32 = arith.constant 15 : i32
    %18 = tpu.dynamic_rotate %2 by %c15_i32 dim 0 : vector<16x1xf32>, i32 -> vector<16x1xf32>
    %19 = tpu.iota {dimensions = array<i32: 0>} : vector<16x1xi32>
    %c15_i32_6 = arith.constant 15 : i32
    %20 = vector.broadcast %c15_i32_6 : i32 to vector<16x1xi32>
    %21 = arith.cmpi eq, %19, %20 : vector<16x1xi32>
    %cst_7 = arith.constant 0.000000e+00 : f32
    %22 = vector.broadcast %cst_7 : f32 to vector<16x1xf32>
    %23 = arith.select %21, %22, %18 : vector<16x1xi1>, vector<16x1xf32>
    %24 = vector.extract_strided_slice %10 {offsets = [0, 0], sizes = [1, 32], strides = [1, 1]} : vector<3x32xf32> to vector<1x32xf32>
    %25 = vector.broadcast %17 : vector<16x1xf32> to vector<16x32xf32>
    %26 = vector.broadcast %24 : vector<1x32xf32> to vector<16x32xf32>
    %27 = arith.mulf %25, %26 : vector<16x32xf32>
    %28 = vector.extract_strided_slice %10 {offsets = [1, 0], sizes = [1, 32], strides = [1, 1]} : vector<3x32xf32> to vector<1x32xf32>
    %29 = vector.broadcast %2 : vector<16x1xf32> to vector<16x32xf32>
    %30 = vector.broadcast %28 : vector<1x32xf32> to vector<16x32xf32>
    %31 = arith.mulf %29, %30 : vector<16x32xf32>
    %32 = arith.addf %27, %31 : vector<16x32xf32>
    %33 = vector.extract_strided_slice %10 {offsets = [2, 0], sizes = [1, 32], strides = [1, 1]} : vector<3x32xf32> to vector<1x32xf32>
    %34 = vector.broadcast %3 : vector<16x1xf32> to vector<16x32xf32>
    %35 = vector.broadcast %33 : vector<1x32xf32> to vector<16x32xf32>
    %36 = arith.mulf %34, %35 : vector<16x32xf32>
    %37 = arith.addf %32, %36 : vector<16x32xf32>
    %38 = vector.broadcast %11 : vector<1x32xf32> to vector<16x32xf32>
    %39 = arith.addf %37, %38 : vector<16x32xf32>
    %cst_8 = arith.constant 0.000000e+00 : f32
    %40 = vector.broadcast %cst_8 : f32 to vector<16x32xf32>
    %41 = arith.maximumf %39, %40 : vector<16x32xf32>
    %42 = vector.extract_strided_slice %10 {offsets = [0, 0], sizes = [1, 32], strides = [1, 1]} : vector<3x32xf32> to vector<1x32xf32>
    %43 = vector.broadcast %2 : vector<16x1xf32> to vector<16x32xf32>
    %44 = vector.broadcast %42 : vector<1x32xf32> to vector<16x32xf32>
    %45 = arith.mulf %43, %44 : vector<16x32xf32>
    %46 = vector.extract_strided_slice %10 {offsets = [1, 0], sizes = [1, 32], strides = [1, 1]} : vector<3x32xf32> to vector<1x32xf32>
    %47 = vector.broadcast %3 : vector<16x1xf32> to vector<16x32xf32>
    %48 = vector.broadcast %46 : vector<1x32xf32> to vector<16x32xf32>
    %49 = arith.mulf %47, %48 : vector<16x32xf32>
    %50 = arith.addf %45, %49 : vector<16x32xf32>
    %51 = vector.extract_strided_slice %10 {offsets = [2, 0], sizes = [1, 32], strides = [1, 1]} : vector<3x32xf32> to vector<1x32xf32>
    %52 = vector.broadcast %4 : vector<16x1xf32> to vector<16x32xf32>
    %53 = vector.broadcast %51 : vector<1x32xf32> to vector<16x32xf32>
    %54 = arith.mulf %52, %53 : vector<16x32xf32>
    %55 = arith.addf %50, %54 : vector<16x32xf32>
    %56 = vector.broadcast %11 : vector<1x32xf32> to vector<16x32xf32>
    %57 = arith.addf %55, %56 : vector<16x32xf32>
    %cst_9 = arith.constant 0.000000e+00 : f32
    %58 = vector.broadcast %cst_9 : f32 to vector<16x32xf32>
    %59 = arith.maximumf %57, %58 : vector<16x32xf32>
    %60 = vector.extract_strided_slice %10 {offsets = [0, 0], sizes = [1, 32], strides = [1, 1]} : vector<3x32xf32> to vector<1x32xf32>
    %61 = vector.broadcast %3 : vector<16x1xf32> to vector<16x32xf32>
    %62 = vector.broadcast %60 : vector<1x32xf32> to vector<16x32xf32>
    %63 = arith.mulf %61, %62 : vector<16x32xf32>
    %64 = vector.extract_strided_slice %10 {offsets = [1, 0], sizes = [1, 32], strides = [1, 1]} : vector<3x32xf32> to vector<1x32xf32>
    %65 = vector.broadcast %4 : vector<16x1xf32> to vector<16x32xf32>
    %66 = vector.broadcast %64 : vector<1x32xf32> to vector<16x32xf32>
    %67 = arith.mulf %65, %66 : vector<16x32xf32>
    %68 = arith.addf %63, %67 : vector<16x32xf32>
    %69 = vector.extract_strided_slice %10 {offsets = [2, 0], sizes = [1, 32], strides = [1, 1]} : vector<3x32xf32> to vector<1x32xf32>
    %70 = vector.broadcast %5 : vector<16x1xf32> to vector<16x32xf32>
    %71 = vector.broadcast %69 : vector<1x32xf32> to vector<16x32xf32>
    %72 = arith.mulf %70, %71 : vector<16x32xf32>
    %73 = arith.addf %68, %72 : vector<16x32xf32>
    %74 = vector.broadcast %11 : vector<1x32xf32> to vector<16x32xf32>
    %75 = arith.addf %73, %74 : vector<16x32xf32>
    %cst_10 = arith.constant 0.000000e+00 : f32
    %76 = vector.broadcast %cst_10 : f32 to vector<16x32xf32>
    %77 = arith.maximumf %75, %76 : vector<16x32xf32>
    %78 = vector.extract_strided_slice %10 {offsets = [0, 0], sizes = [1, 32], strides = [1, 1]} : vector<3x32xf32> to vector<1x32xf32>
    %79 = vector.broadcast %4 : vector<16x1xf32> to vector<16x32xf32>
    %80 = vector.broadcast %78 : vector<1x32xf32> to vector<16x32xf32>
    %81 = arith.mulf %79, %80 : vector<16x32xf32>
    %82 = vector.extract_strided_slice %10 {offsets = [1, 0], sizes = [1, 32], strides = [1, 1]} : vector<3x32xf32> to vector<1x32xf32>
    %83 = vector.broadcast %5 : vector<16x1xf32> to vector<16x32xf32>
    %84 = vector.broadcast %82 : vector<1x32xf32> to vector<16x32xf32>
    %85 = arith.mulf %83, %84 : vector<16x32xf32>
    %86 = arith.addf %81, %85 : vector<16x32xf32>
    %87 = vector.extract_strided_slice %10 {offsets = [2, 0], sizes = [1, 32], strides = [1, 1]} : vector<3x32xf32> to vector<1x32xf32>
    %88 = vector.broadcast %6 : vector<16x1xf32> to vector<16x32xf32>
    %89 = vector.broadcast %87 : vector<1x32xf32> to vector<16x32xf32>
    %90 = arith.mulf %88, %89 : vector<16x32xf32>
    %91 = arith.addf %86, %90 : vector<16x32xf32>
    %92 = vector.broadcast %11 : vector<1x32xf32> to vector<16x32xf32>
    %93 = arith.addf %91, %92 : vector<16x32xf32>
    %cst_11 = arith.constant 0.000000e+00 : f32
    %94 = vector.broadcast %cst_11 : f32 to vector<16x32xf32>
    %95 = arith.maximumf %93, %94 : vector<16x32xf32>
    %96 = vector.extract_strided_slice %10 {offsets = [0, 0], sizes = [1, 32], strides = [1, 1]} : vector<3x32xf32> to vector<1x32xf32>
    %97 = vector.broadcast %5 : vector<16x1xf32> to vector<16x32xf32>
    %98 = vector.broadcast %96 : vector<1x32xf32> to vector<16x32xf32>
    %99 = arith.mulf %97, %98 : vector<16x32xf32>
    %100 = vector.extract_strided_slice %10 {offsets = [1, 0], sizes = [1, 32], strides = [1, 1]} : vector<3x32xf32> to vector<1x32xf32>
    %101 = vector.broadcast %6 : vector<16x1xf32> to vector<16x32xf32>
    %102 = vector.broadcast %100 : vector<1x32xf32> to vector<16x32xf32>
    %103 = arith.mulf %101, %102 : vector<16x32xf32>
    %104 = arith.addf %99, %103 : vector<16x32xf32>
    %105 = vector.extract_strided_slice %10 {offsets = [2, 0], sizes = [1, 32], strides = [1, 1]} : vector<3x32xf32> to vector<1x32xf32>
    %106 = vector.broadcast %7 : vector<16x1xf32> to vector<16x32xf32>
    %107 = vector.broadcast %105 : vector<1x32xf32> to vector<16x32xf32>
    %108 = arith.mulf %106, %107 : vector<16x32xf32>
    %109 = arith.addf %104, %108 : vector<16x32xf32>
    %110 = vector.broadcast %11 : vector<1x32xf32> to vector<16x32xf32>
    %111 = arith.addf %109, %110 : vector<16x32xf32>
    %cst_12 = arith.constant 0.000000e+00 : f32
    %112 = vector.broadcast %cst_12 : f32 to vector<16x32xf32>
    %113 = arith.maximumf %111, %112 : vector<16x32xf32>
    %114 = vector.extract_strided_slice %10 {offsets = [0, 0], sizes = [1, 32], strides = [1, 1]} : vector<3x32xf32> to vector<1x32xf32>
    %115 = vector.broadcast %6 : vector<16x1xf32> to vector<16x32xf32>
    %116 = vector.broadcast %114 : vector<1x32xf32> to vector<16x32xf32>
    %117 = arith.mulf %115, %116 : vector<16x32xf32>
    %118 = vector.extract_strided_slice %10 {offsets = [1, 0], sizes = [1, 32], strides = [1, 1]} : vector<3x32xf32> to vector<1x32xf32>
    %119 = vector.broadcast %7 : vector<16x1xf32> to vector<16x32xf32>
    %120 = vector.broadcast %118 : vector<1x32xf32> to vector<16x32xf32>
    %121 = arith.mulf %119, %120 : vector<16x32xf32>
    %122 = arith.addf %117, %121 : vector<16x32xf32>
    %123 = vector.extract_strided_slice %10 {offsets = [2, 0], sizes = [1, 32], strides = [1, 1]} : vector<3x32xf32> to vector<1x32xf32>
    %124 = vector.broadcast %8 : vector<16x1xf32> to vector<16x32xf32>
    %125 = vector.broadcast %123 : vector<1x32xf32> to vector<16x32xf32>
    %126 = arith.mulf %124, %125 : vector<16x32xf32>
    %127 = arith.addf %122, %126 : vector<16x32xf32>
    %128 = vector.broadcast %11 : vector<1x32xf32> to vector<16x32xf32>
    %129 = arith.addf %127, %128 : vector<16x32xf32>
    %cst_13 = arith.constant 0.000000e+00 : f32
    %130 = vector.broadcast %cst_13 : f32 to vector<16x32xf32>
    %131 = arith.maximumf %129, %130 : vector<16x32xf32>
    %132 = vector.extract_strided_slice %10 {offsets = [0, 0], sizes = [1, 32], strides = [1, 1]} : vector<3x32xf32> to vector<1x32xf32>
    %133 = vector.broadcast %7 : vector<16x1xf32> to vector<16x32xf32>
    %134 = vector.broadcast %132 : vector<1x32xf32> to vector<16x32xf32>
    %135 = arith.mulf %133, %134 : vector<16x32xf32>
    %136 = vector.extract_strided_slice %10 {offsets = [1, 0], sizes = [1, 32], strides = [1, 1]} : vector<3x32xf32> to vector<1x32xf32>
    %137 = vector.broadcast %8 : vector<16x1xf32> to vector<16x32xf32>
    %138 = vector.broadcast %136 : vector<1x32xf32> to vector<16x32xf32>
    %139 = arith.mulf %137, %138 : vector<16x32xf32>
    %140 = arith.addf %135, %139 : vector<16x32xf32>
    %141 = vector.extract_strided_slice %10 {offsets = [2, 0], sizes = [1, 32], strides = [1, 1]} : vector<3x32xf32> to vector<1x32xf32>
    %142 = vector.broadcast %9 : vector<16x1xf32> to vector<16x32xf32>
    %143 = vector.broadcast %141 : vector<1x32xf32> to vector<16x32xf32>
    %144 = arith.mulf %142, %143 : vector<16x32xf32>
    %145 = arith.addf %140, %144 : vector<16x32xf32>
    %146 = vector.broadcast %11 : vector<1x32xf32> to vector<16x32xf32>
    %147 = arith.addf %145, %146 : vector<16x32xf32>
    %cst_14 = arith.constant 0.000000e+00 : f32
    %148 = vector.broadcast %cst_14 : f32 to vector<16x32xf32>
    %149 = arith.maximumf %147, %148 : vector<16x32xf32>
    %150 = vector.extract_strided_slice %10 {offsets = [0, 0], sizes = [1, 32], strides = [1, 1]} : vector<3x32xf32> to vector<1x32xf32>
    %151 = vector.broadcast %8 : vector<16x1xf32> to vector<16x32xf32>
    %152 = vector.broadcast %150 : vector<1x32xf32> to vector<16x32xf32>
    %153 = arith.mulf %151, %152 : vector<16x32xf32>
    %154 = vector.extract_strided_slice %10 {offsets = [1, 0], sizes = [1, 32], strides = [1, 1]} : vector<3x32xf32> to vector<1x32xf32>
    %155 = vector.broadcast %9 : vector<16x1xf32> to vector<16x32xf32>
    %156 = vector.broadcast %154 : vector<1x32xf32> to vector<16x32xf32>
    %157 = arith.mulf %155, %156 : vector<16x32xf32>
    %158 = arith.addf %153, %157 : vector<16x32xf32>
    %159 = vector.extract_strided_slice %10 {offsets = [2, 0], sizes = [1, 32], strides = [1, 1]} : vector<3x32xf32> to vector<1x32xf32>
    %160 = vector.broadcast %23 : vector<16x1xf32> to vector<16x32xf32>
    %161 = vector.broadcast %159 : vector<1x32xf32> to vector<16x32xf32>
    %162 = arith.mulf %160, %161 : vector<16x32xf32>
    %163 = arith.addf %158, %162 : vector<16x32xf32>
    %164 = vector.broadcast %11 : vector<1x32xf32> to vector<16x32xf32>
    %165 = arith.addf %163, %164 : vector<16x32xf32>
    %cst_15 = arith.constant 0.000000e+00 : f32
    %166 = vector.broadcast %cst_15 : f32 to vector<16x32xf32>
    %167 = arith.maximumf %165, %166 : vector<16x32xf32>
    %c0_16 = arith.constant 0 : index
    %c0_17 = arith.constant 0 : index
    %168 = vector.load %arg4[%c0_16, %c0_17] : memref<96x32xbf16, #tpu.memory_space<vmem>>, vector<96x32xbf16>
    %c0_18 = arith.constant 0 : index
    %c0_19 = arith.constant 0 : index
    %169 = vector.load %arg5[%c0_18, %c0_19] : memref<1x32xf32, #tpu.memory_space<vmem>>, vector<1x32xf32>
    %c1_i32_20 = arith.constant 1 : i32
    %170 = tpu.dynamic_rotate %167 by %c1_i32_20 dim 0 : vector<16x32xf32>, i32 -> vector<16x32xf32>
    %171 = tpu.iota {dimensions = array<i32: 0>} : vector<16x32xi32>
    %c0_i32_21 = arith.constant 0 : i32
    %172 = vector.broadcast %c0_i32_21 : i32 to vector<16x32xi32>
    %173 = arith.cmpi eq, %171, %172 : vector<16x32xi32>
    %cst_22 = arith.constant 0.000000e+00 : f32
    %174 = vector.broadcast %cst_22 : f32 to vector<16x32xf32>
    %175 = arith.select %173, %174, %170 : vector<16x32xi1>, vector<16x32xf32>
    %c15_i32_23 = arith.constant 15 : i32
    %176 = tpu.dynamic_rotate %41 by %c15_i32_23 dim 0 : vector<16x32xf32>, i32 -> vector<16x32xf32>
    %177 = tpu.iota {dimensions = array<i32: 0>} : vector<16x32xi32>
    %c15_i32_24 = arith.constant 15 : i32
    %178 = vector.broadcast %c15_i32_24 : i32 to vector<16x32xi32>
    %179 = arith.cmpi eq, %177, %178 : vector<16x32xi32>
    %cst_25 = arith.constant 0.000000e+00 : f32
    %180 = vector.broadcast %cst_25 : f32 to vector<16x32xf32>
    %181 = arith.select %179, %180, %176 : vector<16x32xi1>, vector<16x32xf32>
    %182 = tpu.concatenate %175, %41, %59 in 1 : vector<16x32xf32>, vector<16x32xf32>, vector<16x32xf32> -> vector<16x96xf32>
    %183 = arith.truncf %182 : vector<16x96xf32> to vector<16x96xbf16>
    %cst_26 = arith.constant dense<0.000000e+00> : vector<16x32xf32>
    %184 = tpu.matmul %183, %168, %cst_26 {dimension_numbers = #tpu.dot_dimension_numbers<[1], [0], [0], [1], [0, 0, 1, 1], [], []>} : vector<16x96xbf16>, vector<96x32xbf16>, vector<16x32xf32> -> vector<16x32xf32>
    %185 = vector.broadcast %169 : vector<1x32xf32> to vector<16x32xf32>
    %186 = arith.addf %184, %185 : vector<16x32xf32>
    %cst_27 = arith.constant 0.000000e+00 : f32
    %187 = vector.broadcast %cst_27 : f32 to vector<16x32xf32>
    %188 = arith.maximumf %186, %187 : vector<16x32xf32>
    %189 = tpu.concatenate %41, %59, %77 in 1 : vector<16x32xf32>, vector<16x32xf32>, vector<16x32xf32> -> vector<16x96xf32>
    %190 = arith.truncf %189 : vector<16x96xf32> to vector<16x96xbf16>
    %cst_28 = arith.constant dense<0.000000e+00> : vector<16x32xf32>
    %191 = tpu.matmul %190, %168, %cst_28 {dimension_numbers = #tpu.dot_dimension_numbers<[1], [0], [0], [1], [0, 0, 1, 1], [], []>} : vector<16x96xbf16>, vector<96x32xbf16>, vector<16x32xf32> -> vector<16x32xf32>
    %192 = vector.broadcast %169 : vector<1x32xf32> to vector<16x32xf32>
    %193 = arith.addf %191, %192 : vector<16x32xf32>
    %cst_29 = arith.constant 0.000000e+00 : f32
    %194 = vector.broadcast %cst_29 : f32 to vector<16x32xf32>
    %195 = arith.maximumf %193, %194 : vector<16x32xf32>
    %196 = tpu.concatenate %59, %77, %95 in 1 : vector<16x32xf32>, vector<16x32xf32>, vector<16x32xf32> -> vector<16x96xf32>
    %197 = arith.truncf %196 : vector<16x96xf32> to vector<16x96xbf16>
    %cst_30 = arith.constant dense<0.000000e+00> : vector<16x32xf32>
    %198 = tpu.matmul %197, %168, %cst_30 {dimension_numbers = #tpu.dot_dimension_numbers<[1], [0], [0], [1], [0, 0, 1, 1], [], []>} : vector<16x96xbf16>, vector<96x32xbf16>, vector<16x32xf32> -> vector<16x32xf32>
    %199 = vector.broadcast %169 : vector<1x32xf32> to vector<16x32xf32>
    %200 = arith.addf %198, %199 : vector<16x32xf32>
    %cst_31 = arith.constant 0.000000e+00 : f32
    %201 = vector.broadcast %cst_31 : f32 to vector<16x32xf32>
    %202 = arith.maximumf %200, %201 : vector<16x32xf32>
    %203 = tpu.concatenate %77, %95, %113 in 1 : vector<16x32xf32>, vector<16x32xf32>, vector<16x32xf32> -> vector<16x96xf32>
    %204 = arith.truncf %203 : vector<16x96xf32> to vector<16x96xbf16>
    %cst_32 = arith.constant dense<0.000000e+00> : vector<16x32xf32>
    %205 = tpu.matmul %204, %168, %cst_32 {dimension_numbers = #tpu.dot_dimension_numbers<[1], [0], [0], [1], [0, 0, 1, 1], [], []>} : vector<16x96xbf16>, vector<96x32xbf16>, vector<16x32xf32> -> vector<16x32xf32>
    %206 = vector.broadcast %169 : vector<1x32xf32> to vector<16x32xf32>
    %207 = arith.addf %205, %206 : vector<16x32xf32>
    %cst_33 = arith.constant 0.000000e+00 : f32
    %208 = vector.broadcast %cst_33 : f32 to vector<16x32xf32>
    %209 = arith.maximumf %207, %208 : vector<16x32xf32>
    %210 = tpu.concatenate %95, %113, %131 in 1 : vector<16x32xf32>, vector<16x32xf32>, vector<16x32xf32> -> vector<16x96xf32>
    %211 = arith.truncf %210 : vector<16x96xf32> to vector<16x96xbf16>
    %cst_34 = arith.constant dense<0.000000e+00> : vector<16x32xf32>
    %212 = tpu.matmul %211, %168, %cst_34 {dimension_numbers = #tpu.dot_dimension_numbers<[1], [0], [0], [1], [0, 0, 1, 1], [], []>} : vector<16x96xbf16>, vector<96x32xbf16>, vector<16x32xf32> -> vector<16x32xf32>
    %213 = vector.broadcast %169 : vector<1x32xf32> to vector<16x32xf32>
    %214 = arith.addf %212, %213 : vector<16x32xf32>
    %cst_35 = arith.constant 0.000000e+00 : f32
    %215 = vector.broadcast %cst_35 : f32 to vector<16x32xf32>
    %216 = arith.maximumf %214, %215 : vector<16x32xf32>
    %217 = tpu.concatenate %113, %131, %149 in 1 : vector<16x32xf32>, vector<16x32xf32>, vector<16x32xf32> -> vector<16x96xf32>
    %218 = arith.truncf %217 : vector<16x96xf32> to vector<16x96xbf16>
    %cst_36 = arith.constant dense<0.000000e+00> : vector<16x32xf32>
    %219 = tpu.matmul %218, %168, %cst_36 {dimension_numbers = #tpu.dot_dimension_numbers<[1], [0], [0], [1], [0, 0, 1, 1], [], []>} : vector<16x96xbf16>, vector<96x32xbf16>, vector<16x32xf32> -> vector<16x32xf32>
    %220 = vector.broadcast %169 : vector<1x32xf32> to vector<16x32xf32>
    %221 = arith.addf %219, %220 : vector<16x32xf32>
    %cst_37 = arith.constant 0.000000e+00 : f32
    %222 = vector.broadcast %cst_37 : f32 to vector<16x32xf32>
    %223 = arith.maximumf %221, %222 : vector<16x32xf32>
    %224 = tpu.concatenate %131, %149, %167 in 1 : vector<16x32xf32>, vector<16x32xf32>, vector<16x32xf32> -> vector<16x96xf32>
    %225 = arith.truncf %224 : vector<16x96xf32> to vector<16x96xbf16>
    %cst_38 = arith.constant dense<0.000000e+00> : vector<16x32xf32>
    %226 = tpu.matmul %225, %168, %cst_38 {dimension_numbers = #tpu.dot_dimension_numbers<[1], [0], [0], [1], [0, 0, 1, 1], [], []>} : vector<16x96xbf16>, vector<96x32xbf16>, vector<16x32xf32> -> vector<16x32xf32>
    %227 = vector.broadcast %169 : vector<1x32xf32> to vector<16x32xf32>
    %228 = arith.addf %226, %227 : vector<16x32xf32>
    %cst_39 = arith.constant 0.000000e+00 : f32
    %229 = vector.broadcast %cst_39 : f32 to vector<16x32xf32>
    %230 = arith.maximumf %228, %229 : vector<16x32xf32>
    %231 = tpu.concatenate %149, %167, %181 in 1 : vector<16x32xf32>, vector<16x32xf32>, vector<16x32xf32> -> vector<16x96xf32>
    %232 = arith.truncf %231 : vector<16x96xf32> to vector<16x96xbf16>
    %cst_40 = arith.constant dense<0.000000e+00> : vector<16x32xf32>
    %233 = tpu.matmul %232, %168, %cst_40 {dimension_numbers = #tpu.dot_dimension_numbers<[1], [0], [0], [1], [0, 0, 1, 1], [], []>} : vector<16x96xbf16>, vector<96x32xbf16>, vector<16x32xf32> -> vector<16x32xf32>
    %234 = vector.broadcast %169 : vector<1x32xf32> to vector<16x32xf32>
    %235 = arith.addf %233, %234 : vector<16x32xf32>
    %cst_41 = arith.constant 0.000000e+00 : f32
    %236 = vector.broadcast %cst_41 : f32 to vector<16x32xf32>
    %237 = arith.maximumf %235, %236 : vector<16x32xf32>
    %238 = arith.maximumf %188, %195 : vector<16x32xf32>
    %239 = arith.maximumf %202, %209 : vector<16x32xf32>
    %240 = arith.maximumf %216, %223 : vector<16x32xf32>
    %241 = arith.maximumf %230, %237 : vector<16x32xf32>
    %c0_42 = arith.constant 0 : index
    %c0_43 = arith.constant 0 : index
    %242 = vector.load %arg6[%c0_42, %c0_43] : memref<96x64xbf16, #tpu.memory_space<vmem>>, vector<96x64xbf16>
    %c0_44 = arith.constant 0 : index
    %c0_45 = arith.constant 0 : index
    %243 = vector.load %arg7[%c0_44, %c0_45] : memref<1x64xf32, #tpu.memory_space<vmem>>, vector<1x64xf32>
    %c1_i32_46 = arith.constant 1 : i32
    %244 = tpu.dynamic_rotate %241 by %c1_i32_46 dim 0 : vector<16x32xf32>, i32 -> vector<16x32xf32>
    %245 = tpu.iota {dimensions = array<i32: 0>} : vector<16x32xi32>
    %c0_i32_47 = arith.constant 0 : i32
    %246 = vector.broadcast %c0_i32_47 : i32 to vector<16x32xi32>
    %247 = arith.cmpi eq, %245, %246 : vector<16x32xi32>
    %cst_48 = arith.constant 0.000000e+00 : f32
    %248 = vector.broadcast %cst_48 : f32 to vector<16x32xf32>
    %249 = arith.select %247, %248, %244 : vector<16x32xi1>, vector<16x32xf32>
    %c15_i32_49 = arith.constant 15 : i32
    %250 = tpu.dynamic_rotate %238 by %c15_i32_49 dim 0 : vector<16x32xf32>, i32 -> vector<16x32xf32>
    %251 = tpu.iota {dimensions = array<i32: 0>} : vector<16x32xi32>
    %c15_i32_50 = arith.constant 15 : i32
    %252 = vector.broadcast %c15_i32_50 : i32 to vector<16x32xi32>
    %253 = arith.cmpi eq, %251, %252 : vector<16x32xi32>
    %cst_51 = arith.constant 0.000000e+00 : f32
    %254 = vector.broadcast %cst_51 : f32 to vector<16x32xf32>
    %255 = arith.select %253, %254, %250 : vector<16x32xi1>, vector<16x32xf32>
    %256 = tpu.concatenate %249, %238, %239 in 1 : vector<16x32xf32>, vector<16x32xf32>, vector<16x32xf32> -> vector<16x96xf32>
    %257 = arith.truncf %256 : vector<16x96xf32> to vector<16x96xbf16>
    %cst_52 = arith.constant dense<0.000000e+00> : vector<16x64xf32>
    %258 = tpu.matmul %257, %242, %cst_52 {dimension_numbers = #tpu.dot_dimension_numbers<[1], [0], [0], [1], [0, 0, 1, 1], [], []>} : vector<16x96xbf16>, vector<96x64xbf16>, vector<16x64xf32> -> vector<16x64xf32>
    %259 = vector.broadcast %243 : vector<1x64xf32> to vector<16x64xf32>
    %260 = arith.addf %258, %259 : vector<16x64xf32>
    %cst_53 = arith.constant 0.000000e+00 : f32
    %261 = vector.broadcast %cst_53 : f32 to vector<16x64xf32>
    %262 = arith.maximumf %260, %261 : vector<16x64xf32>
    %263 = tpu.concatenate %238, %239, %240 in 1 : vector<16x32xf32>, vector<16x32xf32>, vector<16x32xf32> -> vector<16x96xf32>
    %264 = arith.truncf %263 : vector<16x96xf32> to vector<16x96xbf16>
    %cst_54 = arith.constant dense<0.000000e+00> : vector<16x64xf32>
    %265 = tpu.matmul %264, %242, %cst_54 {dimension_numbers = #tpu.dot_dimension_numbers<[1], [0], [0], [1], [0, 0, 1, 1], [], []>} : vector<16x96xbf16>, vector<96x64xbf16>, vector<16x64xf32> -> vector<16x64xf32>
    %266 = vector.broadcast %243 : vector<1x64xf32> to vector<16x64xf32>
    %267 = arith.addf %265, %266 : vector<16x64xf32>
    %cst_55 = arith.constant 0.000000e+00 : f32
    %268 = vector.broadcast %cst_55 : f32 to vector<16x64xf32>
    %269 = arith.maximumf %267, %268 : vector<16x64xf32>
    %270 = tpu.concatenate %239, %240, %241 in 1 : vector<16x32xf32>, vector<16x32xf32>, vector<16x32xf32> -> vector<16x96xf32>
    %271 = arith.truncf %270 : vector<16x96xf32> to vector<16x96xbf16>
    %cst_56 = arith.constant dense<0.000000e+00> : vector<16x64xf32>
    %272 = tpu.matmul %271, %242, %cst_56 {dimension_numbers = #tpu.dot_dimension_numbers<[1], [0], [0], [1], [0, 0, 1, 1], [], []>} : vector<16x96xbf16>, vector<96x64xbf16>, vector<16x64xf32> -> vector<16x64xf32>
    %273 = vector.broadcast %243 : vector<1x64xf32> to vector<16x64xf32>
    %274 = arith.addf %272, %273 : vector<16x64xf32>
    %cst_57 = arith.constant 0.000000e+00 : f32
    %275 = vector.broadcast %cst_57 : f32 to vector<16x64xf32>
    %276 = arith.maximumf %274, %275 : vector<16x64xf32>
    %277 = tpu.concatenate %240, %241, %255 in 1 : vector<16x32xf32>, vector<16x32xf32>, vector<16x32xf32> -> vector<16x96xf32>
    %278 = arith.truncf %277 : vector<16x96xf32> to vector<16x96xbf16>
    %cst_58 = arith.constant dense<0.000000e+00> : vector<16x64xf32>
    %279 = tpu.matmul %278, %242, %cst_58 {dimension_numbers = #tpu.dot_dimension_numbers<[1], [0], [0], [1], [0, 0, 1, 1], [], []>} : vector<16x96xbf16>, vector<96x64xbf16>, vector<16x64xf32> -> vector<16x64xf32>
    %280 = vector.broadcast %243 : vector<1x64xf32> to vector<16x64xf32>
    %281 = arith.addf %279, %280 : vector<16x64xf32>
    %cst_59 = arith.constant 0.000000e+00 : f32
    %282 = vector.broadcast %cst_59 : f32 to vector<16x64xf32>
    %283 = arith.maximumf %281, %282 : vector<16x64xf32>
    %c0_60 = arith.constant 0 : index
    %c0_61 = arith.constant 0 : index
    %284 = vector.load %arg8[%c0_60, %c0_61] : memref<192x64xbf16, #tpu.memory_space<vmem>>, vector<192x64xbf16>
    %c0_62 = arith.constant 0 : index
    %c0_63 = arith.constant 0 : index
    %285 = vector.load %arg9[%c0_62, %c0_63] : memref<1x64xf32, #tpu.memory_space<vmem>>, vector<1x64xf32>
    %c1_i32_64 = arith.constant 1 : i32
    %286 = tpu.dynamic_rotate %283 by %c1_i32_64 dim 0 : vector<16x64xf32>, i32 -> vector<16x64xf32>
    %287 = tpu.iota {dimensions = array<i32: 0>} : vector<16x64xi32>
    %c0_i32_65 = arith.constant 0 : i32
    %288 = vector.broadcast %c0_i32_65 : i32 to vector<16x64xi32>
    %289 = arith.cmpi eq, %287, %288 : vector<16x64xi32>
    %cst_66 = arith.constant 0.000000e+00 : f32
    %290 = vector.broadcast %cst_66 : f32 to vector<16x64xf32>
    %291 = arith.select %289, %290, %286 : vector<16x64xi1>, vector<16x64xf32>
    %c15_i32_67 = arith.constant 15 : i32
    %292 = tpu.dynamic_rotate %262 by %c15_i32_67 dim 0 : vector<16x64xf32>, i32 -> vector<16x64xf32>
    %293 = tpu.iota {dimensions = array<i32: 0>} : vector<16x64xi32>
    %c15_i32_68 = arith.constant 15 : i32
    %294 = vector.broadcast %c15_i32_68 : i32 to vector<16x64xi32>
    %295 = arith.cmpi eq, %293, %294 : vector<16x64xi32>
    %cst_69 = arith.constant 0.000000e+00 : f32
    %296 = vector.broadcast %cst_69 : f32 to vector<16x64xf32>
    %297 = arith.select %295, %296, %292 : vector<16x64xi1>, vector<16x64xf32>
    %298 = tpu.concatenate %291, %262, %269 in 1 : vector<16x64xf32>, vector<16x64xf32>, vector<16x64xf32> -> vector<16x192xf32>
    %299 = arith.truncf %298 : vector<16x192xf32> to vector<16x192xbf16>
    %cst_70 = arith.constant dense<0.000000e+00> : vector<16x64xf32>
    %300 = tpu.matmul %299, %284, %cst_70 {dimension_numbers = #tpu.dot_dimension_numbers<[1], [0], [0], [1], [0, 0, 1, 1], [], []>} : vector<16x192xbf16>, vector<192x64xbf16>, vector<16x64xf32> -> vector<16x64xf32>
    %301 = vector.broadcast %285 : vector<1x64xf32> to vector<16x64xf32>
    %302 = arith.addf %300, %301 : vector<16x64xf32>
    %cst_71 = arith.constant 0.000000e+00 : f32
    %303 = vector.broadcast %cst_71 : f32 to vector<16x64xf32>
    %304 = arith.maximumf %302, %303 : vector<16x64xf32>
    %305 = tpu.concatenate %262, %269, %276 in 1 : vector<16x64xf32>, vector<16x64xf32>, vector<16x64xf32> -> vector<16x192xf32>
    %306 = arith.truncf %305 : vector<16x192xf32> to vector<16x192xbf16>
    %cst_72 = arith.constant dense<0.000000e+00> : vector<16x64xf32>
    %307 = tpu.matmul %306, %284, %cst_72 {dimension_numbers = #tpu.dot_dimension_numbers<[1], [0], [0], [1], [0, 0, 1, 1], [], []>} : vector<16x192xbf16>, vector<192x64xbf16>, vector<16x64xf32> -> vector<16x64xf32>
    %308 = vector.broadcast %285 : vector<1x64xf32> to vector<16x64xf32>
    %309 = arith.addf %307, %308 : vector<16x64xf32>
    %cst_73 = arith.constant 0.000000e+00 : f32
    %310 = vector.broadcast %cst_73 : f32 to vector<16x64xf32>
    %311 = arith.maximumf %309, %310 : vector<16x64xf32>
    %312 = tpu.concatenate %269, %276, %283 in 1 : vector<16x64xf32>, vector<16x64xf32>, vector<16x64xf32> -> vector<16x192xf32>
    %313 = arith.truncf %312 : vector<16x192xf32> to vector<16x192xbf16>
    %cst_74 = arith.constant dense<0.000000e+00> : vector<16x64xf32>
    %314 = tpu.matmul %313, %284, %cst_74 {dimension_numbers = #tpu.dot_dimension_numbers<[1], [0], [0], [1], [0, 0, 1, 1], [], []>} : vector<16x192xbf16>, vector<192x64xbf16>, vector<16x64xf32> -> vector<16x64xf32>
    %315 = vector.broadcast %285 : vector<1x64xf32> to vector<16x64xf32>
    %316 = arith.addf %314, %315 : vector<16x64xf32>
    %cst_75 = arith.constant 0.000000e+00 : f32
    %317 = vector.broadcast %cst_75 : f32 to vector<16x64xf32>
    %318 = arith.maximumf %316, %317 : vector<16x64xf32>
    %319 = tpu.concatenate %276, %283, %297 in 1 : vector<16x64xf32>, vector<16x64xf32>, vector<16x64xf32> -> vector<16x192xf32>
    %320 = arith.truncf %319 : vector<16x192xf32> to vector<16x192xbf16>
    %cst_76 = arith.constant dense<0.000000e+00> : vector<16x64xf32>
    %321 = tpu.matmul %320, %284, %cst_76 {dimension_numbers = #tpu.dot_dimension_numbers<[1], [0], [0], [1], [0, 0, 1, 1], [], []>} : vector<16x192xbf16>, vector<192x64xbf16>, vector<16x64xf32> -> vector<16x64xf32>
    %322 = vector.broadcast %285 : vector<1x64xf32> to vector<16x64xf32>
    %323 = arith.addf %321, %322 : vector<16x64xf32>
    %cst_77 = arith.constant 0.000000e+00 : f32
    %324 = vector.broadcast %cst_77 : f32 to vector<16x64xf32>
    %325 = arith.maximumf %323, %324 : vector<16x64xf32>
    %326 = arith.maximumf %304, %311 : vector<16x64xf32>
    %327 = arith.maximumf %318, %325 : vector<16x64xf32>
    %c0_78 = arith.constant 0 : index
    %c0_79 = arith.constant 0 : index
    %328 = vector.load %arg10[%c0_78, %c0_79] : memref<192x128xbf16, #tpu.memory_space<vmem>>, vector<192x128xbf16>
    %c0_80 = arith.constant 0 : index
    %c0_81 = arith.constant 0 : index
    %329 = vector.load %arg11[%c0_80, %c0_81] : memref<1x128xf32, #tpu.memory_space<vmem>>, vector<1x128xf32>
    %c1_i32_82 = arith.constant 1 : i32
    %330 = tpu.dynamic_rotate %327 by %c1_i32_82 dim 0 : vector<16x64xf32>, i32 -> vector<16x64xf32>
    %331 = tpu.iota {dimensions = array<i32: 0>} : vector<16x64xi32>
    %c0_i32_83 = arith.constant 0 : i32
    %332 = vector.broadcast %c0_i32_83 : i32 to vector<16x64xi32>
    %333 = arith.cmpi eq, %331, %332 : vector<16x64xi32>
    %cst_84 = arith.constant 0.000000e+00 : f32
    %334 = vector.broadcast %cst_84 : f32 to vector<16x64xf32>
    %335 = arith.select %333, %334, %330 : vector<16x64xi1>, vector<16x64xf32>
    %c15_i32_85 = arith.constant 15 : i32
    %336 = tpu.dynamic_rotate %326 by %c15_i32_85 dim 0 : vector<16x64xf32>, i32 -> vector<16x64xf32>
    %337 = tpu.iota {dimensions = array<i32: 0>} : vector<16x64xi32>
    %c15_i32_86 = arith.constant 15 : i32
    %338 = vector.broadcast %c15_i32_86 : i32 to vector<16x64xi32>
    %339 = arith.cmpi eq, %337, %338 : vector<16x64xi32>
    %cst_87 = arith.constant 0.000000e+00 : f32
    %340 = vector.broadcast %cst_87 : f32 to vector<16x64xf32>
    %341 = arith.select %339, %340, %336 : vector<16x64xi1>, vector<16x64xf32>
    %342 = tpu.concatenate %335, %326, %327 in 1 : vector<16x64xf32>, vector<16x64xf32>, vector<16x64xf32> -> vector<16x192xf32>
    %343 = arith.truncf %342 : vector<16x192xf32> to vector<16x192xbf16>
    %cst_88 = arith.constant dense<0.000000e+00> : vector<16x128xf32>
    %344 = tpu.matmul %343, %328, %cst_88 {dimension_numbers = #tpu.dot_dimension_numbers<[1], [0], [0], [1], [0, 0, 1, 1], [], []>} : vector<16x192xbf16>, vector<192x128xbf16>, vector<16x128xf32> -> vector<16x128xf32>
    %345 = vector.broadcast %329 : vector<1x128xf32> to vector<16x128xf32>
    %346 = arith.addf %344, %345 : vector<16x128xf32>
    %cst_89 = arith.constant 0.000000e+00 : f32
    %347 = vector.broadcast %cst_89 : f32 to vector<16x128xf32>
    %348 = arith.maximumf %346, %347 : vector<16x128xf32>
    %349 = tpu.concatenate %326, %327, %341 in 1 : vector<16x64xf32>, vector<16x64xf32>, vector<16x64xf32> -> vector<16x192xf32>
    %350 = arith.truncf %349 : vector<16x192xf32> to vector<16x192xbf16>
    %cst_90 = arith.constant dense<0.000000e+00> : vector<16x128xf32>
    %351 = tpu.matmul %350, %328, %cst_90 {dimension_numbers = #tpu.dot_dimension_numbers<[1], [0], [0], [1], [0, 0, 1, 1], [], []>} : vector<16x192xbf16>, vector<192x128xbf16>, vector<16x128xf32> -> vector<16x128xf32>
    %352 = vector.broadcast %329 : vector<1x128xf32> to vector<16x128xf32>
    %353 = arith.addf %351, %352 : vector<16x128xf32>
    %cst_91 = arith.constant 0.000000e+00 : f32
    %354 = vector.broadcast %cst_91 : f32 to vector<16x128xf32>
    %355 = arith.maximumf %353, %354 : vector<16x128xf32>
    %c0_92 = arith.constant 0 : index
    %c0_93 = arith.constant 0 : index
    %356 = vector.load %arg12[%c0_92, %c0_93] : memref<384x128xbf16, #tpu.memory_space<vmem>>, vector<384x128xbf16>
    %c0_94 = arith.constant 0 : index
    %c0_95 = arith.constant 0 : index
    %357 = vector.load %arg13[%c0_94, %c0_95] : memref<1x128xf32, #tpu.memory_space<vmem>>, vector<1x128xf32>
    %c1_i32_96 = arith.constant 1 : i32
    %358 = tpu.dynamic_rotate %355 by %c1_i32_96 dim 0 : vector<16x128xf32>, i32 -> vector<16x128xf32>
    %359 = tpu.iota {dimensions = array<i32: 0>} : vector<16x128xi32>
    %c0_i32_97 = arith.constant 0 : i32
    %360 = vector.broadcast %c0_i32_97 : i32 to vector<16x128xi32>
    %361 = arith.cmpi eq, %359, %360 : vector<16x128xi32>
    %cst_98 = arith.constant 0.000000e+00 : f32
    %362 = vector.broadcast %cst_98 : f32 to vector<16x128xf32>
    %363 = arith.select %361, %362, %358 : vector<16x128xi1>, vector<16x128xf32>
    %c15_i32_99 = arith.constant 15 : i32
    %364 = tpu.dynamic_rotate %348 by %c15_i32_99 dim 0 : vector<16x128xf32>, i32 -> vector<16x128xf32>
    %365 = tpu.iota {dimensions = array<i32: 0>} : vector<16x128xi32>
    %c15_i32_100 = arith.constant 15 : i32
    %366 = vector.broadcast %c15_i32_100 : i32 to vector<16x128xi32>
    %367 = arith.cmpi eq, %365, %366 : vector<16x128xi32>
    %cst_101 = arith.constant 0.000000e+00 : f32
    %368 = vector.broadcast %cst_101 : f32 to vector<16x128xf32>
    %369 = arith.select %367, %368, %364 : vector<16x128xi1>, vector<16x128xf32>
    %370 = tpu.concatenate %363, %348, %355 in 1 : vector<16x128xf32>, vector<16x128xf32>, vector<16x128xf32> -> vector<16x384xf32>
    %371 = arith.truncf %370 : vector<16x384xf32> to vector<16x384xbf16>
    %cst_102 = arith.constant dense<0.000000e+00> : vector<16x128xf32>
    %372 = tpu.matmul %371, %356, %cst_102 {dimension_numbers = #tpu.dot_dimension_numbers<[1], [0], [0], [1], [0, 0, 1, 1], [], []>} : vector<16x384xbf16>, vector<384x128xbf16>, vector<16x128xf32> -> vector<16x128xf32>
    %373 = vector.broadcast %357 : vector<1x128xf32> to vector<16x128xf32>
    %374 = arith.addf %372, %373 : vector<16x128xf32>
    %cst_103 = arith.constant 0.000000e+00 : f32
    %375 = vector.broadcast %cst_103 : f32 to vector<16x128xf32>
    %376 = arith.maximumf %374, %375 : vector<16x128xf32>
    %377 = tpu.concatenate %348, %355, %369 in 1 : vector<16x128xf32>, vector<16x128xf32>, vector<16x128xf32> -> vector<16x384xf32>
    %378 = arith.truncf %377 : vector<16x384xf32> to vector<16x384xbf16>
    %cst_104 = arith.constant dense<0.000000e+00> : vector<16x128xf32>
    %379 = tpu.matmul %378, %356, %cst_104 {dimension_numbers = #tpu.dot_dimension_numbers<[1], [0], [0], [1], [0, 0, 1, 1], [], []>} : vector<16x384xbf16>, vector<384x128xbf16>, vector<16x128xf32> -> vector<16x128xf32>
    %380 = vector.broadcast %357 : vector<1x128xf32> to vector<16x128xf32>
    %381 = arith.addf %379, %380 : vector<16x128xf32>
    %cst_105 = arith.constant 0.000000e+00 : f32
    %382 = vector.broadcast %cst_105 : f32 to vector<16x128xf32>
    %383 = arith.maximumf %381, %382 : vector<16x128xf32>
    %384 = arith.maximumf %376, %383 : vector<16x128xf32>
    %c0_106 = arith.constant 0 : index
    %c0_107 = arith.constant 0 : index
    %c0_108 = arith.constant 0 : index
    %385 = vector.load %arg14[%c0_106, %c0_107, %c0_108] : memref<1x16x128xf32, #tpu.memory_space<vmem>>, vector<1x16x128xf32>
    %386 = vector.shape_cast %385 : vector<1x16x128xf32> to vector<16x128xf32>
    %387 = vector.shape_cast %384 : vector<16x128xf32> to vector<1x16x128xf32>
    tpu.vector_store %arg14[%c0_106, %c0_107, %c0_108], %387 {strides = array<i32>} : memref<1x16x128xf32, #tpu.memory_space<vmem>>, vector<1x16x128xf32>,
    return
  }
  func.func @transform_0(%arg0: i32) -> (i32, i32, i32) {
    %c0_i32 = arith.constant 0 : i32
    %c0_i32_0 = arith.constant 0 : i32
    %c0_i32_1 = arith.constant 0 : i32
    return %arg0, %c0_i32, %c0_i32_0 : i32, i32, i32
  }
  func.func @transform_1(%arg0: i32) -> (i32, i32) {
    %c0_i32 = arith.constant 0 : i32
    %c0_i32_0 = arith.constant 0 : i32
    %c0_i32_1 = arith.constant 0 : i32
    return %c0_i32, %c0_i32_0 : i32, i32
  }
  func.func @transform_2(%arg0: i32) -> (i32, i32) {
    %c0_i32 = arith.constant 0 : i32
    %c0_i32_0 = arith.constant 0 : i32
    %c0_i32_1 = arith.constant 0 : i32
    return %c0_i32, %c0_i32_0 : i32, i32
  }
  func.func @transform_3(%arg0: i32) -> (i32, i32) {
    %c0_i32 = arith.constant 0 : i32
    %c0_i32_0 = arith.constant 0 : i32
    %c0_i32_1 = arith.constant 0 : i32
    return %c0_i32, %c0_i32_0 : i32, i32
  }
  func.func @transform_4(%arg0: i32) -> (i32, i32) {
    %c0_i32 = arith.constant 0 : i32
    %c0_i32_0 = arith.constant 0 : i32
    %c0_i32_1 = arith.constant 0 : i32
    return %c0_i32, %c0_i32_0 : i32, i32
  }
  func.func @transform_5(%arg0: i32) -> (i32, i32) {
    %c0_i32 = arith.constant 0 : i32
    %c0_i32_0 = arith.constant 0 : i32
    %c0_i32_1 = arith.constant 0 : i32
    return %c0_i32, %c0_i32_0 : i32, i32
  }
  func.func @transform_6(%arg0: i32) -> (i32, i32) {
    %c0_i32 = arith.constant 0 : i32
    %c0_i32_0 = arith.constant 0 : i32
    %c0_i32_1 = arith.constant 0 : i32
    return %c0_i32, %c0_i32_0 : i32, i32
  }
  func.func @transform_7(%arg0: i32) -> (i32, i32) {
    %c0_i32 = arith.constant 0 : i32
    %c0_i32_0 = arith.constant 0 : i32
    %c0_i32_1 = arith.constant 0 : i32
    return %c0_i32, %c0_i32_0 : i32, i32
  }
  func.func @transform_8(%arg0: i32) -> (i32, i32) {
    %c0_i32 = arith.constant 0 : i32
    %c0_i32_0 = arith.constant 0 : i32
    %c0_i32_1 = arith.constant 0 : i32
    return %c0_i32, %c0_i32_0 : i32, i32
  }
  func.func @transform_9(%arg0: i32) -> (i32, i32) {
    %c0_i32 = arith.constant 0 : i32
    %c0_i32_0 = arith.constant 0 : i32
    %c0_i32_1 = arith.constant 0 : i32
    return %c0_i32, %c0_i32_0 : i32, i32
  }
  func.func @transform_10(%arg0: i32) -> (i32, i32) {
    %c0_i32 = arith.constant 0 : i32
    %c0_i32_0 = arith.constant 0 : i32
    %c0_i32_1 = arith.constant 0 : i32
    return %c0_i32, %c0_i32_0 : i32, i32
  }
  func.func @transform_11(%arg0: i32) -> (i32, i32) {
    %c0_i32 = arith.constant 0 : i32
    %c0_i32_0 = arith.constant 0 : i32
    %c0_i32_1 = arith.constant 0 : i32
    return %c0_i32, %c0_i32_0 : i32, i32
  }
  func.func @transform_12(%arg0: i32) -> (i32, i32) {
    %c0_i32 = arith.constant 0 : i32
    %c0_i32_0 = arith.constant 0 : i32
    %c0_i32_1 = arith.constant 0 : i32
    return %c0_i32, %c0_i32_0 : i32, i32
  }
  func.func @transform_13(%arg0: i32) -> (i32, i32, i32) {
    %c0_i32 = arith.constant 0 : i32
    %c0_i32_0 = arith.constant 0 : i32
    %c0_i32_1 = arith.constant 0 : i32
    return %arg0, %c0_i32, %c0_i32_0 : i32, i32, i32
  }
}

module attributes {stable_mosaic.version = 11 : i64} {
  func.func @_linear_kernel(%arg0: i32, %arg1: i32, %arg2: memref<2x1024xf32, #tpu.memory_space<vmem>>, %arg3: memref<1024x1024xbf16, #tpu.memory_space<vmem>>, %arg4: memref<1x1024xf32, #tpu.memory_space<vmem>>, %arg5: memref<2x1024xf32, #tpu.memory_space<vmem>>, %arg6: memref<2x1024xf32, #tpu.memory_space<vmem>>) attributes {dimension_semantics = [#tpu.dimension_semantics<parallel>, #tpu.dimension_semantics<arbitrary>], iteration_bounds = array<i64: 1, 2>, scalar_prefetch = 0 : i64, scratch_operands = 1 : i64, tpu.core_type = #tpu.core_type<tc>, window_params = [{transform_indices = @transform_0, window_bounds = array<i64: 2, 1024>}, {transform_indices = @transform_1, window_bounds = array<i64: 1024, 1024>}, {transform_indices = @transform_2, window_bounds = array<i64: 1, 1024>}, {transform_indices = @transform_3, window_bounds = array<i64: 2, 1024>}]} {
    %c0_i32 = arith.constant 0 : i32
    %0 = arith.cmpi eq, %arg1, %c0_i32 : i32
    %1 = arith.extui %0 : i1 to i32
    %c0_i32_0 = arith.constant 0 : i32
    %2 = arith.cmpi ne, %1, %c0_i32_0 : i32
    scf.if %2 {
      %cst_9 = arith.constant 0.000000e+00 : f32
      %13 = vector.broadcast %cst_9 : f32 to vector<2x1024xf32>
      %c0_10 = arith.constant 0 : index
      %c0_11 = arith.constant 0 : index
      %14 = vector.load %arg6[%c0_10, %c0_11] : memref<2x1024xf32, #tpu.memory_space<vmem>>, vector<2x1024xf32>
      tpu.vector_store %arg6[%c0_10, %c0_11], %13 {strides = array<i32>} : memref<2x1024xf32, #tpu.memory_space<vmem>>, vector<2x1024xf32>,
    } else {
    }
    %c0 = arith.constant 0 : index
    %c0_1 = arith.constant 0 : index
    %3 = vector.load %arg6[%c0, %c0_1] : memref<2x1024xf32, #tpu.memory_space<vmem>>, vector<2x1024xf32>
    %c0_2 = arith.constant 0 : index
    %c0_3 = arith.constant 0 : index
    %4 = vector.load %arg2[%c0_2, %c0_3] : memref<2x1024xf32, #tpu.memory_space<vmem>>, vector<2x1024xf32>
    %5 = arith.truncf %4 : vector<2x1024xf32> to vector<2x1024xbf16>
    %c0_4 = arith.constant 0 : index
    %c0_5 = arith.constant 0 : index
    %6 = vector.load %arg3[%c0_4, %c0_5] : memref<1024x1024xbf16, #tpu.memory_space<vmem>>, vector<1024x1024xbf16>
    %cst = arith.constant dense<0.000000e+00> : vector<2x1024xf32>
    %7 = tpu.matmul %5, %6, %cst {dimension_numbers = #tpu.dot_dimension_numbers<[1], [0], [0], [1], [0, 0, 1, 1], [], []>} : vector<2x1024xbf16>, vector<1024x1024xbf16>, vector<2x1024xf32> -> vector<2x1024xf32>
    %8 = arith.addf %3, %7 : vector<2x1024xf32>
    %c0_6 = arith.constant 0 : index
    %c0_7 = arith.constant 0 : index
    %9 = vector.load %arg6[%c0_6, %c0_7] : memref<2x1024xf32, #tpu.memory_space<vmem>>, vector<2x1024xf32>
    tpu.vector_store %arg6[%c0_6, %c0_7], %8 {strides = array<i32>} : memref<2x1024xf32, #tpu.memory_space<vmem>>, vector<2x1024xf32>,
    %c1_i32 = arith.constant 1 : i32
    %10 = arith.cmpi eq, %arg1, %c1_i32 : i32
    %11 = arith.extui %10 : i1 to i32
    %c0_i32_8 = arith.constant 0 : i32
    %12 = arith.cmpi ne, %11, %c0_i32_8 : i32
    scf.if %12 {
      %c0_9 = arith.constant 0 : index
      %c0_10 = arith.constant 0 : index
      %13 = vector.load %arg6[%c0_9, %c0_10] : memref<2x1024xf32, #tpu.memory_space<vmem>>, vector<2x1024xf32>
      %c0_11 = arith.constant 0 : index
      %c0_12 = arith.constant 0 : index
      %14 = vector.load %arg4[%c0_11, %c0_12] : memref<1x1024xf32, #tpu.memory_space<vmem>>, vector<1x1024xf32>
      %15 = vector.broadcast %14 : vector<1x1024xf32> to vector<2x1024xf32>
      %16 = arith.addf %13, %15 : vector<2x1024xf32>
      %cst_13 = arith.constant 0.000000e+00 : f32
      %17 = vector.broadcast %cst_13 : f32 to vector<2x1024xf32>
      %18 = arith.maximumf %16, %17 : vector<2x1024xf32>
      %c0_14 = arith.constant 0 : index
      %c0_15 = arith.constant 0 : index
      %19 = vector.load %arg5[%c0_14, %c0_15] : memref<2x1024xf32, #tpu.memory_space<vmem>>, vector<2x1024xf32>
      tpu.vector_store %arg5[%c0_14, %c0_15], %18 {strides = array<i32>} : memref<2x1024xf32, #tpu.memory_space<vmem>>, vector<2x1024xf32>,
    } else {
    }
    return
  }
  func.func @transform_0(%arg0: i32, %arg1: i32) -> (i32, i32) {
    %c0_i32 = arith.constant 0 : i32
    %c0_i32_0 = arith.constant 0 : i32
    return %c0_i32, %arg1 : i32, i32
  }
  func.func @transform_1(%arg0: i32, %arg1: i32) -> (i32, i32) {
    %c0_i32 = arith.constant 0 : i32
    return %arg1, %arg0 : i32, i32
  }
  func.func @transform_2(%arg0: i32, %arg1: i32) -> (i32, i32) {
    %c0_i32 = arith.constant 0 : i32
    %c0_i32_0 = arith.constant 0 : i32
    return %c0_i32, %arg0 : i32, i32
  }
  func.func @transform_3(%arg0: i32, %arg1: i32) -> (i32, i32) {
    %c0_i32 = arith.constant 0 : i32
    %c0_i32_0 = arith.constant 0 : i32
    return %c0_i32, %arg0 : i32, i32
  }
}

module attributes {stable_mosaic.version = 11 : i64} {
  func.func @_head_kernel(%arg0: memref<2x1024xf32, #tpu.memory_space<vmem>>, %arg1: memref<1024x512xbf16, #tpu.memory_space<vmem>>, %arg2: memref<1x512xf32, #tpu.memory_space<vmem>>, %arg3: memref<512x2xbf16, #tpu.memory_space<vmem>>, %arg4: memref<1x2xf32, #tpu.memory_space<vmem>>, %arg5: memref<2x2xf32, #tpu.memory_space<vmem>>) attributes {dimension_semantics = [], scalar_prefetch = 0 : i64, scratch_operands = 0 : i64, tpu.core_type = #tpu.core_type<tc>} {
    %c0 = arith.constant 0 : index
    %c0_0 = arith.constant 0 : index
    %0 = vector.load %arg0[%c0, %c0_0] : memref<2x1024xf32, #tpu.memory_space<vmem>>, vector<2x1024xf32>
    %1 = arith.truncf %0 : vector<2x1024xf32> to vector<2x1024xbf16>
    %c0_1 = arith.constant 0 : index
    %c0_2 = arith.constant 0 : index
    %2 = vector.load %arg1[%c0_1, %c0_2] : memref<1024x512xbf16, #tpu.memory_space<vmem>>, vector<1024x512xbf16>
    %cst = arith.constant dense<0.000000e+00> : vector<2x512xf32>
    %3 = tpu.matmul %1, %2, %cst {dimension_numbers = #tpu.dot_dimension_numbers<[1], [0], [0], [1], [0, 0, 1, 1], [], []>} : vector<2x1024xbf16>, vector<1024x512xbf16>, vector<2x512xf32> -> vector<2x512xf32>
    %c0_3 = arith.constant 0 : index
    %c0_4 = arith.constant 0 : index
    %4 = vector.load %arg2[%c0_3, %c0_4] : memref<1x512xf32, #tpu.memory_space<vmem>>, vector<1x512xf32>
    %5 = vector.broadcast %4 : vector<1x512xf32> to vector<2x512xf32>
    %6 = arith.addf %3, %5 : vector<2x512xf32>
    %cst_5 = arith.constant 0.000000e+00 : f32
    %7 = vector.broadcast %cst_5 : f32 to vector<2x512xf32>
    %8 = arith.maximumf %6, %7 : vector<2x512xf32>
    %9 = arith.truncf %8 : vector<2x512xf32> to vector<2x512xbf16>
    %c0_6 = arith.constant 0 : index
    %c0_7 = arith.constant 0 : index
    %10 = vector.load %arg3[%c0_6, %c0_7] : memref<512x2xbf16, #tpu.memory_space<vmem>>, vector<512x2xbf16>
    %cst_8 = arith.constant dense<0.000000e+00> : vector<2x2xf32>
    %11 = tpu.matmul %9, %10, %cst_8 {dimension_numbers = #tpu.dot_dimension_numbers<[1], [0], [0], [1], [0, 0, 1, 1], [], []>} : vector<2x512xbf16>, vector<512x2xbf16>, vector<2x2xf32> -> vector<2x2xf32>
    %c0_9 = arith.constant 0 : index
    %c0_10 = arith.constant 0 : index
    %12 = vector.load %arg4[%c0_9, %c0_10] : memref<1x2xf32, #tpu.memory_space<vmem>>, vector<1x2xf32>
    %13 = vector.broadcast %12 : vector<1x2xf32> to vector<2x2xf32>
    %14 = arith.addf %11, %13 : vector<2x2xf32>
    %cst_11 = arith.constant dense<0xFF800000> : vector<2xf32>
    %15 = vector.multi_reduction <maximumf>, %14, %cst_11 [1] : vector<2x2xf32> to vector<2xf32>
    %16 = vector.shape_cast %15 : vector<2xf32> to vector<2x1xf32>
    %17 = vector.broadcast %16 : vector<2x1xf32> to vector<2x2xf32>
    %18 = arith.subf %14, %17 : vector<2x2xf32>
    %19 = math.exp %18 : vector<2x2xf32>
    %cst_12 = arith.constant dense<0.000000e+00> : vector<2xf32>
    %20 = vector.multi_reduction <add>, %19, %cst_12 [1] : vector<2x2xf32> to vector<2xf32>
    %21 = vector.shape_cast %20 : vector<2xf32> to vector<2x1xf32>
    %22 = vector.broadcast %21 : vector<2x1xf32> to vector<2x2xf32>
    %23 = arith.divf %19, %22 : vector<2x2xf32>
    %c0_13 = arith.constant 0 : index
    %c0_14 = arith.constant 0 : index
    %24 = vector.load %arg5[%c0_13, %c0_14] : memref<2x2xf32, #tpu.memory_space<vmem>>, vector<2x2xf32>
    tpu.vector_store %arg5[%c0_13, %c0_14], %23 {strides = array<i32>} : memref<2x2xf32, #tpu.memory_space<vmem>>, vector<2x2xf32>,
    return
  }
}

</mosaic_0001>

<bundles_post_ra>
// kernel: cnn1d_forward.3
= control target key start
LH: loop header
LB: loop body
LE: loop exit
PB: predicated region body
PF: predicated region fallthrough
CT: control target
= control target key end

     0   :  { %s4105_s0 = inlined_call_operand.vmem [shape: f32[2,16,8], index: 0, kind: input, shape index: {}]   ;;  %s4106_s1 = inlined_call_operand.hbm [shape: f32[3,32], index: 1, kind: input, shape index: {}]   ;;  %s4107_s2 = inlined_call_operand.hbm [shape: f32[1,32], index: 2, kind: input, shape index: {}]   ;;  %s4108_s3 = inlined_call_operand.vmem [shape: bf16[96,32], index: 3, kind: input, shape index: {}]   ;;  %s4109_s4 = inlined_call_operand.hbm [shape: f32[1,32], index: 4, kind: input, shape index: {}]   ;;  %s4110_s5 = inlined_call_operand.vmem [shape: bf16[96,64], index: 5, kind: input, shape index: {}]   ;;  %s4111_s6 = inlined_call_operand.hbm [shape: f32[1,64], index: 6, kind: input, shape index: {}]   ;;  %s4112_s7 = inlined_call_operand.vmem [shape: bf16[192,64], index: 7, kind: input, shape index: {}]   ;;  %s4113_s8 = inlined_call_operand.hbm [shape: f32[1,64], index: 8, kind: input, shape index: {}]   ;;  %s4114_s9 = inlined_call_operand.hbm [shape: bf16[192,128], index: 9, kind: input, shape index: {}]   ;;  %s4115_s10 = inlined_call_operand.hbm [shape: f32[1,128], index: 10, kind: input, shape index: {}]   ;;  %s4116_s11 = inlined_call_operand.hbm [shape: bf16[384,128], index: 11, kind: input, shape index: {}]   ;;  %s4117_s12 = inlined_call_operand.hbm [shape: f32[1,128], index: 12, kind: input, shape index: {}]   ;;  %s4118_s13 = inlined_call_operand.vmem [shape: f32[2,16,128], index: 13, kind: output, shape index: {}]  }
   0x1   :  { %4119 = sst [smem:[#allocation21_spill]] %s4107_s2 }
   0x2   :  { %4120 = sst [smem:[#allocation22_spill]] %s4111_s6 }
   0x3   :  { %18 = vsyncpa [#allocation3], 0 }
   0x4   :  { %19 = vsyncpa [#allocation5], 0 }
   0x5   :  { %20 = vsyncpa [#allocation8], 0 }
   0x6   :  { %21 = vsyncpa [#allocation11], 0 }
   0x7   :  { %22 = vsyncpa [#allocation14], 0  ;;  %s3391_s25 = smov 0  }
   0x8 LB: > { %s4121_s2 = sld [smem:[#allocation21_spill]]  ;;  %s3400_s29 = sadd.s32 4294967295, %s3296_s25   ;;  %s3296_s25 = sphi %s3391_s25, %s28_s25  }
   0x9   : > { %p2358_p0 = scmp.ge.s32.totalorder %s3296_s25, 1  ;;  %p337_p1 = scmp.lt.s32.totalorder %s3296_s25, 3 }
   0xa   : > { %p2777_p2 = scmp.eq.s32.totalorder %s3400_s29, 0  ;;  %s3298_s14 = smov [#allocation4]  }
   0xb   : > { %p3405_p3 = pnand %p2358_p0, %p337_p1  ;;  %s363_s15 = sshll.u32 %s3298_s14, 4  ;;  %s364_s15 = int_to_ptr.vmem [resolvable:$true] %s363_s15 }
   0xc   : > { %s4123_s6 = sld [smem:[#allocation22_spill]]  ;;  %s417_s21 = sshll.u32 %s4114_s9, 4  ;;  %s418_s21 = int_to_ptr.hbm [resolvable:$true] %s417_s21 }
   0xd   : > { %p2749_p4 = pneg %p3405_p3  ;;  %s3299_s23 = smov [#allocation7]  }
   0xe   : > { %s361_s28 = sshll.u32 %s4121_s2, 4  ;;  %s393_s24 = sshll.u32 %s3299_s23, 4  ;;  %s362_s28 = int_to_ptr.hbm [resolvable:$true] %s361_s28  ;;  %s394_s24 = int_to_ptr.vmem [resolvable:$true] %s393_s24 }
   0xf   : > { %p3419_p5 = pnand %p2777_p2, %p2749_p4  ;;  %s3300_s26 = smov [#allocation10]  }
  0x10   : > { %s419_s27 = sshll.u32 %s3300_s26, 4  ;;  %s3301_s14 = smov 64   ;;  %s420_s27 = int_to_ptr.vmem [resolvable:$true] %s419_s27 }
  0x11   : > { %2755 = dma.hbm_to_vmem [thread:$0]  (!%p3419_p5), %s362_s28, 16, %s364_s15, [#allocation5]  }
  0x12   : > { %s391_s18 = sshll.u32 %s4123_s6, 4  ;;  %s3302_s16 = smov 4   ;;  %s392_s18 = int_to_ptr.hbm [resolvable:$true] %s391_s18 }
  0x13   : > { %2761 = dma.hbm_to_vmem [thread:$0]  (!%p3419_p5), %s392_s18, 16, %s394_s24, [#allocation8]  }
  0x14   : > { %2767 = dma.hbm_to_vmem [thread:$0]  (!%p3419_p5), %s418_s21, 1536, %s420_s27, [#allocation11], %s3301_s14, %s3301_s14, %s3302_s16  }
  0x15   : > { %s443_s20 = sshll.u32 %s4116_s11, 4  ;;  %s3303_s23 = smov [#allocation13]   ;;  %s444_s20 = int_to_ptr.hbm [resolvable:$true] %s443_s20 }
  0x16   : > { %s445_s2 = sshll.u32 %s3303_s23, 4  ;;  %s349_s18 = sshll.u32 %s4106_s1, 4  ;;  %s446_s2 = int_to_ptr.vmem [resolvable:$true] %s445_s2  ;;  %s350_s18 = int_to_ptr.hbm [resolvable:$true] %s349_s18 }
  0x17   : > { %2773 = dma.hbm_to_vmem [thread:$0]  (!%p3419_p5), %s444_s20, 3072, %s446_s2, [#allocation14], %s3301_s14, %s3301_s14, %s3302_s16  }
  0x18   : > { %s3304_s24 = smov [#allocation2]   ;;  %s376_s27 = sshll.u32 %s4109_s4, 4  ;;  %s377_s27 = int_to_ptr.hbm [resolvable:$true] %s376_s27 }
  0x19   : > { %s351_s26 = sshll.u32 %s3304_s24, 4  ;;  %s406_s23 = sshll.u32 %s4113_s8, 4  ;;  %s352_s26 = int_to_ptr.vmem [resolvable:$true] %s351_s26  ;;  %s407_s23 = int_to_ptr.hbm [resolvable:$true] %s406_s23 }
  0x1a   : > { %2752 = dma.hbm_to_vmem [thread:$0]  (!%p3419_p5), %s350_s18, 64, %s352_s26, [#allocation3]  }
  0x1b   : > { %s3305_s28 = smov [#allocation6]   ;;  %s3306_s2 = smov [#allocation9]  }
  0x1c   : > { %s378_s15 = sshll.u32 %s3305_s28, 4  ;;  %s408_s6 = sshll.u32 %s3306_s2, 4  ;;  %s379_s15 = int_to_ptr.vmem [resolvable:$true] %s378_s15  ;;  %s409_s6 = int_to_ptr.vmem [resolvable:$true] %s408_s6 }
  0x1d   : > { %2758 = dma.hbm_to_vmem [thread:$0]  (!%p3419_p5), %s377_s27, 16, %s379_s15, [#allocation5]  }
  0x1e   : > { %s432_s20 = sshll.u32 %s4115_s10, 4  ;;  %s458_s26 = sshll.u32 %s4117_s12, 4  ;;  %s433_s20 = int_to_ptr.hbm [resolvable:$true] %s432_s20  ;;  %s459_s26 = int_to_ptr.hbm [resolvable:$true] %s458_s26 }
  0x1f   : > { %2764 = dma.hbm_to_vmem [thread:$0]  (!%p3419_p5), %s407_s23, 16, %s409_s6, [#allocation8]  }
  0x20   : > { %s3307_s21 = smov [#allocation12]   ;;  %s3308_s27 = smov [#allocation15]  }
  0x21   : > { %s434_s17 = sshll.u32 %s3307_s21, 4  ;;  %s460_s19 = sshll.u32 %s3308_s27, 4  ;;  %s435_s17 = int_to_ptr.vmem [resolvable:$true] %s434_s17  ;;  %s461_s19 = int_to_ptr.vmem [resolvable:$true] %s460_s19 }
  0x22   : > { %2770 = dma.hbm_to_vmem [thread:$0]  (!%p3419_p5), %s433_s20, 16, %s435_s17, [#allocation11]  }
  0x23   : > { %2776 = dma.hbm_to_vmem [thread:$0]  (!%p3419_p5), %s459_s26, 16, %s461_s19, [#allocation14]  }
  0x24   : > { %481 = sbr.rel (%p3405_p3) target bundleno = 1578 (0x62a), region = 72 }
  0x29   : > { %3275 = dma.done.wait (%p2777_p2), [#allocation3], 64  }
  0x2a   : > { %3277 = vsyncadd (%p2777_p2), [#allocation3], 4294967232 }
  0x2b   : > { %3279 = dma.done.wait (%p2777_p2), [#allocation5], 32  }
  0x2c   : > { %3281 = vsyncadd (%p2777_p2), [#allocation5], 4294967264 }
  0x2d   : > { %3283 = dma.done.wait (%p2777_p2), [#allocation8], 32  }
  0x2e   : > { %3285 = vsyncadd (%p2777_p2), [#allocation8], 4294967264 }
  0x2f   : > { %3287 = dma.done.wait (%p2777_p2), [#allocation11], 1552  }
  0x30   : > { %3289 = vsyncadd (%p2777_p2), [#allocation11], 4294965744 }
  0x31   : > { %3291 = dma.done.wait (%p2777_p2), [#allocation14], 3088  }
  0x32   : > { %3293 = vsyncadd (%p2777_p2), [#allocation14], 4294964208  ;;  %p566_p6 = scmp.lt.s32.totalorder %s3400_s29, 1  ;;  %v3309_v0 = vmov 1   ;;  %v3310_v1 = vmov 0   ;;  %s3311_s15 = smov 121   ;;  %v591_v9 = vlaneseq }
  0x33   : > { %2828 = vset.pattern.permute.xlu1 %v3309_v0  ;;  %2827 = vset.pattern.permute.xlu0 %v3309_v0  ;;  %v3312_v4 = vmov 2   ;;  %v3313_v5 = vmov 4   ;;  %v3314_v6 = vmov 3   ;;  %v3315_v7 = vmov 5   ;;  %v579_v21 = vld [vmem:[#allocation2] sm:$0x7] }
  0x34   : > { %s4126_s29 = smov (!%p566_p6, %s3400_s29), 1  ;;  %2826 = vset.pattern.permute.xlu2 %v3310_v1  ;;  %v3316_v10 = vmov 6   ;;  %v3317_v11 = vmov 7   ;;  %v3515_v12 = vshrl.u32 %v591_v9, 7  ;;  %v3534_v23 = vperm.slane %v579_v21, 0  ;;  %s3318_s2 = smov 32  }
  0x35   : > { %s2651_s30 = sshll.u32 %s4126_s29, 4  ;;  %v3536_v24 = vperm.slane %v579_v21, 1  ;;  %v3540_v27 = vperm.slane %v579_v21, 2  ;;  %v3551_v38 = vld [vmem:[#allocation4] ss:$0 sm:$0xff]  ;;  %s3319_s6 = smov 64  }
  0x36   : > { %s570_s28 = scalar_lea.vmem %s4105_s0, %s2651_s30  ;;  %v3518_v13 = vadd.s32 8, %v3515_v12  ;;  %vm603_vm0 = vcmp.lt.s32.totalorder %v3515_v12, 7  ;;  %vm593_vm2 = vcmp.lt.s32.totalorder %v3515_v12, 1  ;;  %vm597_vm3 = vcmp.eq.s32.totalorder %v3515_v12, 0  ;;  %s575_s24 = scalar_lea.vmem %s4118_s13, %s2651_s30 }
  0x37   : > { %v3491_v2 = vld [vmem:[%s570_s28] sm:$0xff]  ;;  %v3493_v3 = vld [vmem:[%s570_s28 + $0x8] sm:$0xff]  ;;  %vm853_vm4 = vcmask 261120   ;;  %vm856_vm5 = vcmask 523264   ;;  %vm899_vm6 = vcmask 785408   ;;  %vm3320_vm8 = vmmov 1   ;;  %vm2641_vm10 = vmneg %vm597_vm3 }
  0x38   : > { %583 = vrot.lane.b32.xlu0 %v3491_v2, %s3311_s15  ;;  %641 = vperm.xlu1 %2828, %v3493_v3   ;;  %v601_v14 = vrot.slane %v3491_v2, 1  ;;  %v602_v15 = vrot.slane %v3493_v3, 1  ;;  %vm607_vm1 = vcmp.eq.s32.totalorder %v3518_v13, 15  ;;  %vm2642_vm11 = vmpackc.low %vm3320_vm8, %vm2641_vm10 }
  0x39   : > { %624 = vperm.xlu2 %2826, %v3491_v2   ;;  %vm2645_vm7 = vmneg %vm607_vm1 }
  0x3a   : > { %v605_v16 = vsel %vm603_vm0, %v602_v15, %v601_v14  ;;  %v604_v19 = vsel %vm603_vm0, %v601_v14, %v602_v15  ;;  %vm2646_vm9 = vmpackc.low %vm2645_vm7, %vm3320_vm8 }
  0x3b   : > { %v609_v18 = vsel %vm607_vm1, 0.0, %v605_v16 }
  0x40   : > { %585 = vrot.lane.b32.xlu0 %v3493_v3, %s3311_s15  ;;  %2830 = vset.pattern.permute.xlu1 %v3312_v4 }
  0x41   : > { %667 = vperm.xlu1 %2830, %v3493_v3   ;;  %628 = vperm.xlu2 %2826, %v3493_v3  }
  0x48   : > { %637 = vperm.xlu0 %2827, %v3491_v2  }
  0x49   : > { %2829 = vset.pattern.permute.xlu2 %v3312_v4  ;;  %2833 = vset.pattern.permute.xlu1 %v3313_v5 }
  0x4a   : > { %663 = vperm.xlu2 %2829, %v3491_v2   ;;  %707 = vperm.xlu1 %2833, %v3491_v2  }
  0x50   : > { %2832 = vset.pattern.permute.xlu0 %v3314_v6 }
  0x51   : > { %689 = vperm.xlu0 %2832, %v3493_v3  }
  0x52   : > { %2831 = vset.pattern.permute.xlu2 %v3314_v6  ;;  %2835 = vset.pattern.permute.xlu1 %v3310_v1 }
  0x53   : > { %685 = vperm.xlu2 %2831, %v3491_v2  }
  0x59   : > { %2838 = vset.pattern.permute.xlu0 %v3316_v10 }
  0x5a   : > { %751 = vperm.xlu0 %2838, %v3491_v2  }
  0x5b   : > { %2834 = vset.pattern.permute.xlu2 %v3313_v5 }
  0x5c   : > { %711 = vperm.xlu2 %2834, %v3493_v3  }
  0x62   : > { %2843 = vset.pattern.permute.xlu0 %v3310_v1 }
  0x63   : > { %801 = vperm.xlu0 %2843, %v609_v18  }
  0x64   : > { %2837 = vset.pattern.permute.xlu2 %v3315_v7 }
  0x65   : > { %733 = vperm.xlu2 %2837, %v3493_v3  }
  0x6d   : > { %2840 = vset.pattern.permute.xlu2 %v3317_v11 }
  0x6e   : > { %773 = vperm.xlu2 %2840, %v3491_v2  }
  0x76   : > { %2842 = vset.pattern.permute.xlu2 %v3310_v1 }
  0x77   : > { %796 = vperm.xlu2 %2842, %v604_v19  }
  0x93   : > { %v3509_v8 = vpop.permute.xlu2 %624 }
  0x94   : > { %v656_v36 = vmul.f32 %v3509_v8, %v3534_v23 }
  0x9b   : > { %v3526_v17 = vpop.permute.xlu2 %628 }
  0x9c   : > { %v657_v26 = vmul.f32 %v3526_v17, %v3534_v23 }
  0xa4   : > { %v664_v25 = vpop.permute.xlu2 %663 }
  0xa5   : > { %v680_v37 = vmul.f32 %v664_v25, %v3536_v24  ;;  %v670_v43 = vmul.f32 %v664_v25, %v3540_v27  ;;  %v700_v53 = vmul.f32 %v664_v25, %v3534_v23 }
  0xaa   : > { %v584_v20 = vpop.permute.xlu0 %583  ;;  %v3532_v22 = vpop.permute.xlu1 %641 }
  0xab   : > { %v659_v28 = vmul.f32 %v3532_v22, %v3536_v24  ;;  %v589_v30 = vrot.slane %v584_v20, 7  ;;  %v679_v51 = vmul.f32 %v3532_v22, %v3534_v23 }
  0xad   : > { %v661_v34 = vadd.f32 %v659_v28, %v657_v26  ;;  %v3553_v40 = vpop.permute.xlu2 %685 }
  0xae   : > { %v692_v46 = vmul.f32 %v3553_v40, %v3540_v27  ;;  %v702_v55 = vmul.f32 %v3553_v40, %v3536_v24 }
  0xb0   : > { %v704_v63 = vadd.f32 %v702_v55, %v700_v53 }
  0xb2   : > { %v586_v29 = vpop.permute.xlu0 %585 }
  0xb3   : > { %v590_v31 = vrot.slane %v586_v29, 7  ;;  %v668_v32 = vpop.permute.xlu1 %667 }
  0xb4   : > { %v671_v35 = vmul.f32 %v668_v32, %v3540_v27  ;;  %v681_v52 = vmul.f32 %v668_v32, %v3536_v24  ;;  %v701_v62 = vmul.f32 %v668_v32, %v3534_v23  ;;  %v2657_v32 = vld [vmem:[%s4108_s3 + $0x20] sm:$0xff] }
  0xb5   : > { %v594_v33 = vsel %vm593_vm2, %v589_v30, %v590_v31  ;;  %v595_v42 = vsel %vm593_vm2, %v590_v31, %v589_v30 }
  0xb6   : > { %617 = vperm.xlu1 %2835, %v594_v33   ;;  %v673_v39 = vadd.f32 %v671_v35, %v661_v34  ;;  %v599_v49 = vsel %vm597_vm3, 0.0, %v595_v42  ;;  %v3584_v60 = vpop.permute.xlu2 %711  ;;  %v683_v61 = vadd.f32 %v681_v52, %v679_v51  ;;  %v2655_v33 = vld [vmem:[%s4108_s3 + $0x10] sm:$0xff]  ;;  %v2654_v34 = vld [vmem:[%s4108_s3 + $0x8] sm:$0xff]  ;;  %v633_v42 = vmul.f32 %v3536_v24, %v3526_v17 }
  0xb7   : > { %v715_v14 = vmul.f32 %v3584_v60, %v3540_v27  ;;  %v725_v17 = vmul.f32 %v3584_v60, %v3536_v24 }
  0xb8   : > { %v3570_v50 = vadd.f32 %v3551_v38, %v673_v39 }
  0xba   : > { %v3555_v41 = vpop.permute.xlu0 %637  ;;  %v677_v58 = vmax.f32 %v3570_v50, 0.0 }
  0xbb   : > { %v658_v44 = vmul.f32 %v3555_v41, %v3536_v24  ;;  %v678_v45 = vmul.f32 %v3555_v41, %v3534_v23 }
  0xbc   : > { %v3578_v57 = vpop.permute.xlu1 %707 }
  0xbd   : > { %v660_v47 = vadd.f32 %v658_v44, %v656_v36  ;;  %v682_v48 = vadd.f32 %v680_v37, %v678_v45  ;;  %v714_v4 = vmul.f32 %v3578_v57, %v3540_v27  ;;  %v2653_v36 = vld [vmem:[%s4108_s3] sm:$0xff]  ;;  %v646_v44 = vmul.f32 %v3540_v27, %v3532_v22 }
  0xbe   : > { %612 = vperm.xlu1 %2835, %v599_v49   ;;  %v632_v22 = vmul.f32 %v3536_v24, %v3509_v8  ;;  %v724_v8 = vmul.f32 %v3578_v57, %v3536_v24 }
  0xbf   : > { %v672_v54 = vadd.f32 %v670_v43, %v660_v47  ;;  %v694_v56 = vadd.f32 %v692_v46, %v682_v48  ;;  %v716_v19 = vadd.f32 %v714_v4, %v704_v63 }
  0xc1   : > { %v3582_v59 = vadd.f32 %v3551_v38, %v672_v54  ;;  %v3593_v5 = vadd.f32 %v3551_v38, %v694_v56  ;;  %v3614_v28 = vadd.f32 %v3551_v38, %v716_v19  ;;  %v645_v56 = vmul.f32 %v3540_v27, %v3555_v41 }
  0xc3   : > { %v3587_v0 = vpop.permute.xlu0 %689  ;;  %v676_v1 = vmax.f32 %v3582_v59, 0.0  ;;  %v698_v20 = vmax.f32 %v3593_v5, 0.0 }
  0xc4   : > { %v693_v6 = vmul.f32 %v3587_v0, %v3540_v27  ;;  %v703_v9 = vmul.f32 %v3587_v0, %v3536_v24  ;;  %v723_v49 = vmul.f32 %v3587_v0, %v3534_v23 }
  0xc5   : > { %v2844_v15 = vpack.i.bf16 %v677_v58, %v676_v1 }
  0xc6   : > { %v695_v16 = vadd.f32 %v693_v6, %v683_v61  ;;  %v705_v18 = vadd.f32 %v703_v9, %v701_v62  ;;  %2836 = vset.pattern.permute.xlu1 %v3315_v7  ;;  %v720_v7 = vmax.f32 %v3614_v28, 0.0  ;;  %v727_v54 = vadd.f32 %v725_v17, %v723_v49 }
  0xc7   : > { %729 = vperm.xlu1 %2836, %v3491_v2   ;;  %2845 = vrot.lane.b32.xlu2 %v2844_v15, %s3318_s2  ;;  %v722_v62 = vmul.f32 %v3553_v40, %v3534_v23 }
  0xc8   : > { %v3610_v21 = vadd.f32 %v3551_v38, %v695_v16  ;;  %v717_v25 = vadd.f32 %v715_v14, %v705_v18  ;;  %v744_v16 = vmul.f32 %v3578_v57, %v3534_v23 }
  0xc9   : > { %v726_v40 = vadd.f32 %v724_v8, %v722_v62 }
  0xca   : > { %v699_v26 = vmax.f32 %v3610_v21, 0.0  ;;  %v3617_v29 = vadd.f32 %v3551_v38, %v717_v25 }
  0xcc   : > { %v2859_v2 = vpack.i.bf16 %v699_v26, %v698_v20  ;;  %v721_v30 = vmax.f32 %v3617_v29, 0.0  ;;  %v3667_v47 = vpop.permute.xlu0 %751 }
  0xce   : > { %2860 = vrot.lane.b32.xlu0 %v2859_v2, %s3318_s2  ;;  %v2869_v31 = vpack.i.bf16 %v721_v30, %v720_v7 }
  0xcf   : > { %2839 = vset.pattern.permute.xlu1 %v3316_v10  ;;  %2855 = vrot.lane.b32.xlu2 %v2859_v2, %s3319_s6  ;;  %v2658_v10 = vld [vmem:[%s4108_s3 + $0x28] sm:$0xff] }
  0xd0   : > { %755 = vperm.xlu1 %2839, %v3493_v3   ;;  %943 = vmatpush.bf16.msra.mxu1 %v2658_v10 }
  0xd1   : > { %981 = vmatpush.bf16.msra.mxu2 %v2658_v10  ;;  %905 = vmatpush.bf16.msra.mxu0 %v2658_v10 }
  0xd2   : > { %1019 = vmatpush.bf16.msra.mxu3 %v2658_v10 }
  0xd4   : > { %944 = vmatpush.bf16.msra.mxu1 %v2657_v32 }
  0xd5   : > { %982 = vmatpush.bf16.msra.mxu2 %v2657_v32  ;;  %906 = vmatpush.bf16.msra.mxu0 %v2657_v32  ;;  %v3685_v14 = vpop.permute.xlu0 %801 }
  0xd6   : > { %1020 = vmatpush.bf16.msra.mxu3 %v2657_v32 }
  0xd7   : > { %2870 = vrot.lane.b32.xlu2 %v2869_v31, %s3319_s6 }
  0xd8   : > { %2841 = vset.pattern.permute.xlu1 %v3317_v11  ;;  %v3644_v11 = vpop.permute.xlu2 %733 }
  0xd9   : > { %777 = vperm.xlu1 %2841, %v3493_v3   ;;  %v2656_v3 = vld [vmem:[%s4108_s3 + $0x18] sm:$0xff]  ;;  %v737_v55 = vmul.f32 %v3644_v11, %v3540_v27 }
  0xda   : > { %945 = vmatpush.bf16.msra.mxu1 %v2656_v3  ;;  %983 = vmatpush.bf16.msra.mxu2 %v2656_v3 }
  0xdb   : > { %907 = vmatpush.bf16.msra.mxu0 %v2656_v3  ;;  %1021 = vmatpush.bf16.msra.mxu3 %v2656_v3  ;;  %v739_v9 = vadd.f32 %v737_v55, %v727_v54  ;;  %v747_v54 = vmul.f32 %v3644_v11, %v3536_v24 }
  0xde   : > { %946 = vmatpush.bf16.msra.mxu1 %v2655_v33  ;;  %984 = vmatpush.bf16.msra.mxu2 %v2655_v33 }
  0xdf   : > { %908 = vmatpush.bf16.msra.mxu0 %v2655_v33  ;;  %1022 = vmatpush.bf16.msra.mxu3 %v2655_v33 }
  0xe0   : > { %v3655_v35 = vpop.permute.xlu2 %773 }
  0xe1   : > { %2850 = vrot.lane.b32.xlu1 %v2844_v15, %s3319_s6 }
  0xe2   : > { %947 = vmatpush.bf16.msra.mxu1 %v2654_v34  ;;  %985 = vmatpush.bf16.msra.mxu2 %v2654_v34 }
  0xe3   : > { %909 = vmatpush.bf16.msra.mxu0 %v2654_v34  ;;  %1023 = vmatpush.bf16.msra.mxu3 %v2654_v34 }
  0xe6   : > { %948 = vmatpush.bf16.msra.mxu1 %v2653_v36  ;;  %986 = vmatpush.bf16.msra.mxu2 %v2653_v36 }
  0xe7   : > { %910 = vmatpush.bf16.msra.mxu0 %v2653_v36  ;;  %1024 = vmatpush.bf16.msra.mxu3 %v2653_v36 }
  0xe8   : > { %v3660_v37 = vpop.permute.xlu2 %796 }
  0xe9   : > { %2865 = vrot.lane.b32.xlu1 %v2869_v31, %s3318_s2  ;;  %v804_v59 = vmul.f32 %v3660_v37, %v3540_v27  ;;  %v805_v37 = vmul.f32 %v3685_v14, %v3540_v27 }
  0xea   : > { %1095 = vmatpush.bf16.msrb.mxu1 %v2658_v10  ;;  %1133 = vmatpush.bf16.msrb.mxu2 %v2658_v10 }
  0xeb   : > { %1057 = vmatpush.bf16.msrb.mxu0 %v2658_v10  ;;  %1171 = vmatpush.bf16.msrb.mxu3 %v2658_v10  ;;  %v3692_v10 = vadd.f32 %v3551_v38, %v739_v9  ;;  %v788_v9 = vmul.f32 %v3667_v47, %v3534_v23 }
  0xee   : > { %1096 = vmatpush.bf16.msrb.mxu1 %v2657_v32  ;;  %1134 = vmatpush.bf16.msrb.mxu2 %v2657_v32 }
  0xef   : > { %1058 = vmatpush.bf16.msrb.mxu0 %v2657_v32  ;;  %1172 = vmatpush.bf16.msrb.mxu3 %v2657_v32  ;;  %v758_v32 = vmul.f32 %v3667_v47, %v3540_v27 }
  0xf2   : > { %1097 = vmatpush.bf16.msrb.mxu1 %v2656_v3  ;;  %1135 = vmatpush.bf16.msrb.mxu2 %v2656_v3 }
  0xf3   : > { %1059 = vmatpush.bf16.msrb.mxu0 %v2656_v3  ;;  %1173 = vmatpush.bf16.msrb.mxu3 %v2656_v3 }
  0xf6   : > { %1098 = vmatpush.bf16.msrb.mxu1 %v2655_v33  ;;  %1136 = vmatpush.bf16.msrb.mxu2 %v2655_v33 }
  0xf7   : > { %1060 = vmatpush.bf16.msrb.mxu0 %v2655_v33  ;;  %1174 = vmatpush.bf16.msrb.mxu3 %v2655_v33 }
  0xfa   : > { %1099 = vmatpush.bf16.msrb.mxu1 %v2654_v34  ;;  %1137 = vmatpush.bf16.msrb.mxu2 %v2654_v34 }
  0xfb   : > { %1061 = vmatpush.bf16.msrb.mxu0 %v2654_v34  ;;  %1175 = vmatpush.bf16.msrb.mxu3 %v2654_v34 }
  0xfe   : > { %1100 = vmatpush.bf16.msrb.mxu1 %v2653_v36  ;;  %1138 = vmatpush.bf16.msrb.mxu2 %v2653_v36 }
  0xff   : > { %1062 = vmatpush.bf16.msrb.mxu0 %v2653_v36  ;;  %1176 = vmatpush.bf16.msrb.mxu3 %v2653_v36 }
 0x121   : > { %v2846_v46 = vpop.permute.xlu2 %2845 }
 0x122   : > { %v2848_v0 = vunpack.i.h.bf16 %v2846_v46  ;;  %v2847_v15 = vunpack.i.l.bf16 %v2846_v46 }
 0x128   : > { %v618_v39 = vpop.permute.xlu1 %617 }
 0x129   : > { %v622_v43 = vmul.f32 %v3534_v23, %v618_v39  ;;  %v2856_v6 = vpop.permute.xlu2 %2855 }
 0x12a   : > { %v2858_v18 = vunpack.i.h.bf16 %v2856_v6  ;;  %v2857_v19 = vunpack.i.l.bf16 %v2856_v6 }
 0x12b   : > { %v635_v45 = vadd.f32 %v633_v42, %v622_v43 }
 0x12d   : > { %v648_v48 = vadd.f32 %v646_v44, %v635_v45 }
 0x12f   : > { %v653_v52 = vadd.f32 %v3551_v38, %v648_v48 }
 0x130   : > { %v613_v51 = vpop.permute.xlu1 %612 }
 0x131   : > { %v621_v53 = vmul.f32 %v3534_v23, %v613_v51  ;;  %v655_v63 = vmax.f32 %v653_v52, 0.0  ;;  %v2871_v48 = vpop.permute.xlu2 %2870  ;;  %v745_v52 = vmul.f32 %v3584_v60, %v3534_v23  ;;  %v768_v60 = vmul.f32 %v3667_v47, %v3536_v24 }
 0x132   : > { %v2873_v8 = vunpack.i.h.bf16 %v2871_v48 }
 0x133   : > { %v634_v61 = vadd.f32 %v632_v22, %v621_v53  ;;  %v934_v25 = vsel %vm853_vm4, %v655_v63, %v2848_v0  ;;  %v832_v39 = vrot.slane %v655_v63, 1  ;;  %v743_v53 = vmax.f32 %v3692_v10, 0.0 }
 0x134   : > { %v936_v44 = vsel %vm856_vm5, %v934_v25, %v2858_v18  ;;  %v749_v18 = vadd.f32 %v747_v54, %v745_v52 }
 0x135   : > { %v647_v4 = vadd.f32 %v645_v56, %v634_v61  ;;  %v790_v56 = vmul.f32 %v3655_v35, %v3536_v24 }
 0x137   : > { %v652_v41 = vadd.f32 %v3551_v38, %v647_v4 }
 0x139   : > { %v654_v2 = vmax.f32 %v652_v41, 0.0  ;;  %v730_v31 = vpop.permute.xlu1 %729 }
 0x13a   : > { %v736_v3 = vmul.f32 %v730_v31, %v3540_v27  ;;  %v746_v33 = vmul.f32 %v730_v31, %v3536_v24 }
 0x13b   : > { %v2879_v34 = vpack.i.bf16 %v655_v63, %v654_v2  ;;  %v933_v57 = vsel %vm853_vm4, %v654_v2, %v2847_v15  ;;  %v831_v36 = vrot.slane %v654_v2, 1  ;;  %v2872_v63 = vunpack.i.l.bf16 %v2871_v48 }
 0x13c   : > { %v738_v42 = vadd.f32 %v736_v3, %v726_v40  ;;  %v935_v43 = vsel %vm856_vm5, %v933_v57, %v2857_v19  ;;  %v748_v45 = vadd.f32 %v746_v33, %v744_v16  ;;  %v766_v15 = vmul.f32 %v730_v31, %v3534_v23 }
 0x13d   : > { %2880 = vrot.lane.b32.xlu1 %v2879_v34, %s3318_s2  ;;  %v937_v46 = vpack.c.bf16 %v936_v44, %v935_v43  ;;  %v3704_v49 = vsel %vm603_vm0, %v831_v36, %v832_v39  ;;  %v834_v17 = vsel %vm603_vm0, %v832_v39, %v831_v36  ;;  %v767_v39 = vmul.f32 %v3644_v11, %v3534_v23 }
 0x13e   : > { %v3709_v51 = vadd.f32 %v3551_v38, %v738_v42  ;;  %v3713_v22 = vsel %vm607_vm1, 0.0, %v834_v17  ;;  %v760_v0 = vadd.f32 %v758_v32, %v748_v45  ;;  %v770_v3 = vadd.f32 %v768_v60, %v766_v15 }
 0x13f   : > { %2408 = vmatmul.msk.bf16.vlgmr.msra.gmra.mxu1 %vm899_vm6, %v937_v46  ;;  %v2919_v55 = vpack.i.bf16 %v3713_v22, %v3704_v49 }
 0x140   : > { %v742_v61 = vmax.f32 %v3709_v51, 0.0  ;;  %v2861_v62 = vpop.permute.xlu0 %2860  ;;  %v3747_v50 = vadd.f32 %v3551_v38, %v760_v0 }
 0x141   : > { %v2863_v4 = vunpack.i.h.bf16 %v2861_v62  ;;  %v2862_v6 = vunpack.i.l.bf16 %v2861_v62 }
 0x142   : > { %v756_v41 = vpop.permute.xlu1 %755  ;;  %v2874_v16 = vpack.i.bf16 %v743_v53, %v742_v61  ;;  %v764_v36 = vmax.f32 %v3747_v50, 0.0 }
 0x143   : > { %v972_v19 = vsel %vm853_vm4, %v677_v58, %v2863_v4  ;;  %v971_v40 = vsel %vm853_vm4, %v676_v1, %v2862_v6  ;;  %v759_v25 = vmul.f32 %v756_v41, %v3540_v27  ;;  %v780_v58 = vmul.f32 %v3655_v35, %v3540_v27 }
 0x144   : > { %2875 = vrot.lane.b32.xlu0 %v2874_v16, %s3319_s6  ;;  %v973_v47 = vsel %vm856_vm5, %v971_v40, %v2872_v63  ;;  %v974_v2 = vsel %vm856_vm5, %v972_v19, %v2873_v8  ;;  %v792_v1 = vadd.f32 %v790_v56, %v788_v9  ;;  %v769_v34 = vmul.f32 %v756_v41, %v3536_v24 }
 0x145   : > { %v761_v31 = vadd.f32 %v759_v25, %v749_v18  ;;  %2885 = vrot.lane.b32.xlu1 %v2874_v16, %s3318_s2  ;;  %v975_v32 = vpack.c.bf16 %v974_v2, %v973_v47  ;;  %v782_v42 = vadd.f32 %v780_v58, %v770_v3  ;;  %v789_v46 = vmul.f32 %v756_v41, %v3534_v23 }
 0x146   : > { %v806_v35 = vadd.f32 %v804_v59, %v792_v1  ;;  %v771_v45 = vadd.f32 %v769_v34, %v767_v39 }
 0x147   : > { %v3754_v33 = vadd.f32 %v3551_v38, %v761_v31  ;;  %2409 = vmatmul.msk.bf16.vlgmr.msra.gmra.mxu2 %vm899_vm6, %v975_v32  ;;  %v3774_v14 = vadd.f32 %v3551_v38, %v782_v42 }
 0x148   : > { %v808_v54 = vadd.f32 %v3551_v38, %v806_v35 }
 0x149   : > { %v765_v57 = vmax.f32 %v3754_v33, 0.0 }
 0x14a   : > { %v810_v8 = vmax.f32 %v808_v54, 0.0 }
 0x14b   : > { %v778_v43 = vpop.permute.xlu1 %777  ;;  %v2894_v44 = vpack.i.bf16 %v765_v57, %v764_v36 }
 0x14c   : > { %v781_v48 = vmul.f32 %v778_v43, %v3540_v27  ;;  %v791_v17 = vmul.f32 %v778_v43, %v3536_v24  ;;  %v786_v24 = vmax.f32 %v3774_v14, 0.0  ;;  %v825_v6 = vrot.slane %v810_v8, 7 }
 0x14d   : > { %2895 = vrot.lane.b32.xlu0 %v2894_v44, %s3319_s6  ;;  %2890 = vrot.lane.b32.xlu2 %v2894_v44, %s3318_s2 }
 0x14e   : > { %v783_v11 = vadd.f32 %v781_v48, %v771_v45  ;;  %v793_v52 = vadd.f32 %v791_v17, %v789_v46 }
 0x150   : > { %v3778_v56 = vadd.f32 %v3551_v38, %v783_v11  ;;  %v807_v62 = vadd.f32 %v805_v37, %v793_v52 }
 0x152   : > { %v787_v23 = vmax.f32 %v3778_v56, 0.0  ;;  %v809_v27 = vadd.f32 %v3551_v38, %v807_v62 }
 0x153   : > { %v2851_v15 = vpop.permute.xlu1 %2850 }
 0x154   : > { %v811_v63 = vmax.f32 %v809_v27, 0.0  ;;  %v2899_v60 = vpack.i.bf16 %v787_v23, %v786_v24  ;;  %v2853_v40 = vunpack.i.h.bf16 %v2851_v15  ;;  %v2852_v25 = vunpack.i.l.bf16 %v2851_v15 }
 0x156   : > { %v826_v0 = vrot.slane %v811_v63, 7  ;;  %2900 = vrot.lane.b32.xlu1 %v2899_v60, %s3319_s6  ;;  %v2909_v4 = vpack.i.bf16 %v811_v63, %v810_v8  ;;  %2905 = vrot.lane.b32.xlu2 %v2899_v60, %s3318_s2 }
 0x158   : > { %2910 = vrot.lane.b32.xlu0 %v2909_v4, %s3318_s2  ;;  %v827_v38 = vsel %vm593_vm2, %v825_v6, %v826_v0  ;;  %v828_v9 = vsel %vm593_vm2, %v826_v0, %v825_v6 }
 0x159   : > { %v829_v47 = vsel %vm597_vm3, 0.0, %v828_v9 }
 0x15b   : > { %v2866_v41 = vpop.permute.xlu1 %2865 }
 0x15c   : > { %v2868_v49 = vunpack.i.h.bf16 %v2866_v41  ;;  %v2867_v22 = vunpack.i.l.bf16 %v2866_v41 }
 0x15e   : > { %2915 = vrot.lane.b32.xlu1 %v2909_v4, %s3319_s6  ;;  %2920 = vrot.lane.b32.xlu2 %v2919_v55, %s3319_s6  ;;  %v1009_v39 = vsel %vm853_vm4, %v698_v20, %v2867_v22  ;;  %v1010_v35 = vsel %vm853_vm4, %v699_v26, %v2868_v49 }
 0x1a7   : > { %v2891_v59 = vpop.permute.xlu2 %2890 }
 0x1a8   : > { %v2893_v62 = vunpack.i.h.bf16 %v2891_v59  ;;  %v2892_v27 = vunpack.i.l.bf16 %v2891_v59 }
 0x1aa   : > { %v1086_v29 = vsel %vm853_vm4, %v743_v53, %v2893_v62  ;;  %v1085_v28 = vsel %vm853_vm4, %v742_v61, %v2892_v27 }
 0x1af   : > { %v2881_v16 = vpop.permute.xlu1 %2880 }
 0x1b0   : > { %v2883_v18 = vunpack.i.h.bf16 %v2881_v16  ;;  %v2882_v19 = vunpack.i.l.bf16 %v2881_v16  ;;  %v2906_v48 = vpop.permute.xlu2 %2905 }
 0x1b1   : > { %v2908_v53 = vunpack.i.h.bf16 %v2906_v48  ;;  %v2907_v61 = vunpack.i.l.bf16 %v2906_v48 }
 0x1b2   : > { %v854_v2 = vsel %vm853_vm4, %v829_v47, %v2882_v19  ;;  %v855_v31 = vsel %vm853_vm4, %v827_v38, %v2883_v18 }
 0x1b3   : > { %v857_v32 = vsel %vm856_vm5, %v854_v2, %v2852_v25  ;;  %v858_v58 = vsel %vm856_vm5, %v855_v31, %v2853_v40  ;;  %v1124_v14 = vsel %vm853_vm4, %v765_v57, %v2908_v53  ;;  %v1123_v56 = vsel %vm853_vm4, %v764_v36, %v2907_v61 }
 0x1b4   : > { %v859_v55 = vpack.c.bf16 %v858_v58, %v857_v32  ;;  %v2995_v58 = vld [vmem:[#allocation6] ss:$0 sm:$0xff] }
 0x1b6   : > { %v2876_v1 = vpop.permute.xlu0 %2875  ;;  %2407 = vmatmul.msk.bf16.vlgmr.msra.gmra.mxu0 %vm899_vm6, %v859_v55 }
 0x1b7   : > { %v2878_v3 = vunpack.i.h.bf16 %v2876_v1  ;;  %v2877_v34 = vunpack.i.l.bf16 %v2876_v1  ;;  %v2886_v43 = vpop.permute.xlu1 %2885 }
 0x1b8   : > { %v2888_v45 = vunpack.i.h.bf16 %v2886_v43  ;;  %v2887_v46 = vunpack.i.l.bf16 %v2886_v43  ;;  %v2921_v63 = vpop.permute.xlu2 %2920 }
 0x1b9   : > { %v1011_v42 = vsel %vm856_vm5, %v1009_v39, %v2877_v34  ;;  %v1012_v37 = vsel %vm856_vm5, %v1010_v35, %v2878_v3  ;;  %v2923_v9 = vunpack.i.h.bf16 %v2921_v63  ;;  %v2922_v15 = vunpack.i.l.bf16 %v2921_v63 }
 0x1ba   : > { %v1013_v44 = vpack.c.bf16 %v1012_v37, %v1011_v42  ;;  %v1048_v20 = vsel %vm853_vm4, %v721_v30, %v2888_v45  ;;  %v1047_v21 = vsel %vm853_vm4, %v720_v7, %v2887_v46 }
 0x1bc   : > { %2410 = vmatmul.msk.bf16.vlgmr.msra.gmra.mxu3 %vm899_vm6, %v1013_v44  ;;  %v950_v31 = vpop.f32.mrf.mxu1 }
 0x1bd   : > { %v951_v55 = vadd.f32 %v2995_v58, %v950_v31 }
 0x1bf   : > { %v2896_v17 = vpop.permute.xlu0 %2895  ;;  %v955_v3 = vmax.f32 %v951_v55, 0.0 }
 0x1c0   : > { %v2898_v11 = vunpack.i.h.bf16 %v2896_v17  ;;  %v2897_v5 = vunpack.i.l.bf16 %v2896_v17 }
 0x1c2   : > { %v1050_v26 = vsel %vm856_vm5, %v1048_v20, %v2898_v11  ;;  %v1049_v52 = vsel %vm856_vm5, %v1047_v21, %v2897_v5 }
 0x1c3   : > { %v1051_v54 = vpack.c.bf16 %v1050_v26, %v1049_v52 }
 0x1c4   : > { %v952_v49 = vpop.f32.mrf.mxu1 }
 0x1c5   : > { %v953_v33 = vadd.f32 %v2995_v58, %v952_v49 }
 0x1c6   : > { %2411 = vmatmul.msk.bf16.vlgmr.msrb.gmra.mxu0 %vm899_vm6, %v1051_v54 }
 0x1c7   : > { %v956_v36 = vmax.f32 %v953_v33, 0.0 }
 0x1c8   : > { %v2901_v8 = vpop.permute.xlu1 %2900 }
 0x1c9   : > { %v2903_v60 = vunpack.i.h.bf16 %v2901_v8  ;;  %v2902_v0 = vunpack.i.l.bf16 %v2901_v8 }
 0x1ca   : > { %v2911_v7 = vpop.permute.xlu0 %2910  ;;  %v988_v59 = vpop.f32.mrf.mxu2 }
 0x1cb   : > { %v1087_v30 = vsel %vm856_vm5, %v1085_v28, %v2902_v0  ;;  %v1088_v4 = vsel %vm856_vm5, %v1086_v29, %v2903_v60  ;;  %v2913_v6 = vunpack.i.h.bf16 %v2911_v7  ;;  %v2912_v38 = vunpack.i.l.bf16 %v2911_v7 }
 0x1cc   : > { %v1089_v41 = vpack.c.bf16 %v1088_v4, %v1087_v30  ;;  %v989_v46 = vadd.f32 %v2995_v58, %v988_v59 }
 0x1cd   : > { %v1162_v10 = vsel %vm853_vm4, %v787_v23, %v2913_v6  ;;  %v1161_v51 = vsel %vm853_vm4, %v786_v24, %v2912_v38 }
 0x1ce   : > { %2412 = vmatmul.msk.bf16.vlgmr.msrb.gmra.mxu1 %vm899_vm6, %v1089_v41  ;;  %v1163_v16 = vsel %vm856_vm5, %v1161_v51, %v2922_v15  ;;  %v1164_v18 = vsel %vm856_vm5, %v1162_v10, %v2923_v9  ;;  %v993_v20 = vmax.f32 %v989_v46, 0.0 }
 0x1cf   : > { %v1165_v19 = vpack.c.bf16 %v1164_v18, %v1163_v16 }
 0x1d0   : > { %v2916_v40 = vpop.permute.xlu1 %2915 }
 0x1d1   : > { %v2918_v25 = vunpack.i.h.bf16 %v2916_v40  ;;  %v2917_v47 = vunpack.i.l.bf16 %v2916_v40  ;;  %2414 = vmatmul.msk.bf16.vlgmr.msrb.gmra.mxu3 %vm899_vm6, %v1165_v19 }
 0x1d2   : > { %v990_v43 = vpop.f32.mrf.mxu2 }
 0x1d3   : > { %v1125_v23 = vsel %vm856_vm5, %v1123_v56, %v2917_v47  ;;  %v1126_v24 = vsel %vm856_vm5, %v1124_v14, %v2918_v25  ;;  %v991_v48 = vadd.f32 %v2995_v58, %v990_v43 }
 0x1d4   : > { %v1127_v2 = vpack.c.bf16 %v1126_v24, %v1125_v23 }
 0x1d5   : > { %v994_v21 = vmax.f32 %v991_v48, 0.0 }
 0x1d6   : > { %2413 = vmatmul.msk.bf16.vlgmr.msrb.gmra.mxu2 %vm899_vm6, %v1127_v2 }
 0x233   : > { %v912_v32 = vpop.f32.mrf.mxu0 }
 0x234   : > { %v913_v22 = vadd.f32 %v2995_v58, %v912_v32 }
 0x236   : > { %v917_v1 = vmax.f32 %v913_v22, 0.0 }
 0x238   : > { %v3851_v39 = vmax.f32 %v917_v1, %v955_v3  ;;  %v2664_v1 = vld [vmem:[%s4110_s5 + $0x28] sm:$0xff]  ;;  %v2662_v3 = vld [vmem:[%s4110_s5 + $0x18] sm:$0xff] }
 0x239   : > { %1283 = vmatpush.bf16.msra.mxu0 %v2664_v1  ;;  %1321 = vmatpush.bf16.msra.mxu1 %v2664_v1 }
 0x23a   : > { %v1212_v25 = vrot.slane %v3851_v39, 1  ;;  %1359 = vmatpush.bf16.msra.mxu2 %v2664_v1  ;;  %1397 = vmatpush.bf16.msra.mxu3 %v2664_v1 }
 0x23b   : > { %v914_v57 = vpop.f32.mrf.mxu0 }
 0x23c   : > { %v915_v50 = vadd.f32 %v2995_v58, %v914_v57 }
 0x23e   : > { %v918_v34 = vmax.f32 %v915_v50, 0.0  ;;  %v2663_v50 = vld [vmem:[%s4110_s5 + $0x20] sm:$0xff] }
 0x23f   : > { %v1026_v42 = vpop.f32.mrf.mxu3  ;;  %1284 = vmatpush.bf16.msra.mxu0 %v2663_v50  ;;  %1322 = vmatpush.bf16.msra.mxu1 %v2663_v50 }
 0x240   : > { %v3853_v35 = vmax.f32 %v918_v34, %v956_v36  ;;  %v1027_v44 = vadd.f32 %v2995_v58, %v1026_v42  ;;  %1360 = vmatpush.bf16.msra.mxu2 %v2663_v50  ;;  %1398 = vmatpush.bf16.msra.mxu3 %v2663_v50  ;;  %v2661_v36 = vld [vmem:[%s4110_s5 + $0x10] sm:$0xff]  ;;  %v2660_v34 = vld [vmem:[%s4110_s5 + $0x8] sm:$0xff]  ;;  %v2659_v42 = vld [vmem:[%s4110_s5] sm:$0xff] }
 0x242   : > { %v2929_v37 = vpack.i.bf16 %v3853_v35, %v3851_v39  ;;  %v1031_v11 = vmax.f32 %v1027_v44, 0.0  ;;  %v1213_v16 = vrot.slane %v3853_v35, 1 }
 0x243   : > { %v1064_v45 = vpop.f32.mrf.mxu0  ;;  %1285 = vmatpush.bf16.msra.mxu0 %v2662_v3  ;;  %1323 = vmatpush.bf16.msra.mxu1 %v2662_v3 }
 0x244   : > { %2930 = vrot.lane.b32.xlu2 %v2929_v37, %s3318_s2  ;;  %v3858_v54 = vmax.f32 %v993_v20, %v1031_v11  ;;  %v1065_v60 = vadd.f32 %v2995_v58, %v1064_v45  ;;  %v1215_v2 = vsel %vm603_vm0, %v1213_v16, %v1212_v25  ;;  %v1214_v32 = vsel %vm603_vm0, %v1212_v25, %v1213_v16 }
 0x245   : > { %v1217_v49 = vsel %vm607_vm1, 0.0, %v1215_v2  ;;  %1361 = vmatpush.bf16.msra.mxu2 %v2662_v3  ;;  %1399 = vmatpush.bf16.msra.mxu3 %v2662_v3 }
 0x246   : > { %v1069_v4 = vmax.f32 %v1065_v60, 0.0 }
 0x247   : > { %v1028_v17 = vpop.f32.mrf.mxu3  ;;  %1286 = vmatpush.bf16.msra.mxu0 %v2661_v36  ;;  %1324 = vmatpush.bf16.msra.mxu1 %v2661_v36 }
 0x248   : > { %v1029_v5 = vadd.f32 %v2995_v58, %v1028_v17 }
 0x249   : > { %1362 = vmatpush.bf16.msra.mxu2 %v2661_v36  ;;  %1400 = vmatpush.bf16.msra.mxu3 %v2661_v36 }
 0x24a   : > { %v1032_v26 = vmax.f32 %v1029_v5, 0.0 }
 0x24b   : > { %v1102_v52 = vpop.f32.mrf.mxu1  ;;  %v1066_v27 = vpop.f32.mrf.mxu0  ;;  %1287 = vmatpush.bf16.msra.mxu0 %v2660_v34  ;;  %1325 = vmatpush.bf16.msra.mxu1 %v2660_v34 }
 0x24c   : > { %v3860_v62 = vmax.f32 %v994_v21, %v1032_v26  ;;  %v1103_v63 = vadd.f32 %v2995_v58, %v1102_v52  ;;  %v1067_v0 = vadd.f32 %v2995_v58, %v1066_v27 }
 0x24d   : > { %1363 = vmatpush.bf16.msra.mxu2 %v2660_v34  ;;  %1401 = vmatpush.bf16.msra.mxu3 %v2660_v34 }
 0x24e   : > { %v2924_v8 = vpack.i.bf16 %v3860_v62, %v3858_v54  ;;  %v1107_v28 = vmax.f32 %v1103_v63, 0.0  ;;  %v1070_v6 = vmax.f32 %v1067_v0, 0.0 }
 0x24f   : > { %1288 = vmatpush.bf16.msra.mxu0 %v2659_v42  ;;  %1326 = vmatpush.bf16.msra.mxu1 %v2659_v42 }
 0x250   : > { %2925 = vrot.lane.b32.xlu0 %v2924_v8, %s3318_s2  ;;  %v3865_v9 = vmax.f32 %v1069_v4, %v1107_v28 }
 0x251   : > { %1364 = vmatpush.bf16.msra.mxu2 %v2659_v42  ;;  %1402 = vmatpush.bf16.msra.mxu3 %v2659_v42 }
 0x253   : > { %v1104_v29 = vpop.f32.mrf.mxu1 }
 0x254   : > { %v1105_v7 = vadd.f32 %v2995_v58, %v1104_v29  ;;  %v1178_v30 = vpop.f32.mrf.mxu3 }
 0x255   : > { %v1179_v61 = vadd.f32 %v2995_v58, %v1178_v30 }
 0x256   : > { %v1108_v38 = vmax.f32 %v1105_v7, 0.0 }
 0x257   : > { %v1183_v47 = vmax.f32 %v1179_v61, 0.0 }
 0x258   : > { %v3867_v15 = vmax.f32 %v1070_v6, %v1108_v38  ;;  %2935 = vrot.lane.b32.xlu0 %v2924_v8, %s3319_s6 }
 0x259   : > { %v1140_v41 = vpop.f32.mrf.mxu2 }
 0x25a   : > { %v2949_v10 = vpack.i.bf16 %v3867_v15, %v3865_v9  ;;  %v1141_v51 = vadd.f32 %v2995_v58, %v1140_v41 }
 0x25c   : > { %2950 = vrot.lane.b32.xlu1 %v2949_v10, %s3319_s6  ;;  %v1180_v53 = vpop.f32.mrf.mxu3  ;;  %v1145_v18 = vmax.f32 %v1141_v51, 0.0 }
 0x25d   : > { %v1181_v19 = vadd.f32 %v2995_v58, %v1180_v53 }
 0x25e   : > { %v1191_v56 = vmax.f32 %v1145_v18, %v1183_v47 }
 0x25f   : > { %v1184_v23 = vmax.f32 %v1181_v19, 0.0 }
 0x260   : > { %v1206_v22 = vrot.slane %v1191_v56, 7 }
 0x261   : > { %v1142_v40 = vpop.f32.mrf.mxu2 }
 0x262   : > { %v1143_v14 = vadd.f32 %v2995_v58, %v1142_v40  ;;  %v2959_v58 = vpack.i.bf16 %v1217_v49, %v1214_v32  ;;  %v3959_v32 = vld [vmem:[%s4112_s7 + $0x40] sm:$0xff] }
 0x264   : > { %v1146_v24 = vmax.f32 %v1143_v14, 0.0  ;;  %2955 = vrot.lane.b32.xlu1 %v2949_v10, %s3318_s2 }
 0x266   : > { %v1192_v31 = vmax.f32 %v1146_v24, %v1184_v23 }
 0x268   : > { %v1207_v55 = vrot.slane %v1192_v31, 7  ;;  %v2944_v33 = vpack.i.bf16 %v1192_v31, %v1191_v56 }
 0x26a   : > { %2945 = vrot.lane.b32.xlu0 %v2944_v33, %s3319_s6  ;;  %2940 = vrot.lane.b32.xlu2 %v2944_v33, %s3318_s2  ;;  %v1208_v59 = vsel %vm593_vm2, %v1206_v22, %v1207_v55  ;;  %v1209_v57 = vsel %vm593_vm2, %v1207_v55, %v1206_v22  ;;  %v2996_v22 = vld [vmem:[#allocation7] ss:$0 sm:$0xff] }
 0x26b   : > { %v1210_v46 = vsel %vm597_vm3, 0.0, %v1209_v57 }
 0x26c   : > { %2960 = vrot.lane.b32.xlu1 %v2959_v58, %s3319_s6 }
 0x29e   : > { %v2931_v43 = vpop.permute.xlu2 %2930 }
 0x29f   : > { %v2933_v44 = vunpack.i.h.bf16 %v2931_v43  ;;  %v2932_v45 = vunpack.i.l.bf16 %v2931_v43 }
 0x2a1   : > { %v1235_v21 = vsel %vm853_vm4, %v1208_v59, %v2933_v44  ;;  %v1234_v26 = vsel %vm853_vm4, %v1210_v46, %v2932_v45  ;;  %v2672_v45 = vld [vmem:[%s4112_s7 + $0x38] sm:$0xff] }
 0x2a2   : > { %1583 = vmatpush.bf16.msrb.mxu2 %v2672_v45  ;;  %1538 = vmatpush.bf16.msrb.mxu0 %v2672_v45 }
 0x2c2   : > { %v2926_v37 = vpop.permute.xlu0 %2925 }
 0x2c3   : > { %v2928_v17 = vunpack.i.h.bf16 %v2926_v37  ;;  %v2927_v11 = vunpack.i.l.bf16 %v2926_v37 }
 0x2c4   : > { %v2941_v38 = vpop.permute.xlu2 %2940 }
 0x2c5   : > { %v1311_v29 = vsel %vm853_vm4, %v3851_v39, %v2927_v11  ;;  %v1312_v28 = vsel %vm853_vm4, %v3853_v35, %v2928_v17  ;;  %v2943_v51 = vunpack.i.h.bf16 %v2941_v38  ;;  %v2942_v53 = vunpack.i.l.bf16 %v2941_v38  ;;  %v2670_v11 = vld [vmem:[%s4112_s7 + $0x28] sm:$0xff] }
 0x2c7   : > { %v1388_v56 = vsel %vm853_vm4, %v3867_v15, %v2943_v51  ;;  %v1387_v23 = vsel %vm853_vm4, %v3865_v9, %v2942_v53  ;;  %v3945_v9 = vld [vmem:[%s4112_s7 + $0x50] sm:$0xff]  ;;  %v3952_v15 = vld [vmem:[%s4112_s7 + $0x48] sm:$0xff] }
 0x2c8   : > { %v2666_v53 = vld [vmem:[%s4112_s7 + $0x8] sm:$0xff] }
 0x2ca   : > { %v2936_v48 = vpop.permute.xlu0 %2935 }
 0x2cb   : > { %v2938_v5 = vunpack.i.h.bf16 %v2936_v48  ;;  %v2937_v20 = vunpack.i.l.bf16 %v2936_v48  ;;  %v2671_v48 = vld [vmem:[%s4112_s7 + $0x30] sm:$0xff] }
 0x2cc   : > { %1584 = vmatpush.bf16.msrb.mxu2 %v2671_v48  ;;  %1539 = vmatpush.bf16.msrb.mxu0 %v2671_v48 }
 0x2cd   : > { %v1236_v52 = vsel %vm856_vm5, %v1234_v26, %v2937_v20  ;;  %v1237_v27 = vsel %vm856_vm5, %v1235_v21, %v2938_v5 }
 0x2ce   : > { %v2951_v8 = vpop.permute.xlu1 %2950  ;;  %v1238_v63 = vpack.c.bf16 %v1237_v27, %v1236_v52  ;;  %v2669_v52 = vld [vmem:[%s4112_s7 + $0x20] sm:$0xff] }
 0x2cf   : > { %v2953_v60 = vunpack.i.h.bf16 %v2951_v8  ;;  %v2952_v0 = vunpack.i.l.bf16 %v2951_v8 }
 0x2d0   : > { %2439 = vmatmul.msk.bf16.vlgmr.msra.gmra.mxu0 %vm899_vm6, %v1238_v63  ;;  %1585 = vmatpush.bf16.msrb.mxu2 %v2670_v11 }
 0x2d1   : > { %v1313_v7 = vsel %vm856_vm5, %v1311_v29, %v2952_v0  ;;  %v1314_v30 = vsel %vm856_vm5, %v1312_v28, %v2953_v60  ;;  %1540 = vmatpush.bf16.msrb.mxu0 %v2670_v11 }
 0x2d2   : > { %v1315_v4 = vpack.c.bf16 %v1314_v30, %v1313_v7  ;;  %v2668_v30 = vld [vmem:[%s4112_s7 + $0x18] sm:$0xff] }
 0x2d4   : > { %2440 = vmatmul.msk.bf16.vlgmr.msra.gmra.mxu1 %vm899_vm6, %v1315_v4  ;;  %1586 = vmatpush.bf16.msrb.mxu2 %v2669_v52 }
 0x2d5   : > { %1541 = vmatpush.bf16.msrb.mxu0 %v2669_v52 }
 0x2d6   : > { %v2956_v6 = vpop.permute.xlu1 %2955 }
 0x2d7   : > { %v2958_v41 = vunpack.i.h.bf16 %v2956_v6  ;;  %v2957_v10 = vunpack.i.l.bf16 %v2956_v6 }
 0x2d8   : > { %1587 = vmatpush.bf16.msrb.mxu2 %v2668_v30 }
 0x2d9   : > { %v1350_v35 = vsel %vm853_vm4, %v3860_v62, %v2958_v41  ;;  %v1349_v18 = vsel %vm853_vm4, %v3858_v54, %v2957_v10  ;;  %v3938_v54 = vld [vmem:[%s4112_s7 + $0x58] sm:$0xff]  ;;  %v2667_v41 = vld [vmem:[%s4112_s7 + $0x10] sm:$0xff]  ;;  %1542 = vmatpush.bf16.msrb.mxu0 %v2668_v30 }
 0x2da   : > { %1556 = vmatpush.bf16.msrb.mxu1 %v3938_v54  ;;  %1601 = vmatpush.bf16.msrb.mxu3 %v3938_v54 }
 0x2dc   : > { %v2946_v61 = vpop.permute.xlu0 %2945  ;;  %1588 = vmatpush.bf16.msrb.mxu2 %v2667_v41 }
 0x2dd   : > { %v2948_v39 = vunpack.i.h.bf16 %v2946_v61  ;;  %v2947_v16 = vunpack.i.l.bf16 %v2946_v61  ;;  %1543 = vmatpush.bf16.msrb.mxu0 %v2667_v41 }
 0x2de   : > { %v2961_v19 = vpop.permute.xlu1 %2960  ;;  %1557 = vmatpush.bf16.msrb.mxu1 %v3945_v9  ;;  %1602 = vmatpush.bf16.msrb.mxu3 %v3945_v9 }
 0x2df   : > { %v1351_v40 = vsel %vm856_vm5, %v1349_v18, %v2947_v16  ;;  %v1352_v25 = vsel %vm856_vm5, %v1350_v35, %v2948_v39  ;;  %v2963_v47 = vunpack.i.h.bf16 %v2961_v19  ;;  %v2962_v14 = vunpack.i.l.bf16 %v2961_v19  ;;  %v2665_v39 = vld [vmem:[%s4112_s7] sm:$0xff] }
 0x2e0   : > { %v1353_v24 = vpack.c.bf16 %v1352_v25, %v1351_v40  ;;  %1589 = vmatpush.bf16.msrb.mxu2 %v2666_v53 }
 0x2e1   : > { %v1390_v2 = vsel %vm856_vm5, %v1388_v56, %v2963_v47  ;;  %v1389_v62 = vsel %vm856_vm5, %v1387_v23, %v2962_v14  ;;  %1544 = vmatpush.bf16.msrb.mxu0 %v2666_v53 }
 0x2e2   : > { %v1391_v31 = vpack.c.bf16 %v1390_v2, %v1389_v62  ;;  %2441 = vmatmul.msk.bf16.vlgmr.msra.gmra.mxu2 %vm899_vm6, %v1353_v24  ;;  %1558 = vmatpush.bf16.msrb.mxu1 %v3952_v15 }
 0x2e3   : > { %1603 = vmatpush.bf16.msrb.mxu3 %v3952_v15 }
 0x2e4   : > { %2442 = vmatmul.msk.bf16.vlgmr.msra.gmra.mxu3 %vm899_vm6, %v1391_v31  ;;  %1590 = vmatpush.bf16.msrb.mxu2 %v2665_v39 }
 0x2e5   : > { %1545 = vmatpush.bf16.msrb.mxu0 %v2665_v39 }
 0x2e6   : > { %1559 = vmatpush.bf16.msrb.mxu1 %v3959_v32 }
 0x2e7   : > { %1604 = vmatpush.bf16.msrb.mxu3 %v3959_v32 }
 0x2e8   : > { %1691 = vmatpush.bf16.msra.mxu2 %v3938_v54 }
 0x2e9   : > { %1673 = vmatpush.bf16.msra.mxu0 %v2672_v45 }
 0x2ea   : > { %1628 = vmatpush.bf16.msra.mxu1 %v2672_v45  ;;  %v2687_v45 = vld [vmem:[#allocation10 + $0x50] sm:$0xff] }
 0x2eb   : > { %1646 = vmatpush.bf16.msra.mxu3 %v3938_v54 }
 0x2ec   : > { %1692 = vmatpush.bf16.msra.mxu2 %v3945_v9 }
 0x2ed   : > { %1674 = vmatpush.bf16.msra.mxu0 %v2671_v48 }
 0x2ee   : > { %1629 = vmatpush.bf16.msra.mxu1 %v2671_v48  ;;  %v2685_v48 = vld [vmem:[#allocation10 + $0x40] sm:$0xff] }
 0x2ef   : > { %1647 = vmatpush.bf16.msra.mxu3 %v3945_v9 }
 0x2f0   : > { %1693 = vmatpush.bf16.msra.mxu2 %v3952_v15 }
 0x2f1   : > { %1675 = vmatpush.bf16.msra.mxu0 %v2670_v11 }
 0x2f2   : > { %1630 = vmatpush.bf16.msra.mxu1 %v2670_v11 }
 0x2f3   : > { %1648 = vmatpush.bf16.msra.mxu3 %v3952_v15 }
 0x2f4   : > { %1694 = vmatpush.bf16.msra.mxu2 %v3959_v32 }
 0x2f5   : > { %1676 = vmatpush.bf16.msra.mxu0 %v2669_v52 }
 0x2f6   : > { %1631 = vmatpush.bf16.msra.mxu1 %v2669_v52 }
 0x2f7   : > { %1649 = vmatpush.bf16.msra.mxu3 %v3959_v32 }
 0x2f9   : > { %1677 = vmatpush.bf16.msra.mxu0 %v2668_v30 }
 0x2fa   : > { %1632 = vmatpush.bf16.msra.mxu1 %v2668_v30  ;;  %v2684_v30 = vld [vmem:[#allocation10 + $0x38] sm:$0xff] }
 0x2fd   : > { %1678 = vmatpush.bf16.msra.mxu0 %v2667_v41 }
 0x2fe   : > { %1633 = vmatpush.bf16.msra.mxu1 %v2667_v41 }
 0x301   : > { %1679 = vmatpush.bf16.msra.mxu0 %v2666_v53 }
 0x302   : > { %1634 = vmatpush.bf16.msra.mxu1 %v2666_v53 }
 0x305   : > { %1680 = vmatpush.bf16.msra.mxu0 %v2665_v39 }
 0x306   : > { %1635 = vmatpush.bf16.msra.mxu1 %v2665_v39  ;;  %v2682_v39 = vld [vmem:[#allocation10 + $0x28] sm:$0xff] }
 0x34d   : > { %v1290_v49 = vpop.f32.mrf.mxu0 }
 0x34e   : > { %v1291_v33 = vadd.f32 %v2996_v22, %v1290_v49 }
 0x350   : > { %v3967_v1 = vmax.f32 %v1291_v33, 0.0 }
 0x351   : > { %v1328_v55 = vpop.f32.mrf.mxu1 }
 0x352   : > { %v1329_v57 = vadd.f32 %v2996_v22, %v1328_v55  ;;  %v1442_v14 = vrot.slane %v3967_v1, 1 }
 0x354   : > { %v3973_v42 = vmax.f32 %v1329_v57, 0.0 }
 0x355   : > { %v1292_v58 = vpop.f32.mrf.mxu0 }
 0x356   : > { %v1293_v59 = vadd.f32 %v2996_v22, %v1292_v58 }
 0x358   : > { %v3969_v50 = vmax.f32 %v1293_v59, 0.0 }
 0x359   : > { %v1330_v3 = vpop.f32.mrf.mxu1 }
 0x35a   : > { %v1331_v36 = vadd.f32 %v2996_v22, %v1330_v3  ;;  %v2969_v34 = vpack.i.bf16 %v3969_v50, %v3967_v1  ;;  %v1443_v47 = vrot.slane %v3969_v50, 1 }
 0x35c   : > { %v3975_v37 = vmax.f32 %v1331_v36, 0.0  ;;  %2970 = vrot.lane.b32.xlu0 %v2969_v34, %s3319_s6  ;;  %v1445_v56 = vsel %vm603_vm0, %v1443_v47, %v1442_v14  ;;  %v1444_v23 = vsel %vm603_vm0, %v1442_v14, %v1443_v47  ;;  %v2681_v47 = vld [vmem:[#allocation10 + $0x20] sm:$0xff] }
 0x35d   : > { %v1447_v24 = vsel %vm607_vm1, 0.0, %v1445_v56 }
 0x35e   : > { %v1459_v43 = vpack.c.bf16 %v3975_v37, %v3973_v42  ;;  %v2964_v44 = vpack.i.bf16 %v3975_v37, %v3973_v42  ;;  %v1669_v2 = vpack.c.bf16 %v1447_v24, %v1444_v23 }
 0x360   : > { %2965 = vrot.lane.b32.xlu2 %v2964_v44, %s3319_s6  ;;  %2491 = vmatmul.msk.bf16.vlgmr.msrb.gmra.mxu1 %vm856_vm5, %v1459_v43  ;;  %v2688_v44 = vld [vmem:[#allocation10 + $0x58] sm:$0xff] }
 0x361   : > { %1852 = vmatpush.bf16.msrb.mxu1 %v2688_v44 }
 0x365   : > { %v1366_v46 = vpop.f32.mrf.mxu2  ;;  %1853 = vmatpush.bf16.msrb.mxu1 %v2687_v45 }
 0x366   : > { %v1367_v5 = vadd.f32 %v2996_v22, %v1366_v46  ;;  %v2686_v46 = vld [vmem:[#allocation10 + $0x48] sm:$0xff] }
 0x367   : > { %v1404_v17 = vpop.f32.mrf.mxu3 }
 0x368   : > { %v1405_v20 = vadd.f32 %v2996_v22, %v1404_v17  ;;  %v3996_v8 = vmax.f32 %v1367_v5, 0.0 }
 0x369   : > { %1854 = vmatpush.bf16.msrb.mxu1 %v2686_v46 }
 0x36a   : > { %v1409_v63 = vmax.f32 %v1405_v20, 0.0 }
 0x36c   : > { %v1436_v4 = vrot.slane %v1409_v63, 7 }
 0x36d   : > { %v1368_v21 = vpop.f32.mrf.mxu2  ;;  %1855 = vmatpush.bf16.msrb.mxu1 %v2685_v48 }
 0x36e   : > { %v1369_v26 = vadd.f32 %v2996_v22, %v1368_v21 }
 0x36f   : > { %v1406_v27 = vpop.f32.mrf.mxu3 }
 0x370   : > { %v3998_v60 = vmax.f32 %v1369_v26, 0.0  ;;  %v1407_v0 = vadd.f32 %v2996_v22, %v1406_v27 }
 0x372   : > { %v1579_v29 = vpack.c.bf16 %v3998_v60, %v3996_v8  ;;  %v1410_v28 = vmax.f32 %v1407_v0, 0.0  ;;  %v2974_v7 = vpack.i.bf16 %v3998_v60, %v3996_v8 }
 0x374   : > { %v1437_v6 = vrot.slane %v1410_v28, 7  ;;  %2975 = vrot.lane.b32.xlu1 %v2974_v7, %s3319_s6  ;;  %2492 = vmatmul.msk.bf16.vlgmr.msrb.gmra.mxu3 %vm856_vm5, %v1579_v29  ;;  %v2979_v38 = vpack.i.bf16 %v1410_v28, %v1409_v63  ;;  %v1624_v61 = vpack.c.bf16 %v1410_v28, %v1409_v63 }
 0x375   : > { %1834 = vmatpush.bf16.msrb.mxu3 %v2684_v30 }
 0x376   : > { %2980 = vrot.lane.b32.xlu2 %v2979_v38, %s3319_s6  ;;  %v1438_v10 = vsel %vm593_vm2, %v1436_v4, %v1437_v6  ;;  %v1439_v51 = vsel %vm593_vm2, %v1437_v6, %v1436_v4  ;;  %v2683_v38 = vld [vmem:[#allocation10 + $0x30] sm:$0xff] }
 0x377   : > { %v1440_v9 = vsel %vm597_vm3, 0.0, %v1439_v51 }
 0x379   : > { %1835 = vmatpush.bf16.msrb.mxu3 %v2683_v38 }
 0x37d   : > { %1836 = vmatpush.bf16.msrb.mxu3 %v2682_v39 }
 0x381   : > { %1837 = vmatpush.bf16.msrb.mxu3 %v2681_v47 }
 0x384   : > { %2493 = vmatmul.msk.bf16.vlgmr.msra.gmra.mxu3 %vm856_vm5, %v1624_v61 }
 0x3ba   : > { %v2966_v16 = vpop.permute.xlu2 %2965 }
 0x3bb   : > { %v2968_v35 = vunpack.i.h.bf16 %v2966_v16  ;;  %v2967_v18 = vunpack.i.l.bf16 %v2966_v16 }
 0x3bd   : > { %v1577_v19 = vsel %vm856_vm5, %v3969_v50, %v2968_v35  ;;  %v1576_v40 = vsel %vm856_vm5, %v3967_v1, %v2967_v18 }
 0x3be   : > { %v1578_v25 = vpack.c.bf16 %v1577_v19, %v1576_v40 }
 0x3c0   : > { %1591 = vmatmul.bf16.vlgmr.msrb.gmra.mxu2 %v1578_v25 }
 0x3c1   : > { %1879 = vmatpush.bf16.msrb.mxu2 %v2684_v30  ;;  %v2701_v30 = vld [vmem:[#allocation13 + $0x60] sm:$0xff] }
 0x3c5   : > { %1880 = vmatpush.bf16.msrb.mxu2 %v2683_v38 }
 0x3c9   : > { %1881 = vmatpush.bf16.msrb.mxu2 %v2682_v39 }
 0x3cd   : > { %1882 = vmatpush.bf16.msrb.mxu2 %v2681_v47  ;;  %v2691_v47 = vld [vmem:[#allocation13 + $0x10] sm:$0xff] }
 0x3ce   : > { %v2971_v62 = vpop.permute.xlu0 %2970 }
 0x3cf   : > { %v2973_v31 = vunpack.i.h.bf16 %v2971_v62  ;;  %v2972_v54 = vunpack.i.l.bf16 %v2971_v62  ;;  %v2680_v62 = vld [vmem:[#allocation10 + $0x18] sm:$0xff] }
 0x3d0   : > { %2494 = vmatmul.msk.bf16.vlgmr.msra.gmra.mxu2 %vm856_vm5, %v1669_v2  ;;  %v2981_v22 = vpop.permute.xlu2 %2980  ;;  %1838 = vmatpush.bf16.msrb.mxu3 %v2680_v62 }
 0x3d1   : > { %v1456_v15 = vsel %vm856_vm5, %v1440_v9, %v2972_v54  ;;  %v1457_v32 = vsel %vm856_vm5, %v1438_v10, %v2973_v31  ;;  %v2983_v55 = vunpack.i.h.bf16 %v2981_v22  ;;  %v2982_v33 = vunpack.i.l.bf16 %v2981_v22  ;;  %1883 = vmatpush.bf16.msrb.mxu2 %v2680_v62  ;;  %v2706_v62 = vld [vmem:[#allocation13 + $0x88] sm:$0xff] }
 0x3d2   : > { %v1458_v49 = vpack.c.bf16 %v1457_v32, %v1456_v15  ;;  %v2679_v32 = vld [vmem:[#allocation10 + $0x10] sm:$0xff] }
 0x3d3   : > { %v1667_v58 = vsel %vm856_vm5, %v3998_v60, %v2983_v55  ;;  %v1666_v59 = vsel %vm856_vm5, %v3996_v8, %v2982_v33 }
 0x3d4   : > { %1546 = vmatmul.bf16.vlgmr.msrb.gmra.mxu0 %v1458_v49  ;;  %v1668_v57 = vpack.c.bf16 %v1667_v58, %v1666_v59  ;;  %1839 = vmatpush.bf16.msrb.mxu3 %v2679_v32 }
 0x3d5   : > { %1897 = vmatpush.bf16.msrb.mxu0 %v2688_v44  ;;  %1884 = vmatpush.bf16.msrb.mxu2 %v2679_v32 }
 0x3d9   : > { %1898 = vmatpush.bf16.msrb.mxu0 %v2687_v45 }
 0x3dd   : > { %1899 = vmatpush.bf16.msrb.mxu0 %v2686_v46  ;;  %v1561_v5 = vpop.f32.mrf.mxu1 }
 0x3e1   : > { %1900 = vmatpush.bf16.msrb.mxu0 %v2685_v48 }
 0x3e4   : > { %1681 = vmatmul.bf16.vlgmr.msra.gmra.mxu0 %v1668_v57  ;;  %v2678_v57 = vld [vmem:[#allocation10 + $0x8] sm:$0xff] }
 0x3e5   : > { %v1563_v7 = vpop.f32.mrf.mxu1  ;;  %1840 = vmatpush.bf16.msrb.mxu3 %v2678_v57  ;;  %1885 = vmatpush.bf16.msrb.mxu2 %v2678_v57 }
 0x3e6   : > { %v2976_v1 = vpop.permute.xlu1 %2975 }
 0x3e7   : > { %v2978_v50 = vunpack.i.h.bf16 %v2976_v1  ;;  %v2977_v3 = vunpack.i.l.bf16 %v2976_v1 }
 0x3e9   : > { %v1622_v36 = vsel %vm856_vm5, %v3975_v37, %v2978_v50  ;;  %v1621_v34 = vsel %vm856_vm5, %v3973_v42, %v2977_v3  ;;  %v2997_v37 = vld [vmem:[#allocation9] ss:$0 sm:$0xff] }
 0x3ea   : > { %v1623_v43 = vpack.c.bf16 %v1622_v36, %v1621_v34 }
 0x3ec   : > { %1636 = vmatmul.bf16.vlgmr.msra.gmra.mxu1 %v1623_v43 }
 0x3f7   : > { %v1606_v11 = vpop.f32.mrf.mxu3 }
 0x3ff   : > { %v1608_v63 = vpop.f32.mrf.mxu3 }
 0x407   : > { %v1651_v23 = vpop.f32.mrf.mxu3 }
 0x40f   : > { %v1653_v1 = vpop.f32.mrf.mxu3 }
 0x443   : > { %v1592_v17 = vpop.f32.mrf.mxu2 }
 0x444   : > { %v1593_v26 = vadd.f32 %v2997_v37, %v1592_v17 }
 0x446   : > { %v1607_v8 = vadd.f32 %v1606_v11, %v1593_v26 }
 0x448   : > { %v1611_v4 = vmax.f32 %v1607_v8, 0.0 }
 0x44b   : > { %v1594_v21 = vpop.f32.mrf.mxu2 }
 0x44c   : > { %v1595_v52 = vadd.f32 %v2997_v37, %v1594_v21 }
 0x44e   : > { %v1609_v0 = vadd.f32 %v1608_v63, %v1595_v52  ;;  %v2704_v63 = vld [vmem:[#allocation13 + $0x78] sm:$0xff] }
 0x450   : > { %v1612_v41 = vmax.f32 %v1609_v0, 0.0  ;;  %v2703_v0 = vld [vmem:[#allocation13 + $0x70] sm:$0xff] }
 0x451   : > { %v1547_v20 = vpop.f32.mrf.mxu0 }
 0x452   : > { %v1548_v42 = vadd.f32 %v2997_v37, %v1547_v20 }
 0x453   : > { %v1696_v14 = vpop.f32.mrf.mxu2 }
 0x454   : > { %v1562_v27 = vadd.f32 %v1561_v5, %v1548_v42  ;;  %v2677_v5 = vld [vmem:[#allocation10] sm:$0xff] }
 0x455   : > { %1841 = vmatpush.bf16.msrb.mxu3 %v2677_v5  ;;  %1886 = vmatpush.bf16.msrb.mxu2 %v2677_v5 }
 0x456   : > { %v1566_v29 = vmax.f32 %v1562_v27, 0.0 }
 0x458   : > { %v4053_v10 = vmax.f32 %v1566_v29, %v1611_v4  ;;  %v2695_v29 = vld [vmem:[#allocation13 + $0x30] sm:$0xff]  ;;  %v2693_v4 = vld [vmem:[#allocation13 + $0x20] sm:$0xff] }
 0x459   : > { %v1549_v60 = vpop.f32.mrf.mxu0  ;;  %2134 = vmatpush.bf16.msra.mxu3 %v2704_v63 }
 0x45a   : > { %v1550_v28 = vadd.f32 %v2997_v37, %v1549_v60  ;;  %v1738_v16 = vrot.slane %v4053_v10, 1  ;;  %v2696_v60 = vld [vmem:[#allocation13 + $0x38] sm:$0xff] }
 0x45b   : > { %v1698_v22 = vpop.f32.mrf.mxu2  ;;  %2165 = vmatpush.bf16.msra.mxu2 %v2696_v60  ;;  %2120 = vmatpush.bf16.msra.mxu1 %v2696_v60 }
 0x45c   : > { %v1564_v6 = vadd.f32 %v1563_v7, %v1550_v28  ;;  %v2702_v28 = vld [vmem:[#allocation13 + $0x68] sm:$0xff] }
 0x45d   : > { %2135 = vmatpush.bf16.msra.mxu3 %v2703_v0  ;;  %v2694_v7 = vld [vmem:[#allocation13 + $0x28] sm:$0xff] }
 0x45e   : > { %v1567_v51 = vmax.f32 %v1564_v6, 0.0 }
 0x45f   : > { %2166 = vmatpush.bf16.msra.mxu2 %v2695_v29  ;;  %2121 = vmatpush.bf16.msra.mxu1 %v2695_v29  ;;  %v2999_v29 = vld [vmem:[#allocation15] ss:$0 sm:$0xff] }
 0x460   : > { %v4055_v53 = vmax.f32 %v1567_v51, %v1612_v41  ;;  %v2700_v51 = vld [vmem:[#allocation13 + $0x58] sm:$0xff] }
 0x461   : > { %v1682_v61 = vpop.f32.mrf.mxu0  ;;  %2136 = vmatpush.bf16.msra.mxu3 %v2702_v28 }
 0x462   : > { %v1739_v35 = vrot.slane %v4055_v53, 1  ;;  %v2984_v18 = vpack.i.bf16 %v4055_v53, %v4053_v10  ;;  %v1683_v54 = vadd.f32 %v2997_v37, %v1682_v61 }
 0x463   : > { %2167 = vmatpush.bf16.msra.mxu2 %v2694_v7  ;;  %2122 = vmatpush.bf16.msra.mxu1 %v2694_v7 }
 0x464   : > { %2985 = vrot.lane.b32.xlu0 %v2984_v18, %s3319_s6  ;;  %v1740_v19 = vsel %vm603_vm0, %v1738_v16, %v1739_v35  ;;  %v1741_v40 = vsel %vm603_vm0, %v1739_v35, %v1738_v16  ;;  %v1697_v49 = vadd.f32 %v1696_v14, %v1683_v54  ;;  %v2699_v35 = vld [vmem:[#allocation13 + $0x50] sm:$0xff]  ;;  %v2698_v18 = vld [vmem:[#allocation13 + $0x48] sm:$0xff] }
 0x465   : > { %v1743_v25 = vsel %vm607_vm1, 0.0, %v1741_v40  ;;  %2137 = vmatpush.bf16.msra.mxu3 %v2701_v30  ;;  %v2692_v40 = vld [vmem:[#allocation13 + $0x18] sm:$0xff]  ;;  %v2710_v14 = vld [vmem:[#allocation13 + $0xa8] sm:$0xff] }
 0x466   : > { %v1875_v56 = vpack.c.bf16 %v1743_v25, %v1740_v19  ;;  %v1701_v50 = vmax.f32 %v1697_v49, 0.0  ;;  %v2697_v19 = vld [vmem:[#allocation13 + $0x40] sm:$0xff]  ;;  %v2712_v25 = vld [vmem:[#allocation13 + $0xb8] sm:$0xff] }
 0x467   : > { %2168 = vmatpush.bf16.msra.mxu2 %v2693_v4  ;;  %2123 = vmatpush.bf16.msra.mxu1 %v2693_v4 }
 0x468   : > { %2544 = vmatmul.msk.bf16.vlgmr.msrb.gmra.mxu0 %vm856_vm5, %v1875_v56  ;;  %v2689_v56 = vld [vmem:[#allocation13] sm:$0xff] }
 0x469   : > { %v1637_v24 = vpop.f32.mrf.mxu1  ;;  %v1684_v31 = vpop.f32.mrf.mxu0  ;;  %2138 = vmatpush.bf16.msra.mxu3 %v2700_v51  ;;  %2148 = vmatpush.bf16.msra.mxu0 %v2712_v25 }
 0x46a   : > { %v1638_v2 = vadd.f32 %v2997_v37, %v1637_v24  ;;  %v1685_v15 = vadd.f32 %v2997_v37, %v1684_v31  ;;  %v2708_v24 = vld [vmem:[#allocation13 + $0x98] sm:$0xff]  ;;  %v2705_v31 = vld [vmem:[#allocation13 + $0x80] sm:$0xff] }
 0x46b   : > { %2169 = vmatpush.bf16.msra.mxu2 %v2692_v40  ;;  %2124 = vmatpush.bf16.msra.mxu1 %v2692_v40 }
 0x46c   : > { %v1652_v9 = vadd.f32 %v1651_v23, %v1638_v2  ;;  %v1699_v58 = vadd.f32 %v1698_v22, %v1685_v15  ;;  %v2709_v23 = vld [vmem:[#allocation13 + $0xa0] sm:$0xff]  ;;  %v2707_v2 = vld [vmem:[#allocation13 + $0x90] sm:$0xff]  ;;  %v2998_v15 = vld [vmem:[#allocation12] ss:$0 sm:$0xff] }
 0x46d   : > { %2139 = vmatpush.bf16.msra.mxu3 %v2699_v35 }
 0x46e   : > { %v1656_v33 = vmax.f32 %v1652_v9, 0.0  ;;  %v1702_v34 = vmax.f32 %v1699_v58, 0.0 }
 0x46f   : > { %2170 = vmatpush.bf16.msra.mxu2 %v2691_v47  ;;  %2125 = vmatpush.bf16.msra.mxu1 %v2691_v47 }
 0x470   : > { %v1705_v36 = vmax.f32 %v1656_v33, %v1701_v50 }
 0x471   : > { %v1639_v55 = vpop.f32.mrf.mxu1  ;;  %2140 = vmatpush.bf16.msra.mxu3 %v2698_v18 }
 0x472   : > { %v1640_v59 = vadd.f32 %v2997_v37, %v1639_v55  ;;  %v1732_v45 = vrot.slane %v1705_v36, 7 }
 0x474   : > { %v1654_v3 = vadd.f32 %v1653_v1, %v1640_v59 }
 0x475   : > { %2141 = vmatpush.bf16.msra.mxu3 %v2697_v19 }
 0x476   : > { %v1657_v43 = vmax.f32 %v1654_v3, 0.0 }
 0x478   : > { %v1706_v44 = vmax.f32 %v1657_v43, %v1702_v34 }
 0x47a   : > { %v1733_v46 = vrot.slane %v1706_v44, 7  ;;  %v1755_v48 = vpack.c.bf16 %v1706_v44, %v1705_v36  ;;  %v2989_v17 = vpack.i.bf16 %v1706_v44, %v1705_v36 }
 0x47c   : > { %2990 = vrot.lane.b32.xlu1 %v2989_v17, %s3319_s6  ;;  %2543 = vmatmul.msk.bf16.vlgmr.msrb.gmra.mxu1 %vm856_vm5, %v1755_v48  ;;  %v1734_v11 = vsel %vm593_vm2, %v1732_v45, %v1733_v46  ;;  %v1735_v37 = vsel %vm593_vm2, %v1733_v46, %v1732_v45 }
 0x47d   : > { %v1736_v26 = vsel %vm597_vm3, 0.0, %v1735_v37 }
 0x4d6   : > { %v2986_v20 = vpop.permute.xlu0 %2985 }
 0x4d7   : > { %v2988_v42 = vunpack.i.h.bf16 %v2986_v20  ;;  %v2987_v21 = vunpack.i.l.bf16 %v2986_v20 }
 0x4d9   : > { %v1753_v52 = vsel %vm856_vm5, %v1734_v11, %v2988_v42  ;;  %v1752_v27 = vsel %vm856_vm5, %v1736_v26, %v2987_v21 }
 0x4da   : > { %v1754_v8 = vpack.c.bf16 %v1753_v52, %v1752_v27 }
 0x4dc   : > { %1842 = vmatmul.bf16.vlgmr.msrb.gmra.mxu3 %v1754_v8 }
 0x4dd   : > { %2193 = vmatpush.bf16.msrb.mxu3 %v2712_v25 }
 0x4e5   : > { %v1902_v50 = vpop.f32.mrf.mxu0 }
 0x4ed   : > { %v1904_v37 = vpop.f32.mrf.mxu0 }
 0x4ee   : > { %v2991_v6 = vpop.permute.xlu1 %2990 }
 0x4ef   : > { %v2993_v38 = vunpack.i.h.bf16 %v2991_v6  ;;  %v2992_v41 = vunpack.i.l.bf16 %v2991_v6 }
 0x4f1   : > { %v1872_v61 = vsel %vm856_vm5, %v4053_v10, %v2992_v41  ;;  %v1873_v39 = vsel %vm856_vm5, %v4055_v53, %v2993_v38  ;;  %v2711_v10 = vld [vmem:[#allocation13 + $0xb0] sm:$0xff]  ;;  %v2690_v53 = vld [vmem:[#allocation13 + $0x8] sm:$0xff] }
 0x4f2   : > { %v1874_v16 = vpack.c.bf16 %v1873_v39, %v1872_v61  ;;  %2194 = vmatpush.bf16.msrb.mxu3 %v2711_v10  ;;  %2149 = vmatpush.bf16.msra.mxu0 %v2711_v10 }
 0x4f3   : > { %2171 = vmatpush.bf16.msra.mxu2 %v2690_v53  ;;  %2126 = vmatpush.bf16.msra.mxu1 %v2690_v53 }
 0x4f4   : > { %1887 = vmatmul.bf16.vlgmr.msrb.gmra.mxu2 %v1874_v16 }
 0x4f6   : > { %2195 = vmatpush.bf16.msrb.mxu3 %v2710_v14  ;;  %2150 = vmatpush.bf16.msra.mxu0 %v2710_v14 }
 0x4f7   : > { %2172 = vmatpush.bf16.msra.mxu2 %v2689_v56  ;;  %2127 = vmatpush.bf16.msra.mxu1 %v2689_v56 }
 0x4f9   : > { %v1857_v54 = vpop.f32.mrf.mxu1 }
 0x4fa   : > { %2196 = vmatpush.bf16.msrb.mxu3 %v2709_v23  ;;  %2151 = vmatpush.bf16.msra.mxu0 %v2709_v23 }
 0x4fb   : > { %2179 = vmatpush.bf16.msrb.mxu1 %v2704_v63 }
 0x4fe   : > { %2197 = vmatpush.bf16.msrb.mxu3 %v2708_v24  ;;  %2152 = vmatpush.bf16.msra.mxu0 %v2708_v24 }
 0x4ff   : > { %2180 = vmatpush.bf16.msrb.mxu1 %v2703_v0 }
 0x501   : > { %v1859_v33 = vpop.f32.mrf.mxu1 }
 0x502   : > { %2198 = vmatpush.bf16.msrb.mxu3 %v2707_v2  ;;  %2153 = vmatpush.bf16.msra.mxu0 %v2707_v2 }
 0x503   : > { %2181 = vmatpush.bf16.msrb.mxu1 %v2702_v28 }
 0x506   : > { %2199 = vmatpush.bf16.msrb.mxu3 %v2706_v62  ;;  %2154 = vmatpush.bf16.msra.mxu0 %v2706_v62 }
 0x507   : > { %2182 = vmatpush.bf16.msrb.mxu1 %v2701_v30 }
 0x50a   : > { %2200 = vmatpush.bf16.msrb.mxu3 %v2705_v31  ;;  %2155 = vmatpush.bf16.msra.mxu0 %v2705_v31 }
 0x50b   : > { %2183 = vmatpush.bf16.msrb.mxu1 %v2700_v51 }
 0x50f   : > { %2184 = vmatpush.bf16.msrb.mxu1 %v2699_v35 }
 0x513   : > { %2185 = vmatpush.bf16.msrb.mxu1 %v2698_v18 }
 0x517   : > { %2186 = vmatpush.bf16.msrb.mxu1 %v2697_v19 }
 0x55f   : > { %v1843_v9 = vpop.f32.mrf.mxu3 }
 0x560   : > { %v1844_v32 = vadd.f32 %v2998_v15, %v1843_v9 }
 0x562   : > { %v1858_v22 = vadd.f32 %v1857_v54, %v1844_v32 }
 0x564   : > { %v1862_v59 = vmax.f32 %v1858_v22, 0.0 }
 0x566   : > { %v1964_v34 = vrot.slane %v1862_v59, 1 }
 0x567   : > { %v1845_v49 = vpop.f32.mrf.mxu3 }
 0x568   : > { %v1846_v55 = vadd.f32 %v2998_v15, %v1845_v49 }
 0x56a   : > { %v1860_v58 = vadd.f32 %v1859_v33, %v1846_v55 }
 0x56c   : > { %v1863_v57 = vmax.f32 %v1860_v58, 0.0 }
 0x56e   : > { %v1971_v1 = vpack.c.bf16 %v1863_v57, %v1862_v59  ;;  %v1965_v36 = vrot.slane %v1863_v57, 1 }
 0x570   : > { %2142 = vmatmul.bf16.vlgmr.msra.gmra.mxu3 %v1971_v1  ;;  %2173 = vmatmul.bf16.vlgmr.msra.gmra.mxu2 %v1971_v1  ;;  %v1966_v44 = vsel %vm603_vm0, %v1964_v34, %v1965_v36  ;;  %v1967_v45 = vsel %vm603_vm0, %v1965_v36, %v1964_v34 }
 0x571   : > { %v2647_v48 = vpack.c.bf16 %v1967_v45, %v1966_v44 }
 0x577   : > { %v1888_v3 = vpop.f32.mrf.mxu2 }
 0x578   : > { %v1889_v43 = vadd.f32 %v2998_v15, %v1888_v3 }
 0x57a   : > { %v1903_v46 = vadd.f32 %v1902_v50, %v1889_v43 }
 0x57c   : > { %v1907_v5 = vmax.f32 %v1903_v46, 0.0 }
 0x57e   : > { %v1958_v13 = vrot.slane %v1907_v5, 7 }
 0x57f   : > { %v1890_v17 = vpop.f32.mrf.mxu2 }
 0x580   : > { %v1891_v11 = vadd.f32 %v2998_v15, %v1890_v17  ;;  %2648 = vmatmul.msk.bf16.vlgmr.msrb.gmra.mxu3 %vm2646_vm9, %v2647_v48 }
 0x582   : > { %v1905_v20 = vadd.f32 %v1904_v37, %v1891_v11 }
 0x584   : > { %v1908_v42 = vmax.f32 %v1905_v20, 0.0 }
 0x586   : > { %v1959_v21 = vrot.slane %v1908_v42, 7  ;;  %v1972_v26 = vpack.c.bf16 %v1908_v42, %v1907_v5 }
 0x588   : > { %v1960_v52 = vsel %vm593_vm2, %v1958_v13, %v1959_v21  ;;  %v1961_v27 = vsel %vm593_vm2, %v1959_v21, %v1958_v13  ;;  %2156 = vmatmul.bf16.vlgmr.msra.gmra.mxu0 %v1972_v26 }
 0x589   : > { %v2643_v8 = vpack.c.bf16 %v1960_v52, %v1961_v27 }
 0x58b   : > { %2644 = vmatmul.msk.bf16.vlgmr.msra.gmra.mxu1 %vm2642_vm11, %v2643_v8 }
 0x59b   : > { %2187 = vmatmul.bf16.vlgmr.msrb.gmra.mxu1 %v1972_v26 }
 0x5f3   : > { %v2143_v63 = vpop.f32.mrf.mxu3  ;;  %v2174_v30 = vpop.f32.mrf.mxu2 }
 0x5f4   : > { %v2175_v38 = vadd.f32 %v2999_v29, %v2174_v30 }
 0x5fb   : > { %v2145_v0 = vpop.f32.mrf.mxu3  ;;  %v2176_v35 = vpop.f32.mrf.mxu2 }
 0x5fc   : > { %v2177_v25 = vadd.f32 %v2999_v29, %v2176_v35 }
 0x603   : > { %v2202_v41 = vpop.f32.mrf.mxu3 }
 0x605   : > { %v2157_v6 = vpop.f32.mrf.mxu0 }
 0x608   : > { %v2129_v60 = vpop.f32.mrf.mxu1 }
 0x609   : > { %v2130_v7 = vadd.f32 %v2999_v29, %v2129_v60 }
 0x60b   : > { %v2144_v4 = vadd.f32 %v2143_v63, %v2130_v7  ;;  %v2204_v23 = vpop.f32.mrf.mxu3 }
 0x60d   : > { %v2158_v51 = vadd.f32 %v2157_v6, %v2144_v4  ;;  %v2159_v10 = vpop.f32.mrf.mxu0 }
 0x60f   : > { %v2162_v18 = vmax.f32 %v2158_v51, 0.0 }
 0x610   : > { %v2131_v28 = vpop.f32.mrf.mxu1 }
 0x611   : > { %v2132_v61 = vadd.f32 %v2999_v29, %v2131_v28 }
 0x613   : > { %v2146_v19 = vadd.f32 %v2145_v0, %v2132_v61 }
 0x615   : > { %v2160_v14 = vadd.f32 %v2159_v10, %v2146_v19 }
 0x617   : > { %v2163_v2 = vmax.f32 %v2160_v14, 0.0 }
 0x618   : > { %v2188_v12 = vpop.f32.mrf.mxu1 }
 0x619   : > { %v2189_v39 = vadd.f32 %v2188_v12, %v2175_v38 }
 0x61b   : > { %v2203_v16 = vadd.f32 %v2202_v41, %v2189_v39 }
 0x61d   : > { %v2207_v40 = vmax.f32 %v2203_v16, 0.0 }
 0x61f   : > { %v2209_v47 = vmax.f32 %v2162_v18, %v2207_v40 }
 0x620   : > { %v2190_v53 = vpop.f32.mrf.mxu1 }
 0x621   : > { %2211 = vst [vmem:[%s575_s24] sm:$0xff] %v2209_v47  ;;  %v2191_v56 = vadd.f32 %v2190_v53, %v2177_v25 }
 0x623   : > { %v2205_v24 = vadd.f32 %v2204_v23, %v2191_v56 }
 0x625   : > { %v2208_v62 = vmax.f32 %v2205_v24, 0.0 }
 0x627   : > { %v2210_v31 = vmax.f32 %v2163_v2, %v2208_v62 }
 0x629   : > { %2212 = vst [vmem:[%s575_s24 + $0x8] sm:$0xff] %v2210_v31 }
 0x62a PF: > { %s28_s25 = sadd.s32 1, %s3296_s25  }
 0x62b   : > { %p25_p7 = scmp.ge.s32.totalorder %s28_s25, 4  }
 0x62d   :  { %27 = sbr.rel (!%p25_p7) target bundleno = 8 (0x8), region = 139 }
 0x632   :  { %2234 = vsyncpa [#allocation3], 1 }
 0x633   :  { %2236 = vsyncpa [#allocation3 + $0x1], 1 }
 0x634   :  { %2237 = vsyncpa [#allocation5], 1 }
 0x635   :  { %2238 = vsyncpa [#allocation8], 1 }
 0x636   :  { %2239 = vsyncpa [#allocation11], 1 }
 0x637   :  { %2240 = vsyncpa [#allocation14], 1 }

// kernel: cnn1d_forward.5
= control target key start
LH: loop header
LB: loop body
LE: loop exit
PB: predicated region body
PF: predicated region fallthrough
CT: control target
= control target key end

     0   :  { %10 = vsyncpa [#allocation3], 0  ;;  %s4196_s0 = inlined_call_operand.vmem [shape: f32[2,1024], index: 0, kind: input, shape index: {}]   ;;  %s4197_s1 = inlined_call_operand.hbm [shape: bf16[1024,512], index: 1, kind: input, shape index: {}]   ;;  %s4198_s2 = inlined_call_operand.hbm [shape: f32[1,512], index: 2, kind: input, shape index: {}]   ;;  %s4199_s3 = inlined_call_operand.vmem [shape: bf16[512,2], index: 3, kind: input, shape index: {}]   ;;  %s4200_s4 = inlined_call_operand.hbm [shape: f32[1,2], index: 4, kind: input, shape index: {}]   ;;  %s4201_s5 = inlined_call_operand.hbm [shape: f32[2,2], index: 5, kind: output, shape index: {}]  }
   0x1   :  { %11 = vsyncpa [#allocation6], 0  ;;  %s33_s20 = sshll.u32 %s4198_s2, 4  ;;  %s34_s20 = int_to_ptr.hbm [resolvable:$true] %s33_s20 }
   0x2   :  { %12 = vsyncpa [#allocation4], 0  ;;  %s3974_s21 = smov [#allocation5]   ;;  %s19_s25 = sshll.u32 %s4197_s1, 4  ;;  %s20_s25 = int_to_ptr.hbm [resolvable:$true] %s19_s25 }
   0x3   :  { %s35_s22 = sshll.u32 %s3974_s21, 4  ;;  %s3975_s26 = smov [#allocation2]   ;;  %s36_s22 = int_to_ptr.vmem [resolvable:$true] %s35_s22 }
   0x4   :  { %38 = dma.hbm_to_vmem [thread:$0]  %s34_s20, 64, %s36_s22, [#allocation6]  }
   0x5   :  { %s21_s27 = sshll.u32 %s3975_s26, 4  ;;  %s3976_s28 = smov 256   ;;  %s22_s27 = int_to_ptr.vmem [resolvable:$true] %s21_s27 }
   0x6   :  { %s3977_s29 = smov 16   ;;  %s46_s2 = sshll.u32 %s4200_s4, 4  ;;  %s47_s2 = int_to_ptr.hbm [resolvable:$true] %s46_s2 }
   0x7   :  { %27 = dma.hbm_to_vmem [thread:$0]  %s20_s25, 32768, %s22_s27, [#allocation3], %s3976_s28, %s3976_s28, %s3977_s29  }
   0x8   :  { %s3978_s7 = smov [#allocation7]  }
   0x9   :  { %s48_s8 = sshll.u32 %s3978_s7, 4  ;;  %s49_s8 = int_to_ptr.vmem [resolvable:$true] %s48_s8 }
   0xa   :  { %51 = dma.hbm_to_vmem [thread:$0]  %s47_s2, 16, %s49_s8, [#allocation6]  }
   0xb   :  { %3968 = dma.done.wait [#allocation3], 32768  }
   0xc   :  { %3969 = vsyncadd [#allocation3], 4294934528 }
   0xd   :  { %3970 = dma.done.wait [#allocation6], 80  }
   0xe   :  { %3971 = vsyncadd [#allocation6], 4294967216  ;;  %v2535_v0 = vld [vmem:[#allocation2 + $0xe0] sm:$0xf]  ;;  %v3603_v1 = vld [vmem:[#allocation2 + $0xec] sm:$0xf0] }
   0xf   :  { %v2663_v2 = vld [vmem:[#allocation2 + $0x1e0] sm:$0xf]  ;;  %v2536_v3 = vor.u32 %v3603_v1, %v2535_v0  ;;  %v3635_v4 = vld [vmem:[#allocation2 + $0x1ec] sm:$0xf0]  ;;  %vm2377_vm0 = vcmask 9216   ;;  %s2410_s19 = sshll.u32 %s4201_s5, 4  ;;  %s2411_s19 = int_to_ptr.hbm [resolvable:$true] %s2410_s19 }
  0x10   :  { %v2791_v5 = vld [vmem:[#allocation2 + $0x2e0] sm:$0xf]  ;;  %v3667_v6 = vld [vmem:[#allocation2 + $0x2ec] sm:$0xf0]  ;;  %v2664_v7 = vor.u32 %v3635_v4, %v2663_v2 }
  0x11   :  { %v2792_v8 = vor.u32 %v3667_v6, %v2791_v5  ;;  %v2919_v9 = vld [vmem:[#allocation2 + $0x3e0] sm:$0xf]  ;;  %v3699_v10 = vld [vmem:[#allocation2 + $0x3ec] sm:$0xf0]  ;;  %1641 = vmatpush.bf16.msra.mxu0 %v2536_v3 }
  0x12   :  { %v2519_v11 = vld [vmem:[#allocation2 + $0xc0] sm:$0xf]  ;;  %v2920_v12 = vor.u32 %v3699_v10, %v2919_v9  ;;  %v3599_v13 = vld [vmem:[#allocation2 + $0xcc] sm:$0xf0]  ;;  %1654 = vmatpush.bf16.msra.mxu1 %v2664_v7 }
  0x13   :  { %v2647_v14 = vld [vmem:[#allocation2 + $0x1c0] sm:$0xf]  ;;  %v3631_v15 = vld [vmem:[#allocation2 + $0x1cc] sm:$0xf0]  ;;  %1667 = vmatpush.bf16.msra.mxu2 %v2792_v8  ;;  %v2520_v16 = vor.u32 %v3599_v13, %v2519_v11 }
  0x14   :  { %v2648_v17 = vor.u32 %v3631_v15, %v2647_v14  ;;  %v2775_v18 = vld [vmem:[#allocation2 + $0x2c0] sm:$0xf]  ;;  %v3663_v19 = vld [vmem:[#allocation2 + $0x2cc] sm:$0xf0]  ;;  %1680 = vmatpush.bf16.msra.mxu3 %v2920_v12 }
  0x15   :  { %v2903_v20 = vld [vmem:[#allocation2 + $0x3c0] sm:$0xf]  ;;  %v2776_v21 = vor.u32 %v3663_v19, %v2775_v18  ;;  %v3695_v22 = vld [vmem:[#allocation2 + $0x3cc] sm:$0xf0]  ;;  %1642 = vmatpush.bf16.msra.mxu0 %v2520_v16 }
  0x16   :  { %v2503_v23 = vld [vmem:[#allocation2 + $0xa0] sm:$0xf]  ;;  %v3595_v24 = vld [vmem:[#allocation2 + $0xac] sm:$0xf0]  ;;  %v2904_v25 = vor.u32 %v3695_v22, %v2903_v20  ;;  %1655 = vmatpush.bf16.msra.mxu1 %v2648_v17 }
  0x17   :  { %v2631_v26 = vld [vmem:[#allocation2 + $0x1a0] sm:$0xf]  ;;  %v3627_v27 = vld [vmem:[#allocation2 + $0x1ac] sm:$0xf0]  ;;  %v2504_v29 = vor.u32 %v3595_v24, %v2503_v23  ;;  %1668 = vmatpush.bf16.msra.mxu2 %v2776_v21 }
  0x18   :  { %v2759_v28 = vld [vmem:[#allocation2 + $0x2a0] sm:$0xf]  ;;  %v3659_v30 = vld [vmem:[#allocation2 + $0x2ac] sm:$0xf0]  ;;  %v2632_v33 = vor.u32 %v3627_v27, %v2631_v26  ;;  %1681 = vmatpush.bf16.msra.mxu3 %v2904_v25 }
  0x19   :  { %v2887_v31 = vld [vmem:[#allocation2 + $0x3a0] sm:$0xf]  ;;  %v3691_v32 = vld [vmem:[#allocation2 + $0x3ac] sm:$0xf0]  ;;  %v2760_v34 = vor.u32 %v3659_v30, %v2759_v28  ;;  %1643 = vmatpush.bf16.msra.mxu0 %v2504_v29 }
  0x1a   :  { %v2487_v35 = vld [vmem:[#allocation2 + $0x80] sm:$0xf]  ;;  %v3591_v36 = vld [vmem:[#allocation2 + $0x8c] sm:$0xf0]  ;;  %v2888_v38 = vor.u32 %v3691_v32, %v2887_v31  ;;  %1656 = vmatpush.bf16.msra.mxu1 %v2632_v33 }
  0x1b   :  { %v2615_v37 = vld [vmem:[#allocation2 + $0x180] sm:$0xf]  ;;  %v3623_v39 = vld [vmem:[#allocation2 + $0x18c] sm:$0xf0]  ;;  %v2488_v44 = vor.u32 %v3591_v36, %v2487_v35  ;;  %1669 = vmatpush.bf16.msra.mxu2 %v2760_v34 }
  0x1c   :  { %v2743_v40 = vld [vmem:[#allocation2 + $0x280] sm:$0xf]  ;;  %v3655_v41 = vld [vmem:[#allocation2 + $0x28c] sm:$0xf0]  ;;  %v2616_v45 = vor.u32 %v3623_v39, %v2615_v37  ;;  %1682 = vmatpush.bf16.msra.mxu3 %v2888_v38 }
  0x1d   :  { %v2871_v42 = vld [vmem:[#allocation2 + $0x380] sm:$0xf]  ;;  %v3687_v43 = vld [vmem:[#allocation2 + $0x38c] sm:$0xf0]  ;;  %v2744_v46 = vor.u32 %v3655_v41, %v2743_v40  ;;  %1644 = vmatpush.bf16.msra.mxu0 %v2488_v44 }
  0x1e   :  { %v2471_v47 = vld [vmem:[#allocation2 + $0x60] sm:$0xf]  ;;  %v3587_v48 = vld [vmem:[#allocation2 + $0x6c] sm:$0xf0]  ;;  %v2872_v50 = vor.u32 %v3687_v43, %v2871_v42  ;;  %1657 = vmatpush.bf16.msra.mxu1 %v2616_v45 }
  0x1f   :  { %v2599_v49 = vld [vmem:[#allocation2 + $0x160] sm:$0xf]  ;;  %v3619_v51 = vld [vmem:[#allocation2 + $0x16c] sm:$0xf0]  ;;  %v2472_v56 = vor.u32 %v3587_v48, %v2471_v47  ;;  %1670 = vmatpush.bf16.msra.mxu2 %v2744_v46 }
  0x20   :  { %v2727_v52 = vld [vmem:[#allocation2 + $0x260] sm:$0xf]  ;;  %v3651_v53 = vld [vmem:[#allocation2 + $0x26c] sm:$0xf0]  ;;  %v2600_v57 = vor.u32 %v3619_v51, %v2599_v49  ;;  %1683 = vmatpush.bf16.msra.mxu3 %v2872_v50 }
  0x21   :  { %v2855_v54 = vld [vmem:[#allocation2 + $0x360] sm:$0xf]  ;;  %v3683_v55 = vld [vmem:[#allocation2 + $0x36c] sm:$0xf0]  ;;  %v2728_v58 = vor.u32 %v3651_v53, %v2727_v52  ;;  %1645 = vmatpush.bf16.msra.mxu0 %v2472_v56 }
  0x22   :  { %v2455_v59 = vld [vmem:[#allocation2 + $0x40] sm:$0xf]  ;;  %v3583_v60 = vld [vmem:[#allocation2 + $0x4c] sm:$0xf0]  ;;  %v2856_v62 = vor.u32 %v3683_v55, %v2855_v54  ;;  %1658 = vmatpush.bf16.msra.mxu1 %v2600_v57 }
  0x23   :  { %v2583_v61 = vld [vmem:[#allocation2 + $0x140] sm:$0xf]  ;;  %v3615_v63 = vld [vmem:[#allocation2 + $0x14c] sm:$0xf0]  ;;  %v2456_v4 = vor.u32 %v3583_v60, %v2455_v59  ;;  %1671 = vmatpush.bf16.msra.mxu2 %v2728_v58 }
  0x24   :  { %v2711_v0 = vld [vmem:[#allocation2 + $0x240] sm:$0xf]  ;;  %v3647_v1 = vld [vmem:[#allocation2 + $0x24c] sm:$0xf0]  ;;  %v2584_v5 = vor.u32 %v3615_v63, %v2583_v61  ;;  %1684 = vmatpush.bf16.msra.mxu3 %v2856_v62 }
  0x25   :  { %v2839_v2 = vld [vmem:[#allocation2 + $0x340] sm:$0xf]  ;;  %v3679_v3 = vld [vmem:[#allocation2 + $0x34c] sm:$0xf0]  ;;  %v2712_v6 = vor.u32 %v3647_v1, %v2711_v0  ;;  %1646 = vmatpush.bf16.msra.mxu0 %v2456_v4 }
  0x26   :  { %v2439_v7 = vld [vmem:[#allocation2 + $0x20] sm:$0xf]  ;;  %v3579_v8 = vld [vmem:[#allocation2 + $0x2c] sm:$0xf0]  ;;  %v2840_v10 = vor.u32 %v3679_v3, %v2839_v2  ;;  %1659 = vmatpush.bf16.msra.mxu1 %v2584_v5  ;;  %v64_v2 = vld [vmem:[%s4196_s0] sm:$0xff] }
  0x27   :  { %v2567_v9 = vld [vmem:[#allocation2 + $0x120] sm:$0xf]  ;;  %v3611_v11 = vld [vmem:[#allocation2 + $0x12c] sm:$0xf0]  ;;  %v2440_v16 = vor.u32 %v3579_v8, %v2439_v7  ;;  %1672 = vmatpush.bf16.msra.mxu2 %v2712_v6  ;;  %68 = vst [vmem:[#allocation1] ss:$4 sm:$0xff] %v64_v2 }
  0x28   :  { %v2695_v12 = vld [vmem:[#allocation2 + $0x220] sm:$0xf]  ;;  %v3643_v13 = vld [vmem:[#allocation2 + $0x22c] sm:$0xf0]  ;;  %v2568_v19 = vor.u32 %v3611_v11, %v2567_v9  ;;  %1685 = vmatpush.bf16.msra.mxu3 %v2840_v10 }
  0x29   :  { %v2823_v14 = vld [vmem:[#allocation2 + $0x320] sm:$0xf]  ;;  %v3675_v15 = vld [vmem:[#allocation2 + $0x32c] sm:$0xf0]  ;;  %v2696_v20 = vor.u32 %v3643_v13, %v2695_v12  ;;  %1647 = vmatpush.bf16.msra.mxu0 %v2440_v16 }
  0x2a   :  { %v2423_v17 = vld [vmem:[#allocation2] sm:$0xf]  ;;  %v3575_v18 = vld [vmem:[#allocation2 + $0xc] sm:$0xf0]  ;;  %v2824_v24 = vor.u32 %v3675_v15, %v2823_v14  ;;  %1660 = vmatpush.bf16.msra.mxu1 %v2568_v19 }
  0x2b   :  { %v2551_v21 = vld [vmem:[#allocation2 + $0x100] sm:$0xf]  ;;  %v3607_v22 = vld [vmem:[#allocation2 + $0x10c] sm:$0xf0]  ;;  %v2424_v31 = vor.u32 %v3575_v18, %v2423_v17  ;;  %1673 = vmatpush.bf16.msra.mxu2 %v2696_v20 }
  0x2c   :  { %v2679_v23 = vld [vmem:[#allocation2 + $0x200] sm:$0xf]  ;;  %v3639_v25 = vld [vmem:[#allocation2 + $0x20c] sm:$0xf0]  ;;  %v2552_v35 = vor.u32 %v3607_v22, %v2551_v21  ;;  %1686 = vmatpush.bf16.msra.mxu3 %v2824_v24 }
  0x2d   :  { %v2807_v26 = vld [vmem:[#allocation2 + $0x300] sm:$0xf]  ;;  %v3671_v27 = vld [vmem:[#allocation2 + $0x30c] sm:$0xf0]  ;;  %v2680_v36 = vor.u32 %v3639_v25, %v2679_v23  ;;  %1648 = vmatpush.bf16.msra.mxu0 %v2424_v31 }
  0x2e   :  { %v3047_v28 = vld [vmem:[#allocation2 + $0x4e0] sm:$0xf]  ;;  %v3731_v29 = vld [vmem:[#allocation2 + $0x4ec] sm:$0xf0]  ;;  %v2808_v39 = vor.u32 %v3671_v27, %v2807_v26  ;;  %1661 = vmatpush.bf16.msra.mxu1 %v2552_v35 }
  0x2f   :  { %v3175_v30 = vld [vmem:[#allocation2 + $0x5e0] sm:$0xf]  ;;  %v3763_v32 = vld [vmem:[#allocation2 + $0x5ec] sm:$0xf0]  ;;  %v3048_v40 = vor.u32 %v3731_v29, %v3047_v28  ;;  %1674 = vmatpush.bf16.msra.mxu2 %v2680_v36 }
  0x30   :  { %v3303_v33 = vld [vmem:[#allocation2 + $0x6e0] sm:$0xf]  ;;  %v3795_v34 = vld [vmem:[#allocation2 + $0x6ec] sm:$0xf0]  ;;  %v3176_v41 = vor.u32 %v3763_v32, %v3175_v30  ;;  %1687 = vmatpush.bf16.msra.mxu3 %v2808_v39 }
  0x31   :  { %v3431_v37 = vld [vmem:[#allocation2 + $0x7e0] sm:$0xf]  ;;  %v3827_v38 = vld [vmem:[#allocation2 + $0x7ec] sm:$0xf0]  ;;  %v3304_v42 = vor.u32 %v3795_v34, %v3303_v33  ;;  %1693 = vmatpush.bf16.msrb.mxu0 %v3048_v40 }
  0x32   :  { %v3031_v43 = vld [vmem:[#allocation2 + $0x4c0] sm:$0xf]  ;;  %v3727_v44 = vld [vmem:[#allocation2 + $0x4cc] sm:$0xf0]  ;;  %v3432_v46 = vor.u32 %v3827_v38, %v3431_v37  ;;  %1706 = vmatpush.bf16.msrb.mxu1 %v3176_v41 }
  0x33   :  { %v3159_v45 = vld [vmem:[#allocation2 + $0x5c0] sm:$0xf]  ;;  %v3759_v47 = vld [vmem:[#allocation2 + $0x5cc] sm:$0xf0]  ;;  %v3032_v52 = vor.u32 %v3727_v44, %v3031_v43  ;;  %1719 = vmatpush.bf16.msrb.mxu2 %v3304_v42 }
  0x34   :  { %v3287_v48 = vld [vmem:[#allocation2 + $0x6c0] sm:$0xf]  ;;  %v3791_v49 = vld [vmem:[#allocation2 + $0x6cc] sm:$0xf0]  ;;  %v3160_v53 = vor.u32 %v3759_v47, %v3159_v45  ;;  %1732 = vmatpush.bf16.msrb.mxu3 %v3432_v46 }
  0x35   :  { %v3415_v50 = vld [vmem:[#allocation2 + $0x7c0] sm:$0xf]  ;;  %v3823_v51 = vld [vmem:[#allocation2 + $0x7cc] sm:$0xf0]  ;;  %v3288_v54 = vor.u32 %v3791_v49, %v3287_v48  ;;  %1694 = vmatpush.bf16.msrb.mxu0 %v3032_v52 }
  0x36   :  { %v3015_v55 = vld [vmem:[#allocation2 + $0x4a0] sm:$0xf]  ;;  %v3723_v56 = vld [vmem:[#allocation2 + $0x4ac] sm:$0xf0]  ;;  %v3416_v58 = vor.u32 %v3823_v51, %v3415_v50  ;;  %1707 = vmatpush.bf16.msrb.mxu1 %v3160_v53 }
  0x37   :  { %v3143_v57 = vld [vmem:[#allocation2 + $0x5a0] sm:$0xf]  ;;  %v3755_v59 = vld [vmem:[#allocation2 + $0x5ac] sm:$0xf0]  ;;  %v3016_v0 = vor.u32 %v3723_v56, %v3015_v55  ;;  %1720 = vmatpush.bf16.msrb.mxu2 %v3288_v54 }
  0x38   :  { %v3271_v60 = vld [vmem:[#allocation2 + $0x6a0] sm:$0xf]  ;;  %v3787_v61 = vld [vmem:[#allocation2 + $0x6ac] sm:$0xf0]  ;;  %v3144_v3 = vor.u32 %v3755_v59, %v3143_v57  ;;  %1733 = vmatpush.bf16.msrb.mxu3 %v3416_v58 }
  0x39   :  { %v3399_v62 = vld [vmem:[#allocation2 + $0x7a0] sm:$0xf]  ;;  %v3819_v63 = vld [vmem:[#allocation2 + $0x7ac] sm:$0xf0]  ;;  %v3272_v4 = vor.u32 %v3787_v61, %v3271_v60  ;;  %1695 = vmatpush.bf16.msrb.mxu0 %v3016_v0 }
  0x3a   :  { %v2999_v1 = vld [vmem:[#allocation2 + $0x480] sm:$0xf]  ;;  %v3719_v5 = vld [vmem:[#allocation2 + $0x48c] sm:$0xf0]  ;;  %v3400_v7 = vor.u32 %v3819_v63, %v3399_v62  ;;  %1708 = vmatpush.bf16.msrb.mxu1 %v3144_v3 }
  0x3b   :  { %v3127_v6 = vld [vmem:[#allocation2 + $0x580] sm:$0xf]  ;;  %v3751_v8 = vld [vmem:[#allocation2 + $0x58c] sm:$0xf0]  ;;  %v3000_v13 = vor.u32 %v3719_v5, %v2999_v1  ;;  %1721 = vmatpush.bf16.msrb.mxu2 %v3272_v4 }
  0x3c   :  { %v3255_v9 = vld [vmem:[#allocation2 + $0x680] sm:$0xf]  ;;  %v3783_v10 = vld [vmem:[#allocation2 + $0x68c] sm:$0xf0]  ;;  %v3128_v15 = vor.u32 %v3751_v8, %v3127_v6  ;;  %1734 = vmatpush.bf16.msrb.mxu3 %v3400_v7  ;;  %v3601_v6 = vld [vmem:[#allocation2 + $0xe4] sm:$0xf] }
  0x3d   :  { %v3383_v11 = vld [vmem:[#allocation2 + $0x780] sm:$0xf]  ;;  %v3815_v12 = vld [vmem:[#allocation2 + $0x78c] sm:$0xf0]  ;;  %v3256_v16 = vor.u32 %v3783_v10, %v3255_v9  ;;  %1696 = vmatpush.bf16.msrb.mxu0 %v3000_v13  ;;  %v2537_v7 = vld [vmem:[#allocation2 + $0xf0] sm:$0xf0] }
  0x3e   :  { %v2983_v14 = vld [vmem:[#allocation2 + $0x460] sm:$0xf]  ;;  %v3715_v17 = vld [vmem:[#allocation2 + $0x46c] sm:$0xf0]  ;;  %v3384_v20 = vor.u32 %v3815_v12, %v3383_v11  ;;  %1709 = vmatpush.bf16.msrb.mxu1 %v3128_v15  ;;  %v3633_v8 = vld [vmem:[#allocation2 + $0x1e4] sm:$0xf] }
  0x3f   :  { %v3111_v18 = vld [vmem:[#allocation2 + $0x560] sm:$0xf]  ;;  %v3747_v19 = vld [vmem:[#allocation2 + $0x56c] sm:$0xf0]  ;;  %v2984_v27 = vor.u32 %v3715_v17, %v2983_v14  ;;  %1722 = vmatpush.bf16.msrb.mxu2 %v3256_v16  ;;  %v2665_v9 = vld [vmem:[#allocation2 + $0x1f0] sm:$0xf0] }
  0x40   :  { %v3239_v21 = vld [vmem:[#allocation2 + $0x660] sm:$0xf]  ;;  %v3779_v22 = vld [vmem:[#allocation2 + $0x66c] sm:$0xf0]  ;;  %v3112_v28 = vor.u32 %v3747_v19, %v3111_v18  ;;  %1735 = vmatpush.bf16.msrb.mxu3 %v3384_v20  ;;  %v3665_v10 = vld [vmem:[#allocation2 + $0x2e4] sm:$0xf] }
  0x41   :  { %v3367_v23 = vld [vmem:[#allocation2 + $0x760] sm:$0xf]  ;;  %v3811_v24 = vld [vmem:[#allocation2 + $0x76c] sm:$0xf0]  ;;  %v3240_v32 = vor.u32 %v3779_v22, %v3239_v21  ;;  %1697 = vmatpush.bf16.msrb.mxu0 %v2984_v27  ;;  %v2793_v12 = vld [vmem:[#allocation2 + $0x2f0] sm:$0xf0]  ;;  %v2540_v21 = vor.u32 %v3601_v6, %v2537_v7 }
  0x42   :  { %v2967_v25 = vld [vmem:[#allocation2 + $0x440] sm:$0xf]  ;;  %v3711_v26 = vld [vmem:[#allocation2 + $0x44c] sm:$0xf0]  ;;  %v3368_v37 = vor.u32 %v3811_v24, %v3367_v23  ;;  %1710 = vmatpush.bf16.msrb.mxu1 %v3112_v28  ;;  %v3697_v13 = vld [vmem:[#allocation2 + $0x3e4] sm:$0xf]  ;;  %v2668_v24 = vor.u32 %v3633_v8, %v2665_v9 }
  0x43   :  { %v3095_v29 = vld [vmem:[#allocation2 + $0x540] sm:$0xf]  ;;  %v73_v30 = vld.sshfl [vmem:[#allocation1 + $0x10] sm:$0xff pattern:$0x73625140]  ;;  %v2968_v45 = vor.u32 %v3711_v26, %v2967_v25  ;;  %1723 = vmatpush.bf16.msrb.mxu2 %v3240_v32  ;;  %v2796_v25 = vor.u32 %v3665_v10, %v2793_v12 }
  0x44   :  { %v71_v31 = vld.sshfl [vmem:[#allocation1] sm:$0xff pattern:$0x73625140]  ;;  %v4022_v33 = vpack.c.bf16 %v73_v30, %v73_v30  ;;  %v74_v35 = vld.sshfl [vmem:[#allocation1 + $0x18] sm:$0xff pattern:$0x73625140]  ;;  %1736 = vmatpush.bf16.msrb.mxu3 %v3368_v37 }
  0x45   :  { %v4024_v34 = vpack.c.bf16 %v71_v31, %v71_v31  ;;  %v72_v36 = vld.sshfl [vmem:[#allocation1 + $0x8] sm:$0xff pattern:$0x73625140]  ;;  %v3743_v38 = vld [vmem:[#allocation2 + $0x54c] sm:$0xf0]  ;;  %v4026_v41 = vpack.c.bf16 %v74_v35, %v74_v35  ;;  %1698 = vmatpush.bf16.msrb.mxu0 %v2968_v45 }
  0x46   :  { %v3223_v39 = vld [vmem:[#allocation2 + $0x640] sm:$0xf]  ;;  %v3775_v40 = vld [vmem:[#allocation2 + $0x64c] sm:$0xf0]  ;;  %v4028_v42 = vpack.c.bf16 %v72_v36, %v72_v36  ;;  %1675 = vmatmul.bf16.vlgmr.msra.gmra.mxu2 %v4022_v33  ;;  %v3096_v48 = vor.u32 %v3743_v38, %v3095_v29  ;;  %v2921_v14 = vld [vmem:[#allocation2 + $0x3f0] sm:$0xf0] }
  0x47   :  { %v3351_v43 = vld [vmem:[#allocation2 + $0x740] sm:$0xf]  ;;  %v3807_v44 = vld [vmem:[#allocation2 + $0x74c] sm:$0xf0]  ;;  %1649 = vmatmul.bf16.vlgmr.msra.gmra.mxu0 %v4024_v34  ;;  %1688 = vmatmul.bf16.vlgmr.msra.gmra.mxu3 %v4026_v41  ;;  %v3224_v49 = vor.u32 %v3775_v40, %v3223_v39  ;;  %v3597_v17 = vld [vmem:[#allocation2 + $0xc4] sm:$0xf]  ;;  %v2924_v28 = vor.u32 %v3697_v13, %v2921_v14 }
  0x48   :  { %v2951_v46 = vld [vmem:[#allocation2 + $0x420] sm:$0xf]  ;;  %v3707_v47 = vld [vmem:[#allocation2 + $0x42c] sm:$0xf0]  ;;  %v3352_v53 = vor.u32 %v3807_v44, %v3351_v43  ;;  %1662 = vmatmul.bf16.vlgmr.msra.gmra.mxu1 %v4028_v42  ;;  %v2521_v18 = vld [vmem:[#allocation2 + $0xd0] sm:$0xf0] }
  0x49   :  { %v3079_v50 = vld [vmem:[#allocation2 + $0x520] sm:$0xf]  ;;  %v3739_v51 = vld [vmem:[#allocation2 + $0x52c] sm:$0xf0]  ;;  %v2952_v59 = vor.u32 %v3707_v47, %v2951_v46  ;;  %1711 = vmatpush.bf16.msrb.mxu1 %v3096_v48  ;;  %1724 = vmatpush.bf16.msrb.mxu2 %v3224_v49  ;;  %v3629_v26 = vld [vmem:[#allocation2 + $0x1c4] sm:$0xf]  ;;  %v2524_v39 = vor.u32 %v3597_v17, %v2521_v18 }
  0x4a   :  { %v65_v52 = vld [vmem:[%s4196_s0 + $0x8] sm:$0xff]  ;;  %v3771_v55 = vld [vmem:[#allocation2 + $0x62c] sm:$0xf0]  ;;  %v3080_v63 = vor.u32 %v3739_v51, %v3079_v50  ;;  %1737 = vmatpush.bf16.msrb.mxu3 %v3352_v53  ;;  %v2649_v29 = vld [vmem:[#allocation2 + $0x1d0] sm:$0xf0] }
  0x4b   :  { %v3207_v54 = vld [vmem:[#allocation2 + $0x620] sm:$0xf]  ;;  %70 = vst [vmem:[#allocation1 + $0x20] ss:$4 sm:$0xff] %v65_v52  ;;  %v3803_v57 = vld [vmem:[#allocation2 + $0x72c] sm:$0xf0]  ;;  %1699 = vmatpush.bf16.msrb.mxu0 %v2952_v59  ;;  %v2652_v43 = vor.u32 %v3629_v26, %v2649_v29 }
  0x4c   :  { %v3335_v56 = vld [vmem:[#allocation2 + $0x720] sm:$0xf]  ;;  %v3703_v60 = vld [vmem:[#allocation2 + $0x40c] sm:$0xf0]  ;;  %v3208_v0 = vor.u32 %v3771_v55, %v3207_v54  ;;  %v3661_v30 = vld [vmem:[#allocation2 + $0x2c4] sm:$0xf] }
  0x4d   :  { %v2935_v58 = vld [vmem:[#allocation2 + $0x400] sm:$0xf]  ;;  %v3735_v62 = vld [vmem:[#allocation2 + $0x50c] sm:$0xf0]  ;;  %v3336_v4 = vor.u32 %v3803_v57, %v3335_v56  ;;  %1712 = vmatpush.bf16.msrb.mxu1 %v3080_v63  ;;  %v2777_v31 = vld [vmem:[#allocation2 + $0x2d0] sm:$0xf0] }
  0x4e   :  { %v3063_v61 = vld [vmem:[#allocation2 + $0x500] sm:$0xf]  ;;  %v3767_v2 = vld [vmem:[#allocation2 + $0x60c] sm:$0xf0]  ;;  %v2936_v11 = vor.u32 %v3703_v60, %v2935_v58  ;;  %1725 = vmatpush.bf16.msrb.mxu2 %v3208_v0  ;;  %v3693_v35 = vld [vmem:[#allocation2 + $0x3c4] sm:$0xf]  ;;  %v2780_v44 = vor.u32 %v3661_v30, %v2777_v31 }
  0x4f   :  { %v3191_v1 = vld [vmem:[#allocation2 + $0x600] sm:$0xf]  ;;  %v3799_v5 = vld [vmem:[#allocation2 + $0x70c] sm:$0xf0]  ;;  %v3064_v15 = vor.u32 %v3735_v62, %v3063_v61  ;;  %1738 = vmatpush.bf16.msrb.mxu3 %v3336_v4  ;;  %v2905_v36 = vld [vmem:[#allocation2 + $0x3d0] sm:$0xf0] }
  0x50   :  { %v3319_v3 = vld [vmem:[#allocation2 + $0x700] sm:$0xf]  ;;  %v3192_v16 = vor.u32 %v3767_v2, %v3191_v1  ;;  %1700 = vmatpush.bf16.msrb.mxu0 %v2936_v11  ;;  %v3593_v45 = vld [vmem:[#allocation2 + $0xa4] sm:$0xf]  ;;  %v2505_v46 = vld [vmem:[#allocation2 + $0xb0] sm:$0xf0]  ;;  %v2908_v48 = vor.u32 %v3693_v35, %v2905_v36 }
  0x51   :  { %v3320_v20 = vor.u32 %v3799_v5, %v3319_v3  ;;  %1713 = vmatpush.bf16.msrb.mxu1 %v3064_v15  ;;  %v3625_v47 = vld [vmem:[#allocation2 + $0x1a4] sm:$0xf]  ;;  %v2633_v49 = vld [vmem:[#allocation2 + $0x1b0] sm:$0xf0]  ;;  %v2508_v54 = vor.u32 %v3593_v45, %v2505_v46 }
  0x52   :  { %v77_v19 = vld.sshfl [vmem:[#allocation1 + $0x30] sm:$0xff pattern:$0x73625140]  ;;  %v75_v22 = vld.sshfl [vmem:[#allocation1 + $0x20] sm:$0xff pattern:$0x73625140]  ;;  %1726 = vmatpush.bf16.msrb.mxu2 %v3192_v16  ;;  %v2636_v55 = vor.u32 %v3625_v47, %v2633_v49 }
  0x53   :  { %v78_v23 = vld.sshfl [vmem:[#allocation1 + $0x38] sm:$0xff pattern:$0x73625140]  ;;  %v76_v27 = vld.sshfl [vmem:[#allocation1 + $0x28] sm:$0xff pattern:$0x73625140]  ;;  %v4037_v32 = vpack.c.bf16 %v77_v19, %v77_v19  ;;  %v4039_v37 = vpack.c.bf16 %v75_v22, %v75_v22  ;;  %1739 = vmatpush.bf16.msrb.mxu3 %v3320_v20 }
  0x54   :  { %v4041_v38 = vpack.c.bf16 %v78_v23, %v78_v23  ;;  %1745 = vmatpush.bf16.msra.mxu0 %v2540_v21  ;;  %v4043_v40 = vpack.c.bf16 %v76_v27, %v76_v27  ;;  %v3657_v50 = vld [vmem:[#allocation2 + $0x2a4] sm:$0xf]  ;;  %v2761_v51 = vld [vmem:[#allocation2 + $0x2b0] sm:$0xf0] }
  0x55   :  { %1758 = vmatpush.bf16.msra.mxu1 %v2668_v24  ;;  %v3689_v52 = vld [vmem:[#allocation2 + $0x3a4] sm:$0xf]  ;;  %v2889_v53 = vld [vmem:[#allocation2 + $0x3b0] sm:$0xf0]  ;;  %v2764_v56 = vor.u32 %v3657_v50, %v2761_v51 }
  0x56   :  { %1771 = vmatpush.bf16.msra.mxu2 %v2796_v25  ;;  %v3589_v57 = vld [vmem:[#allocation2 + $0x84] sm:$0xf]  ;;  %v2489_v58 = vld [vmem:[#allocation2 + $0x90] sm:$0xf0]  ;;  %v2892_v60 = vor.u32 %v3689_v52, %v2889_v53 }
  0x57   :  { %1784 = vmatpush.bf16.msra.mxu3 %v2924_v28  ;;  %1727 = vmatmul.bf16.vlgmr.msrb.gmra.mxu2 %v4037_v32  ;;  %v3621_v59 = vld [vmem:[#allocation2 + $0x184] sm:$0xf]  ;;  %v2617_v61 = vld [vmem:[#allocation2 + $0x190] sm:$0xf0]  ;;  %v2492_v2 = vor.u32 %v3589_v57, %v2489_v58 }
  0x58   :  { %1701 = vmatmul.bf16.vlgmr.msrb.gmra.mxu0 %v4039_v37  ;;  %1740 = vmatmul.bf16.vlgmr.msrb.gmra.mxu3 %v4041_v38  ;;  %v3653_v62 = vld [vmem:[#allocation2 + $0x284] sm:$0xf]  ;;  %v2745_v63 = vld [vmem:[#allocation2 + $0x290] sm:$0xf0]  ;;  %v2620_v3 = vor.u32 %v3621_v59, %v2617_v61 }
  0x59   :  { %1746 = vmatpush.bf16.msra.mxu0 %v2524_v39  ;;  %1714 = vmatmul.bf16.vlgmr.msrb.gmra.mxu1 %v4043_v40  ;;  %v3685_v0 = vld [vmem:[#allocation2 + $0x384] sm:$0xf]  ;;  %v2873_v1 = vld [vmem:[#allocation2 + $0x390] sm:$0xf0]  ;;  %v2748_v4 = vor.u32 %v3653_v62, %v2745_v63 }
  0x5a   :  { %1759 = vmatpush.bf16.msra.mxu1 %v2652_v43  ;;  %1772 = vmatpush.bf16.msra.mxu2 %v2780_v44  ;;  %v3585_v5 = vld [vmem:[#allocation2 + $0x64] sm:$0xf]  ;;  %v2473_v6 = vld [vmem:[#allocation2 + $0x70] sm:$0xf0]  ;;  %v2876_v8 = vor.u32 %v3685_v0, %v2873_v1 }
  0x5b   :  { %1785 = vmatpush.bf16.msra.mxu3 %v2908_v48  ;;  %v3617_v7 = vld [vmem:[#allocation2 + $0x164] sm:$0xf]  ;;  %v2601_v9 = vld [vmem:[#allocation2 + $0x170] sm:$0xf0]  ;;  %v2476_v14 = vor.u32 %v3585_v5, %v2473_v6 }
  0x5c   :  { %v3649_v10 = vld [vmem:[#allocation2 + $0x264] sm:$0xf]  ;;  %v2729_v11 = vld [vmem:[#allocation2 + $0x270] sm:$0xf0]  ;;  %v2604_v15 = vor.u32 %v3617_v7, %v2601_v9 }
  0x5d   :  { %1747 = vmatpush.bf16.msra.mxu0 %v2508_v54  ;;  %v3681_v12 = vld [vmem:[#allocation2 + $0x364] sm:$0xf]  ;;  %v2857_v13 = vld [vmem:[#allocation2 + $0x370] sm:$0xf0]  ;;  %v2732_v16 = vor.u32 %v3649_v10, %v2729_v11 }
  0x5e   :  { %1760 = vmatpush.bf16.msra.mxu1 %v2636_v55  ;;  %1773 = vmatpush.bf16.msra.mxu2 %v2764_v56  ;;  %v3581_v17 = vld [vmem:[#allocation2 + $0x44] sm:$0xf]  ;;  %v2457_v18 = vld [vmem:[#allocation2 + $0x50] sm:$0xf0]  ;;  %v2860_v20 = vor.u32 %v3681_v12, %v2857_v13 }
  0x5f   :  { %1786 = vmatpush.bf16.msra.mxu3 %v2892_v60  ;;  %v3613_v19 = vld [vmem:[#allocation2 + $0x144] sm:$0xf]  ;;  %v2585_v21 = vld [vmem:[#allocation2 + $0x150] sm:$0xf0]  ;;  %v2460_v26 = vor.u32 %v3581_v17, %v2457_v18 }
  0x60   :  { %v3645_v22 = vld [vmem:[#allocation2 + $0x244] sm:$0xf]  ;;  %v2713_v23 = vld [vmem:[#allocation2 + $0x250] sm:$0xf0]  ;;  %v2588_v27 = vor.u32 %v3613_v19, %v2585_v21 }
  0x61   :  { %1748 = vmatpush.bf16.msra.mxu0 %v2492_v2  ;;  %v3677_v24 = vld [vmem:[#allocation2 + $0x344] sm:$0xf]  ;;  %v2841_v25 = vld [vmem:[#allocation2 + $0x350] sm:$0xf0]  ;;  %v2716_v28 = vor.u32 %v3645_v22, %v2713_v23 }
  0x62   :  { %1761 = vmatpush.bf16.msra.mxu1 %v2620_v3  ;;  %1774 = vmatpush.bf16.msra.mxu2 %v2748_v4  ;;  %v3577_v29 = vld [vmem:[#allocation2 + $0x24] sm:$0xf]  ;;  %v2441_v30 = vld [vmem:[#allocation2 + $0x30] sm:$0xf0]  ;;  %v2844_v35 = vor.u32 %v3677_v24, %v2841_v25 }
  0x63   :  { %1787 = vmatpush.bf16.msra.mxu3 %v2876_v8  ;;  %v3609_v31 = vld [vmem:[#allocation2 + $0x124] sm:$0xf]  ;;  %v2569_v36 = vld [vmem:[#allocation2 + $0x130] sm:$0xf0]  ;;  %v2444_v46 = vor.u32 %v3577_v29, %v2441_v30 }
  0x64   :  { %v3641_v39 = vld [vmem:[#allocation2 + $0x224] sm:$0xf]  ;;  %v2697_v43 = vld [vmem:[#allocation2 + $0x230] sm:$0xf0]  ;;  %v2572_v49 = vor.u32 %v3609_v31, %v2569_v36 }
  0x65   :  { %1749 = vmatpush.bf16.msra.mxu0 %v2476_v14  ;;  %v3673_v44 = vld [vmem:[#allocation2 + $0x324] sm:$0xf]  ;;  %v2825_v45 = vld [vmem:[#allocation2 + $0x330] sm:$0xf0]  ;;  %v2700_v50 = vor.u32 %v3641_v39, %v2697_v43 }
  0x66   :  { %1762 = vmatpush.bf16.msra.mxu1 %v2604_v15  ;;  %1775 = vmatpush.bf16.msra.mxu2 %v2732_v16  ;;  %v3573_v47 = vld [vmem:[#allocation2 + $0x4] sm:$0xf]  ;;  %v2425_v48 = vld [vmem:[#allocation2 + $0x10] sm:$0xf0]  ;;  %v2828_v54 = vor.u32 %v3673_v44, %v2825_v45 }
  0x67   :  { %1788 = vmatpush.bf16.msra.mxu3 %v2860_v20  ;;  %v3605_v51 = vld [vmem:[#allocation2 + $0x104] sm:$0xf]  ;;  %v2553_v52 = vld [vmem:[#allocation2 + $0x110] sm:$0xf0]  ;;  %v2428_v61 = vor.u32 %v3573_v47, %v2425_v48 }
  0x68   :  { %v3637_v53 = vld [vmem:[#allocation2 + $0x204] sm:$0xf]  ;;  %v2681_v55 = vld [vmem:[#allocation2 + $0x210] sm:$0xf0]  ;;  %v2556_v1 = vor.u32 %v3605_v51, %v2553_v52 }
  0x69   :  { %1750 = vmatpush.bf16.msra.mxu0 %v2460_v26  ;;  %v3669_v56 = vld [vmem:[#allocation2 + $0x304] sm:$0xf]  ;;  %v2809_v57 = vld [vmem:[#allocation2 + $0x310] sm:$0xf0]  ;;  %v2684_v2 = vor.u32 %v3637_v53, %v2681_v55 }
  0x6a   :  { %1763 = vmatpush.bf16.msra.mxu1 %v2588_v27  ;;  %1776 = vmatpush.bf16.msra.mxu2 %v2716_v28  ;;  %v3729_v58 = vld [vmem:[#allocation2 + $0x4e4] sm:$0xf]  ;;  %v3049_v59 = vld [vmem:[#allocation2 + $0x4f0] sm:$0xf0]  ;;  %v2812_v5 = vor.u32 %v3669_v56, %v2809_v57 }
  0x6b   :  { %1789 = vmatpush.bf16.msra.mxu3 %v2844_v35  ;;  %v3761_v60 = vld [vmem:[#allocation2 + $0x5e4] sm:$0xf]  ;;  %v3177_v62 = vld [vmem:[#allocation2 + $0x5f0] sm:$0xf0]  ;;  %v3052_v6 = vor.u32 %v3729_v58, %v3049_v59 }
  0x6c   :  { %v3793_v63 = vld [vmem:[#allocation2 + $0x6e4] sm:$0xf]  ;;  %v3305_v0 = vld [vmem:[#allocation2 + $0x6f0] sm:$0xf0]  ;;  %v3180_v7 = vor.u32 %v3761_v60, %v3177_v62 }
  0x6d   :  { %1751 = vmatpush.bf16.msra.mxu0 %v2444_v46  ;;  %v3825_v3 = vld [vmem:[#allocation2 + $0x7e4] sm:$0xf]  ;;  %v3433_v4 = vld [vmem:[#allocation2 + $0x7f0] sm:$0xf0]  ;;  %v3308_v8 = vor.u32 %v3793_v63, %v3305_v0 }
  0x6e   :  { %1764 = vmatpush.bf16.msra.mxu1 %v2572_v49  ;;  %1777 = vmatpush.bf16.msra.mxu2 %v2700_v50  ;;  %v3725_v9 = vld [vmem:[#allocation2 + $0x4c4] sm:$0xf]  ;;  %v3033_v10 = vld [vmem:[#allocation2 + $0x4d0] sm:$0xf0]  ;;  %v3436_v12 = vor.u32 %v3825_v3, %v3433_v4 }
  0x6f   :  { %1790 = vmatpush.bf16.msra.mxu3 %v2828_v54  ;;  %v3757_v11 = vld [vmem:[#allocation2 + $0x5c4] sm:$0xf]  ;;  %v3161_v13 = vld [vmem:[#allocation2 + $0x5d0] sm:$0xf0]  ;;  %v3036_v18 = vor.u32 %v3725_v9, %v3033_v10 }
  0x70   :  { %v3789_v14 = vld [vmem:[#allocation2 + $0x6c4] sm:$0xf]  ;;  %v3289_v15 = vld [vmem:[#allocation2 + $0x6d0] sm:$0xf0]  ;;  %v3164_v19 = vor.u32 %v3757_v11, %v3161_v13 }
  0x71   :  { %1752 = vmatpush.bf16.msra.mxu0 %v2428_v61  ;;  %v3821_v16 = vld [vmem:[#allocation2 + $0x7c4] sm:$0xf]  ;;  %v3417_v17 = vld [vmem:[#allocation2 + $0x7d0] sm:$0xf0]  ;;  %v3292_v20 = vor.u32 %v3789_v14, %v3289_v15 }
  0x72   :  { %1765 = vmatpush.bf16.msra.mxu1 %v2556_v1  ;;  %1778 = vmatpush.bf16.msra.mxu2 %v2684_v2  ;;  %v3721_v21 = vld [vmem:[#allocation2 + $0x4a4] sm:$0xf]  ;;  %v3017_v22 = vld [vmem:[#allocation2 + $0x4b0] sm:$0xf0]  ;;  %v3420_v24 = vor.u32 %v3821_v16, %v3417_v17 }
  0x73   :  { %1791 = vmatpush.bf16.msra.mxu3 %v2812_v5  ;;  %v3753_v23 = vld [vmem:[#allocation2 + $0x5a4] sm:$0xf]  ;;  %v3145_v25 = vld [vmem:[#allocation2 + $0x5b0] sm:$0xf0]  ;;  %v3020_v30 = vor.u32 %v3721_v21, %v3017_v22 }
  0x74   :  { %v3785_v26 = vld [vmem:[#allocation2 + $0x6a4] sm:$0xf]  ;;  %v3273_v27 = vld [vmem:[#allocation2 + $0x6b0] sm:$0xf0]  ;;  %1753 = vmatmul.bf16.vlgmr.msra.gmra.mxu0 %v4024_v34  ;;  %v3148_v31 = vor.u32 %v3753_v23, %v3145_v25 }
  0x75   :  { %1797 = vmatpush.bf16.msrb.mxu0 %v3052_v6  ;;  %1779 = vmatmul.bf16.vlgmr.msra.gmra.mxu2 %v4022_v33  ;;  %v3817_v28 = vld [vmem:[#allocation2 + $0x7a4] sm:$0xf]  ;;  %v3401_v29 = vld [vmem:[#allocation2 + $0x7b0] sm:$0xf0]  ;;  %v3276_v35 = vor.u32 %v3785_v26, %v3273_v27 }
  0x76   :  { %1810 = vmatpush.bf16.msrb.mxu1 %v3180_v7  ;;  %1823 = vmatpush.bf16.msrb.mxu2 %v3308_v8  ;;  %v3717_v36 = vld [vmem:[#allocation2 + $0x484] sm:$0xf]  ;;  %v3001_v39 = vld [vmem:[#allocation2 + $0x490] sm:$0xf0]  ;;  %v3404_v44 = vor.u32 %v3817_v28, %v3401_v29 }
  0x77   :  { %1836 = vmatpush.bf16.msrb.mxu3 %v3436_v12  ;;  %1766 = vmatmul.bf16.vlgmr.msra.gmra.mxu1 %v4028_v42  ;;  %v3749_v43 = vld [vmem:[#allocation2 + $0x584] sm:$0xf]  ;;  %v3129_v45 = vld [vmem:[#allocation2 + $0x590] sm:$0xf0]  ;;  %v3004_v50 = vor.u32 %v3717_v36, %v3001_v39  ;;  %v2543_v39 = vld [vmem:[#allocation2 + $0xe8] sm:$0xf] }
  0x78   :  { %1792 = vmatmul.bf16.vlgmr.msra.gmra.mxu3 %v4026_v41  ;;  %v3781_v46 = vld [vmem:[#allocation2 + $0x684] sm:$0xf]  ;;  %v3257_v47 = vld [vmem:[#allocation2 + $0x690] sm:$0xf0]  ;;  %v3132_v51 = vor.u32 %v3749_v43, %v3129_v45  ;;  %v3604_v43 = vld [vmem:[#allocation2 + $0xf4] sm:$0xf0] }
  0x79   :  { %1798 = vmatpush.bf16.msrb.mxu0 %v3036_v18  ;;  %v3813_v48 = vld [vmem:[#allocation2 + $0x784] sm:$0xf]  ;;  %v3385_v49 = vld [vmem:[#allocation2 + $0x790] sm:$0xf0]  ;;  %v3260_v52 = vor.u32 %v3781_v46, %v3257_v47  ;;  %v3636_v46 = vld [vmem:[#allocation2 + $0x1f4] sm:$0xf0] }
  0x7a   :  { %1811 = vmatpush.bf16.msrb.mxu1 %v3164_v19  ;;  %1824 = vmatpush.bf16.msrb.mxu2 %v3292_v20  ;;  %v3713_v53 = vld [vmem:[#allocation2 + $0x464] sm:$0xf]  ;;  %v2985_v54 = vld [vmem:[#allocation2 + $0x470] sm:$0xf0]  ;;  %v3388_v56 = vor.u32 %v3813_v48, %v3385_v49  ;;  %v2799_v47 = vld [vmem:[#allocation2 + $0x2e8] sm:$0xf] }
  0x7b   :  { %1837 = vmatpush.bf16.msrb.mxu3 %v3420_v24  ;;  %v3745_v55 = vld [vmem:[#allocation2 + $0x564] sm:$0xf]  ;;  %v3113_v57 = vld [vmem:[#allocation2 + $0x570] sm:$0xf0]  ;;  %v2988_v62 = vor.u32 %v3713_v53, %v2985_v54  ;;  %v3668_v48 = vld [vmem:[#allocation2 + $0x2f4] sm:$0xf0]  ;;  %v2544_v54 = vor.u32 %v3604_v43, %v2543_v39 }
  0x7c   :  { %v3777_v58 = vld [vmem:[#allocation2 + $0x664] sm:$0xf]  ;;  %v3241_v59 = vld [vmem:[#allocation2 + $0x670] sm:$0xf0]  ;;  %v3116_v63 = vor.u32 %v3745_v55, %v3113_v57  ;;  %v2527_v57 = vld [vmem:[#allocation2 + $0xc8] sm:$0xf] }
  0x7d   :  { %1799 = vmatpush.bf16.msrb.mxu0 %v3020_v30  ;;  %v3809_v60 = vld [vmem:[#allocation2 + $0x764] sm:$0xf]  ;;  %v3369_v61 = vld [vmem:[#allocation2 + $0x770] sm:$0xf0]  ;;  %v3244_v0 = vor.u32 %v3777_v58, %v3241_v59  ;;  %v3600_v58 = vld [vmem:[#allocation2 + $0xd4] sm:$0xf0] }
  0x7e   :  { %1812 = vmatpush.bf16.msrb.mxu1 %v3148_v31  ;;  %1825 = vmatpush.bf16.msrb.mxu2 %v3276_v35  ;;  %v3709_v1 = vld [vmem:[#allocation2 + $0x444] sm:$0xf]  ;;  %v2969_v2 = vld [vmem:[#allocation2 + $0x450] sm:$0xf0]  ;;  %v3372_v4 = vor.u32 %v3809_v60, %v3369_v61  ;;  %v2655_v59 = vld [vmem:[#allocation2 + $0x1c8] sm:$0xf] }
  0x7f   :  { %1838 = vmatpush.bf16.msrb.mxu3 %v3404_v44  ;;  %v3741_v3 = vld [vmem:[#allocation2 + $0x544] sm:$0xf]  ;;  %v3097_v5 = vld [vmem:[#allocation2 + $0x550] sm:$0xf0]  ;;  %v2972_v10 = vor.u32 %v3709_v1, %v2969_v2  ;;  %v2671_v44 = vld [vmem:[#allocation2 + $0x1e8] sm:$0xf]  ;;  %v2528_v2 = vor.u32 %v3600_v58, %v2527_v57 }
  0x80   :  { %v3773_v6 = vld [vmem:[#allocation2 + $0x644] sm:$0xf]  ;;  %v3225_v7 = vld [vmem:[#allocation2 + $0x650] sm:$0xf0]  ;;  %v3100_v11 = vor.u32 %v3741_v3, %v3097_v5  ;;  %v2672_v55 = vor.u32 %v3636_v46, %v2671_v44  ;;  %v3632_v61 = vld [vmem:[#allocation2 + $0x1d4] sm:$0xf0] }
  0x81   :  { %1800 = vmatpush.bf16.msrb.mxu0 %v3004_v50  ;;  %v3805_v8 = vld [vmem:[#allocation2 + $0x744] sm:$0xf]  ;;  %v3353_v9 = vld [vmem:[#allocation2 + $0x750] sm:$0xf0]  ;;  %v3228_v12 = vor.u32 %v3773_v6, %v3225_v7  ;;  %v3696_v1 = vld [vmem:[#allocation2 + $0x3d4] sm:$0xf0]  ;;  %v2656_v3 = vor.u32 %v3632_v61, %v2655_v59 }
  0x82   :  { %1813 = vmatpush.bf16.msrb.mxu1 %v3132_v51  ;;  %1826 = vmatpush.bf16.msrb.mxu2 %v3260_v52  ;;  %v3705_v13 = vld [vmem:[#allocation2 + $0x424] sm:$0xf]  ;;  %v2953_v14 = vld [vmem:[#allocation2 + $0x430] sm:$0xf0]  ;;  %v3356_v16 = vor.u32 %v3805_v8, %v3353_v9  ;;  %v2927_v51 = vld [vmem:[#allocation2 + $0x3e8] sm:$0xf] }
  0x83   :  { %1839 = vmatpush.bf16.msrb.mxu3 %v3388_v56  ;;  %v3737_v15 = vld [vmem:[#allocation2 + $0x524] sm:$0xf]  ;;  %v3081_v17 = vld [vmem:[#allocation2 + $0x530] sm:$0xf0]  ;;  %v2956_v22 = vor.u32 %v3705_v13, %v2953_v14  ;;  %v3700_v52 = vld [vmem:[#allocation2 + $0x3f4] sm:$0xf0]  ;;  %v2800_v56 = vor.u32 %v3668_v48, %v2799_v47 }
  0x84   :  { %v3769_v18 = vld [vmem:[#allocation2 + $0x624] sm:$0xf]  ;;  %v3209_v19 = vld [vmem:[#allocation2 + $0x630] sm:$0xf0]  ;;  %v3084_v25 = vor.u32 %v3737_v15, %v3081_v17  ;;  %v2928_v60 = vor.u32 %v3700_v52, %v2927_v51  ;;  %v2511_v5 = vld [vmem:[#allocation2 + $0xa8] sm:$0xf] }
  0x85   :  { %1801 = vmatpush.bf16.msrb.mxu0 %v2988_v62  ;;  %v3801_v20 = vld [vmem:[#allocation2 + $0x724] sm:$0xf]  ;;  %v3337_v21 = vld [vmem:[#allocation2 + $0x730] sm:$0xf0]  ;;  %v3212_v26 = vor.u32 %v3769_v18, %v3209_v19  ;;  %v2783_v62 = vld [vmem:[#allocation2 + $0x2c8] sm:$0xf] }
  0x86   :  { %1814 = vmatpush.bf16.msrb.mxu1 %v3116_v63  ;;  %1827 = vmatpush.bf16.msrb.mxu2 %v3244_v0  ;;  %v3701_v23 = vld [vmem:[#allocation2 + $0x404] sm:$0xf]  ;;  %v2937_v24 = vld [vmem:[#allocation2 + $0x410] sm:$0xf0]  ;;  %v3340_v30 = vor.u32 %v3801_v20, %v3337_v21  ;;  %v3664_v63 = vld [vmem:[#allocation2 + $0x2d4] sm:$0xf0] }
  0x87   :  { %1840 = vmatpush.bf16.msrb.mxu3 %v3372_v4  ;;  %v3733_v27 = vld [vmem:[#allocation2 + $0x504] sm:$0xf]  ;;  %v3065_v28 = vld [vmem:[#allocation2 + $0x510] sm:$0xf0]  ;;  %v2940_v45 = vor.u32 %v3701_v23, %v2937_v24  ;;  %v2911_v0 = vld [vmem:[#allocation2 + $0x3c8] sm:$0xf]  ;;  %v2784_v4 = vor.u32 %v3664_v63, %v2783_v62 }
  0x88   :  { %v3765_v29 = vld [vmem:[#allocation2 + $0x604] sm:$0xf]  ;;  %v3193_v31 = vld [vmem:[#allocation2 + $0x610] sm:$0xf0]  ;;  %v3068_v49 = vor.u32 %v3733_v27, %v3065_v28  ;;  %v3596_v6 = vld [vmem:[#allocation2 + $0xb4] sm:$0xf0]  ;;  %v2912_v8 = vor.u32 %v3696_v1, %v2911_v0 }
  0x89   :  { %1802 = vmatpush.bf16.msrb.mxu0 %v2972_v10  ;;  %v3797_v35 = vld [vmem:[#allocation2 + $0x704] sm:$0xf]  ;;  %v3321_v36 = vld [vmem:[#allocation2 + $0x710] sm:$0xf0]  ;;  %v3196_v50 = vor.u32 %v3765_v29, %v3193_v31  ;;  %v2639_v7 = vld [vmem:[#allocation2 + $0x1a8] sm:$0xf]  ;;  %v2512_v14 = vor.u32 %v3596_v6, %v2511_v5 }
  0x8a   :  { %1815 = vmatpush.bf16.msrb.mxu1 %v3100_v11  ;;  %1828 = vmatpush.bf16.msrb.mxu2 %v3228_v12  ;;  %v3324_v53 = vor.u32 %v3797_v35, %v3321_v36  ;;  %v3628_v9 = vld [vmem:[#allocation2 + $0x1b4] sm:$0xf0]  ;;  %v2767_v10 = vld [vmem:[#allocation2 + $0x2a8] sm:$0xf] }
  0x8b   :  { %1841 = vmatpush.bf16.msrb.mxu3 %v3356_v16  ;;  %v3660_v11 = vld [vmem:[#allocation2 + $0x2b4] sm:$0xf0]  ;;  %v2895_v12 = vld [vmem:[#allocation2 + $0x3a8] sm:$0xf]  ;;  %v2640_v15 = vor.u32 %v3628_v9, %v2639_v7 }
  0x8c   :  { %v3692_v13 = vld [vmem:[#allocation2 + $0x3b4] sm:$0xf0]  ;;  %v2768_v16 = vor.u32 %v3660_v11, %v2767_v10  ;;  %v2495_v17 = vld [vmem:[#allocation2 + $0x88] sm:$0xf] }
  0x8d   :  { %1803 = vmatpush.bf16.msrb.mxu0 %v2956_v22  ;;  %v3592_v18 = vld [vmem:[#allocation2 + $0x94] sm:$0xf0]  ;;  %v2623_v19 = vld [vmem:[#allocation2 + $0x188] sm:$0xf]  ;;  %v2896_v20 = vor.u32 %v3692_v13, %v2895_v12 }
  0x8e   :  { %1816 = vmatpush.bf16.msrb.mxu1 %v3084_v25  ;;  %1829 = vmatpush.bf16.msrb.mxu2 %v3212_v26  ;;  %v3624_v21 = vld [vmem:[#allocation2 + $0x194] sm:$0xf0]  ;;  %v2751_v22 = vld [vmem:[#allocation2 + $0x288] sm:$0xf]  ;;  %v2496_v26 = vor.u32 %v3592_v18, %v2495_v17 }
  0x8f   :  { %1842 = vmatpush.bf16.msrb.mxu3 %v3340_v30  ;;  %v3656_v23 = vld [vmem:[#allocation2 + $0x294] sm:$0xf0]  ;;  %v2879_v24 = vld [vmem:[#allocation2 + $0x388] sm:$0xf]  ;;  %v2624_v27 = vor.u32 %v3624_v21, %v2623_v19 }
  0x90   :  { %v3688_v25 = vld [vmem:[#allocation2 + $0x394] sm:$0xf0]  ;;  %v2752_v28 = vor.u32 %v3656_v23, %v2751_v22  ;;  %v2479_v29 = vld [vmem:[#allocation2 + $0x68] sm:$0xf] }
  0x91   :  { %1804 = vmatpush.bf16.msrb.mxu0 %v2940_v45  ;;  %v3588_v30 = vld [vmem:[#allocation2 + $0x74] sm:$0xf0]  ;;  %v2607_v31 = vld [vmem:[#allocation2 + $0x168] sm:$0xf]  ;;  %v2880_v35 = vor.u32 %v3688_v25, %v2879_v24 }
  0x92   :  { %1817 = vmatpush.bf16.msrb.mxu1 %v3068_v49  ;;  %1830 = vmatpush.bf16.msrb.mxu2 %v3196_v50  ;;  %v3620_v36 = vld [vmem:[#allocation2 + $0x174] sm:$0xf0]  ;;  %v2735_v39 = vld [vmem:[#allocation2 + $0x268] sm:$0xf]  ;;  %v2480_v46 = vor.u32 %v3588_v30, %v2479_v29 }
  0x93   :  { %1843 = vmatpush.bf16.msrb.mxu3 %v3324_v53  ;;  %v3652_v43 = vld [vmem:[#allocation2 + $0x274] sm:$0xf0]  ;;  %v2863_v44 = vld [vmem:[#allocation2 + $0x368] sm:$0xf]  ;;  %v2608_v47 = vor.u32 %v3620_v36, %v2607_v31 }
  0x94   :  { %1805 = vmatmul.bf16.vlgmr.msrb.gmra.mxu0 %v4039_v37  ;;  %v3684_v45 = vld [vmem:[#allocation2 + $0x374] sm:$0xf0]  ;;  %v2736_v48 = vor.u32 %v3652_v43, %v2735_v39  ;;  %v2463_v49 = vld [vmem:[#allocation2 + $0x48] sm:$0xf] }
  0x95   :  { %1849 = vmatpush.bf16.msra.mxu0 %v2544_v54  ;;  %1831 = vmatmul.bf16.vlgmr.msrb.gmra.mxu2 %v4037_v32  ;;  %v3584_v50 = vld [vmem:[#allocation2 + $0x54] sm:$0xf0]  ;;  %v2591_v51 = vld [vmem:[#allocation2 + $0x148] sm:$0xf]  ;;  %v2864_v52 = vor.u32 %v3684_v45, %v2863_v44 }
  0x96   :  { %1862 = vmatpush.bf16.msra.mxu1 %v2672_v55  ;;  %1875 = vmatpush.bf16.msra.mxu2 %v2800_v56  ;;  %v3616_v53 = vld [vmem:[#allocation2 + $0x154] sm:$0xf0]  ;;  %v2719_v54 = vld [vmem:[#allocation2 + $0x248] sm:$0xf]  ;;  %v2464_v58 = vor.u32 %v3584_v50, %v2463_v49 }
  0x97   :  { %1888 = vmatpush.bf16.msra.mxu3 %v2928_v60  ;;  %1818 = vmatmul.bf16.vlgmr.msrb.gmra.mxu1 %v4043_v40  ;;  %v3648_v55 = vld [vmem:[#allocation2 + $0x254] sm:$0xf0]  ;;  %v2847_v56 = vld [vmem:[#allocation2 + $0x348] sm:$0xf]  ;;  %v2592_v59 = vor.u32 %v3616_v53, %v2591_v51 }
  0x98   :  { %1844 = vmatmul.bf16.vlgmr.msrb.gmra.mxu3 %v4041_v38  ;;  %v3680_v57 = vld [vmem:[#allocation2 + $0x354] sm:$0xf0]  ;;  %v2720_v60 = vor.u32 %v3648_v55, %v2719_v54  ;;  %v2447_v61 = vld [vmem:[#allocation2 + $0x28] sm:$0xf] }
  0x99   :  { %1850 = vmatpush.bf16.msra.mxu0 %v2528_v2  ;;  %v3580_v62 = vld [vmem:[#allocation2 + $0x34] sm:$0xf0]  ;;  %v2575_v63 = vld [vmem:[#allocation2 + $0x128] sm:$0xf]  ;;  %v2848_v0 = vor.u32 %v3680_v57, %v2847_v56 }
  0x9a   :  { %1863 = vmatpush.bf16.msra.mxu1 %v2656_v3  ;;  %1876 = vmatpush.bf16.msra.mxu2 %v2784_v4  ;;  %v3612_v1 = vld [vmem:[#allocation2 + $0x134] sm:$0xf0]  ;;  %v2703_v2 = vld [vmem:[#allocation2 + $0x228] sm:$0xf]  ;;  %v2448_v6 = vor.u32 %v3580_v62, %v2447_v61 }
  0x9b   :  { %1889 = vmatpush.bf16.msra.mxu3 %v2912_v8  ;;  %v3644_v3 = vld [vmem:[#allocation2 + $0x234] sm:$0xf0]  ;;  %v2831_v4 = vld [vmem:[#allocation2 + $0x328] sm:$0xf]  ;;  %v2576_v9 = vor.u32 %v3612_v1, %v2575_v63 }
  0x9c   :  { %v3676_v5 = vld [vmem:[#allocation2 + $0x334] sm:$0xf0]  ;;  %v2431_v7 = vld [vmem:[#allocation2 + $0x8] sm:$0xf]  ;;  %v2704_v10 = vor.u32 %v3644_v3, %v2703_v2 }
  0x9d   :  { %1851 = vmatpush.bf16.msra.mxu0 %v2512_v14  ;;  %v3576_v8 = vld [vmem:[#allocation2 + $0x14] sm:$0xf0]  ;;  %v2559_v11 = vld [vmem:[#allocation2 + $0x108] sm:$0xf]  ;;  %v2832_v14 = vor.u32 %v3676_v5, %v2831_v4 }
  0x9e   :  { %1864 = vmatpush.bf16.msra.mxu1 %v2640_v15  ;;  %1877 = vmatpush.bf16.msra.mxu2 %v2768_v16  ;;  %v3608_v12 = vld [vmem:[#allocation2 + $0x114] sm:$0xf0]  ;;  %v2687_v13 = vld [vmem:[#allocation2 + $0x208] sm:$0xf]  ;;  %v2432_v21 = vor.u32 %v3576_v8, %v2431_v7 }
  0x9f   :  { %1890 = vmatpush.bf16.msra.mxu3 %v2896_v20  ;;  %v3640_v15 = vld [vmem:[#allocation2 + $0x214] sm:$0xf0]  ;;  %v2815_v16 = vld [vmem:[#allocation2 + $0x308] sm:$0xf]  ;;  %v2560_v25 = vor.u32 %v3608_v12, %v2559_v11 }
  0xa0   :  { %v3672_v17 = vld [vmem:[#allocation2 + $0x314] sm:$0xf0]  ;;  %v3055_v18 = vld [vmem:[#allocation2 + $0x4e8] sm:$0xf] }
  0xa1   :  { %1852 = vmatpush.bf16.msra.mxu0 %v2496_v26  ;;  %v3732_v19 = vld [vmem:[#allocation2 + $0x4f4] sm:$0xf0]  ;;  %v3183_v20 = vld [vmem:[#allocation2 + $0x5e8] sm:$0xf]  ;;  %v2688_v26 = vor.u32 %v3640_v15, %v2687_v13  ;;  %v2816_v29 = vor.u32 %v3672_v17, %v2815_v16 }
  0xa2   :  { %1865 = vmatpush.bf16.msra.mxu1 %v2624_v27  ;;  %1878 = vmatpush.bf16.msra.mxu2 %v2752_v28  ;;  %v3764_v22 = vld [vmem:[#allocation2 + $0x5f4] sm:$0xf0]  ;;  %v3311_v23 = vld [vmem:[#allocation2 + $0x6e8] sm:$0xf]  ;;  %v3056_v30 = vor.u32 %v3732_v19, %v3055_v18 }
  0xa3   :  { %1891 = vmatpush.bf16.msra.mxu3 %v2880_v35  ;;  %v3796_v24 = vld [vmem:[#allocation2 + $0x6f4] sm:$0xf0]  ;;  %v3439_v27 = vld [vmem:[#allocation2 + $0x7e8] sm:$0xf]  ;;  %v3184_v31 = vor.u32 %v3764_v22, %v3183_v20 }
  0xa4   :  { %v3828_v28 = vld [vmem:[#allocation2 + $0x7f4] sm:$0xf0]  ;;  %v3312_v35 = vor.u32 %v3796_v24, %v3311_v23  ;;  %v3039_v36 = vld [vmem:[#allocation2 + $0x4c8] sm:$0xf] }
  0xa5   :  { %1853 = vmatpush.bf16.msra.mxu0 %v2480_v46  ;;  %v3728_v39 = vld [vmem:[#allocation2 + $0x4d4] sm:$0xf0]  ;;  %v3167_v43 = vld [vmem:[#allocation2 + $0x5c8] sm:$0xf]  ;;  %v3440_v44 = vor.u32 %v3828_v28, %v3439_v27 }
  0xa6   :  { %1866 = vmatpush.bf16.msra.mxu1 %v2608_v47  ;;  %1879 = vmatpush.bf16.msra.mxu2 %v2736_v48  ;;  %v3760_v45 = vld [vmem:[#allocation2 + $0x5d4] sm:$0xf0]  ;;  %v3295_v46 = vld [vmem:[#allocation2 + $0x6c8] sm:$0xf]  ;;  %v3040_v50 = vor.u32 %v3728_v39, %v3039_v36 }
  0xa7   :  { %1892 = vmatpush.bf16.msra.mxu3 %v2864_v52  ;;  %v3792_v47 = vld [vmem:[#allocation2 + $0x6d4] sm:$0xf0]  ;;  %v3423_v48 = vld [vmem:[#allocation2 + $0x7c8] sm:$0xf]  ;;  %v3168_v51 = vor.u32 %v3760_v45, %v3167_v43 }
  0xa8   :  { %v3824_v49 = vld [vmem:[#allocation2 + $0x7d4] sm:$0xf0]  ;;  %v3296_v52 = vor.u32 %v3792_v47, %v3295_v46  ;;  %v3023_v53 = vld [vmem:[#allocation2 + $0x4a8] sm:$0xf] }
  0xa9   :  { %1854 = vmatpush.bf16.msra.mxu0 %v2464_v58  ;;  %v3724_v54 = vld [vmem:[#allocation2 + $0x4b4] sm:$0xf0]  ;;  %v3151_v55 = vld [vmem:[#allocation2 + $0x5a8] sm:$0xf]  ;;  %v3424_v56 = vor.u32 %v3824_v49, %v3423_v48 }
  0xaa   :  { %1867 = vmatpush.bf16.msra.mxu1 %v2592_v59  ;;  %1880 = vmatpush.bf16.msra.mxu2 %v2720_v60  ;;  %v3756_v57 = vld [vmem:[#allocation2 + $0x5b4] sm:$0xf0]  ;;  %v3279_v58 = vld [vmem:[#allocation2 + $0x6a8] sm:$0xf]  ;;  %v3024_v62 = vor.u32 %v3724_v54, %v3023_v53 }
  0xab   :  { %1893 = vmatpush.bf16.msra.mxu3 %v2848_v0  ;;  %v3788_v59 = vld [vmem:[#allocation2 + $0x6b4] sm:$0xf0]  ;;  %v3407_v60 = vld [vmem:[#allocation2 + $0x7a8] sm:$0xf]  ;;  %v3152_v63 = vor.u32 %v3756_v57, %v3151_v55 }
  0xac   :  { %v3820_v61 = vld [vmem:[#allocation2 + $0x7b4] sm:$0xf0]  ;;  %v3280_v0 = vor.u32 %v3788_v59, %v3279_v58  ;;  %v3007_v1 = vld [vmem:[#allocation2 + $0x488] sm:$0xf] }
  0xad   :  { %1855 = vmatpush.bf16.msra.mxu0 %v2448_v6  ;;  %v3720_v2 = vld [vmem:[#allocation2 + $0x494] sm:$0xf0]  ;;  %v3135_v3 = vld [vmem:[#allocation2 + $0x588] sm:$0xf]  ;;  %v3408_v4 = vor.u32 %v3820_v61, %v3407_v60 }
  0xae   :  { %1868 = vmatpush.bf16.msra.mxu1 %v2576_v9  ;;  %1881 = vmatpush.bf16.msra.mxu2 %v2704_v10  ;;  %v3752_v5 = vld [vmem:[#allocation2 + $0x594] sm:$0xf0]  ;;  %v3263_v6 = vld [vmem:[#allocation2 + $0x688] sm:$0xf]  ;;  %v3008_v10 = vor.u32 %v3720_v2, %v3007_v1 }
  0xaf   :  { %1894 = vmatpush.bf16.msra.mxu3 %v2832_v14  ;;  %v3784_v7 = vld [vmem:[#allocation2 + $0x694] sm:$0xf0]  ;;  %v3391_v8 = vld [vmem:[#allocation2 + $0x788] sm:$0xf]  ;;  %v3136_v11 = vor.u32 %v3752_v5, %v3135_v3 }
  0xb0   :  { %v3816_v9 = vld [vmem:[#allocation2 + $0x794] sm:$0xf0]  ;;  %v3264_v12 = vor.u32 %v3784_v7, %v3263_v6  ;;  %v2991_v13 = vld [vmem:[#allocation2 + $0x468] sm:$0xf]  ;;  %v3602_v6 = vld [vmem:[#allocation2 + $0xec] sm:$0xf] }
  0xb1   :  { %1856 = vmatpush.bf16.msra.mxu0 %v2432_v21  ;;  %v3716_v14 = vld [vmem:[#allocation2 + $0x474] sm:$0xf0]  ;;  %v3119_v15 = vld [vmem:[#allocation2 + $0x568] sm:$0xf]  ;;  %v3392_v16 = vor.u32 %v3816_v9, %v3391_v8  ;;  %v2545_v7 = vld [vmem:[#allocation2 + $0xf8] sm:$0xf0] }
  0xb2   :  { %1869 = vmatpush.bf16.msra.mxu1 %v2560_v25  ;;  %1882 = vmatpush.bf16.msra.mxu2 %v2688_v26  ;;  %v3748_v17 = vld [vmem:[#allocation2 + $0x574] sm:$0xf0]  ;;  %v3247_v18 = vld [vmem:[#allocation2 + $0x668] sm:$0xf]  ;;  %v2992_v22 = vor.u32 %v3716_v14, %v2991_v13  ;;  %v3634_v8 = vld [vmem:[#allocation2 + $0x1ec] sm:$0xf] }
  0xb3   :  { %1895 = vmatpush.bf16.msra.mxu3 %v2816_v29  ;;  %v3780_v19 = vld [vmem:[#allocation2 + $0x674] sm:$0xf0]  ;;  %v3375_v20 = vld [vmem:[#allocation2 + $0x768] sm:$0xf]  ;;  %v3120_v24 = vor.u32 %v3748_v17, %v3119_v15  ;;  %v2801_v13 = vld [vmem:[#allocation2 + $0x2f8] sm:$0xf0] }
  0xb4   :  { %1857 = vmatmul.bf16.vlgmr.msra.gmra.mxu0 %v4024_v34  ;;  %v3812_v21 = vld [vmem:[#allocation2 + $0x774] sm:$0xf0]  ;;  %v2975_v23 = vld [vmem:[#allocation2 + $0x448] sm:$0xf]  ;;  %v3248_v25 = vor.u32 %v3780_v19, %v3247_v18  ;;  %v3698_v17 = vld [vmem:[#allocation2 + $0x3ec] sm:$0xf] }
  0xb5   :  { %1901 = vmatpush.bf16.msrb.mxu0 %v3056_v30  ;;  %1883 = vmatmul.bf16.vlgmr.msra.gmra.mxu2 %v4022_v33  ;;  %v3712_v26 = vld [vmem:[#allocation2 + $0x454] sm:$0xf0]  ;;  %v3103_v27 = vld [vmem:[#allocation2 + $0x548] sm:$0xf]  ;;  %v3376_v29 = vor.u32 %v3812_v21, %v3375_v20  ;;  %v2929_v18 = vld [vmem:[#allocation2 + $0x3f8] sm:$0xf0]  ;;  %v2548_v20 = vor.u32 %v3602_v6, %v2545_v7 }
  0xb6   :  { %1914 = vmatpush.bf16.msrb.mxu1 %v3184_v31  ;;  %1927 = vmatpush.bf16.msrb.mxu2 %v3312_v35  ;;  %v3744_v28 = vld [vmem:[#allocation2 + $0x554] sm:$0xf0]  ;;  %v3231_v30 = vld [vmem:[#allocation2 + $0x648] sm:$0xf]  ;;  %v4061_v35 = vld [vmem:[#allocation5] sm:$0xf]  ;;  %v2976_v43 = vor.u32 %v3712_v26, %v2975_v23 }
  0xb7   :  { %1940 = vmatpush.bf16.msrb.mxu3 %v3440_v44  ;;  %1870 = vmatmul.bf16.vlgmr.msra.gmra.mxu1 %v4028_v42  ;;  %v3776_v31 = vld [vmem:[#allocation2 + $0x654] sm:$0xf0]  ;;  %v3359_v36 = vld [vmem:[#allocation2 + $0x748] sm:$0xf]  ;;  %v3104_v45 = vor.u32 %v3744_v28, %v3103_v27  ;;  %v353_v49 = vperm.slane %v4061_v35, 0 }
  0xb8   :  { %1896 = vmatmul.bf16.vlgmr.msra.gmra.mxu3 %v4026_v41  ;;  %v3808_v39 = vld [vmem:[#allocation2 + $0x754] sm:$0xf0]  ;;  %v2959_v44 = vld [vmem:[#allocation2 + $0x428] sm:$0xf]  ;;  %v3232_v46 = vor.u32 %v3776_v31, %v3231_v30  ;;  %v3630_v26 = vld [vmem:[#allocation2 + $0x1cc] sm:$0xf] }
  0xb9   :  { %1902 = vmatpush.bf16.msrb.mxu0 %v3040_v50  ;;  %v3708_v47 = vld [vmem:[#allocation2 + $0x434] sm:$0xf0]  ;;  %v3087_v48 = vld [vmem:[#allocation2 + $0x528] sm:$0xf]  ;;  %v3360_v50 = vor.u32 %v3808_v39, %v3359_v36  ;;  %v2657_v30 = vld [vmem:[#allocation2 + $0x1d8] sm:$0xf0] }
  0xba   :  { %1915 = vmatpush.bf16.msrb.mxu1 %v3168_v51  ;;  %1928 = vmatpush.bf16.msrb.mxu2 %v3296_v52  ;;  %v3740_v51 = vld [vmem:[#allocation2 + $0x534] sm:$0xf0]  ;;  %v3215_v52 = vld [vmem:[#allocation2 + $0x628] sm:$0xf]  ;;  %v3662_v31 = vld [vmem:[#allocation2 + $0x2cc] sm:$0xf] }
  0xbb   :  { %1941 = vmatpush.bf16.msrb.mxu3 %v3424_v56  ;;  %v3772_v53 = vld [vmem:[#allocation2 + $0x634] sm:$0xf0]  ;;  %v3343_v54 = vld [vmem:[#allocation2 + $0x728] sm:$0xf]  ;;  %v2960_v56 = vor.u32 %v3708_v47, %v2959_v44  ;;  %v3088_v60 = vor.u32 %v3740_v51, %v3087_v48  ;;  %v2785_v36 = vld [vmem:[#allocation2 + $0x2d8] sm:$0xf0]  ;;  %v2660_v47 = vor.u32 %v3630_v26, %v2657_v30 }
  0xbc   :  { %v3804_v55 = vld [vmem:[#allocation2 + $0x734] sm:$0xf0]  ;;  %v2943_v57 = vld [vmem:[#allocation2 + $0x408] sm:$0xf]  ;;  %v3216_v61 = vor.u32 %v3772_v53, %v3215_v52  ;;  %v2913_v44 = vld [vmem:[#allocation2 + $0x3d8] sm:$0xf0]  ;;  %v2788_v48 = vor.u32 %v3662_v31, %v2785_v36 }
  0xbd   :  { %1903 = vmatpush.bf16.msrb.mxu0 %v3024_v62  ;;  %v3704_v58 = vld [vmem:[#allocation2 + $0x414] sm:$0xf0]  ;;  %v3071_v62 = vld [vmem:[#allocation2 + $0x508] sm:$0xf]  ;;  %v3344_v2 = vor.u32 %v3804_v55, %v3343_v54  ;;  %v3626_v51 = vld [vmem:[#allocation2 + $0x1ac] sm:$0xf] }
  0xbe   :  { %1916 = vmatpush.bf16.msrb.mxu1 %v3152_v63  ;;  %1929 = vmatpush.bf16.msrb.mxu2 %v3280_v0  ;;  %v3736_v63 = vld [vmem:[#allocation2 + $0x514] sm:$0xf0]  ;;  %v3199_v0 = vld [vmem:[#allocation2 + $0x608] sm:$0xf]  ;;  %v2641_v54 = vld [vmem:[#allocation2 + $0x1b8] sm:$0xf0] }
  0xbf   :  { %1942 = vmatpush.bf16.msrb.mxu3 %v3408_v4  ;;  %v3768_v3 = vld [vmem:[#allocation2 + $0x614] sm:$0xf0]  ;;  %v3327_v4 = vld [vmem:[#allocation2 + $0x708] sm:$0xf]  ;;  %v3072_v15 = vor.u32 %v3736_v63, %v3071_v62  ;;  %v3658_v55 = vld [vmem:[#allocation2 + $0x2ac] sm:$0xf] }
  0xc0   :  { %v3800_v5 = vld [vmem:[#allocation2 + $0x714] sm:$0xf0]  ;;  %v3590_v63 = vld [vmem:[#allocation2 + $0x8c] sm:$0xf]  ;;  %v2753_v6 = vld [vmem:[#allocation2 + $0x298] sm:$0xf0] }
  0xc1   :  { %1904 = vmatpush.bf16.msrb.mxu0 %v3008_v10  ;;  %v2944_v10 = vor.u32 %v3704_v58, %v2943_v57  ;;  %v3328_v19 = vor.u32 %v3800_v5, %v3327_v4  ;;  %v3690_v57 = vld [vmem:[#allocation2 + $0x3ac] sm:$0xf]  ;;  %v2897_v58 = vld [vmem:[#allocation2 + $0x3b8] sm:$0xf0] }
  0xc2   :  { %1917 = vmatpush.bf16.msrb.mxu1 %v3136_v11  ;;  %1930 = vmatpush.bf16.msrb.mxu2 %v3264_v12  ;;  %v2673_v11 = vld [vmem:[#allocation2 + $0x1f8] sm:$0xf0]  ;;  %v3666_v12 = vld [vmem:[#allocation2 + $0x2ec] sm:$0xf] }
  0xc3   :  { %1943 = vmatpush.bf16.msrb.mxu3 %v3392_v16  ;;  %v3200_v16 = vor.u32 %v3768_v3, %v3199_v0  ;;  %v2804_v23 = vor.u32 %v3666_v12, %v2801_v13  ;;  %v2497_v0 = vld [vmem:[#allocation2 + $0x98] sm:$0xf0]  ;;  %v2900_v3 = vor.u32 %v3690_v57, %v2897_v58  ;;  %v3654_v5 = vld [vmem:[#allocation2 + $0x28c] sm:$0xf] }
  0xc4   :  { %v1650_v59 = vpop.f32.mrf.mxu0  ;;  %v2625_v4 = vld [vmem:[#allocation2 + $0x198] sm:$0xf0]  ;;  %v3686_v7 = vld [vmem:[#allocation2 + $0x38c] sm:$0xf]  ;;  %v2756_v12 = vor.u32 %v3654_v5, %v2753_v6 }
  0xc5   :  { %1905 = vmatpush.bf16.msrb.mxu0 %v2992_v22  ;;  %v1651_v1 = vadd.f32 %v1650_v59, %v353_v49  ;;  %v1663_v9 = vpop.f32.mrf.mxu1  ;;  %v2676_v22 = vor.u32 %v3634_v8, %v2673_v11  ;;  %v3594_v49 = vld [vmem:[#allocation2 + $0xac] sm:$0xf]  ;;  %v2881_v8 = vld [vmem:[#allocation2 + $0x398] sm:$0xf0] }
  0xc6   :  { %1918 = vmatpush.bf16.msrb.mxu1 %v3120_v24  ;;  %1931 = vmatpush.bf16.msrb.mxu2 %v3248_v25  ;;  %v3598_v24 = vld [vmem:[#allocation2 + $0xcc] sm:$0xf]  ;;  %v2529_v25 = vld [vmem:[#allocation2 + $0xd8] sm:$0xf0] }
  0xc7   :  { %1944 = vmatpush.bf16.msrb.mxu3 %v3376_v29  ;;  %v1664_v14 = vadd.f32 %v1663_v9, %v1651_v1  ;;  %v2932_v29 = vor.u32 %v3698_v17, %v2929_v18  ;;  %v3622_v1 = vld [vmem:[#allocation2 + $0x18c] sm:$0xf]  ;;  %v2500_v9 = vor.u32 %v3590_v63, %v2497_v0  ;;  %v2884_v18 = vor.u32 %v3686_v7, %v2881_v8  ;;  %v2833_v63 = vld [vmem:[#allocation2 + $0x338] sm:$0xf0] }
  0xc8   :  { %v2628_v11 = vor.u32 %v3622_v1, %v2625_v4  ;;  %v3586_v13 = vld [vmem:[#allocation2 + $0x6c] sm:$0xf]  ;;  %v2561_v6 = vld [vmem:[#allocation2 + $0x118] sm:$0xf0] }
  0xc9   :  { %1906 = vmatpush.bf16.msrb.mxu0 %v2976_v43  ;;  %v1676_v21 = vpop.f32.mrf.mxu2  ;;  %v3694_v43 = vld [vmem:[#allocation2 + $0x3cc] sm:$0xf] }
  0xca   :  { %1919 = vmatpush.bf16.msrb.mxu1 %v3104_v45  ;;  %1932 = vmatpush.bf16.msrb.mxu2 %v3232_v46  ;;  %v1677_v27 = vadd.f32 %v1676_v21, %v1664_v14  ;;  %v1689_v28 = vpop.f32.mrf.mxu3  ;;  %v2532_v46 = vor.u32 %v3598_v24, %v2529_v25  ;;  %v2916_v53 = vor.u32 %v3694_v43, %v2913_v44  ;;  %v2481_v14 = vld [vmem:[#allocation2 + $0x78] sm:$0xf0]  ;;  %v3614_v30 = vld [vmem:[#allocation2 + $0x14c] sm:$0xf] }
  0xcb   :  { %1945 = vmatpush.bf16.msrb.mxu3 %v3360_v50  ;;  %v2513_v50 = vld [vmem:[#allocation2 + $0xb8] sm:$0xf0]  ;;  %v2484_v25 = vor.u32 %v3586_v13, %v2481_v14  ;;  %v3646_v43 = vld [vmem:[#allocation2 + $0x24c] sm:$0xf] }
  0xcc   :  { %v1652_v39 = vpop.f32.mrf.mxu0  ;;  %v1690_v45 = vadd.f32 %v1689_v28, %v1677_v27  ;;  %v2516_v59 = vor.u32 %v3594_v49, %v2513_v50  ;;  %v2737_v21 = vld [vmem:[#allocation2 + $0x278] sm:$0xf0]  ;;  %v3582_v28 = vld [vmem:[#allocation2 + $0x4c] sm:$0xf] }
  0xcd   :  { %1907 = vmatpush.bf16.msrb.mxu0 %v2960_v56  ;;  %v1665_v52 = vpop.f32.mrf.mxu1  ;;  %v2769_v56 = vld [vmem:[#allocation2 + $0x2b8] sm:$0xf0]  ;;  %v3574_v1 = vld [vmem:[#allocation2 + $0xc] sm:$0xf] }
  0xce   :  { %1920 = vmatpush.bf16.msrb.mxu1 %v3088_v60  ;;  %1933 = vmatpush.bf16.msrb.mxu2 %v3216_v61  ;;  %v2644_v61 = vor.u32 %v3626_v51, %v2641_v54  ;;  %v2772_v62 = vor.u32 %v3658_v55, %v2769_v56  ;;  %v2593_v39 = vld [vmem:[#allocation2 + $0x158] sm:$0xf0]  ;;  %v3578_v54 = vld [vmem:[#allocation2 + $0x2c] sm:$0xf] }
  0xcf   :  { %1946 = vmatpush.bf16.msrb.mxu3 %v3344_v2  ;;  %v2721_v44 = vld [vmem:[#allocation2 + $0x258] sm:$0xf0]  ;;  %v2596_v52 = vor.u32 %v3614_v30, %v2593_v39  ;;  %v3610_v56 = vld [vmem:[#allocation2 + $0x12c] sm:$0xf] }
  0xd0   :  { %v2449_v55 = vld [vmem:[#allocation2 + $0x38] sm:$0xf0]  ;;  %v3606_v5 = vld [vmem:[#allocation2 + $0x10c] sm:$0xf] }
  0xd1   :  { %1908 = vmatpush.bf16.msrb.mxu0 %v2944_v10  ;;  %v1678_v60 = vpop.f32.mrf.mxu2  ;;  %v2452_v0 = vor.u32 %v3578_v54, %v2449_v55  ;;  %v3638_v7 = vld [vmem:[#allocation2 + $0x20c] sm:$0xf]  ;;  %v3041_v30 = vld [vmem:[#allocation2 + $0x4d8] sm:$0xf0] }
  0xd2   :  { %1921 = vmatpush.bf16.msrb.mxu1 %v3072_v15  ;;  %1934 = vmatpush.bf16.msrb.mxu2 %v3200_v16  ;;  %v1691_v2 = vpop.f32.mrf.mxu3  ;;  %v3618_v15 = vld [vmem:[#allocation2 + $0x16c] sm:$0xf]  ;;  %v3169_v39 = vld [vmem:[#allocation2 + $0x5d8] sm:$0xf0] }
  0xd3   :  { %1947 = vmatpush.bf16.msrb.mxu3 %v3328_v19  ;;  %v2609_v19 = vld [vmem:[#allocation2 + $0x178] sm:$0xf0]  ;;  %v3642_v60 = vld [vmem:[#allocation2 + $0x22c] sm:$0xf] }
  0xd4   :  { %1909 = vmatmul.bf16.vlgmr.msrb.gmra.mxu0 %v4039_v37  ;;  %v2612_v26 = vor.u32 %v3618_v15, %v2609_v19  ;;  %v2433_v2 = vld [vmem:[#allocation2 + $0x18] sm:$0xf0]  ;;  %v3730_v14 = vld [vmem:[#allocation2 + $0x4ec] sm:$0xf] }
  0xd5   :  { %1953 = vmatpush.bf16.msra.mxu0 %v2548_v20  ;;  %1935 = vmatmul.bf16.vlgmr.msrb.gmra.mxu2 %v4037_v32  ;;  %v1702_v10 = vpop.f32.mrf.mxu0  ;;  %v3650_v20 = vld [vmem:[#allocation2 + $0x26c] sm:$0xf]  ;;  %v3057_v15 = vld [vmem:[#allocation2 + $0x4f8] sm:$0xf0] }
  0xd6   :  { %1966 = vmatpush.bf16.msra.mxu1 %v2676_v22  ;;  %1979 = vmatpush.bf16.msra.mxu2 %v2804_v23  ;;  %v1703_v16 = vadd.f32 %v1702_v10, %v1690_v45  ;;  %v1715_v17 = vpop.f32.mrf.mxu1  ;;  %v3682_v22 = vld [vmem:[#allocation2 + $0x36c] sm:$0xf]  ;;  %v2865_v23 = vld [vmem:[#allocation2 + $0x378] sm:$0xf0]  ;;  %v2740_v27 = vor.u32 %v3650_v20, %v2737_v21  ;;  %v2564_v21 = vor.u32 %v3606_v5, %v2561_v6 }
  0xd7   :  { %1992 = vmatpush.bf16.msra.mxu3 %v2932_v29  ;;  %1922 = vmatmul.bf16.vlgmr.msrb.gmra.mxu1 %v4043_v40  ;;  %v2465_v29 = vld [vmem:[#allocation2 + $0x58] sm:$0xf0]  ;;  %v2868_v36 = vor.u32 %v3682_v22, %v2865_v23  ;;  %v3794_v19 = vld [vmem:[#allocation2 + $0x6ec] sm:$0xf] }
  0xd8   :  { %1948 = vmatmul.bf16.vlgmr.msrb.gmra.mxu3 %v4041_v38  ;;  %v1716_v24 = vadd.f32 %v1715_v17, %v1703_v16  ;;  %v2468_v49 = vor.u32 %v3582_v28, %v2465_v29  ;;  %v2689_v10 = vld [vmem:[#allocation2 + $0x218] sm:$0xf0]  ;;  %v3762_v16 = vld [vmem:[#allocation2 + $0x5ec] sm:$0xf]  ;;  %v2436_v17 = vor.u32 %v3574_v1, %v2433_v2 }
  0xd9   :  { %1954 = vmatpush.bf16.msra.mxu0 %v2532_v46  ;;  %v3313_v20 = vld [vmem:[#allocation2 + $0x6f8] sm:$0xf0]  ;;  %v2692_v22 = vor.u32 %v3638_v7, %v2689_v10  ;;  %v3826_v23 = vld [vmem:[#allocation2 + $0x7ec] sm:$0xf] }
  0xda   :  { %1967 = vmatpush.bf16.msra.mxu1 %v2660_v47  ;;  %1980 = vmatpush.bf16.msra.mxu2 %v2788_v48  ;;  %v1728_v31 = vpop.f32.mrf.mxu2  ;;  %v3678_v47 = vld [vmem:[#allocation2 + $0x34c] sm:$0xf]  ;;  %v2849_v48 = vld [vmem:[#allocation2 + $0x358] sm:$0xf0]  ;;  %v3316_v28 = vor.u32 %v3794_v19, %v3313_v20 }
  0xdb   :  { %1993 = vmatpush.bf16.msra.mxu3 %v2916_v53  ;;  %v1729_v45 = vadd.f32 %v1728_v31, %v1716_v24  ;;  %v1741_v46 = vpop.f32.mrf.mxu3  ;;  %v2724_v53 = vor.u32 %v3646_v43, %v2721_v44  ;;  %v2852_v58 = vor.u32 %v3678_v47, %v2849_v48  ;;  %v3441_v24 = vld [vmem:[#allocation2 + $0x7f8] sm:$0xf0]  ;;  %v3726_v29 = vld [vmem:[#allocation2 + $0x4cc] sm:$0xf] }
  0xdc   :  { %v3758_v31 = vld [vmem:[#allocation2 + $0x5cc] sm:$0xf]  ;;  %v3297_v44 = vld [vmem:[#allocation2 + $0x6d8] sm:$0xf0]  ;;  %v3044_v47 = vor.u32 %v3726_v29, %v3041_v30 }
  0xdd   :  { %1955 = vmatpush.bf16.msra.mxu0 %v2516_v59  ;;  %v4068_v50 = vadd.f32 %v1741_v46, %v1729_v45  ;;  %v1704_v51 = vpop.f32.mrf.mxu0  ;;  %v2577_v59 = vld [vmem:[#allocation2 + $0x138] sm:$0xf0]  ;;  %v3790_v43 = vld [vmem:[#allocation2 + $0x6cc] sm:$0xf]  ;;  %v3172_v48 = vor.u32 %v3758_v31, %v3169_v39 }
  0xde   :  { %1968 = vmatpush.bf16.msra.mxu1 %v2644_v61  ;;  %1981 = vmatpush.bf16.msra.mxu2 %v2772_v62  ;;  %v1717_v57 = vpop.f32.mrf.mxu1  ;;  %v2705_v61 = vld [vmem:[#allocation2 + $0x238] sm:$0xf0]  ;;  %v3674_v62 = vld [vmem:[#allocation2 + $0x32c] sm:$0xf] }
  0xdf   :  { %1994 = vmatpush.bf16.msra.mxu3 %v2900_v3  ;;  %v2580_v3 = vor.u32 %v3610_v56, %v2577_v59  ;;  %v2708_v4 = vor.u32 %v3642_v60, %v2705_v61  ;;  %v3822_v45 = vld [vmem:[#allocation2 + $0x7cc] sm:$0xf]  ;;  %v3425_v46 = vld [vmem:[#allocation2 + $0x7d8] sm:$0xf0] }
  0xe0   :  { %v3722_v51 = vld [vmem:[#allocation2 + $0x4ac] sm:$0xf]  ;;  %v3428_v54 = vor.u32 %v3822_v45, %v3425_v46  ;;  %v3153_v55 = vld [vmem:[#allocation2 + $0x5b8] sm:$0xf0] }
  0xe1   :  { %1956 = vmatpush.bf16.msra.mxu0 %v2500_v9  ;;  %v2836_v9 = vor.u32 %v3674_v62, %v2833_v63  ;;  %v3786_v56 = vld [vmem:[#allocation2 + $0x6ac] sm:$0xf]  ;;  %v3281_v57 = vld [vmem:[#allocation2 + $0x6b8] sm:$0xf0] }
  0xe2   :  { %1969 = vmatpush.bf16.msra.mxu1 %v2628_v11  ;;  %1982 = vmatpush.bf16.msra.mxu2 %v2756_v12  ;;  %v1730_v8 = vpop.f32.mrf.mxu2  ;;  %v3670_v11 = vld [vmem:[#allocation2 + $0x30c] sm:$0xf]  ;;  %v2817_v12 = vld [vmem:[#allocation2 + $0x318] sm:$0xf0]  ;;  %v3284_v62 = vor.u32 %v3786_v56, %v3281_v57  ;;  %v354_v56 = vperm.slane %v4061_v35, 1 }
  0xe3   :  { %1995 = vmatpush.bf16.msra.mxu3 %v2884_v18  ;;  %v1743_v13 = vpop.f32.mrf.mxu3  ;;  %v3185_v18 = vld [vmem:[#allocation2 + $0x5f8] sm:$0xf0]  ;;  %v3718_v63 = vld [vmem:[#allocation2 + $0x48c] sm:$0xf] }
  0xe4   :  { %v3409_v59 = vld [vmem:[#allocation2 + $0x7b8] sm:$0xf0]  ;;  %v3814_v5 = vld [vmem:[#allocation2 + $0x78c] sm:$0xf] }
  0xe5   :  { %1957 = vmatpush.bf16.msra.mxu0 %v2484_v25  ;;  %v2820_v25 = vor.u32 %v3670_v11, %v2817_v12  ;;  %v3137_v2 = vld [vmem:[#allocation2 + $0x598] sm:$0xf0]  ;;  %v3714_v8 = vld [vmem:[#allocation2 + $0x46c] sm:$0xf] }
  0xe6   :  { %1970 = vmatpush.bf16.msra.mxu1 %v2612_v26  ;;  %1983 = vmatpush.bf16.msra.mxu2 %v2740_v27  ;;  %v3060_v26 = vor.u32 %v3730_v14, %v3057_v15  ;;  %v3188_v27 = vor.u32 %v3762_v16, %v3185_v18  ;;  %v3746_v10 = vld [vmem:[#allocation2 + $0x56c] sm:$0xf]  ;;  %v3121_v13 = vld [vmem:[#allocation2 + $0x578] sm:$0xf0] }
  0xe7   :  { %1996 = vmatpush.bf16.msra.mxu3 %v2868_v36  ;;  %v3444_v36 = vor.u32 %v3826_v23, %v3441_v24  ;;  %v3778_v14 = vld [vmem:[#allocation2 + $0x66c] sm:$0xf]  ;;  %v3249_v15 = vld [vmem:[#allocation2 + $0x678] sm:$0xf0]  ;;  %v3124_v19 = vor.u32 %v3746_v10, %v3121_v13  ;;  %v3844_v10 = vld [vmem:[%s4199_s3 + $0x78] sm:$0xff] }
  0xe8   :  { %v3810_v16 = vld [vmem:[#allocation2 + $0x76c] sm:$0xf]  ;;  %v3252_v20 = vor.u32 %v3778_v14, %v3249_v15  ;;  %v3361_v31 = vld [vmem:[#allocation2 + $0x758] sm:$0xf0]  ;;  %v3852_v13 = vld [vmem:[%s4199_s3 + $0xb8] sm:$0xff] }
  0xe9   :  { %1958 = vmatpush.bf16.msra.mxu0 %v2468_v49  ;;  %v3300_v49 = vor.u32 %v3790_v43, %v3297_v44  ;;  %v3742_v23 = vld [vmem:[#allocation2 + $0x54c] sm:$0xf]  ;;  %v2961_v46 = vld [vmem:[#allocation2 + $0x438] sm:$0xf0]  ;;  %v3834_v15 = vld [vmem:[%s4199_s3 + $0x28] sm:$0xff] }
  0xea   :  { %1971 = vmatpush.bf16.msra.mxu1 %v2596_v52  ;;  %1984 = vmatpush.bf16.msra.mxu2 %v2724_v53  ;;  %v3025_v52 = vld [vmem:[#allocation2 + $0x4b8] sm:$0xf0]  ;;  %v3754_v53 = vld [vmem:[#allocation2 + $0x5ac] sm:$0xf] }
  0xeb   :  { %1997 = vmatpush.bf16.msra.mxu3 %v2852_v58  ;;  %v3818_v58 = vld [vmem:[#allocation2 + $0x7ac] sm:$0xf]  ;;  %v3028_v60 = vor.u32 %v3722_v51, %v3025_v52  ;;  %v3156_v61 = vor.u32 %v3754_v53, %v3153_v55  ;;  %v3089_v51 = vld [vmem:[#allocation2 + $0x538] sm:$0xf0] }
  0xec   :  { %v3412_v1 = vor.u32 %v3818_v58, %v3409_v59  ;;  %v3806_v30 = vld [vmem:[#allocation2 + $0x74c] sm:$0xf]  ;;  %v3217_v53 = vld [vmem:[#allocation2 + $0x638] sm:$0xf0] }
  0xed   :  { %1959 = vmatpush.bf16.msra.mxu0 %v2452_v0  ;;  %v3009_v0 = vld [vmem:[#allocation2 + $0x498] sm:$0xf0]  ;;  %v3706_v45 = vld [vmem:[#allocation2 + $0x42c] sm:$0xf] }
  0xee   :  { %1972 = vmatpush.bf16.msra.mxu1 %v2580_v3  ;;  %1985 = vmatpush.bf16.msra.mxu2 %v2708_v4  ;;  %v3782_v3 = vld [vmem:[#allocation2 + $0x68c] sm:$0xf]  ;;  %v3265_v4 = vld [vmem:[#allocation2 + $0x698] sm:$0xf0]  ;;  %v2964_v57 = vor.u32 %v3706_v45, %v2961_v46 }
  0xef   :  { %1998 = vmatpush.bf16.msra.mxu3 %v2836_v9  ;;  %v3268_v7 = vor.u32 %v3782_v3, %v3265_v4  ;;  %v2993_v9 = vld [vmem:[#allocation2 + $0x478] sm:$0xf0]  ;;  %v3770_v52 = vld [vmem:[#allocation2 + $0x62c] sm:$0xf] }
  0xf0   :  { %v2996_v18 = vor.u32 %v3714_v8, %v2993_v9  ;;  %v3345_v55 = vld [vmem:[#allocation2 + $0x738] sm:$0xf0]  ;;  %v3220_v59 = vor.u32 %v3770_v52, %v3217_v53  ;;  %v3798_v4 = vld [vmem:[#allocation2 + $0x70c] sm:$0xf]  ;;  %v3836_v9 = vld [vmem:[%s4199_s3 + $0x38] sm:$0xff] }
  0xf1   :  { %1960 = vmatpush.bf16.msra.mxu0 %v2436_v17  ;;  %v4074_v6 = vpop.f32.mrf.mxu0  ;;  %v3377_v17 = vld [vmem:[#allocation2 + $0x778] sm:$0xf0] }
  0xf2   :  { %1973 = vmatpush.bf16.msra.mxu1 %v2564_v21  ;;  %1986 = vmatpush.bf16.msra.mxu2 %v2692_v22  ;;  %v3710_v21 = vld [vmem:[#allocation2 + $0x44c] sm:$0xf]  ;;  %v2977_v22 = vld [vmem:[#allocation2 + $0x458] sm:$0xf0] }
  0xf3   :  { %1999 = vmatpush.bf16.msra.mxu3 %v2820_v25  ;;  %v3380_v25 = vor.u32 %v3810_v16, %v3377_v17  ;;  %v3842_v16 = vld [vmem:[%s4199_s3 + $0x68] sm:$0xff] }
  0xf4   :  { %1961 = vmatmul.bf16.vlgmr.msra.gmra.mxu0 %v4024_v34  ;;  %v3393_v34 = vld [vmem:[#allocation2 + $0x798] sm:$0xf0]  ;;  %v4076_v11 = vpop.f32.mrf.mxu1 }
  0xf5   :  { %2005 = vmatpush.bf16.msrb.mxu0 %v3060_v26  ;;  %1987 = vmatmul.bf16.vlgmr.msra.gmra.mxu2 %v4022_v33  ;;  %v3750_v33 = vld [vmem:[#allocation2 + $0x58c] sm:$0xf]  ;;  %v3396_v12 = vor.u32 %v3814_v5, %v3393_v34  ;;  %v3105_v26 = vld [vmem:[#allocation2 + $0x558] sm:$0xf0]  ;;  %v1755_v34 = vadd.f32 %v4074_v6, %v354_v56 }
  0xf6   :  { %2018 = vmatpush.bf16.msrb.mxu1 %v3188_v27  ;;  %2031 = vmatpush.bf16.msrb.mxu2 %v3316_v28  ;;  %v3774_v27 = vld [vmem:[#allocation2 + $0x64c] sm:$0xf]  ;;  %v3233_v28 = vld [vmem:[#allocation2 + $0x658] sm:$0xf0]  ;;  %v3108_v43 = vor.u32 %v3742_v23, %v3105_v26 }
  0xf7   :  { %2044 = vmatpush.bf16.msrb.mxu3 %v3444_v36  ;;  %1974 = vmatmul.bf16.vlgmr.msra.gmra.mxu1 %v4028_v42  ;;  %v3140_v42 = vor.u32 %v3750_v33, %v3137_v2  ;;  %v2980_v36 = vor.u32 %v3710_v21, %v2977_v22  ;;  %v3236_v44 = vor.u32 %v3774_v27, %v3233_v28  ;;  %v3073_v33 = vld [vmem:[#allocation2 + $0x518] sm:$0xf0]  ;;  %v3835_v6 = vld [vmem:[%s4199_s3 + $0x30] sm:$0xff]  ;;  %v3840_v22 = vld [vmem:[%s4199_s3 + $0x58] sm:$0xff] }
  0xf8   :  { %2000 = vmatmul.bf16.vlgmr.msra.gmra.mxu3 %v4026_v41  ;;  %v3012_v41 = vor.u32 %v3718_v63, %v3009_v0  ;;  %v4078_v24 = vpop.f32.mrf.mxu2  ;;  %v3201_v2 = vld [vmem:[#allocation2 + $0x618] sm:$0xf0]  ;;  %v3831_v26 = vld [vmem:[%s4199_s3 + $0x10] sm:$0xff] }
  0xf9   :  { %2006 = vmatpush.bf16.msrb.mxu0 %v3044_v47  ;;  %v1756_v39 = vpop.f32.mrf.mxu0  ;;  %v3738_v47 = vld [vmem:[#allocation2 + $0x52c] sm:$0xf]  ;;  %v3329_v5 = vld [vmem:[#allocation2 + $0x718] sm:$0xf0] }
  0xfa   :  { %2019 = vmatpush.bf16.msrb.mxu1 %v3172_v48  ;;  %2032 = vmatpush.bf16.msrb.mxu2 %v3300_v49  ;;  %v3364_v49 = vor.u32 %v3806_v30, %v3361_v31  ;;  %v3092_v58 = vor.u32 %v3738_v47, %v3089_v51  ;;  %v3332_v8 = vor.u32 %v3798_v4, %v3329_v5  ;;  %v3839_v30 = vld [vmem:[%s4199_s3 + $0x50] sm:$0xff]  ;;  %v3830_v39 = vld [vmem:[%s4199_s3 + $0x8] sm:$0xff]  ;;  %v3837_v51 = vld [vmem:[%s4199_s3 + $0x40] sm:$0xff] }
  0xfb   :  { %2045 = vmatpush.bf16.msrb.mxu3 %v3428_v54  ;;  %v4080_v29 = vpop.f32.mrf.mxu3  ;;  %v3802_v54 = vld [vmem:[#allocation2 + $0x72c] sm:$0xf] }
  0xfc   :  { %v1769_v48 = vpop.f32.mrf.mxu1  ;;  %v3348_v0 = vor.u32 %v3802_v54, %v3345_v55  ;;  %v3847_v56 = vld [vmem:[%s4199_s3 + $0x90] sm:$0xff] }
  0xfd   :  { %2007 = vmatpush.bf16.msrb.mxu0 %v3028_v60  ;;  %v3702_v60 = vld [vmem:[#allocation2 + $0x40c] sm:$0xf]  ;;  %v3829_v48 = vld [vmem:[%s4199_s3] sm:$0xff] }
  0xfe   :  { %2020 = vmatpush.bf16.msrb.mxu1 %v3156_v61  ;;  %2033 = vmatpush.bf16.msrb.mxu2 %v3284_v62  ;;  %v2945_v61 = vld [vmem:[#allocation2 + $0x418] sm:$0xf0]  ;;  %v3734_v62 = vld [vmem:[#allocation2 + $0x50c] sm:$0xf] }
  0xff   :  { %2046 = vmatpush.bf16.msrb.mxu3 %v3412_v1  ;;  %v3766_v1 = vld [vmem:[#allocation2 + $0x60c] sm:$0xf] }
 0x100   :  { %v1782_v63 = vpop.f32.mrf.mxu2 }
 0x101   :  { %2008 = vmatpush.bf16.msrb.mxu0 %v3012_v41  ;;  %v2948_v41 = vor.u32 %v3702_v60, %v2945_v61  ;;  %v3845_v61 = vld [vmem:[%s4199_s3 + $0x80] sm:$0xff] }
 0x102   :  { %2021 = vmatpush.bf16.msrb.mxu1 %v3140_v42  ;;  %2034 = vmatpush.bf16.msrb.mxu2 %v3268_v7  ;;  %v3076_v42 = vor.u32 %v3734_v62, %v3073_v33  ;;  %v3204_v7 = vor.u32 %v3766_v1, %v3201_v2  ;;  %v355_v62 = vperm.slane %v4061_v35, 2 }
 0x103   :  { %2047 = vmatpush.bf16.msrb.mxu3 %v3396_v12  ;;  %v1795_v3 = vpop.f32.mrf.mxu3  ;;  %v1768_v12 = vadd.f32 %v4076_v11, %v1755_v34  ;;  %v3843_v11 = vld [vmem:[%s4199_s3 + $0x70] sm:$0xff] }
 0x105   :  { %2009 = vmatpush.bf16.msrb.mxu0 %v2996_v18  ;;  %v1781_v14 = vadd.f32 %v4078_v24, %v1768_v12 }
 0x106   :  { %2022 = vmatpush.bf16.msrb.mxu1 %v3124_v19  ;;  %2035 = vmatpush.bf16.msrb.mxu2 %v3252_v20  ;;  %v3851_v19 = vld [vmem:[%s4199_s3 + $0xb0] sm:$0xff]  ;;  %v3832_v20 = vld [vmem:[%s4199_s3 + $0x18] sm:$0xff] }
 0x107   :  { %2048 = vmatpush.bf16.msrb.mxu3 %v3380_v25  ;;  %v3850_v25 = vld [vmem:[%s4199_s3 + $0xa8] sm:$0xff] }
 0x109   :  { %2010 = vmatpush.bf16.msrb.mxu0 %v2980_v36 }
 0x10a   :  { %2023 = vmatpush.bf16.msrb.mxu1 %v3108_v43  ;;  %2036 = vmatpush.bf16.msrb.mxu2 %v3236_v44  ;;  %v3848_v43 = vld [vmem:[%s4199_s3 + $0x98] sm:$0xff]  ;;  %v3838_v44 = vld [vmem:[%s4199_s3 + $0x48] sm:$0xff] }
 0x10b   :  { %2049 = vmatpush.bf16.msrb.mxu3 %v3364_v49  ;;  %v2057_v49 = vmax.f32 %v4068_v50, 0.0 }
 0x10d   :  { %2011 = vmatpush.bf16.msrb.mxu0 %v2964_v57  ;;  %v2061_v53 = vpack.c.bf16 %v2057_v49, %v2057_v49 }
 0x10e   :  { %2024 = vmatpush.bf16.msrb.mxu1 %v3092_v58  ;;  %2037 = vmatpush.bf16.msrb.mxu2 %v3220_v59  ;;  %v3846_v58 = vld [vmem:[%s4199_s3 + $0x88] sm:$0xff] }
 0x10f   :  { %2050 = vmatpush.bf16.msrb.mxu3 %v3348_v0 }
 0x111   :  { %2012 = vmatpush.bf16.msrb.mxu0 %v2948_v41 }
 0x112   :  { %2025 = vmatpush.bf16.msrb.mxu1 %v3076_v42  ;;  %2038 = vmatpush.bf16.msrb.mxu2 %v3204_v7 }
 0x113   :  { %2051 = vmatpush.bf16.msrb.mxu3 %v3332_v8 }
 0x114   :  { %2013 = vmatmul.bf16.vlgmr.msrb.gmra.mxu0 %v4039_v37  ;;  %v1794_v37 = vadd.f32 %v4080_v29, %v1781_v14  ;;  %v1819_v18 = vpop.f32.mrf.mxu1  ;;  %v3849_v29 = vld [vmem:[%s4199_s3 + $0xa0] sm:$0xff] }
 0x115   :  { %2325 = vmatpush.bf16.msra.mxu0 %v3836_v9  ;;  %2026 = vmatmul.bf16.vlgmr.msrb.gmra.mxu1 %v4043_v40  ;;  %v1806_v40 = vpop.f32.mrf.mxu0  ;;  %v3860_v9 = vld [vmem:[%s4199_s3 + $0xf8] sm:$0xff] }
 0x116   :  { %2338 = vmatpush.bf16.msra.mxu1 %v3844_v10  ;;  %2039 = vmatmul.bf16.vlgmr.msrb.gmra.mxu2 %v4037_v32  ;;  %v3833_v32 = vld [vmem:[%s4199_s3 + $0x20] sm:$0xff]  ;;  %v1807_v17 = vadd.f32 %v1806_v40, %v1794_v37  ;;  %v3856_v40 = vld [vmem:[%s4199_s3 + $0xd8] sm:$0xff] }
 0x117   :  { %2052 = vmatmul.bf16.vlgmr.msrb.gmra.mxu3 %v4041_v38  ;;  %2351 = vmatpush.bf16.msra.mxu2 %v3852_v13  ;;  %v3841_v38 = vld [vmem:[%s4199_s3 + $0x60] sm:$0xff] }
 0x118   :  { %v1820_v21 = vadd.f32 %v1819_v18, %v1807_v17  ;;  %v1832_v23 = vpop.f32.mrf.mxu2  ;;  %2364 = vmatpush.bf16.msra.mxu3 %v3860_v9 }
 0x119   :  { %2326 = vmatpush.bf16.msra.mxu0 %v3835_v6  ;;  %v3859_v6 = vld [vmem:[%s4199_s3 + $0xf0] sm:$0xff] }
 0x11a   :  { %2339 = vmatpush.bf16.msra.mxu1 %v3843_v11  ;;  %v1833_v27 = vadd.f32 %v1832_v23, %v1820_v21  ;;  %v3853_v23 = vld [vmem:[%s4199_s3 + $0xc0] sm:$0xff] }
 0x11b   :  { %2352 = vmatpush.bf16.msra.mxu2 %v3851_v19  ;;  %v1845_v24 = vpop.f32.mrf.mxu3  ;;  %v3854_v19 = vld [vmem:[%s4199_s3 + $0xc8] sm:$0xff] }
 0x11c   :  { %v1821_v31 = vpop.f32.mrf.mxu1  ;;  %v1846_v36 = vadd.f32 %v1845_v24, %v1833_v27  ;;  %2365 = vmatpush.bf16.msra.mxu3 %v3859_v6 }
 0x11d   :  { %2327 = vmatpush.bf16.msra.mxu0 %v3834_v15  ;;  %v1808_v28 = vpop.f32.mrf.mxu0  ;;  %v3858_v15 = vld [vmem:[%s4199_s3 + $0xe8] sm:$0xff] }
 0x11e   :  { %2340 = vmatpush.bf16.msra.mxu1 %v3842_v16  ;;  %v2058_v47 = vmax.f32 %v1846_v36, 0.0 }
 0x11f   :  { %2353 = vmatpush.bf16.msra.mxu2 %v3850_v25  ;;  %v356_v25 = vperm.slane %v4061_v35, 3 }
 0x120   :  { %v1834_v45 = vpop.f32.mrf.mxu2  ;;  %v2062_v52 = vpack.c.bf16 %v2058_v47, %v2058_v47  ;;  %2366 = vmatpush.bf16.msra.mxu3 %v3858_v15 }
 0x121   :  { %2328 = vmatpush.bf16.msra.mxu0 %v3833_v32  ;;  %v3857_v32 = vld [vmem:[%s4199_s3 + $0xe0] sm:$0xff] }
 0x122   :  { %2341 = vmatpush.bf16.msra.mxu1 %v3841_v38  ;;  %v3855_v38 = vld [vmem:[%s4199_s3 + $0xd0] sm:$0xff]  ;;  %s3979_s3 = smov [#allocation8]  }
 0x123   :  { %2354 = vmatpush.bf16.msra.mxu2 %v3849_v29  ;;  %v1847_v46 = vpop.f32.mrf.mxu3  ;;  %s2408_s16 = sshll.u32 %s3979_s3, 4  ;;  %s2409_s16 = int_to_ptr.vmem [resolvable:$true] %s2408_s16 }
 0x124   :  { %2367 = vmatpush.bf16.msra.mxu3 %v3857_v32 }
 0x125   :  { %2329 = vmatpush.bf16.msra.mxu0 %v3832_v20 }
 0x126   :  { %2342 = vmatpush.bf16.msra.mxu1 %v3840_v22 }
 0x127   :  { %2355 = vmatpush.bf16.msra.mxu2 %v3848_v43 }
 0x128   :  { %2368 = vmatpush.bf16.msra.mxu3 %v3856_v40 }
 0x129   :  { %2330 = vmatpush.bf16.msra.mxu0 %v3831_v26 }
 0x12a   :  { %2343 = vmatpush.bf16.msra.mxu1 %v3839_v30 }
 0x12b   :  { %2356 = vmatpush.bf16.msra.mxu2 %v3847_v56 }
 0x12c   :  { %2369 = vmatpush.bf16.msra.mxu3 %v3855_v38 }
 0x12d   :  { %2331 = vmatpush.bf16.msra.mxu0 %v3830_v39 }
 0x12e   :  { %2344 = vmatpush.bf16.msra.mxu1 %v3838_v44 }
 0x12f   :  { %2357 = vmatpush.bf16.msra.mxu2 %v3846_v58 }
 0x130   :  { %2370 = vmatpush.bf16.msra.mxu3 %v3854_v19 }
 0x131   :  { %2332 = vmatpush.bf16.msra.mxu0 %v3829_v48  ;;  %v1858_v54 = vpop.f32.mrf.mxu0 }
 0x132   :  { %2345 = vmatpush.bf16.msra.mxu1 %v3837_v51  ;;  %v1859_v33 = vadd.f32 %v1858_v54, %v355_v62 }
 0x133   :  { %2358 = vmatpush.bf16.msra.mxu2 %v3845_v61 }
 0x134   :  { %2333 = vmatmul.bf16.vlgmr.msra.gmra.mxu0 %v2061_v53  ;;  %v1871_v55 = vpop.f32.mrf.mxu1  ;;  %2371 = vmatpush.bf16.msra.mxu3 %v3853_v23 }
 0x135   :  { %2346 = vmatmul.bf16.vlgmr.msra.gmra.mxu1 %v2062_v52  ;;  %v1872_v1 = vadd.f32 %v1871_v55, %v1859_v33  ;;  %v3867_v55 = vld [vmem:[#allocation7] ss:$0 sm:$0xff] }
 0x138   :  { %v1884_v57 = vpop.f32.mrf.mxu2 }
 0x139   :  { %v1860_v59 = vpop.f32.mrf.mxu0  ;;  %v1885_v2 = vadd.f32 %v1884_v57, %v1872_v1 }
 0x13b   :  { %v1897_v50 = vpop.f32.mrf.mxu3 }
 0x13c   :  { %v1873_v60 = vpop.f32.mrf.mxu1  ;;  %v1898_v3 = vadd.f32 %v1897_v50, %v1885_v2 }
 0x140   :  { %v1886_v63 = vpop.f32.mrf.mxu2 }
 0x143   :  { %v1899_v0 = vpop.f32.mrf.mxu3 }
 0x151   :  { %v1910_v4 = vpop.f32.mrf.mxu0 }
 0x152   :  { %v1911_v5 = vadd.f32 %v1910_v4, %v1898_v3 }
 0x154   :  { %v1923_v34 = vpop.f32.mrf.mxu1 }
 0x155   :  { %v1924_v41 = vadd.f32 %v1923_v34, %v1911_v5 }
 0x158   :  { %v1936_v42 = vpop.f32.mrf.mxu2 }
 0x159   :  { %v1937_v7 = vadd.f32 %v1936_v42, %v1924_v41  ;;  %v1912_v12 = vpop.f32.mrf.mxu0 }
 0x15b   :  { %v1949_v8 = vpop.f32.mrf.mxu3 }
 0x15c   :  { %v1950_v10 = vadd.f32 %v1949_v8, %v1937_v7  ;;  %v1925_v13 = vpop.f32.mrf.mxu1 }
 0x15e   :  { %v2059_v11 = vmax.f32 %v1950_v10, 0.0 }
 0x160   :  { %v2063_v14 = vpack.c.bf16 %v2059_v11, %v2059_v11  ;;  %v1938_v37 = vpop.f32.mrf.mxu2 }
 0x162   :  { %2359 = vmatmul.bf16.vlgmr.msra.gmra.mxu2 %v2063_v14 }
 0x163   :  { %v1951_v16 = vpop.f32.mrf.mxu3 }
 0x171   :  { %v1962_v17 = vpop.f32.mrf.mxu0 }
 0x172   :  { %v1963_v28 = vadd.f32 %v1962_v17, %v356_v25 }
 0x174   :  { %v1975_v18 = vpop.f32.mrf.mxu1 }
 0x175   :  { %v1976_v29 = vadd.f32 %v1975_v18, %v1963_v28 }
 0x178   :  { %v1988_v20 = vpop.f32.mrf.mxu2 }
 0x179   :  { %v1964_v22 = vpop.f32.mrf.mxu0  ;;  %v1989_v30 = vadd.f32 %v1988_v20, %v1976_v29 }
 0x17b   :  { %v2001_v21 = vpop.f32.mrf.mxu3 }
 0x17c   :  { %v1977_v24 = vpop.f32.mrf.mxu1  ;;  %v2002_v31 = vadd.f32 %v2001_v21, %v1989_v30 }
 0x180   :  { %v1990_v26 = vpop.f32.mrf.mxu2 }
 0x183   :  { %v2003_v27 = vpop.f32.mrf.mxu3 }
 0x191   :  { %v2014_v36 = vpop.f32.mrf.mxu0 }
 0x192   :  { %v2027_v39 = vpop.f32.mrf.mxu1  ;;  %v2015_v43 = vadd.f32 %v2014_v36, %v2002_v31 }
 0x194   :  { %v2028_v44 = vadd.f32 %v2027_v39, %v2015_v43 }
 0x199   :  { %v2040_v45 = vpop.f32.mrf.mxu2  ;;  %v2016_v48 = vpop.f32.mrf.mxu0 }
 0x19a   :  { %v2041_v46 = vadd.f32 %v2040_v45, %v2028_v44  ;;  %v2053_v47 = vpop.f32.mrf.mxu3  ;;  %v2029_v49 = vpop.f32.mrf.mxu1 }
 0x19c   :  { %v2054_v51 = vadd.f32 %v2053_v47, %v2041_v46 }
 0x19e   :  { %v2060_v52 = vmax.f32 %v2054_v51, 0.0 }
 0x1a0   :  { %v2064_v53 = vpack.c.bf16 %v2060_v52, %v2060_v52 }
 0x1a1   :  { %v2042_v54 = vpop.f32.mrf.mxu2 }
 0x1a2   :  { %v2055_v35 = vpop.f32.mrf.mxu3  ;;  %2372 = vmatmul.bf16.vlgmr.msra.gmra.mxu3 %v2064_v53 }
 0x1b1   :  { %v2334_v56 = vpop.f32.mrf.mxu0 }
 0x1b2   :  { %v2335_v57 = vadd.f32 %v3867_v55, %v2334_v56  ;;  %v2347_v50 = vpop.f32.mrf.mxu1 }
 0x1b4   :  { %v2348_v58 = vadd.f32 %v2347_v50, %v2335_v57 }
 0x1b9   :  { %v2336_v59 = vpop.f32.mrf.mxu0 }
 0x1ba   :  { %v2349_v60 = vpop.f32.mrf.mxu1 }
 0x1e5   :  { %v2360_v61 = vpop.f32.mrf.mxu2 }
 0x1e6   :  { %v2361_v63 = vadd.f32 %v2360_v61, %v2348_v58 }
 0x1ed   :  { %v2362_v62 = vpop.f32.mrf.mxu2 }
 0x225   :  { %v2373_v0 = vpop.f32.mrf.mxu3 }
 0x226   :  { %v2374_v33 = vadd.f32 %v2373_v0, %v2361_v63 }
 0x228   :  { %v2378_v1 = vsel %vm2377_vm0, %v2374_v33, -inf }
 0x229   :  { %2379 = vmax.xlane.f32.xlu0 %v2378_v1 }
 0x22d   :  { %v2375_v2 = vpop.f32.mrf.mxu3 }
 0x29c   :  { %v2380_v3 = vpop.xlane.xlu0 %2379 }
 0x29d   :  { %v2381_v4 = vsub.f32 %v2374_v33, %v2380_v3 }
 0x29f   :  { %v2382_v5 = vmul.f32 1.442695, %v2381_v4 }
 0x2a1   :  { %3868 = vpow2.f32 %v2382_v5 }
 0x2a7   :  { %v3869_v34 = vpop.eup %3868 }
 0x2a8   :  { %v2384_v41 = vsel %vm2377_vm0, %v3869_v34, 0.0 }
 0x2a9   :  { %2385 = vadd.xlane.f32.xlu0 %v2384_v41 }
 0x31c   :  { %v2386_v42 = vpop.xlane.xlu0 %2385 }
 0x31d   :  { %3870 = vrcp.f32 %v2386_v42  ;;  %v2398_v10 = vand.u32 2147483648, %v2386_v42  ;;  %v2396_v6 = vand.u32 2147483647, %v2386_v42  ;;  %vm2392_vm2 = vweird.f32 %v2386_v42 }
 0x31f   :  { %v2399_v11 = vor.u32 1.1754944e-38, %v2398_v10  ;;  %vm2397_vm4 = vcmp.eq.f32.partialorder %v2396_v6, 8.507059e+37 }
 0x323   :  { %v3871_v7 = vpop.eup %3870 }
 0x324   :  { %v2388_v8 = vmul.f32 %v3871_v7, %v2386_v42  ;;  %vm2393_vm1 = vweird.f32 %v3871_v7 }
 0x325   :  { %vm2394_vm3 = vmor %vm2392_vm2, %vm2393_vm1 }
 0x326   :  { %v2389_v9 = vsub.f32 1.0, %v2388_v8 }
 0x328   :  { %v2390_v12 = vmul.f32 %v3871_v7, %v2389_v9 }
 0x32a   :  { %v2391_v13 = vadd.f32 %v3871_v7, %v2390_v12 }
 0x32c   :  { %v2395_v14 = vsel %vm2394_vm3, %v3871_v7, %v2391_v13 }
 0x32d   :  { %v2400_v15 = vsel %vm2397_vm4, %v2399_v11, %v2395_v14 }
 0x32e   :  { %v2401_v37 = vmul.f32 %v3869_v34, %v2400_v15 }
 0x330   :  { %2402 = vst.msk [vmem:[#allocation8] sm:$0x3] %vm2377_vm0, %v2401_v37 }
 0x331   :  { %2413 = dma.vmem_to_hbm [thread:$0]  %s2409_s16, 32, %s2411_s19, [#allocation4]  }
 0x332   :  { %3972 = dma.done.wait [#allocation4], 32  }
 0x333   :  { %3973 = vsyncadd [#allocation4], 4294967264 }
 0x334   :  { %2418 = vsyncpa [#allocation3], 1 }
 0x335   :  { %2419 = vsyncpa [#allocation6], 1 }
 0x336   :  { %2420 = vsyncpa [#allocation4], 1 }

// kernel: cnn1d_forward.4
= control target key start
LH: loop header
LB: loop body
LE: loop exit
PB: predicated region body
PF: predicated region fallthrough
CT: control target
= control target key end

     0   :  { %8 = vsyncpa [#allocation4], 0  ;;  %s8446_s0 = inlined_call_operand.vmem [shape: f32[2,2048], index: 0, kind: input, shape index: {}]   ;;  %s8447_s1 = inlined_call_operand.hbm [shape: bf16[2048,1024], index: 1, kind: input, shape index: {}]   ;;  %s8448_s2 = inlined_call_operand.hbm [shape: f32[1,1024], index: 2, kind: input, shape index: {}]   ;;  %s8449_s3 = inlined_call_operand.vmem [shape: f32[2,1024], index: 3, kind: output, shape index: {}]  }
   0x1   :  { %10 = vsyncpa [#allocation4 + $0x1], 0 }
   0x2   :  { %11 = vsyncpa [#allocation6], 0  ;;  %s7156_s12 = smov 0   ;;  %s7158_s13 = smov 0  }
   0x3   :  { %s7160_s14 = smov 0   ;;  %s7162_s15 = smov 0  }
   0x4   :  { %s7164_s16 = smov 0   ;;  %s7166_s17 = smov 0  }
   0x5 LB: > { %s4366_s18 = sadd.s32 4294967295, %s7130_s17   ;;  %s64_s19 = sadd.s32 1, %s7118_s14  ;;  %s7130_s17 = sphi %s7166_s17, %s17_s17   ;;  %s7126_s16 = sphi %s7164_s16, %s8459_s16   ;;  %s7122_s15 = sphi %s7162_s15, %s8458_s15   ;;  %s7118_s14 = sphi %s7160_s14, %s8457_s14   ;;  %s7114_s13 = sphi %s7158_s13, %s8456_s13   ;;  %s7110_s12 = sphi %s7156_s12, %s8455_s12  }
   0x6   : > { %p71_p0 = scmp.ne.s32.totalorder %s7118_s14, %s7114_s13  ;;  %p72_p1 = scmp.eq.s32.totalorder %s7130_s17, 0 }
   0x7   : > { %p77_p2 = scmp.ne.s32.totalorder %s7114_s13, %s7110_s12  ;;  %p7190_p3 = scmp.eq.s32.totalorder %s4366_s18, 0 }
   0x8   : > { %p7194_p4 = por %p72_p1, %p71_p0  ;;  %p4367_p5 = scmp.ge.s32.totalorder %s7130_s17, 1 }
   0x9   : > { %p7201_p6 = por %p7190_p3, %p77_p2  ;;  %p140_p7 = scmp.lt.s32.totalorder %s7130_s17, 3 }
   0xa   : > { %s154_s25 = sshll.u32 %s8448_s2, 4  ;;  %s7132_s27 = smov [#allocation5]   ;;  %s155_s25 = int_to_ptr.hbm [resolvable:$true] %s154_s25 }
   0xb   : > { %p7209_p8 = pnand %p4367_p5, %p140_p7  ;;  %s156_s28 = sshll.u32 %s7132_s27, 4  ;;  %s157_s28 = int_to_ptr.vmem [resolvable:$true] %s156_s28 }
   0xc   : > { %p6962_p10 = scmp.lt.s32.totalorder %s7130_s17, 2  ;;  %s26_s30 = sadd.s32 1, %s7126_s16 }
   0xd   : > { %p6953_p9 = pneg %p7209_p8  ;;  %p27_p13 = scmp.ge.s32.totalorder %s26_s30, 2 }
   0xe   : > { %p7220_p12 = pnand %p6962_p10, %p7194_p4  ;;  %s176_s4 = sand.u32 1, %s7118_s14  }
   0xf   : > { %p6954_p11 = pnand %p6953_p9, %p7190_p3  ;;  %s6434_s5 = sshll.u32 %s7126_s16, 12 }
  0x10   : > { %s8461_s30 = smov (%p27_p13, %s26_s30), 0  ;;  %s4370_s6 = sshll.u32 %s176_s4, 12 }
  0x11   : > { %6956 = dma.hbm_to_vmem [thread:$0]  (!%p6954_p11), %s155_s25, 128, %s157_s28, [#allocation6]  }
  0x12   : > { %s59_s7 = ssub.s32 %s7126_s16, %s8461_s30  ;;  %s188_s10 = scalar_lea.hbm %s8447_s1, %s6434_s5 }
  0x13   : > { %p62_p0 = scmp.eq.s32.totalorder %s59_s7, 0  ;;  %s189_s11 = sshll.u32 %s188_s10, 4  ;;  %s190_s11 = int_to_ptr.hbm [resolvable:$true] %s189_s11 }
  0x14   : > { %s180_s12 = scalar_lea.vmem [#allocation3], %s4370_s6  ;;  %s177_s23 = scalar_lea.sflag [#allocation4], %s176_s4 }
  0x15   : > { %s191_s18 = sshll.u32 %s180_s12, 4  ;;  %s7133_s24 = smov 512   ;;  %s192_s18 = int_to_ptr.vmem [resolvable:$true] %s191_s18 }
  0x16   : > { %s7237_s21 = scalar_select %p62_p0, %s7118_s14, %s64_s19  }
  0x17   : > { %s7134_s25 = smov 32   ;;  %203 = sbr.rel (%p7209_p8) target bundleno = 977 (0x3d1), region = 32 }
  0x18   : > { %6960 = dma.hbm_to_vmem [thread:$0]  (!%p7220_p12), %s190_s11, 65536, %s192_s18, %s177_s23, %s7133_s24, %s7133_s24, %s7134_s25  }
  0x19   : > { %s205_s27 = sand.u32 (!%p7209_p8), 1, %s7114_s13  }
  0x1a   : > { %s4375_s28 = sshll.u32 (!%p7209_p8), %s205_s27, 12  ;;  %s206_s5 = scalar_lea.sflag (!%p7209_p8), [#allocation4], %s205_s27 }
  0x1b   : > { %s7244_s6 = scalar_lea.vmem (!%p7209_p8), [#allocation3], %s4375_s28 }
  0x1c   : > { %7101 = dma.done.wait (%p7201_p6), %s206_s5, 65536  }
  0x1d   : > { %7103 = vsyncadd (%p7201_p6), %s206_s5, 4294901760 }
  0x1e   : > { %7105 = dma.done.wait (%p7190_p3), [#allocation6], 128  }
  0x1f   : > { %7107 = vsyncadd (%p7190_p3), [#allocation6], 4294967168  ;;  %s4377_s19 = sshll.u32 %s7122_s15, 3  ;;  %p4379_p2 = scmp.ne.s32.totalorder %s7122_s15, 0 }
  0x20   : > { %p244_p1 = scmp.lt.s32.totalorder %s4377_s19, 15 }
  0x21   : > { %261 = sbr.rel (%p4379_p2) target bundleno = 41 (0x29), region = 44 }
  0x22   : > { %s8463_s19 = smov (!%p244_p1, %s4377_s19), 15 }
  0x23   : > { %s4378_s26 = sshll.u32 %s8463_s19, 1 }
  0x24   : > { %s7258_s7 = scalar_lea.vmem %s8446_s0, %s4378_s26 }
  0x26   : > { %v7135_v0 = vmov 0.0  }
  0x27   : > { %262 = vst [vmem:[#allocation2] sm:$0xff] %v7135_v0 }
  0x28   : > { %263 = vst [vmem:[#allocation2 + $0x8] sm:$0xff] %v7135_v0 }
  0x29 PF: > { %v4606_v1 = vld [vmem:[%s7244_s6 + $0x1c0] sm:$0xf]  ;;  %vm4215_vm0 = vcmask 1041408   ;;  %vm4217_vm1 = vcmask 1045508   ;;  %vm4219_vm2 = vcmask 1043456   ;;  %p6428_p3 = scmp.ne.s32.totalorder %s7122_s15, 1 }
  0x2a   : > { %v6495_v2 = vld [vmem:[%s7244_s6 + $0x1dc] sm:$0xf0] }
  0x2b   : > { %v4862_v3 = vld [vmem:[%s7244_s6 + $0x3c0] sm:$0xf]  ;;  %v4607_v4 = vor.u32 %v6495_v2, %v4606_v1 }
  0x2c   : > { %v6559_v5 = vld [vmem:[%s7244_s6 + $0x3dc] sm:$0xf0] }
  0x2d   : > { %v5118_v6 = vld [vmem:[%s7244_s6 + $0x5c0] sm:$0xf]  ;;  %v4863_v8 = vor.u32 %v6559_v5, %v4862_v3  ;;  %3369 = vmatpush.bf16.msra.mxu0 %v4607_v4 }
  0x2e   : > { %v6623_v7 = vld [vmem:[%s7244_s6 + $0x5dc] sm:$0xf0] }
  0x2f   : > { %v5119_v9 = vor.u32 %v6623_v7, %v5118_v6  ;;  %v5374_v10 = vld [vmem:[%s7244_s6 + $0x7c0] sm:$0xf]  ;;  %3382 = vmatpush.bf16.msra.mxu1 %v4863_v8 }
  0x30   : > { %v6687_v11 = vld [vmem:[%s7244_s6 + $0x7dc] sm:$0xf0] }
  0x31   : > { %v4574_v12 = vld [vmem:[%s7244_s6 + $0x180] sm:$0xf]  ;;  %v5375_v13 = vor.u32 %v6687_v11, %v5374_v10  ;;  %3395 = vmatpush.bf16.msra.mxu2 %v5119_v9 }
  0x32   : > { %v6487_v14 = vld [vmem:[%s7244_s6 + $0x19c] sm:$0xf0] }
  0x33   : > { %v4830_v15 = vld [vmem:[%s7244_s6 + $0x380] sm:$0xf]  ;;  %v4575_v17 = vor.u32 %v6487_v14, %v4574_v12  ;;  %3408 = vmatpush.bf16.msra.mxu3 %v5375_v13 }
  0x34   : > { %v6551_v16 = vld [vmem:[%s7244_s6 + $0x39c] sm:$0xf0] }
  0x35   : > { %v4831_v18 = vor.u32 %v6551_v16, %v4830_v15  ;;  %v5086_v19 = vld [vmem:[%s7244_s6 + $0x580] sm:$0xf]  ;;  %3370 = vmatpush.bf16.msra.mxu0 %v4575_v17 }
  0x36   : > { %v6615_v20 = vld [vmem:[%s7244_s6 + $0x59c] sm:$0xf0] }
  0x37   : > { %v5342_v21 = vld [vmem:[%s7244_s6 + $0x780] sm:$0xf]  ;;  %v5087_v22 = vor.u32 %v6615_v20, %v5086_v19  ;;  %3383 = vmatpush.bf16.msra.mxu1 %v4831_v18 }
  0x38   : > { %v6679_v23 = vld [vmem:[%s7244_s6 + $0x79c] sm:$0xf0] }
  0x39   : > { %v4542_v24 = vld [vmem:[%s7244_s6 + $0x140] sm:$0xf]  ;;  %v5343_v26 = vor.u32 %v6679_v23, %v5342_v21  ;;  %3396 = vmatpush.bf16.msra.mxu2 %v5087_v22 }
  0x3a   : > { %v6479_v25 = vld [vmem:[%s7244_s6 + $0x15c] sm:$0xf0] }
  0x3b   : > { %v4798_v27 = vld [vmem:[%s7244_s6 + $0x340] sm:$0xf]  ;;  %v4543_v30 = vor.u32 %v6479_v25, %v4542_v24  ;;  %3409 = vmatpush.bf16.msra.mxu3 %v5343_v26 }
  0x3c   : > { %v6543_v28 = vld [vmem:[%s7244_s6 + $0x35c] sm:$0xf0] }
  0x3d   : > { %v5054_v29 = vld [vmem:[%s7244_s6 + $0x540] sm:$0xf]  ;;  %v4799_v34 = vor.u32 %v6543_v28, %v4798_v27  ;;  %3371 = vmatpush.bf16.msra.mxu0 %v4543_v30 }
  0x3e   : > { %v6607_v31 = vld [vmem:[%s7244_s6 + $0x55c] sm:$0xf0] }
  0x3f   : > { %v5310_v32 = vld [vmem:[%s7244_s6 + $0x740] sm:$0xf]  ;;  %v5055_v35 = vor.u32 %v6607_v31, %v5054_v29  ;;  %3384 = vmatpush.bf16.msra.mxu1 %v4799_v34 }
  0x40   : > { %v6671_v33 = vld [vmem:[%s7244_s6 + $0x75c] sm:$0xf0] }
  0x41   : > { %v4510_v36 = vld [vmem:[%s7244_s6 + $0x100] sm:$0xf]  ;;  %v5311_v39 = vor.u32 %v6671_v33, %v5310_v32  ;;  %3397 = vmatpush.bf16.msra.mxu2 %v5055_v35 }
  0x42   : > { %v6471_v37 = vld [vmem:[%s7244_s6 + $0x11c] sm:$0xf0] }
  0x43   : > { %v4766_v38 = vld [vmem:[%s7244_s6 + $0x300] sm:$0xf]  ;;  %v4511_v45 = vor.u32 %v6471_v37, %v4510_v36  ;;  %3410 = vmatpush.bf16.msra.mxu3 %v5311_v39 }
  0x44   : > { %v6535_v40 = vld [vmem:[%s7244_s6 + $0x31c] sm:$0xf0] }
  0x45   : > { %v5022_v41 = vld [vmem:[%s7244_s6 + $0x500] sm:$0xf]  ;;  %v4767_v46 = vor.u32 %v6535_v40, %v4766_v38  ;;  %3372 = vmatpush.bf16.msra.mxu0 %v4511_v45 }
  0x46   : > { %v6599_v42 = vld [vmem:[%s7244_s6 + $0x51c] sm:$0xf0] }
  0x47   : > { %v5278_v43 = vld [vmem:[%s7244_s6 + $0x700] sm:$0xf]  ;;  %v5023_v47 = vor.u32 %v6599_v42, %v5022_v41  ;;  %3385 = vmatpush.bf16.msra.mxu1 %v4767_v46 }
  0x48   : > { %v6663_v44 = vld [vmem:[%s7244_s6 + $0x71c] sm:$0xf0] }
  0x49   : > { %v4478_v48 = vld [vmem:[%s7244_s6 + $0xc0] sm:$0xf]  ;;  %v5279_v51 = vor.u32 %v6663_v44, %v5278_v43  ;;  %3398 = vmatpush.bf16.msra.mxu2 %v5023_v47 }
  0x4a   : > { %v6463_v49 = vld [vmem:[%s7244_s6 + $0xdc] sm:$0xf0] }
  0x4b   : > { %v4734_v50 = vld [vmem:[%s7244_s6 + $0x2c0] sm:$0xf]  ;;  %v4479_v57 = vor.u32 %v6463_v49, %v4478_v48  ;;  %3411 = vmatpush.bf16.msra.mxu3 %v5279_v51 }
  0x4c   : > { %v6527_v52 = vld [vmem:[%s7244_s6 + $0x2dc] sm:$0xf0] }
  0x4d   : > { %v4990_v53 = vld [vmem:[%s7244_s6 + $0x4c0] sm:$0xf]  ;;  %v4735_v58 = vor.u32 %v6527_v52, %v4734_v50  ;;  %3373 = vmatpush.bf16.msra.mxu0 %v4479_v57 }
  0x4e   : > { %v6591_v54 = vld [vmem:[%s7244_s6 + $0x4dc] sm:$0xf0] }
  0x4f   : > { %v5246_v55 = vld [vmem:[%s7244_s6 + $0x6c0] sm:$0xf]  ;;  %v4991_v59 = vor.u32 %v6591_v54, %v4990_v53  ;;  %3386 = vmatpush.bf16.msra.mxu1 %v4735_v58 }
  0x50   : > { %v6655_v56 = vld [vmem:[%s7244_s6 + $0x6dc] sm:$0xf0] }
  0x51   : > { %v4446_v60 = vld [vmem:[%s7244_s6 + $0x80] sm:$0xf]  ;;  %v5247_v63 = vor.u32 %v6655_v56, %v5246_v55  ;;  %3399 = vmatpush.bf16.msra.mxu2 %v4991_v59 }
  0x52   : > { %v6455_v61 = vld [vmem:[%s7244_s6 + $0x9c] sm:$0xf0] }
  0x53   : > { %v4702_v62 = vld [vmem:[%s7244_s6 + $0x280] sm:$0xf]  ;;  %v4447_v5 = vor.u32 %v6455_v61, %v4446_v60  ;;  %3412 = vmatpush.bf16.msra.mxu3 %v5247_v63  ;;  %v266_v60 = vld [vmem:[%s7258_s7] sm:$0xff] }
  0x54   : > { %v6519_v0 = vld [vmem:[%s7244_s6 + $0x29c] sm:$0xf0]  ;;  %270 = vst [vmem:[#allocation1] ss:$4 sm:$0xff] %v266_v60 }
  0x55   : > { %v4958_v1 = vld [vmem:[%s7244_s6 + $0x480] sm:$0xf]  ;;  %v4703_v6 = vor.u32 %v6519_v0, %v4702_v62  ;;  %3374 = vmatpush.bf16.msra.mxu0 %v4447_v5 }
  0x56   : > { %v6583_v2 = vld [vmem:[%s7244_s6 + $0x49c] sm:$0xf0] }
  0x57   : > { %v5214_v3 = vld [vmem:[%s7244_s6 + $0x680] sm:$0xf]  ;;  %v4959_v7 = vor.u32 %v6583_v2, %v4958_v1  ;;  %3387 = vmatpush.bf16.msra.mxu1 %v4703_v6 }
  0x58   : > { %v6647_v4 = vld [vmem:[%s7244_s6 + $0x69c] sm:$0xf0] }
  0x59   : > { %v4414_v8 = vld [vmem:[%s7244_s6 + $0x40] sm:$0xf]  ;;  %v5215_v11 = vor.u32 %v6647_v4, %v5214_v3  ;;  %3400 = vmatpush.bf16.msra.mxu2 %v4959_v7 }
  0x5a   : > { %v6447_v9 = vld [vmem:[%s7244_s6 + $0x5c] sm:$0xf0] }
  0x5b   : > { %v4670_v10 = vld [vmem:[%s7244_s6 + $0x240] sm:$0xf]  ;;  %v4415_v17 = vor.u32 %v6447_v9, %v4414_v8  ;;  %3413 = vmatpush.bf16.msra.mxu3 %v5215_v11 }
  0x5c   : > { %v6511_v12 = vld [vmem:[%s7244_s6 + $0x25c] sm:$0xf0] }
  0x5d   : > { %v4926_v13 = vld [vmem:[%s7244_s6 + $0x440] sm:$0xf]  ;;  %v4671_v20 = vor.u32 %v6511_v12, %v4670_v10  ;;  %3375 = vmatpush.bf16.msra.mxu0 %v4415_v17 }
  0x5e   : > { %v6575_v14 = vld [vmem:[%s7244_s6 + $0x45c] sm:$0xf0] }
  0x5f   : > { %v5182_v15 = vld [vmem:[%s7244_s6 + $0x640] sm:$0xf]  ;;  %v4927_v21 = vor.u32 %v6575_v14, %v4926_v13  ;;  %3388 = vmatpush.bf16.msra.mxu1 %v4671_v20 }
  0x60   : > { %v6639_v16 = vld [vmem:[%s7244_s6 + $0x65c] sm:$0xf0] }
  0x61   : > { %v4382_v18 = vld [vmem:[%s7244_s6] sm:$0xf]  ;;  %v5183_v25 = vor.u32 %v6639_v16, %v5182_v15  ;;  %3401 = vmatpush.bf16.msra.mxu2 %v4927_v21 }
  0x62   : > { %v6439_v19 = vld [vmem:[%s7244_s6 + $0x1c] sm:$0xf0] }
  0x63   : > { %v4638_v22 = vld [vmem:[%s7244_s6 + $0x200] sm:$0xf]  ;;  %v4383_v32 = vor.u32 %v6439_v19, %v4382_v18  ;;  %3414 = vmatpush.bf16.msra.mxu3 %v5183_v25 }
  0x64   : > { %v6503_v23 = vld [vmem:[%s7244_s6 + $0x21c] sm:$0xf0] }
  0x65   : > { %v4894_v24 = vld [vmem:[%s7244_s6 + $0x400] sm:$0xf]  ;;  %v4639_v36 = vor.u32 %v6503_v23, %v4638_v22  ;;  %3376 = vmatpush.bf16.msra.mxu0 %v4383_v32  ;;  %v275_v23 = vld.sshfl [vmem:[#allocation1 + $0x10] sm:$0xff pattern:$0x73625140] }
  0x66   : > { %v6567_v26 = vld [vmem:[%s7244_s6 + $0x41c] sm:$0xf0] }
  0x67   : > { %v5150_v27 = vld [vmem:[%s7244_s6 + $0x600] sm:$0xf]  ;;  %v4895_v37 = vor.u32 %v6567_v26, %v4894_v24  ;;  %3389 = vmatpush.bf16.msra.mxu1 %v4639_v36  ;;  %v273_v24 = vld.sshfl [vmem:[#allocation1] sm:$0xff pattern:$0x73625140]  ;;  %v7364_v26 = vpack.c.bf16 %v275_v23, %v275_v23 }
  0x68   : > { %v6631_v28 = vld [vmem:[%s7244_s6 + $0x61c] sm:$0xf0] }
  0x69   : > { %v5630_v29 = vld [vmem:[%s7244_s6 + $0x9c0] sm:$0xf]  ;;  %v5151_v40 = vor.u32 %v6631_v28, %v5150_v27  ;;  %3402 = vmatpush.bf16.msra.mxu2 %v4895_v37  ;;  %v7366_v27 = vpack.c.bf16 %v273_v24, %v273_v24 }
  0x6a   : > { %v6751_v30 = vld [vmem:[%s7244_s6 + $0x9dc] sm:$0xf0] }
  0x6b   : > { %v5886_v31 = vld [vmem:[%s7244_s6 + $0xbc0] sm:$0xf]  ;;  %v5631_v41 = vor.u32 %v6751_v30, %v5630_v29  ;;  %3415 = vmatpush.bf16.msra.mxu3 %v5151_v40  ;;  %v274_v29 = vld.sshfl [vmem:[#allocation1 + $0x8] sm:$0xff pattern:$0x73625140]  ;;  %3377 = vmatmul.bf16.vlgmr.msra.gmra.mxu0 %v7366_v27 }
  0x6c   : > { %v6815_v33 = vld [vmem:[%s7244_s6 + $0xbdc] sm:$0xf0]  ;;  %3403 = vmatmul.bf16.vlgmr.msra.gmra.mxu2 %v7364_v26 }
  0x6d   : > { %v6142_v34 = vld [vmem:[%s7244_s6 + $0xdc0] sm:$0xf]  ;;  %v5887_v42 = vor.u32 %v6815_v33, %v5886_v31  ;;  %3421 = vmatpush.bf16.msrb.mxu0 %v5631_v41  ;;  %v7372_v33 = vpack.c.bf16 %v274_v29, %v274_v29  ;;  %v6547_v29 = vld [vmem:[%s7244_s6 + $0x384] sm:$0xf] }
  0x6e   : > { %v6879_v35 = vld [vmem:[%s7244_s6 + $0xddc] sm:$0xf0] }
  0x6f   : > { %v6398_v38 = vld [vmem:[%s7244_s6 + $0xfc0] sm:$0xf]  ;;  %v6143_v43 = vor.u32 %v6879_v35, %v6142_v34  ;;  %3434 = vmatpush.bf16.msrb.mxu1 %v5887_v42 }
  0x70   : > { %v6943_v39 = vld [vmem:[%s7244_s6 + $0xfdc] sm:$0xf0]  ;;  %3390 = vmatmul.bf16.vlgmr.msra.gmra.mxu1 %v7372_v33 }
  0x71   : > { %v5598_v44 = vld [vmem:[%s7244_s6 + $0x980] sm:$0xf]  ;;  %v6399_v47 = vor.u32 %v6943_v39, %v6398_v38  ;;  %3447 = vmatpush.bf16.msrb.mxu2 %v6143_v43 }
  0x72   : > { %v6743_v45 = vld [vmem:[%s7244_s6 + $0x99c] sm:$0xf0] }
  0x73   : > { %v5854_v46 = vld [vmem:[%s7244_s6 + $0xb80] sm:$0xf]  ;;  %v5599_v53 = vor.u32 %v6743_v45, %v5598_v44  ;;  %3460 = vmatpush.bf16.msrb.mxu3 %v6399_v47 }
  0x74   : > { %v6807_v48 = vld [vmem:[%s7244_s6 + $0xb9c] sm:$0xf0] }
  0x75   : > { %v6110_v49 = vld [vmem:[%s7244_s6 + $0xd80] sm:$0xf]  ;;  %v5855_v56 = vor.u32 %v6807_v48, %v5854_v46  ;;  %3422 = vmatpush.bf16.msrb.mxu0 %v5599_v53  ;;  %v267_v53 = vld [vmem:[%s7258_s7 + $0x8] sm:$0xff] }
  0x76   : > { %v6871_v50 = vld [vmem:[%s7244_s6 + $0xd9c] sm:$0xf0]  ;;  %272 = vst [vmem:[#allocation1 + $0x20] ss:$4 sm:$0xff] %v267_v53  ;;  %v6667_v53 = vld [vmem:[%s7244_s6 + $0x744] sm:$0xf] }
  0x77   : > { %v6366_v51 = vld [vmem:[%s7244_s6 + $0xf80] sm:$0xf]  ;;  %v6111_v57 = vor.u32 %v6871_v50, %v6110_v49  ;;  %3435 = vmatpush.bf16.msrb.mxu1 %v5855_v56 }
  0x78   : > { %v6935_v52 = vld [vmem:[%s7244_s6 + $0xf9c] sm:$0xf0] }
  0x79   : > { %v5566_v54 = vld [vmem:[%s7244_s6 + $0x940] sm:$0xf]  ;;  %v6367_v61 = vor.u32 %v6935_v52, %v6366_v51  ;;  %3448 = vmatpush.bf16.msrb.mxu2 %v6111_v57 }
  0x7a   : > { %v6735_v55 = vld [vmem:[%s7244_s6 + $0x95c] sm:$0xf0] }
  0x7b   : > { %v5822_v58 = vld [vmem:[%s7244_s6 + $0xb40] sm:$0xf]  ;;  %v5567_v2 = vor.u32 %v6735_v55, %v5566_v54  ;;  %3461 = vmatpush.bf16.msrb.mxu3 %v6367_v61 }
  0x7c   : > { %v6799_v59 = vld [vmem:[%s7244_s6 + $0xb5c] sm:$0xf0] }
  0x7d   : > { %v6078_v62 = vld [vmem:[%s7244_s6 + $0xd40] sm:$0xf]  ;;  %v5823_v4 = vor.u32 %v6799_v59, %v5822_v58  ;;  %3423 = vmatpush.bf16.msrb.mxu0 %v5567_v2  ;;  %v277_v23 = vld.sshfl [vmem:[#allocation1 + $0x20] sm:$0xff pattern:$0x73625140] }
  0x7e   : > { %v6863_v63 = vld [vmem:[%s7244_s6 + $0xd5c] sm:$0xf0] }
  0x7f   : > { %v6334_v0 = vld [vmem:[%s7244_s6 + $0xf40] sm:$0xf]  ;;  %v6079_v5 = vor.u32 %v6863_v63, %v6078_v62  ;;  %3436 = vmatpush.bf16.msrb.mxu1 %v5823_v4 }
  0x80   : > { %v6927_v1 = vld [vmem:[%s7244_s6 + $0xf5c] sm:$0xf0] }
  0x81   : > { %v5534_v3 = vld [vmem:[%s7244_s6 + $0x900] sm:$0xf]  ;;  %v6335_v9 = vor.u32 %v6927_v1, %v6334_v0  ;;  %3449 = vmatpush.bf16.msrb.mxu2 %v6079_v5 }
  0x82   : > { %v6727_v6 = vld [vmem:[%s7244_s6 + $0x91c] sm:$0xf0] }
  0x83   : > { %v5790_v7 = vld [vmem:[%s7244_s6 + $0xb00] sm:$0xf]  ;;  %v5535_v16 = vor.u32 %v6727_v6, %v5534_v3  ;;  %3462 = vmatpush.bf16.msrb.mxu3 %v6335_v9  ;;  %v6555_v9 = vld [vmem:[%s7244_s6 + $0x3c4] sm:$0xf] }
  0x84   : > { %v6791_v8 = vld [vmem:[%s7244_s6 + $0xb1c] sm:$0xf0] }
  0x85   : > { %v6046_v10 = vld [vmem:[%s7244_s6 + $0xd00] sm:$0xf]  ;;  %v5791_v21 = vor.u32 %v6791_v8, %v5790_v7  ;;  %3424 = vmatpush.bf16.msrb.mxu0 %v5535_v16  ;;  %v6491_v7 = vld [vmem:[%s7244_s6 + $0x1c4] sm:$0xf] }
  0x86   : > { %v6855_v11 = vld [vmem:[%s7244_s6 + $0xd1c] sm:$0xf0]  ;;  %v4608_v8 = vld [vmem:[%s7244_s6 + $0x1e0] sm:$0xf0] }
  0x87   : > { %v6302_v12 = vld [vmem:[%s7244_s6 + $0xf00] sm:$0xf]  ;;  %v6047_v22 = vor.u32 %v6855_v11, %v6046_v10  ;;  %3437 = vmatpush.bf16.msrb.mxu1 %v5791_v21  ;;  %v4864_v10 = vld [vmem:[%s7244_s6 + $0x3e0] sm:$0xf0] }
  0x88   : > { %v6919_v13 = vld [vmem:[%s7244_s6 + $0xf1c] sm:$0xf0]  ;;  %v6619_v11 = vld [vmem:[%s7244_s6 + $0x5c4] sm:$0xf] }
  0x89   : > { %v5502_v14 = vld [vmem:[%s7244_s6 + $0x8c0] sm:$0xf]  ;;  %v6303_v25 = vor.u32 %v6919_v13, %v6302_v12  ;;  %3450 = vmatpush.bf16.msrb.mxu2 %v6047_v22  ;;  %v5120_v13 = vld [vmem:[%s7244_s6 + $0x5e0] sm:$0xf0]  ;;  %v4611_v22 = vor.u32 %v6491_v7, %v4608_v8 }
  0x8a   : > { %v6719_v15 = vld [vmem:[%s7244_s6 + $0x8dc] sm:$0xf0]  ;;  %v4480_v7 = vld [vmem:[%s7244_s6 + $0xe0] sm:$0xf0] }
  0x8b   : > { %v5758_v17 = vld [vmem:[%s7244_s6 + $0xac0] sm:$0xf]  ;;  %v5503_v34 = vor.u32 %v6719_v15, %v5502_v14  ;;  %3463 = vmatpush.bf16.msrb.mxu3 %v6303_v25  ;;  %v6683_v14 = vld [vmem:[%s7244_s6 + $0x7c4] sm:$0xf]  ;;  %v4867_v25 = vor.u32 %v6555_v9, %v4864_v10 }
  0x8c   : > { %v6783_v18 = vld [vmem:[%s7244_s6 + $0xadc] sm:$0xf0]  ;;  %v5376_v15 = vld [vmem:[%s7244_s6 + $0x7e0] sm:$0xf0] }
  0x8d   : > { %v6014_v19 = vld [vmem:[%s7244_s6 + $0xcc0] sm:$0xf]  ;;  %v5759_v35 = vor.u32 %v6783_v18, %v5758_v17  ;;  %3425 = vmatpush.bf16.msrb.mxu0 %v5503_v34  ;;  %v6483_v18 = vld [vmem:[%s7244_s6 + $0x184] sm:$0xf] }
  0x8e   : > { %v6847_v20 = vld [vmem:[%s7244_s6 + $0xcdc] sm:$0xf0]  ;;  %v4832_v34 = vld [vmem:[%s7244_s6 + $0x3a0] sm:$0xf0] }
  0x8f   : > { %v276_v28 = vld.sshfl [vmem:[#allocation1 + $0x18] sm:$0xff pattern:$0x73625140]  ;;  %v6015_v36 = vor.u32 %v6847_v20, %v6014_v19  ;;  %3438 = vmatpush.bf16.msrb.mxu1 %v5759_v35  ;;  %v279_v20 = vld.sshfl [vmem:[#allocation1 + $0x30] sm:$0xff pattern:$0x73625140] }
  0x90   : > { %v6270_v30 = vld [vmem:[%s7244_s6 + $0xec0] sm:$0xf]  ;;  %v7370_v32 = vpack.c.bf16 %v276_v28, %v276_v28  ;;  %v4576_v19 = vld [vmem:[%s7244_s6 + $0x1a0] sm:$0xf0]  ;;  %v5123_v28 = vor.u32 %v6619_v11, %v5120_v13 }
  0x91   : > { %v6911_v31 = vld [vmem:[%s7244_s6 + $0xedc] sm:$0xf0]  ;;  %3451 = vmatpush.bf16.msrb.mxu2 %v6015_v36  ;;  %v6611_v35 = vld [vmem:[%s7244_s6 + $0x584] sm:$0xf] }
  0x92   : > { %v5470_v37 = vld [vmem:[%s7244_s6 + $0x880] sm:$0xf]  ;;  %v6271_v40 = vor.u32 %v6911_v31, %v6270_v30  ;;  %3416 = vmatmul.bf16.vlgmr.msra.gmra.mxu3 %v7370_v32  ;;  %v278_v30 = vld.sshfl [vmem:[#allocation1 + $0x28] sm:$0xff pattern:$0x73625140]  ;;  %v5379_v31 = vor.u32 %v6683_v14, %v5376_v15 }
  0x93   : > { %v6711_v38 = vld [vmem:[%s7244_s6 + $0x89c] sm:$0xf0]  ;;  %v5088_v36 = vld [vmem:[%s7244_s6 + $0x5a0] sm:$0xf0] }
  0x94   : > { %v5726_v39 = vld [vmem:[%s7244_s6 + $0xa80] sm:$0xf]  ;;  %v5471_v46 = vor.u32 %v6711_v38, %v5470_v37  ;;  %3464 = vmatpush.bf16.msrb.mxu3 %v6271_v40  ;;  %v7417_v37 = vpack.c.bf16 %v279_v20, %v279_v20  ;;  %v6675_v38 = vld [vmem:[%s7244_s6 + $0x784] sm:$0xf]  ;;  %v7421_v40 = vpack.c.bf16 %v277_v23, %v277_v23 }
  0x95   : > { %v6775_v41 = vld [vmem:[%s7244_s6 + $0xa9c] sm:$0xf0]  ;;  %v6523_v8 = vld [vmem:[%s7244_s6 + $0x2c4] sm:$0xf] }
  0x96   : > { %v5982_v42 = vld [vmem:[%s7244_s6 + $0xc80] sm:$0xf]  ;;  %v5727_v49 = vor.u32 %v6775_v41, %v5726_v39  ;;  %3426 = vmatpush.bf16.msrb.mxu0 %v5471_v46  ;;  %v5344_v39 = vld [vmem:[%s7244_s6 + $0x7a0] sm:$0xf0] }
  0x97   : > { %v6839_v43 = vld [vmem:[%s7244_s6 + $0xc9c] sm:$0xf0]  ;;  %v6475_v46 = vld [vmem:[%s7244_s6 + $0x144] sm:$0xf] }
  0x98   : > { %v6238_v44 = vld [vmem:[%s7244_s6 + $0xe80] sm:$0xf]  ;;  %v5983_v50 = vor.u32 %v6839_v43, %v5982_v42  ;;  %3439 = vmatpush.bf16.msrb.mxu1 %v5727_v49  ;;  %v4579_v42 = vor.u32 %v6483_v18, %v4576_v19  ;;  %v7425_v43 = vpack.c.bf16 %v278_v30, %v278_v30  ;;  %v5347_v49 = vor.u32 %v6675_v38, %v5344_v39  ;;  %v4736_v10 = vld [vmem:[%s7244_s6 + $0x2e0] sm:$0xf0] }
  0x99   : > { %v6903_v45 = vld [vmem:[%s7244_s6 + $0xe9c] sm:$0xf0]  ;;  %v6587_v11 = vld [vmem:[%s7244_s6 + $0x4c4] sm:$0xf] }
  0x9a   : > { %v5438_v47 = vld [vmem:[%s7244_s6 + $0x840] sm:$0xf]  ;;  %v6239_v54 = vor.u32 %v6903_v45, %v6238_v44  ;;  %3452 = vmatpush.bf16.msrb.mxu2 %v5983_v50  ;;  %v4835_v44 = vor.u32 %v6547_v29, %v4832_v34  ;;  %v5091_v45 = vor.u32 %v6611_v35, %v5088_v36  ;;  %v4800_v50 = vld [vmem:[%s7244_s6 + $0x360] sm:$0xf0] }
  0x9b   : > { %v6703_v48 = vld [vmem:[%s7244_s6 + $0x85c] sm:$0xf0]  ;;  %v6651_v13 = vld [vmem:[%s7244_s6 + $0x6c4] sm:$0xf] }
  0x9c   : > { %v5694_v51 = vld [vmem:[%s7244_s6 + $0xa40] sm:$0xf]  ;;  %v5439_v60 = vor.u32 %v6703_v48, %v5438_v47  ;;  %3465 = vmatpush.bf16.msrb.mxu3 %v6239_v54  ;;  %v4544_v47 = vld [vmem:[%s7244_s6 + $0x160] sm:$0xf0] }
  0x9d   : > { %v6767_v52 = vld [vmem:[%s7244_s6 + $0xa5c] sm:$0xf0]  ;;  %v6539_v48 = vld [vmem:[%s7244_s6 + $0x344] sm:$0xf] }
  0x9e   : > { %v5950_v55 = vld [vmem:[%s7244_s6 + $0xc40] sm:$0xf]  ;;  %v5695_v0 = vor.u32 %v6767_v52, %v5694_v51  ;;  %3427 = vmatpush.bf16.msrb.mxu0 %v5439_v60  ;;  %v6603_v51 = vld [vmem:[%s7244_s6 + $0x544] sm:$0xf] }
  0x9f   : > { %v6831_v56 = vld [vmem:[%s7244_s6 + $0xc5c] sm:$0xf0]  ;;  %v5056_v52 = vld [vmem:[%s7244_s6 + $0x560] sm:$0xf0] }
  0xa0   : > { %v6206_v57 = vld [vmem:[%s7244_s6 + $0xe40] sm:$0xf]  ;;  %v5951_v1 = vor.u32 %v6831_v56, %v5950_v55  ;;  %3440 = vmatpush.bf16.msrb.mxu1 %v5695_v0  ;;  %v5312_v54 = vld [vmem:[%s7244_s6 + $0x760] sm:$0xf0]  ;;  %v4547_v55 = vor.u32 %v6475_v46, %v4544_v47  ;;  %v4803_v56 = vor.u32 %v6539_v48, %v4800_v50 }
  0xa1   : > { %v6895_v58 = vld [vmem:[%s7244_s6 + $0xe5c] sm:$0xf0]  ;;  %v6531_v60 = vld [vmem:[%s7244_s6 + $0x304] sm:$0xf] }
  0xa2   : > { %v5406_v59 = vld [vmem:[%s7244_s6 + $0x800] sm:$0xf]  ;;  %v6207_v5 = vor.u32 %v6895_v58, %v6206_v57  ;;  %3453 = vmatpush.bf16.msrb.mxu2 %v5951_v1  ;;  %v5059_v57 = vor.u32 %v6603_v51, %v5056_v52  ;;  %v6467_v58 = vld [vmem:[%s7244_s6 + $0x104] sm:$0xf] }
  0xa3   : > { %v6695_v61 = vld [vmem:[%s7244_s6 + $0x81c] sm:$0xf0]  ;;  %v5024_v0 = vld [vmem:[%s7244_s6 + $0x520] sm:$0xf0] }
  0xa4   : > { %v5662_v62 = vld [vmem:[%s7244_s6 + $0xa00] sm:$0xf]  ;;  %v5407_v12 = vor.u32 %v6695_v61, %v5406_v59  ;;  %3466 = vmatpush.bf16.msrb.mxu3 %v6207_v5  ;;  %v4512_v59 = vld [vmem:[%s7244_s6 + $0x120] sm:$0xf0]  ;;  %v5315_v61 = vor.u32 %v6667_v53, %v5312_v54 }
  0xa5   : > { %v6759_v63 = vld [vmem:[%s7244_s6 + $0xa1c] sm:$0xf0]  ;;  %v6659_v1 = vld [vmem:[%s7244_s6 + $0x704] sm:$0xf] }
  0xa6   : > { %v5918_v2 = vld [vmem:[%s7244_s6 + $0xc00] sm:$0xf]  ;;  %v5663_v16 = vor.u32 %v6759_v63, %v5662_v62  ;;  %3428 = vmatpush.bf16.msrb.mxu0 %v5407_v12  ;;  %v4768_v62 = vld [vmem:[%s7244_s6 + $0x320] sm:$0xf0] }
  0xa7   : > { %v6823_v3 = vld [vmem:[%s7244_s6 + $0xc1c] sm:$0xf0]  ;;  %v6595_v63 = vld [vmem:[%s7244_s6 + $0x504] sm:$0xf] }
  0xa8   : > { %v6174_v4 = vld [vmem:[%s7244_s6 + $0xe00] sm:$0xf]  ;;  %v5919_v17 = vor.u32 %v6823_v3, %v5918_v2  ;;  %3441 = vmatpush.bf16.msrb.mxu1 %v5663_v16  ;;  %v5280_v2 = vld [vmem:[%s7244_s6 + $0x720] sm:$0xf0]  ;;  %v4515_v3 = vor.u32 %v6467_v58, %v4512_v59  ;;  %v5027_v5 = vor.u32 %v6595_v63, %v5024_v0  ;;  %v4739_v16 = vor.u32 %v6523_v8, %v4736_v10 }
  0xa9   : > { %v6887_v6 = vld [vmem:[%s7244_s6 + $0xe1c] sm:$0xf0]  ;;  %3429 = vmatmul.bf16.vlgmr.msrb.gmra.mxu0 %v7421_v40  ;;  %v5283_v9 = vor.u32 %v6659_v1, %v5280_v2  ;;  %v4992_v12 = vld [vmem:[%s7244_s6 + $0x4e0] sm:$0xf0] }
  0xaa   : > { %v6175_v21 = vor.u32 %v6887_v6, %v6174_v4  ;;  %v280_v24 = vld.sshfl [vmem:[#allocation1 + $0x38] sm:$0xff pattern:$0x73625140]  ;;  %3454 = vmatpush.bf16.msrb.mxu2 %v5919_v17  ;;  %3473 = vmatpush.bf16.msra.mxu0 %v4611_v22  ;;  %v4771_v4 = vor.u32 %v6531_v60, %v4768_v62  ;;  %v4995_v17 = vor.u32 %v6587_v11, %v4992_v12 }
  0xab   : > { %v7423_v41 = vpack.c.bf16 %v280_v24, %v280_v24  ;;  %3442 = vmatmul.bf16.vlgmr.msrb.gmra.mxu1 %v7425_v43  ;;  %v6459_v6 = vld [vmem:[%s7244_s6 + $0xc4] sm:$0xf] }
  0xac   : > { %3467 = vmatpush.bf16.msrb.mxu3 %v6175_v21  ;;  %3486 = vmatpush.bf16.msra.mxu1 %v4867_v25  ;;  %v5248_v14 = vld [vmem:[%s7244_s6 + $0x6e0] sm:$0xf0]  ;;  %v4483_v15 = vor.u32 %v6459_v6, %v4480_v7 }
  0xad   : > { %3455 = vmatmul.bf16.vlgmr.msrb.gmra.mxu2 %v7417_v37  ;;  %v6451_v18 = vld [vmem:[%s7244_s6 + $0x84] sm:$0xf]  ;;  %v5251_v21 = vor.u32 %v6651_v13, %v5248_v14 }
  0xae   : > { %3499 = vmatpush.bf16.msra.mxu2 %v5123_v28  ;;  %3474 = vmatpush.bf16.msra.mxu0 %v4579_v42  ;;  %v4448_v19 = vld [vmem:[%s7244_s6 + $0xa0] sm:$0xf0] }
  0xaf   : > { %3468 = vmatmul.bf16.vlgmr.msrb.gmra.mxu3 %v7423_v41  ;;  %v6515_v20 = vld [vmem:[%s7244_s6 + $0x284] sm:$0xf]  ;;  %v4451_v29 = vor.u32 %v6451_v18, %v4448_v19 }
  0xb0   : > { %3512 = vmatpush.bf16.msra.mxu3 %v5379_v31  ;;  %3487 = vmatpush.bf16.msra.mxu1 %v4835_v44  ;;  %v4704_v22 = vld [vmem:[%s7244_s6 + $0x2a0] sm:$0xf0] }
  0xb1   : > { %v6579_v23 = vld [vmem:[%s7244_s6 + $0x484] sm:$0xf]  ;;  %v4707_v30 = vor.u32 %v6515_v20, %v4704_v22 }
  0xb2   : > { %3500 = vmatpush.bf16.msra.mxu2 %v5091_v45  ;;  %3475 = vmatpush.bf16.msra.mxu0 %v4547_v55  ;;  %v4960_v24 = vld [vmem:[%s7244_s6 + $0x4a0] sm:$0xf0] }
  0xb3   : > { %v6643_v25 = vld [vmem:[%s7244_s6 + $0x684] sm:$0xf]  ;;  %v4963_v31 = vor.u32 %v6579_v23, %v4960_v24 }
  0xb4   : > { %3513 = vmatpush.bf16.msra.mxu3 %v5347_v49  ;;  %3488 = vmatpush.bf16.msra.mxu1 %v4803_v56  ;;  %v5216_v28 = vld [vmem:[%s7244_s6 + $0x6a0] sm:$0xf0] }
  0xb5   : > { %v6443_v34 = vld [vmem:[%s7244_s6 + $0x44] sm:$0xf]  ;;  %v5219_v38 = vor.u32 %v6643_v25, %v5216_v28 }
  0xb6   : > { %3501 = vmatpush.bf16.msra.mxu2 %v5059_v57  ;;  %3476 = vmatpush.bf16.msra.mxu0 %v4515_v3  ;;  %v4416_v35 = vld [vmem:[%s7244_s6 + $0x60] sm:$0xf0] }
  0xb7   : > { %v6507_v36 = vld [vmem:[%s7244_s6 + $0x244] sm:$0xf]  ;;  %v4419_v47 = vor.u32 %v6443_v34, %v4416_v35 }
  0xb8   : > { %3514 = vmatpush.bf16.msra.mxu3 %v5315_v61  ;;  %3489 = vmatpush.bf16.msra.mxu1 %v4771_v4  ;;  %v4672_v39 = vld [vmem:[%s7244_s6 + $0x260] sm:$0xf0] }
  0xb9   : > { %v6571_v42 = vld [vmem:[%s7244_s6 + $0x444] sm:$0xf]  ;;  %v4675_v50 = vor.u32 %v6507_v36, %v4672_v39 }
  0xba   : > { %3502 = vmatpush.bf16.msra.mxu2 %v5027_v5  ;;  %3477 = vmatpush.bf16.msra.mxu0 %v4483_v15  ;;  %v4928_v44 = vld [vmem:[%s7244_s6 + $0x460] sm:$0xf0] }
  0xbb   : > { %v6635_v45 = vld [vmem:[%s7244_s6 + $0x644] sm:$0xf]  ;;  %v4931_v51 = vor.u32 %v6571_v42, %v4928_v44 }
  0xbc   : > { %3515 = vmatpush.bf16.msra.mxu3 %v5283_v9  ;;  %3490 = vmatpush.bf16.msra.mxu1 %v4739_v16  ;;  %v5184_v46 = vld [vmem:[%s7244_s6 + $0x660] sm:$0xf0] }
  0xbd   : > { %v6435_v48 = vld [vmem:[%s7244_s6 + $0x4] sm:$0xf]  ;;  %v5187_v55 = vor.u32 %v6635_v45, %v5184_v46 }
  0xbe   : > { %3503 = vmatpush.bf16.msra.mxu2 %v4995_v17  ;;  %3478 = vmatpush.bf16.msra.mxu0 %v4451_v29  ;;  %v4384_v49 = vld [vmem:[%s7244_s6 + $0x20] sm:$0xf0] }
  0xbf   : > { %v6499_v52 = vld [vmem:[%s7244_s6 + $0x204] sm:$0xf]  ;;  %v4387_v62 = vor.u32 %v6435_v48, %v4384_v49 }
  0xc0   : > { %3516 = vmatpush.bf16.msra.mxu3 %v5251_v21  ;;  %3491 = vmatpush.bf16.msra.mxu1 %v4707_v30  ;;  %v4640_v53 = vld [vmem:[%s7244_s6 + $0x220] sm:$0xf0] }
  0xc1   : > { %v6563_v54 = vld [vmem:[%s7244_s6 + $0x404] sm:$0xf]  ;;  %v4643_v2 = vor.u32 %v6499_v52, %v4640_v53 }
  0xc2   : > { %3504 = vmatpush.bf16.msra.mxu2 %v4963_v31  ;;  %v4896_v56 = vld [vmem:[%s7244_s6 + $0x420] sm:$0xf0]  ;;  %3479 = vmatpush.bf16.msra.mxu0 %v4419_v47 }
  0xc3   : > { %v6627_v57 = vld [vmem:[%s7244_s6 + $0x604] sm:$0xf]  ;;  %v4899_v3 = vor.u32 %v6563_v54, %v4896_v56 }
  0xc4   : > { %3517 = vmatpush.bf16.msra.mxu3 %v5219_v38  ;;  %v5152_v58 = vld [vmem:[%s7244_s6 + $0x620] sm:$0xf0]  ;;  %3492 = vmatpush.bf16.msra.mxu1 %v4675_v50 }
  0xc5   : > { %v6747_v59 = vld [vmem:[%s7244_s6 + $0x9c4] sm:$0xf]  ;;  %v5155_v6 = vor.u32 %v6627_v57, %v5152_v58 }
  0xc6   : > { %v5632_v60 = vld [vmem:[%s7244_s6 + $0x9e0] sm:$0xf0]  ;;  %3505 = vmatpush.bf16.msra.mxu2 %v4931_v51  ;;  %3480 = vmatpush.bf16.msra.mxu0 %v4387_v62 }
  0xc7   : > { %v6811_v61 = vld [vmem:[%s7244_s6 + $0xbc4] sm:$0xf]  ;;  %v5635_v7 = vor.u32 %v6747_v59, %v5632_v60 }
  0xc8   : > { %v5888_v63 = vld [vmem:[%s7244_s6 + $0xbe0] sm:$0xf0]  ;;  %3518 = vmatpush.bf16.msra.mxu3 %v5187_v55  ;;  %3493 = vmatpush.bf16.msra.mxu1 %v4643_v2 }
  0xc9   : > { %v6875_v0 = vld [vmem:[%s7244_s6 + $0xdc4] sm:$0xf]  ;;  %v5891_v8 = vor.u32 %v6811_v61, %v5888_v63  ;;  %3481 = vmatmul.bf16.vlgmr.msra.gmra.mxu0 %v7366_v27 }
  0xca   : > { %v6144_v1 = vld [vmem:[%s7244_s6 + $0xde0] sm:$0xf0]  ;;  %3506 = vmatpush.bf16.msra.mxu2 %v4899_v3  ;;  %3525 = vmatpush.bf16.msrb.mxu0 %v5635_v7 }
  0xcb   : > { %v6939_v4 = vld [vmem:[%s7244_s6 + $0xfc4] sm:$0xf]  ;;  %v6147_v9 = vor.u32 %v6875_v0, %v6144_v1  ;;  %3494 = vmatmul.bf16.vlgmr.msra.gmra.mxu1 %v7372_v33 }
  0xcc   : > { %v6400_v5 = vld [vmem:[%s7244_s6 + $0xfe0] sm:$0xf0]  ;;  %3519 = vmatpush.bf16.msra.mxu3 %v5155_v6  ;;  %3538 = vmatpush.bf16.msrb.mxu1 %v5891_v8 }
  0xcd   : > { %v6739_v10 = vld [vmem:[%s7244_s6 + $0x984] sm:$0xf]  ;;  %v6403_v13 = vor.u32 %v6939_v4, %v6400_v5  ;;  %3507 = vmatmul.bf16.vlgmr.msra.gmra.mxu2 %v7364_v26 }
  0xce   : > { %v5600_v11 = vld [vmem:[%s7244_s6 + $0x9a0] sm:$0xf0]  ;;  %3551 = vmatpush.bf16.msrb.mxu2 %v6147_v9 }
  0xcf   : > { %v6803_v12 = vld [vmem:[%s7244_s6 + $0xb84] sm:$0xf]  ;;  %v5603_v19 = vor.u32 %v6739_v10, %v5600_v11  ;;  %3520 = vmatmul.bf16.vlgmr.msra.gmra.mxu3 %v7370_v32 }
  0xd0   : > { %v5856_v14 = vld [vmem:[%s7244_s6 + $0xba0] sm:$0xf0]  ;;  %3564 = vmatpush.bf16.msrb.mxu3 %v6403_v13 }
  0xd1   : > { %v6867_v15 = vld [vmem:[%s7244_s6 + $0xd84] sm:$0xf]  ;;  %v5859_v20 = vor.u32 %v6803_v12, %v5856_v14  ;;  %3526 = vmatpush.bf16.msrb.mxu0 %v5603_v19 }
  0xd2   : > { %v6112_v16 = vld [vmem:[%s7244_s6 + $0xda0] sm:$0xf0] }
  0xd3   : > { %v6931_v17 = vld [vmem:[%s7244_s6 + $0xf84] sm:$0xf]  ;;  %v6115_v21 = vor.u32 %v6867_v15, %v6112_v16  ;;  %3539 = vmatpush.bf16.msrb.mxu1 %v5859_v20 }
  0xd4   : > { %v6368_v18 = vld [vmem:[%s7244_s6 + $0xfa0] sm:$0xf0] }
  0xd5   : > { %v6731_v22 = vld [vmem:[%s7244_s6 + $0x944] sm:$0xf]  ;;  %v6371_v25 = vor.u32 %v6931_v17, %v6368_v18  ;;  %3552 = vmatpush.bf16.msrb.mxu2 %v6115_v21 }
  0xd6   : > { %v5568_v23 = vld [vmem:[%s7244_s6 + $0x960] sm:$0xf0] }
  0xd7   : > { %v6795_v24 = vld [vmem:[%s7244_s6 + $0xb44] sm:$0xf]  ;;  %v5571_v35 = vor.u32 %v6731_v22, %v5568_v23  ;;  %3565 = vmatpush.bf16.msrb.mxu3 %v6371_v25 }
  0xd8   : > { %v5824_v28 = vld [vmem:[%s7244_s6 + $0xb60] sm:$0xf0] }
  0xd9   : > { %v6859_v29 = vld [vmem:[%s7244_s6 + $0xd44] sm:$0xf]  ;;  %v5827_v36 = vor.u32 %v6795_v24, %v5824_v28  ;;  %3527 = vmatpush.bf16.msrb.mxu0 %v5571_v35 }
  0xda   : > { %v6080_v30 = vld [vmem:[%s7244_s6 + $0xd60] sm:$0xf0] }
  0xdb   : > { %v6923_v31 = vld [vmem:[%s7244_s6 + $0xf44] sm:$0xf]  ;;  %v6083_v38 = vor.u32 %v6859_v29, %v6080_v30  ;;  %3540 = vmatpush.bf16.msrb.mxu1 %v5827_v36 }
  0xdc   : > { %v6336_v34 = vld [vmem:[%s7244_s6 + $0xf60] sm:$0xf0] }
  0xdd   : > { %v6723_v39 = vld [vmem:[%s7244_s6 + $0x904] sm:$0xf]  ;;  %v6339_v45 = vor.u32 %v6923_v31, %v6336_v34  ;;  %3553 = vmatpush.bf16.msrb.mxu2 %v6083_v38 }
  0xde   : > { %v5536_v42 = vld [vmem:[%s7244_s6 + $0x920] sm:$0xf0] }
  0xdf   : > { %v6787_v44 = vld [vmem:[%s7244_s6 + $0xb04] sm:$0xf]  ;;  %v5539_v51 = vor.u32 %v6723_v39, %v5536_v42  ;;  %3566 = vmatpush.bf16.msrb.mxu3 %v6339_v45  ;;  %v4614_v42 = vld [vmem:[%s7244_s6 + $0x1c8] sm:$0xf] }
  0xe0   : > { %v5792_v46 = vld [vmem:[%s7244_s6 + $0xb20] sm:$0xf0]  ;;  %v4870_v45 = vld [vmem:[%s7244_s6 + $0x3c8] sm:$0xf] }
  0xe1   : > { %v6851_v47 = vld [vmem:[%s7244_s6 + $0xd04] sm:$0xf]  ;;  %v5795_v52 = vor.u32 %v6787_v44, %v5792_v46  ;;  %3528 = vmatpush.bf16.msrb.mxu0 %v5539_v51  ;;  %v6496_v44 = vld [vmem:[%s7244_s6 + $0x1e4] sm:$0xf0] }
  0xe2   : > { %v6048_v48 = vld [vmem:[%s7244_s6 + $0xd20] sm:$0xf0] }
  0xe3   : > { %v6915_v49 = vld [vmem:[%s7244_s6 + $0xf04] sm:$0xf]  ;;  %v6051_v53 = vor.u32 %v6851_v47, %v6048_v48  ;;  %3541 = vmatpush.bf16.msrb.mxu1 %v5795_v52  ;;  %v6560_v47 = vld [vmem:[%s7244_s6 + $0x3e4] sm:$0xf0] }
  0xe4   : > { %v6304_v50 = vld [vmem:[%s7244_s6 + $0xf20] sm:$0xf0]  ;;  %v5126_v48 = vld [vmem:[%s7244_s6 + $0x5c8] sm:$0xf] }
  0xe5   : > { %v6715_v54 = vld [vmem:[%s7244_s6 + $0x8c4] sm:$0xf]  ;;  %v6307_v57 = vor.u32 %v6915_v49, %v6304_v50  ;;  %3554 = vmatpush.bf16.msrb.mxu2 %v6051_v53  ;;  %v6624_v49 = vld [vmem:[%s7244_s6 + $0x5e4] sm:$0xf0] }
  0xe6   : > { %v5504_v55 = vld [vmem:[%s7244_s6 + $0x8e0] sm:$0xf0]  ;;  %v5382_v52 = vld [vmem:[%s7244_s6 + $0x7c8] sm:$0xf] }
  0xe7   : > { %v6779_v56 = vld [vmem:[%s7244_s6 + $0xac4] sm:$0xf]  ;;  %v5507_v63 = vor.u32 %v6715_v54, %v5504_v55  ;;  %3567 = vmatpush.bf16.msrb.mxu3 %v6307_v57  ;;  %v6688_v53 = vld [vmem:[%s7244_s6 + $0x7e4] sm:$0xf0]  ;;  %v4615_v55 = vor.u32 %v6496_v44, %v4614_v42  ;;  %v5127_v57 = vor.u32 %v6624_v49, %v5126_v48 }
  0xe8   : > { %v5760_v58 = vld [vmem:[%s7244_s6 + $0xae0] sm:$0xf0]  ;;  %v4998_v42 = vld [vmem:[%s7244_s6 + $0x4c8] sm:$0xf] }
  0xe9   : > { %v6843_v59 = vld [vmem:[%s7244_s6 + $0xcc4] sm:$0xf]  ;;  %v5763_v0 = vor.u32 %v6779_v56, %v5760_v58  ;;  %3529 = vmatpush.bf16.msrb.mxu0 %v5507_v63  ;;  %v4871_v56 = vor.u32 %v6560_v47, %v4870_v45  ;;  %v4582_v58 = vld [vmem:[%s7244_s6 + $0x188] sm:$0xf] }
  0xea   : > { %v6016_v60 = vld [vmem:[%s7244_s6 + $0xce0] sm:$0xf0]  ;;  %v5094_v63 = vld [vmem:[%s7244_s6 + $0x588] sm:$0xf] }
  0xeb   : > { %v6907_v61 = vld [vmem:[%s7244_s6 + $0xec4] sm:$0xf]  ;;  %v6019_v1 = vor.u32 %v6843_v59, %v6016_v60  ;;  %3542 = vmatpush.bf16.msrb.mxu1 %v5763_v0  ;;  %v6488_v59 = vld [vmem:[%s7244_s6 + $0x1a4] sm:$0xf0] }
  0xec   : > { %v6272_v62 = vld [vmem:[%s7244_s6 + $0xee0] sm:$0xf0]  ;;  %v4838_v60 = vld [vmem:[%s7244_s6 + $0x388] sm:$0xf] }
  0xed   : > { %v6707_v2 = vld [vmem:[%s7244_s6 + $0x884] sm:$0xf]  ;;  %v6275_v5 = vor.u32 %v6907_v61, %v6272_v62  ;;  %3555 = vmatpush.bf16.msrb.mxu2 %v6019_v1  ;;  %v5383_v61 = vor.u32 %v6688_v53, %v5382_v52  ;;  %v6552_v62 = vld [vmem:[%s7244_s6 + $0x3a4] sm:$0xf0] }
  0xee   : > { %v5472_v3 = vld [vmem:[%s7244_s6 + $0x8a0] sm:$0xf0]  ;;  %v6616_v0 = vld [vmem:[%s7244_s6 + $0x5a4] sm:$0xf0] }
  0xef   : > { %v6771_v4 = vld [vmem:[%s7244_s6 + $0xa84] sm:$0xf]  ;;  %v5475_v11 = vor.u32 %v6707_v2, %v5472_v3  ;;  %3568 = vmatpush.bf16.msrb.mxu3 %v6275_v5  ;;  %v5350_v1 = vld [vmem:[%s7244_s6 + $0x788] sm:$0xf]  ;;  %v4583_v3 = vor.u32 %v6488_v59, %v4582_v58  ;;  %v5095_v5 = vor.u32 %v6616_v0, %v5094_v63 }
  0xf0   : > { %v5728_v6 = vld [vmem:[%s7244_s6 + $0xaa0] sm:$0xf0]  ;;  %v6680_v2 = vld [vmem:[%s7244_s6 + $0x7a4] sm:$0xf0] }
  0xf1   : > { %v6835_v7 = vld [vmem:[%s7244_s6 + $0xc84] sm:$0xf]  ;;  %v5731_v12 = vor.u32 %v6771_v4, %v5728_v6  ;;  %3530 = vmatpush.bf16.msrb.mxu0 %v5475_v11  ;;  %v4839_v4 = vor.u32 %v6552_v62, %v4838_v60  ;;  %v4550_v6 = vld [vmem:[%s7244_s6 + $0x148] sm:$0xf] }
  0xf2   : > { %v5984_v8 = vld [vmem:[%s7244_s6 + $0xca0] sm:$0xf0]  ;;  %v5062_v11 = vld [vmem:[%s7244_s6 + $0x548] sm:$0xf] }
  0xf3   : > { %v6899_v9 = vld [vmem:[%s7244_s6 + $0xe84] sm:$0xf]  ;;  %v5987_v13 = vor.u32 %v6835_v7, %v5984_v8  ;;  %3543 = vmatpush.bf16.msrb.mxu1 %v5731_v12  ;;  %v6480_v7 = vld [vmem:[%s7244_s6 + $0x164] sm:$0xf0] }
  0xf4   : > { %v6240_v10 = vld [vmem:[%s7244_s6 + $0xea0] sm:$0xf0]  ;;  %v4806_v8 = vld [vmem:[%s7244_s6 + $0x348] sm:$0xf] }
  0xf5   : > { %v6699_v14 = vld [vmem:[%s7244_s6 + $0x844] sm:$0xf]  ;;  %v6243_v17 = vor.u32 %v6899_v9, %v6240_v10  ;;  %3556 = vmatpush.bf16.msrb.mxu2 %v5987_v13  ;;  %v5351_v9 = vor.u32 %v6680_v2, %v5350_v1  ;;  %v6544_v10 = vld [vmem:[%s7244_s6 + $0x364] sm:$0xf0] }
  0xf6   : > { %v5440_v15 = vld [vmem:[%s7244_s6 + $0x860] sm:$0xf0]  ;;  %v6608_v12 = vld [vmem:[%s7244_s6 + $0x564] sm:$0xf0] }
  0xf7   : > { %v6763_v16 = vld [vmem:[%s7244_s6 + $0xa44] sm:$0xf]  ;;  %v5443_v23 = vor.u32 %v6699_v14, %v5440_v15  ;;  %3569 = vmatpush.bf16.msrb.mxu3 %v6243_v17  ;;  %v5318_v13 = vld [vmem:[%s7244_s6 + $0x748] sm:$0xf]  ;;  %v4551_v15 = vor.u32 %v6480_v7, %v4550_v6  ;;  %v5063_v17 = vor.u32 %v6608_v12, %v5062_v11 }
  0xf8   : > { %v5696_v18 = vld [vmem:[%s7244_s6 + $0xa60] sm:$0xf0]  ;;  %v6672_v14 = vld [vmem:[%s7244_s6 + $0x764] sm:$0xf0] }
  0xf9   : > { %v6827_v19 = vld [vmem:[%s7244_s6 + $0xc44] sm:$0xf]  ;;  %v5699_v28 = vor.u32 %v6763_v16, %v5696_v18  ;;  %3531 = vmatpush.bf16.msrb.mxu0 %v5443_v23  ;;  %v4807_v16 = vor.u32 %v6544_v10, %v4806_v8  ;;  %v4518_v18 = vld [vmem:[%s7244_s6 + $0x108] sm:$0xf] }
  0xfa   : > { %v5952_v20 = vld [vmem:[%s7244_s6 + $0xc60] sm:$0xf0]  ;;  %v5030_v23 = vld [vmem:[%s7244_s6 + $0x508] sm:$0xf] }
  0xfb   : > { %v6891_v21 = vld [vmem:[%s7244_s6 + $0xe44] sm:$0xf]  ;;  %v5955_v29 = vor.u32 %v6827_v19, %v5952_v20  ;;  %3544 = vmatpush.bf16.msrb.mxu1 %v5699_v28  ;;  %v6472_v19 = vld [vmem:[%s7244_s6 + $0x124] sm:$0xf0] }
  0xfc   : > { %v6208_v22 = vld [vmem:[%s7244_s6 + $0xe60] sm:$0xf0]  ;;  %v4774_v20 = vld [vmem:[%s7244_s6 + $0x308] sm:$0xf] }
  0xfd   : > { %v6691_v24 = vld [vmem:[%s7244_s6 + $0x804] sm:$0xf]  ;;  %v6211_v35 = vor.u32 %v6891_v21, %v6208_v22  ;;  %3557 = vmatpush.bf16.msrb.mxu2 %v5955_v29  ;;  %v5319_v21 = vor.u32 %v6672_v14, %v5318_v13  ;;  %v6536_v22 = vld [vmem:[%s7244_s6 + $0x324] sm:$0xf0]  ;;  %v4519_v29 = vor.u32 %v6472_v19, %v4518_v18 }
  0xfe   : > { %v5408_v25 = vld [vmem:[%s7244_s6 + $0x820] sm:$0xf0]  ;;  %v6664_v28 = vld [vmem:[%s7244_s6 + $0x724] sm:$0xf0] }
  0xff   : > { %v6755_v30 = vld [vmem:[%s7244_s6 + $0xa04] sm:$0xf]  ;;  %v5411_v46 = vor.u32 %v6691_v24, %v5408_v25  ;;  %3570 = vmatpush.bf16.msrb.mxu3 %v6211_v35  ;;  %v6600_v24 = vld [vmem:[%s7244_s6 + $0x524] sm:$0xf0] }
 0x100   : > { %v5664_v31 = vld [vmem:[%s7244_s6 + $0xa20] sm:$0xf0]  ;;  %v5286_v25 = vld [vmem:[%s7244_s6 + $0x708] sm:$0xf] }
 0x101   : > { %v6819_v34 = vld [vmem:[%s7244_s6 + $0xc04] sm:$0xf]  ;;  %v5667_v50 = vor.u32 %v6755_v30, %v5664_v31  ;;  %3532 = vmatpush.bf16.msrb.mxu0 %v5411_v46  ;;  %v4775_v30 = vor.u32 %v6536_v22, %v4774_v20  ;;  %v5031_v31 = vor.u32 %v6600_v24, %v5030_v23  ;;  %v6464_v35 = vld [vmem:[%s7244_s6 + $0xe4] sm:$0xf0] }
 0x102   : > { %v5920_v36 = vld [vmem:[%s7244_s6 + $0xc20] sm:$0xf0]  ;;  %v6592_v44 = vld [vmem:[%s7244_s6 + $0x4e4] sm:$0xf0] }
 0x103   : > { %v6883_v38 = vld [vmem:[%s7244_s6 + $0xe04] sm:$0xf]  ;;  %v5923_v51 = vor.u32 %v6819_v34, %v5920_v36  ;;  %3545 = vmatpush.bf16.msrb.mxu1 %v5667_v50  ;;  %v4486_v34 = vld [vmem:[%s7244_s6 + $0xc8] sm:$0xf]  ;;  %v4999_v49 = vor.u32 %v6592_v44, %v4998_v42 }
 0x104   : > { %v6176_v39 = vld [vmem:[%s7244_s6 + $0xe20] sm:$0xf0]  ;;  %3533 = vmatmul.bf16.vlgmr.msrb.gmra.mxu0 %v7421_v40  ;;  %v4742_v36 = vld [vmem:[%s7244_s6 + $0x2c8] sm:$0xf]  ;;  %v4487_v47 = vor.u32 %v6464_v35, %v4486_v34 }
 0x105   : > { %v6179_v54 = vor.u32 %v6883_v38, %v6176_v39  ;;  %3558 = vmatpush.bf16.msrb.mxu2 %v5923_v51  ;;  %3577 = vmatpush.bf16.msra.mxu0 %v4615_v55  ;;  %v5287_v38 = vor.u32 %v6664_v28, %v5286_v25  ;;  %v6528_v39 = vld [vmem:[%s7244_s6 + $0x2e4] sm:$0xf0] }
 0x106   : > { %3546 = vmatmul.bf16.vlgmr.msrb.gmra.mxu1 %v7425_v43  ;;  %v5254_v45 = vld [vmem:[%s7244_s6 + $0x6c8] sm:$0xf]  ;;  %v4743_v48 = vor.u32 %v6528_v39, %v4742_v36 }
 0x107   : > { %3571 = vmatpush.bf16.msrb.mxu3 %v6179_v54  ;;  %3590 = vmatpush.bf16.msra.mxu1 %v4871_v56  ;;  %v6656_v46 = vld [vmem:[%s7244_s6 + $0x6e4] sm:$0xf0] }
 0x108   : > { %3559 = vmatmul.bf16.vlgmr.msrb.gmra.mxu2 %v7417_v37  ;;  %v4454_v50 = vld [vmem:[%s7244_s6 + $0x88] sm:$0xf]  ;;  %v5255_v53 = vor.u32 %v6656_v46, %v5254_v45 }
 0x109   : > { %3603 = vmatpush.bf16.msra.mxu2 %v5127_v57  ;;  %3578 = vmatpush.bf16.msra.mxu0 %v4583_v3  ;;  %v6456_v51 = vld [vmem:[%s7244_s6 + $0xa4] sm:$0xf0] }
 0x10a   : > { %3572 = vmatmul.bf16.vlgmr.msrb.gmra.mxu3 %v7423_v41  ;;  %v4710_v52 = vld [vmem:[%s7244_s6 + $0x288] sm:$0xf]  ;;  %v4455_v59 = vor.u32 %v6456_v51, %v4454_v50 }
 0x10b   : > { %3616 = vmatpush.bf16.msra.mxu3 %v5383_v61  ;;  %3591 = vmatpush.bf16.msra.mxu1 %v4839_v4  ;;  %v6520_v54 = vld [vmem:[%s7244_s6 + $0x2a4] sm:$0xf0] }
 0x10c   : > { %v4966_v55 = vld [vmem:[%s7244_s6 + $0x488] sm:$0xf]  ;;  %v4711_v60 = vor.u32 %v6520_v54, %v4710_v52 }
 0x10d   : > { %3604 = vmatpush.bf16.msra.mxu2 %v5095_v5  ;;  %3579 = vmatpush.bf16.msra.mxu0 %v4551_v15  ;;  %v6584_v56 = vld [vmem:[%s7244_s6 + $0x4a4] sm:$0xf0] }
 0x10e   : > { %v5222_v57 = vld [vmem:[%s7244_s6 + $0x688] sm:$0xf]  ;;  %v4967_v61 = vor.u32 %v6584_v56, %v4966_v55 }
 0x10f   : > { %3617 = vmatpush.bf16.msra.mxu3 %v5351_v9  ;;  %3592 = vmatpush.bf16.msra.mxu1 %v4807_v16  ;;  %v6648_v58 = vld [vmem:[%s7244_s6 + $0x6a4] sm:$0xf0] }
 0x110   : > { %v4422_v62 = vld [vmem:[%s7244_s6 + $0x48] sm:$0xf]  ;;  %v5223_v1 = vor.u32 %v6648_v58, %v5222_v57 }
 0x111   : > { %3605 = vmatpush.bf16.msra.mxu2 %v5063_v17  ;;  %3580 = vmatpush.bf16.msra.mxu0 %v4519_v29  ;;  %v6448_v63 = vld [vmem:[%s7244_s6 + $0x64] sm:$0xf0] }
 0x112   : > { %v4678_v0 = vld [vmem:[%s7244_s6 + $0x248] sm:$0xf]  ;;  %v4423_v7 = vor.u32 %v6448_v63, %v4422_v62 }
 0x113   : > { %3618 = vmatpush.bf16.msra.mxu3 %v5319_v21  ;;  %3593 = vmatpush.bf16.msra.mxu1 %v4775_v30  ;;  %v6512_v2 = vld [vmem:[%s7244_s6 + $0x264] sm:$0xf0] }
 0x114   : > { %v4934_v3 = vld [vmem:[%s7244_s6 + $0x448] sm:$0xf]  ;;  %v4679_v10 = vor.u32 %v6512_v2, %v4678_v0 }
 0x115   : > { %3606 = vmatpush.bf16.msra.mxu2 %v5031_v31  ;;  %3581 = vmatpush.bf16.msra.mxu0 %v4487_v47  ;;  %v6576_v4 = vld [vmem:[%s7244_s6 + $0x464] sm:$0xf0] }
 0x116   : > { %v5190_v5 = vld [vmem:[%s7244_s6 + $0x648] sm:$0xf]  ;;  %v4935_v11 = vor.u32 %v6576_v4, %v4934_v3 }
 0x117   : > { %3619 = vmatpush.bf16.msra.mxu3 %v5287_v38  ;;  %3594 = vmatpush.bf16.msra.mxu1 %v4743_v48  ;;  %v6640_v6 = vld [vmem:[%s7244_s6 + $0x664] sm:$0xf0] }
 0x118   : > { %v4390_v8 = vld [vmem:[%s7244_s6 + $0x8] sm:$0xf]  ;;  %v5191_v15 = vor.u32 %v6640_v6, %v5190_v5 }
 0x119   : > { %3607 = vmatpush.bf16.msra.mxu2 %v4999_v49  ;;  %3582 = vmatpush.bf16.msra.mxu0 %v4455_v59  ;;  %v6440_v9 = vld [vmem:[%s7244_s6 + $0x24] sm:$0xf0] }
 0x11a   : > { %v4646_v12 = vld [vmem:[%s7244_s6 + $0x208] sm:$0xf]  ;;  %v4391_v22 = vor.u32 %v6440_v9, %v4390_v8 }
 0x11b   : > { %3620 = vmatpush.bf16.msra.mxu3 %v5255_v53  ;;  %3595 = vmatpush.bf16.msra.mxu1 %v4711_v60  ;;  %v6504_v13 = vld [vmem:[%s7244_s6 + $0x224] sm:$0xf0] }
 0x11c   : > { %v4902_v14 = vld [vmem:[%s7244_s6 + $0x408] sm:$0xf]  ;;  %v4647_v28 = vor.u32 %v6504_v13, %v4646_v12 }
 0x11d   : > { %3608 = vmatpush.bf16.msra.mxu2 %v4967_v61  ;;  %v6568_v16 = vld [vmem:[%s7244_s6 + $0x424] sm:$0xf0]  ;;  %3583 = vmatpush.bf16.msra.mxu0 %v4423_v7 }
 0x11e   : > { %v5158_v17 = vld [vmem:[%s7244_s6 + $0x608] sm:$0xf]  ;;  %v4903_v29 = vor.u32 %v6568_v16, %v4902_v14 }
 0x11f   : > { %3621 = vmatpush.bf16.msra.mxu3 %v5223_v1  ;;  %v6632_v18 = vld [vmem:[%s7244_s6 + $0x624] sm:$0xf0]  ;;  %3596 = vmatpush.bf16.msra.mxu1 %v4679_v10 }
 0x120   : > { %v5638_v19 = vld [vmem:[%s7244_s6 + $0x9c8] sm:$0xf]  ;;  %v5159_v34 = vor.u32 %v6632_v18, %v5158_v17 }
 0x121   : > { %v6752_v20 = vld [vmem:[%s7244_s6 + $0x9e4] sm:$0xf0]  ;;  %3609 = vmatpush.bf16.msra.mxu2 %v4935_v11  ;;  %3584 = vmatpush.bf16.msra.mxu0 %v4391_v22 }
 0x122   : > { %v5894_v21 = vld [vmem:[%s7244_s6 + $0xbc8] sm:$0xf]  ;;  %v5639_v35 = vor.u32 %v6752_v20, %v5638_v19 }
 0x123   : > { %v6816_v23 = vld [vmem:[%s7244_s6 + $0xbe4] sm:$0xf0]  ;;  %3622 = vmatpush.bf16.msra.mxu3 %v5191_v15  ;;  %3597 = vmatpush.bf16.msra.mxu1 %v4647_v28 }
 0x124   : > { %v6150_v24 = vld [vmem:[%s7244_s6 + $0xdc8] sm:$0xf]  ;;  %v5895_v36 = vor.u32 %v6816_v23, %v5894_v21  ;;  %3585 = vmatmul.bf16.vlgmr.msra.gmra.mxu0 %v7366_v27 }
 0x125   : > { %v6880_v25 = vld [vmem:[%s7244_s6 + $0xde4] sm:$0xf0]  ;;  %3610 = vmatpush.bf16.msra.mxu2 %v4903_v29  ;;  %3629 = vmatpush.bf16.msrb.mxu0 %v5639_v35 }
 0x126   : > { %v6406_v30 = vld [vmem:[%s7244_s6 + $0xfc8] sm:$0xf]  ;;  %v6151_v38 = vor.u32 %v6880_v25, %v6150_v24  ;;  %3598 = vmatmul.bf16.vlgmr.msra.gmra.mxu1 %v7372_v33 }
 0x127   : > { %v6944_v31 = vld [vmem:[%s7244_s6 + $0xfe4] sm:$0xf0]  ;;  %3623 = vmatpush.bf16.msra.mxu3 %v5159_v34  ;;  %3642 = vmatpush.bf16.msrb.mxu1 %v5895_v36 }
 0x128   : > { %v5606_v39 = vld [vmem:[%s7244_s6 + $0x988] sm:$0xf]  ;;  %v6407_v45 = vor.u32 %v6944_v31, %v6406_v30  ;;  %3611 = vmatmul.bf16.vlgmr.msra.gmra.mxu2 %v7364_v26 }
 0x129   : > { %v6744_v42 = vld [vmem:[%s7244_s6 + $0x9a4] sm:$0xf0]  ;;  %3655 = vmatpush.bf16.msrb.mxu2 %v6151_v38 }
 0x12a   : > { %v5862_v44 = vld [vmem:[%s7244_s6 + $0xb88] sm:$0xf]  ;;  %v5607_v51 = vor.u32 %v6744_v42, %v5606_v39  ;;  %3624 = vmatmul.bf16.vlgmr.msra.gmra.mxu3 %v7370_v32 }
 0x12b   : > { %v6808_v46 = vld [vmem:[%s7244_s6 + $0xba4] sm:$0xf0]  ;;  %3668 = vmatpush.bf16.msrb.mxu3 %v6407_v45 }
 0x12c   : > { %v6118_v47 = vld [vmem:[%s7244_s6 + $0xd88] sm:$0xf]  ;;  %v5863_v52 = vor.u32 %v6808_v46, %v5862_v44  ;;  %3630 = vmatpush.bf16.msrb.mxu0 %v5607_v51 }
 0x12d   : > { %v6872_v48 = vld [vmem:[%s7244_s6 + $0xda4] sm:$0xf0] }
 0x12e   : > { %v6374_v49 = vld [vmem:[%s7244_s6 + $0xf88] sm:$0xf]  ;;  %v6119_v53 = vor.u32 %v6872_v48, %v6118_v47  ;;  %3643 = vmatpush.bf16.msrb.mxu1 %v5863_v52 }
 0x12f   : > { %v6936_v50 = vld [vmem:[%s7244_s6 + $0xfa4] sm:$0xf0] }
 0x130   : > { %v5574_v54 = vld [vmem:[%s7244_s6 + $0x948] sm:$0xf]  ;;  %v6375_v57 = vor.u32 %v6936_v50, %v6374_v49  ;;  %3656 = vmatpush.bf16.msrb.mxu2 %v6119_v53 }
 0x131   : > { %v6736_v55 = vld [vmem:[%s7244_s6 + $0x964] sm:$0xf0] }
 0x132   : > { %v5830_v56 = vld [vmem:[%s7244_s6 + $0xb48] sm:$0xf]  ;;  %v5575_v63 = vor.u32 %v6736_v55, %v5574_v54  ;;  %3669 = vmatpush.bf16.msrb.mxu3 %v6375_v57  ;;  %v3378_v55 = vpop.f32.mrf.mxu0 }
 0x133   : > { %v6800_v58 = vld [vmem:[%s7244_s6 + $0xb64] sm:$0xf0] }
 0x134   : > { %v6086_v59 = vld [vmem:[%s7244_s6 + $0xd48] sm:$0xf]  ;;  %v5831_v0 = vor.u32 %v6800_v58, %v5830_v56  ;;  %3631 = vmatpush.bf16.msrb.mxu0 %v5575_v63 }
 0x135   : > { %v6864_v60 = vld [vmem:[%s7244_s6 + $0xd64] sm:$0xf0] }
 0x136   : > { %v6342_v61 = vld [vmem:[%s7244_s6 + $0xf48] sm:$0xf]  ;;  %v6087_v1 = vor.u32 %v6864_v60, %v6086_v59  ;;  %3644 = vmatpush.bf16.msrb.mxu1 %v5831_v0  ;;  %v3391_v59 = vpop.f32.mrf.mxu1 }
 0x137   : > { %v6928_v62 = vld [vmem:[%s7244_s6 + $0xf64] sm:$0xf0] }
 0x138   : > { %v5542_v2 = vld [vmem:[%s7244_s6 + $0x908] sm:$0xf]  ;;  %v6343_v5 = vor.u32 %v6928_v62, %v6342_v61  ;;  %3657 = vmatpush.bf16.msrb.mxu2 %v6087_v1  ;;  %v3392_v1 = vadd.f32 %v3391_v59, %v3378_v55  ;;  %v6668_v55 = vld [vmem:[%s7244_s6 + $0x74c] sm:$0xf] }
 0x139   : > { %v6728_v3 = vld [vmem:[%s7244_s6 + $0x924] sm:$0xf0] }
 0x13a   : > { %v5798_v4 = vld [vmem:[%s7244_s6 + $0xb08] sm:$0xf]  ;;  %v5543_v11 = vor.u32 %v6728_v3, %v5542_v2  ;;  %3670 = vmatpush.bf16.msrb.mxu3 %v6343_v5 }
 0x13b   : > { %v6792_v6 = vld [vmem:[%s7244_s6 + $0xb24] sm:$0xf0] }
 0x13c   : > { %v6054_v7 = vld [vmem:[%s7244_s6 + $0xd08] sm:$0xf]  ;;  %v5799_v12 = vor.u32 %v6792_v6, %v5798_v4  ;;  %3632 = vmatpush.bf16.msrb.mxu0 %v5543_v11  ;;  %v6492_v6 = vld [vmem:[%s7244_s6 + $0x1cc] sm:$0xf] }
 0x13d   : > { %v6856_v8 = vld [vmem:[%s7244_s6 + $0xd24] sm:$0xf0]  ;;  %v4872_v11 = vld [vmem:[%s7244_s6 + $0x3e8] sm:$0xf0] }
 0x13e   : > { %v6310_v9 = vld [vmem:[%s7244_s6 + $0xf08] sm:$0xf]  ;;  %v6055_v13 = vor.u32 %v6856_v8, %v6054_v7  ;;  %3645 = vmatpush.bf16.msrb.mxu1 %v5799_v12  ;;  %v4616_v7 = vld [vmem:[%s7244_s6 + $0x1e8] sm:$0xf0] }
 0x13f   : > { %v6920_v10 = vld [vmem:[%s7244_s6 + $0xf24] sm:$0xf0]  ;;  %v6556_v8 = vld [vmem:[%s7244_s6 + $0x3cc] sm:$0xf] }
 0x140   : > { %v5510_v14 = vld [vmem:[%s7244_s6 + $0x8c8] sm:$0xf]  ;;  %v6311_v17 = vor.u32 %v6920_v10, %v6310_v9  ;;  %3658 = vmatpush.bf16.msrb.mxu2 %v6055_v13  ;;  %v3404_v9 = vpop.f32.mrf.mxu2  ;;  %v6620_v12 = vld [vmem:[%s7244_s6 + $0x5cc] sm:$0xf] }
 0x141   : > { %v6720_v15 = vld [vmem:[%s7244_s6 + $0x8e4] sm:$0xf0]  ;;  %v5128_v13 = vld [vmem:[%s7244_s6 + $0x5e8] sm:$0xf0] }
 0x142   : > { %v5766_v16 = vld [vmem:[%s7244_s6 + $0xac8] sm:$0xf]  ;;  %v5511_v23 = vor.u32 %v6720_v15, %v5510_v14  ;;  %3671 = vmatpush.bf16.msrb.mxu3 %v6311_v17  ;;  %v3405_v14 = vadd.f32 %v3404_v9, %v3392_v1  ;;  %v6684_v17 = vld [vmem:[%s7244_s6 + $0x7cc] sm:$0xf] }
 0x143   : > { %v6784_v18 = vld [vmem:[%s7244_s6 + $0xae4] sm:$0xf0]  ;;  %v4776_v1 = vld [vmem:[%s7244_s6 + $0x328] sm:$0xf0] }
 0x144   : > { %v6022_v19 = vld [vmem:[%s7244_s6 + $0xcc8] sm:$0xf]  ;;  %v5767_v24 = vor.u32 %v6784_v18, %v5766_v16  ;;  %3633 = vmatpush.bf16.msrb.mxu0 %v5511_v23  ;;  %v5384_v18 = vld [vmem:[%s7244_s6 + $0x7e8] sm:$0xf0]  ;;  %v5131_v23 = vor.u32 %v6620_v12, %v5128_v13 }
 0x145   : > { %v6848_v20 = vld [vmem:[%s7244_s6 + $0xce4] sm:$0xf0]  ;;  %v6524_v12 = vld [vmem:[%s7244_s6 + $0x2cc] sm:$0xf] }
 0x146   : > { %v6278_v21 = vld [vmem:[%s7244_s6 + $0xec8] sm:$0xf]  ;;  %v6023_v25 = vor.u32 %v6848_v20, %v6022_v19  ;;  %3646 = vmatpush.bf16.msrb.mxu1 %v5767_v24  ;;  %v4619_v20 = vor.u32 %v6492_v6, %v4616_v7  ;;  %v6484_v24 = vld [vmem:[%s7244_s6 + $0x18c] sm:$0xf] }
 0x147   : > { %v6912_v22 = vld [vmem:[%s7244_s6 + $0xee4] sm:$0xf0] }
 0x148   : > { %v5478_v28 = vld [vmem:[%s7244_s6 + $0x888] sm:$0xf]  ;;  %v6279_v31 = vor.u32 %v6912_v22, %v6278_v21  ;;  %3659 = vmatpush.bf16.msrb.mxu2 %v6023_v25  ;;  %v3417_v21 = vpop.f32.mrf.mxu3  ;;  %v4875_v22 = vor.u32 %v6556_v8, %v4872_v11  ;;  %v4584_v25 = vld [vmem:[%s7244_s6 + $0x1a8] sm:$0xf0] }
 0x149   : > { %v6712_v29 = vld [vmem:[%s7244_s6 + $0x8a4] sm:$0xf0]  ;;  %v4488_v11 = vld [vmem:[%s7244_s6 + $0xe8] sm:$0xf0] }
 0x14a   : > { %v5734_v30 = vld [vmem:[%s7244_s6 + $0xa88] sm:$0xf]  ;;  %v5479_v42 = vor.u32 %v6712_v29, %v5478_v28  ;;  %3672 = vmatpush.bf16.msrb.mxu3 %v6279_v31  ;;  %v6548_v28 = vld [vmem:[%s7244_s6 + $0x38c] sm:$0xf]  ;;  %v3418_v29 = vadd.f32 %v3417_v21, %v3405_v14  ;;  %v5387_v31 = vor.u32 %v6684_v17, %v5384_v18 }
 0x14b   : > { %v6776_v34 = vld [vmem:[%s7244_s6 + $0xaa4] sm:$0xf0]  ;;  %v6588_v17 = vld [vmem:[%s7244_s6 + $0x4cc] sm:$0xf] }
 0x14c   : > { %v5990_v35 = vld [vmem:[%s7244_s6 + $0xc88] sm:$0xf]  ;;  %v5735_v44 = vor.u32 %v6776_v34, %v5734_v30  ;;  %3634 = vmatpush.bf16.msrb.mxu0 %v5479_v42  ;;  %v3380_v30 = vpop.f32.mrf.mxu0  ;;  %v4840_v34 = vld [vmem:[%s7244_s6 + $0x3a8] sm:$0xf0] }
 0x14d   : > { %v6840_v36 = vld [vmem:[%s7244_s6 + $0xca4] sm:$0xf0]  ;;  %v5352_v42 = vld [vmem:[%s7244_s6 + $0x7a8] sm:$0xf0] }
 0x14e   : > { %v6246_v38 = vld [vmem:[%s7244_s6 + $0xe88] sm:$0xf]  ;;  %v5991_v45 = vor.u32 %v6840_v36, %v5990_v35  ;;  %3647 = vmatpush.bf16.msrb.mxu1 %v5735_v44  ;;  %v6612_v35 = vld [vmem:[%s7244_s6 + $0x58c] sm:$0xf]  ;;  %v4587_v44 = vor.u32 %v6484_v24, %v4584_v25 }
 0x14f   : > { %v6904_v39 = vld [vmem:[%s7244_s6 + $0xea4] sm:$0xf0]  ;;  %v5096_v36 = vld [vmem:[%s7244_s6 + $0x5a8] sm:$0xf0] }
 0x150   : > { %v5446_v46 = vld [vmem:[%s7244_s6 + $0x848] sm:$0xf]  ;;  %v6247_v49 = vor.u32 %v6904_v39, %v6246_v38  ;;  %3660 = vmatpush.bf16.msrb.mxu2 %v5991_v45  ;;  %v3393_v38 = vpop.f32.mrf.mxu1  ;;  %v6676_v39 = vld [vmem:[%s7244_s6 + $0x78c] sm:$0xf]  ;;  %v4843_v45 = vor.u32 %v6548_v28, %v4840_v34 }
 0x151   : > { %v6704_v47 = vld [vmem:[%s7244_s6 + $0x864] sm:$0xf0]  ;;  %v5000_v18 = vld [vmem:[%s7244_s6 + $0x4e8] sm:$0xf0] }
 0x152   : > { %v5702_v48 = vld [vmem:[%s7244_s6 + $0xa48] sm:$0xf]  ;;  %v5447_v56 = vor.u32 %v6704_v47, %v5446_v46  ;;  %3673 = vmatpush.bf16.msrb.mxu3 %v6247_v49  ;;  %v5099_v46 = vor.u32 %v6612_v35, %v5096_v36  ;;  %v6476_v47 = vld [vmem:[%s7244_s6 + $0x14c] sm:$0xf]  ;;  %v5003_v24 = vor.u32 %v6588_v17, %v5000_v18 }
 0x153   : > { %v6768_v50 = vld [vmem:[%s7244_s6 + $0xa64] sm:$0xf0]  ;;  %v6540_v49 = vld [vmem:[%s7244_s6 + $0x34c] sm:$0xf] }
 0x154   : > { %v5958_v51 = vld [vmem:[%s7244_s6 + $0xc48] sm:$0xf]  ;;  %v5703_v60 = vor.u32 %v6768_v50, %v5702_v48  ;;  %3635 = vmatpush.bf16.msrb.mxu0 %v5447_v56  ;;  %v4552_v48 = vld [vmem:[%s7244_s6 + $0x168] sm:$0xf0]  ;;  %v3406_v50 = vpop.f32.mrf.mxu2  ;;  %v3430_v7 = vpop.f32.mrf.mxu0 }
 0x155   : > { %v6832_v52 = vld [vmem:[%s7244_s6 + $0xc64] sm:$0xf0]  ;;  %v5320_v56 = vld [vmem:[%s7244_s6 + $0x768] sm:$0xf0]  ;;  %v3431_v13 = vadd.f32 %v3430_v7, %v3418_v29 }
 0x156   : > { %v6214_v53 = vld [vmem:[%s7244_s6 + $0xe48] sm:$0xf]  ;;  %v5959_v61 = vor.u32 %v6832_v52, %v5958_v51  ;;  %3648 = vmatpush.bf16.msrb.mxu1 %v5703_v60  ;;  %v5355_v51 = vor.u32 %v6676_v39, %v5352_v42  ;;  %v4808_v52 = vld [vmem:[%s7244_s6 + $0x368] sm:$0xf0] }
 0x157   : > { %v6896_v54 = vld [vmem:[%s7244_s6 + $0xe64] sm:$0xf0]  ;;  %v4811_v59 = vor.u32 %v6540_v49, %v4808_v52  ;;  %v6452_v25 = vld [vmem:[%s7244_s6 + $0x8c] sm:$0xf] }
 0x158   : > { %v5414_v57 = vld [vmem:[%s7244_s6 + $0x808] sm:$0xf]  ;;  %v6215_v2 = vor.u32 %v6896_v54, %v6214_v53  ;;  %3661 = vmatpush.bf16.msrb.mxu2 %v5959_v61  ;;  %v6604_v53 = vld [vmem:[%s7244_s6 + $0x54c] sm:$0xf]  ;;  %v3443_v14 = vpop.f32.mrf.mxu1 }
 0x159   : > { %v6696_v58 = vld [vmem:[%s7244_s6 + $0x824] sm:$0xf0]  ;;  %v5064_v54 = vld [vmem:[%s7244_s6 + $0x568] sm:$0xf0]  ;;  %v3444_v21 = vadd.f32 %v3443_v14, %v3431_v13 }
 0x15a   : > { %v5670_v62 = vld [vmem:[%s7244_s6 + $0xa08] sm:$0xf]  ;;  %v5415_v10 = vor.u32 %v6696_v58, %v5414_v57  ;;  %3674 = vmatpush.bf16.msrb.mxu3 %v6215_v2  ;;  %v4555_v57 = vor.u32 %v6476_v47, %v4552_v48  ;;  %v3419_v58 = vpop.f32.mrf.mxu3  ;;  %v5067_v60 = vor.u32 %v6604_v53, %v5064_v54  ;;  %v6468_v61 = vld [vmem:[%s7244_s6 + $0x10c] sm:$0xf] }
 0x15b   : > { %v6760_v63 = vld [vmem:[%s7244_s6 + $0xa24] sm:$0xf0]  ;;  %v6596_v2 = vld [vmem:[%s7244_s6 + $0x50c] sm:$0xf] }
 0x15c   : > { %v5926_v0 = vld [vmem:[%s7244_s6 + $0xc08] sm:$0xf]  ;;  %v5671_v15 = vor.u32 %v6760_v63, %v5670_v62  ;;  %3636 = vmatpush.bf16.msrb.mxu0 %v5415_v10  ;;  %v4520_v62 = vld [vmem:[%s7244_s6 + $0x128] sm:$0xf0]  ;;  %v3456_v30 = vpop.f32.mrf.mxu2  ;;  %v3432_v47 = vpop.f32.mrf.mxu0 }
 0x15d   : > { %v6824_v3 = vld [vmem:[%s7244_s6 + $0xc24] sm:$0xf0]  ;;  %v6532_v63 = vld [vmem:[%s7244_s6 + $0x30c] sm:$0xf]  ;;  %v4523_v6 = vor.u32 %v6468_v61, %v4520_v62  ;;  %v3457_v38 = vadd.f32 %v3456_v30, %v3444_v21 }
 0x15e   : > { %v6182_v4 = vld [vmem:[%s7244_s6 + $0xe08] sm:$0xf]  ;;  %v5927_v16 = vor.u32 %v6824_v3, %v5926_v0  ;;  %3649 = vmatpush.bf16.msrb.mxu1 %v5671_v15  ;;  %v5323_v0 = vor.u32 %v6668_v55, %v5320_v56  ;;  %v5032_v3 = vld [vmem:[%s7244_s6 + $0x528] sm:$0xf0]  ;;  %v4779_v8 = vor.u32 %v6532_v63, %v4776_v1 }
 0x15f   : > { %v6888_v5 = vld [vmem:[%s7244_s6 + $0xe24] sm:$0xf0]  ;;  %3637 = vmatmul.bf16.vlgmr.msrb.gmra.mxu0 %v7421_v40  ;;  %v5035_v9 = vor.u32 %v6596_v2, %v5032_v3  ;;  %v6460_v10 = vld [vmem:[%s7244_s6 + $0xcc] sm:$0xf] }
 0x160   : > { %v6183_v19 = vor.u32 %v6888_v5, %v6182_v4  ;;  %3662 = vmatpush.bf16.msrb.mxu2 %v5927_v16  ;;  %3681 = vmatpush.bf16.msra.mxu0 %v4619_v20  ;;  %v6660_v4 = vld [vmem:[%s7244_s6 + $0x70c] sm:$0xf]  ;;  %v3445_v53 = vpop.f32.mrf.mxu1 }
 0x161   : > { %3650 = vmatmul.bf16.vlgmr.msrb.gmra.mxu1 %v7425_v43  ;;  %v5288_v5 = vld [vmem:[%s7244_s6 + $0x728] sm:$0xf0] }
 0x162   : > { %3675 = vmatpush.bf16.msrb.mxu3 %v6183_v19  ;;  %3694 = vmatpush.bf16.msra.mxu1 %v4875_v22  ;;  %v5291_v15 = vor.u32 %v6660_v4, %v5288_v5  ;;  %v4744_v16 = vld [vmem:[%s7244_s6 + $0x2e8] sm:$0xf0]  ;;  %v4491_v22 = vor.u32 %v6460_v10, %v4488_v11  ;;  %v3469_v39 = vpop.f32.mrf.mxu3 }
 0x163   : > { %3663 = vmatmul.bf16.vlgmr.msrb.gmra.mxu2 %v7417_v37  ;;  %v6652_v19 = vld [vmem:[%s7244_s6 + $0x6cc] sm:$0xf] }
 0x164   : > { %3707 = vmatpush.bf16.msra.mxu2 %v5131_v23  ;;  %3682 = vmatpush.bf16.msra.mxu0 %v4587_v44  ;;  %v5256_v20 = vld [vmem:[%s7244_s6 + $0x6e8] sm:$0xf0]  ;;  %v4747_v23 = vor.u32 %v6524_v12, %v4744_v16  ;;  %v3458_v4 = vpop.f32.mrf.mxu2 }
 0x165   : > { %3676 = vmatmul.bf16.vlgmr.msrb.gmra.mxu3 %v7423_v41  ;;  %v4456_v28 = vld [vmem:[%s7244_s6 + $0xa8] sm:$0xf0]  ;;  %v3482_v4 = vpop.f32.mrf.mxu0 }
 0x166   : > { %3720 = vmatpush.bf16.msra.mxu3 %v5387_v31  ;;  %3695 = vmatpush.bf16.msra.mxu1 %v4843_v45  ;;  %v6516_v29 = vld [vmem:[%s7244_s6 + $0x28c] sm:$0xf]  ;;  %v5259_v31 = vor.u32 %v6652_v19, %v5256_v20  ;;  %v4459_v45 = vor.u32 %v6452_v25, %v4456_v28 }
 0x167   : > { %v4712_v34 = vld [vmem:[%s7244_s6 + $0x2a8] sm:$0xf0] }
 0x168   : > { %3708 = vmatpush.bf16.msra.mxu2 %v5099_v46  ;;  %3683 = vmatpush.bf16.msra.mxu0 %v4555_v57  ;;  %v6580_v35 = vld [vmem:[%s7244_s6 + $0x48c] sm:$0xf]  ;;  %v7735_v46 = vadd.f32 %v3469_v39, %v3457_v38  ;;  %v4715_v48 = vor.u32 %v6516_v29, %v4712_v34 }
 0x169   : > { %v4968_v36 = vld [vmem:[%s7244_s6 + $0x4a8] sm:$0xf0] }
 0x16a   : > { %3721 = vmatpush.bf16.msra.mxu3 %v5355_v51  ;;  %3696 = vmatpush.bf16.msra.mxu1 %v4811_v59  ;;  %v6644_v42 = vld [vmem:[%s7244_s6 + $0x68c] sm:$0xf]  ;;  %v4971_v49 = vor.u32 %v6580_v35, %v4968_v36 }
 0x16b   : > { %v5224_v44 = vld [vmem:[%s7244_s6 + $0x6a8] sm:$0xf0] }
 0x16c   : > { %3709 = vmatpush.bf16.msra.mxu2 %v5067_v60  ;;  %3684 = vmatpush.bf16.msra.mxu0 %v4523_v6  ;;  %v6444_v50 = vld [vmem:[%s7244_s6 + $0x4c] sm:$0xf]  ;;  %v5227_v54 = vor.u32 %v6644_v42, %v5224_v44 }
 0x16d   : > { %v4424_v51 = vld [vmem:[%s7244_s6 + $0x68] sm:$0xf0] }
 0x16e   : > { %3722 = vmatpush.bf16.msra.mxu3 %v5323_v0  ;;  %3697 = vmatpush.bf16.msra.mxu1 %v4779_v8  ;;  %v6508_v52 = vld [vmem:[%s7244_s6 + $0x24c] sm:$0xf]  ;;  %v4427_v60 = vor.u32 %v6444_v50, %v4424_v51 }
 0x16f   : > { %v4680_v55 = vld [vmem:[%s7244_s6 + $0x268] sm:$0xf0] }
 0x170   : > { %3710 = vmatpush.bf16.msra.mxu2 %v5035_v9  ;;  %3685 = vmatpush.bf16.msra.mxu0 %v4491_v22  ;;  %v6572_v56 = vld [vmem:[%s7244_s6 + $0x44c] sm:$0xf]  ;;  %v4683_v63 = vor.u32 %v6508_v52, %v4680_v55  ;;  %v3471_v9 = vpop.f32.mrf.mxu3 }
 0x171   : > { %v4936_v57 = vld [vmem:[%s7244_s6 + $0x468] sm:$0xf0] }
 0x172   : > { %3723 = vmatpush.bf16.msra.mxu3 %v5291_v15  ;;  %3698 = vmatpush.bf16.msra.mxu1 %v4747_v23  ;;  %v6636_v58 = vld [vmem:[%s7244_s6 + $0x64c] sm:$0xf]  ;;  %v4939_v0 = vor.u32 %v6572_v56, %v4936_v57 }
 0x173   : > { %v5192_v59 = vld [vmem:[%s7244_s6 + $0x668] sm:$0xf0] }
 0x174   : > { %3711 = vmatpush.bf16.msra.mxu2 %v5003_v24  ;;  %3686 = vmatpush.bf16.msra.mxu0 %v4459_v45  ;;  %v6436_v61 = vld [vmem:[%s7244_s6 + $0xc] sm:$0xf]  ;;  %v5195_v5 = vor.u32 %v6636_v58, %v5192_v59 }
 0x175   : > { %v4392_v62 = vld [vmem:[%s7244_s6 + $0x28] sm:$0xf0] }
 0x176   : > { %3724 = vmatpush.bf16.msra.mxu3 %v5259_v31  ;;  %3699 = vmatpush.bf16.msra.mxu1 %v4715_v48  ;;  %v6500_v1 = vld [vmem:[%s7244_s6 + $0x20c] sm:$0xf]  ;;  %v4395_v13 = vor.u32 %v6436_v61, %v4392_v62 }
 0x177   : > { %v4648_v2 = vld [vmem:[%s7244_s6 + $0x228] sm:$0xf0] }
 0x178   : > { %3712 = vmatpush.bf16.msra.mxu2 %v4971_v49  ;;  %v6564_v3 = vld [vmem:[%s7244_s6 + $0x40c] sm:$0xf]  ;;  %3687 = vmatpush.bf16.msra.mxu0 %v4427_v60  ;;  %v4651_v17 = vor.u32 %v6500_v1, %v4648_v2 }
 0x179   : > { %v4904_v6 = vld [vmem:[%s7244_s6 + $0x428] sm:$0xf0] }
 0x17a   : > { %3725 = vmatpush.bf16.msra.mxu3 %v5227_v54  ;;  %v6628_v7 = vld [vmem:[%s7244_s6 + $0x60c] sm:$0xf]  ;;  %3700 = vmatpush.bf16.msra.mxu1 %v4683_v63  ;;  %v4907_v18 = vor.u32 %v6564_v3, %v4904_v6 }
 0x17b   : > { %v5160_v8 = vld [vmem:[%s7244_s6 + $0x628] sm:$0xf0] }
 0x17c   : > { %v6748_v10 = vld [vmem:[%s7244_s6 + $0x9cc] sm:$0xf]  ;;  %3713 = vmatpush.bf16.msra.mxu2 %v4939_v0  ;;  %v5163_v21 = vor.u32 %v6628_v7, %v5160_v8  ;;  %3688 = vmatpush.bf16.msra.mxu0 %v4395_v13 }
 0x17d   : > { %v5640_v11 = vld [vmem:[%s7244_s6 + $0x9e8] sm:$0xf0] }
 0x17e   : > { %v6812_v12 = vld [vmem:[%s7244_s6 + $0xbcc] sm:$0xf]  ;;  %3726 = vmatpush.bf16.msra.mxu3 %v5195_v5  ;;  %v5643_v22 = vor.u32 %v6748_v10, %v5640_v11  ;;  %3701 = vmatpush.bf16.msra.mxu1 %v4651_v17  ;;  %v3495_v10 = vpop.f32.mrf.mxu1 }
 0x17f   : > { %v5896_v14 = vld [vmem:[%s7244_s6 + $0xbe8] sm:$0xf0]  ;;  %3689 = vmatmul.bf16.vlgmr.msra.gmra.mxu0 %v7366_v27 }
 0x180   : > { %v6876_v15 = vld [vmem:[%s7244_s6 + $0xdcc] sm:$0xf]  ;;  %v5899_v23 = vor.u32 %v6812_v12, %v5896_v14  ;;  %3714 = vmatpush.bf16.msra.mxu2 %v4907_v18  ;;  %3733 = vmatpush.bf16.msrb.mxu0 %v5643_v22 }
 0x181   : > { %v6152_v16 = vld [vmem:[%s7244_s6 + $0xde8] sm:$0xf0]  ;;  %3702 = vmatmul.bf16.vlgmr.msra.gmra.mxu1 %v7372_v33 }
 0x182   : > { %v6940_v19 = vld [vmem:[%s7244_s6 + $0xfcc] sm:$0xf]  ;;  %v6155_v24 = vor.u32 %v6876_v15, %v6152_v16  ;;  %3727 = vmatpush.bf16.msra.mxu3 %v5163_v21  ;;  %3746 = vmatpush.bf16.msrb.mxu1 %v5899_v23  ;;  %v3496_v15 = vadd.f32 %v3495_v10, %v3482_v4 }
 0x183   : > { %v6408_v20 = vld [vmem:[%s7244_s6 + $0xfe8] sm:$0xf0]  ;;  %3715 = vmatmul.bf16.vlgmr.msra.gmra.mxu2 %v7364_v26 }
 0x184   : > { %v6740_v25 = vld [vmem:[%s7244_s6 + $0x98c] sm:$0xf]  ;;  %v6411_v30 = vor.u32 %v6940_v19, %v6408_v20  ;;  %3759 = vmatpush.bf16.msrb.mxu2 %v6155_v24  ;;  %v3508_v24 = vpop.f32.mrf.mxu2 }
 0x185   : > { %v5608_v28 = vld [vmem:[%s7244_s6 + $0x9a8] sm:$0xf0]  ;;  %3728 = vmatmul.bf16.vlgmr.msra.gmra.mxu3 %v7370_v32 }
 0x186   : > { %v6804_v29 = vld [vmem:[%s7244_s6 + $0xb8c] sm:$0xf]  ;;  %v5611_v39 = vor.u32 %v6740_v25, %v5608_v28  ;;  %3772 = vmatpush.bf16.msrb.mxu3 %v6411_v30 }
 0x187   : > { %v5864_v31 = vld [vmem:[%s7244_s6 + $0xba8] sm:$0xf0] }
 0x188   : > { %v6868_v34 = vld [vmem:[%s7244_s6 + $0xd8c] sm:$0xf]  ;;  %v5867_v42 = vor.u32 %v6804_v29, %v5864_v31  ;;  %3734 = vmatpush.bf16.msrb.mxu0 %v5611_v39  ;;  %v3509_v31 = vadd.f32 %v3508_v24, %v3496_v15  ;;  %v4846_v24 = vld [vmem:[%s7244_s6 + $0x390] sm:$0xf] }
 0x189   : > { %v6120_v35 = vld [vmem:[%s7244_s6 + $0xda8] sm:$0xf0] }
 0x18a   : > { %v6932_v36 = vld [vmem:[%s7244_s6 + $0xf8c] sm:$0xf]  ;;  %v6123_v44 = vor.u32 %v6868_v34, %v6120_v35  ;;  %3747 = vmatpush.bf16.msrb.mxu1 %v5867_v42  ;;  %v3521_v34 = vpop.f32.mrf.mxu3  ;;  %v3484_v42 = vpop.f32.mrf.mxu0 }
 0x18b   : > { %v6376_v38 = vld [vmem:[%s7244_s6 + $0xfa8] sm:$0xf0]  ;;  %v7805_v39 = vadd.f32 %v3521_v34, %v3509_v31  ;;  %v5358_v31 = vld [vmem:[%s7244_s6 + $0x790] sm:$0xf] }
 0x18c   : > { %v6732_v45 = vld [vmem:[%s7244_s6 + $0x94c] sm:$0xf]  ;;  %v6379_v49 = vor.u32 %v6932_v36, %v6376_v38  ;;  %3760 = vmatpush.bf16.msrb.mxu2 %v6123_v44  ;;  %v6681_v34 = vld [vmem:[%s7244_s6 + $0x7ac] sm:$0xf0] }
 0x18d   : > { %v5576_v47 = vld [vmem:[%s7244_s6 + $0x968] sm:$0xf0]  ;;  %v4558_v42 = vld [vmem:[%s7244_s6 + $0x150] sm:$0xf] }
 0x18e   : > { %v6796_v48 = vld [vmem:[%s7244_s6 + $0xb4c] sm:$0xf]  ;;  %v5579_v55 = vor.u32 %v6732_v45, %v5576_v47  ;;  %3773 = vmatpush.bf16.msrb.mxu3 %v6379_v49 }
 0x18f   : > { %v5832_v50 = vld [vmem:[%s7244_s6 + $0xb68] sm:$0xf0] }
 0x190   : > { %v6860_v51 = vld [vmem:[%s7244_s6 + $0xd4c] sm:$0xf]  ;;  %v5835_v56 = vor.u32 %v6796_v48, %v5832_v50  ;;  %3735 = vmatpush.bf16.msrb.mxu0 %v5579_v55  ;;  %v3497_v50 = vpop.f32.mrf.mxu1 }
 0x191   : > { %v6088_v52 = vld [vmem:[%s7244_s6 + $0xd68] sm:$0xf0]  ;;  %v6609_v50 = vld [vmem:[%s7244_s6 + $0x56c] sm:$0xf0] }
 0x192   : > { %v6924_v53 = vld [vmem:[%s7244_s6 + $0xf4c] sm:$0xf]  ;;  %v6091_v57 = vor.u32 %v6860_v51, %v6088_v52  ;;  %3748 = vmatpush.bf16.msrb.mxu1 %v5835_v56 }
 0x193   : > { %v6344_v54 = vld [vmem:[%s7244_s6 + $0xf68] sm:$0xf0] }
 0x194   : > { %v6724_v58 = vld [vmem:[%s7244_s6 + $0x90c] sm:$0xf]  ;;  %v6347_v61 = vor.u32 %v6924_v53, %v6344_v54  ;;  %3761 = vmatpush.bf16.msrb.mxu2 %v6091_v57 }
 0x195   : > { %v5544_v59 = vld [vmem:[%s7244_s6 + $0x928] sm:$0xf0] }
 0x196   : > { %v6788_v60 = vld [vmem:[%s7244_s6 + $0xb0c] sm:$0xf]  ;;  %v5547_v3 = vor.u32 %v6724_v58, %v5544_v59  ;;  %3774 = vmatpush.bf16.msrb.mxu3 %v6347_v61 }
 0x197   : > { %v5800_v62 = vld [vmem:[%s7244_s6 + $0xb28] sm:$0xf0] }
 0x198   : > { %v6852_v63 = vld [vmem:[%s7244_s6 + $0xd0c] sm:$0xf]  ;;  %v5803_v5 = vor.u32 %v6788_v60, %v5800_v62  ;;  %3736 = vmatpush.bf16.msrb.mxu0 %v5547_v3 }
 0x199   : > { %v6056_v0 = vld [vmem:[%s7244_s6 + $0xd28] sm:$0xf0] }
 0x19a   : > { %v6916_v1 = vld [vmem:[%s7244_s6 + $0xf0c] sm:$0xf]  ;;  %v6059_v6 = vor.u32 %v6852_v63, %v6056_v0  ;;  %3749 = vmatpush.bf16.msrb.mxu1 %v5803_v5 }
 0x19b   : > { %v6312_v2 = vld [vmem:[%s7244_s6 + $0xf28] sm:$0xf0] }
 0x19c   : > { %v6716_v7 = vld [vmem:[%s7244_s6 + $0x8cc] sm:$0xf]  ;;  %v6315_v11 = vor.u32 %v6916_v1, %v6312_v2  ;;  %3762 = vmatpush.bf16.msrb.mxu2 %v6059_v6  ;;  %v3510_v1 = vpop.f32.mrf.mxu2  ;;  %v3523_v6 = vpop.f32.mrf.mxu3 }
 0x19d   : > { %v5512_v8 = vld [vmem:[%s7244_s6 + $0x8e8] sm:$0xf0]  ;;  %v3547_v6 = vpop.f32.mrf.mxu1 }
 0x19e   : > { %v6780_v9 = vld [vmem:[%s7244_s6 + $0xacc] sm:$0xf]  ;;  %v5515_v18 = vor.u32 %v6716_v7, %v5512_v8  ;;  %3775 = vmatpush.bf16.msrb.mxu3 %v6315_v11  ;;  %v4622_v7 = vld [vmem:[%s7244_s6 + $0x1d0] sm:$0xf] }
 0x19f   : > { %v5768_v12 = vld [vmem:[%s7244_s6 + $0xae8] sm:$0xf0]  ;;  %v6497_v8 = vld [vmem:[%s7244_s6 + $0x1ec] sm:$0xf0] }
 0x1a0   : > { %v6844_v13 = vld [vmem:[%s7244_s6 + $0xccc] sm:$0xf]  ;;  %v5771_v19 = vor.u32 %v6780_v9, %v5768_v12  ;;  %3737 = vmatpush.bf16.msrb.mxu0 %v5515_v18  ;;  %v4878_v9 = vld [vmem:[%s7244_s6 + $0x3d0] sm:$0xf] }
 0x1a1   : > { %v6024_v14 = vld [vmem:[%s7244_s6 + $0xce8] sm:$0xf0]  ;;  %v6561_v11 = vld [vmem:[%s7244_s6 + $0x3ec] sm:$0xf0] }
 0x1a2   : > { %v6908_v16 = vld [vmem:[%s7244_s6 + $0xecc] sm:$0xf]  ;;  %v6027_v20 = vor.u32 %v6844_v13, %v6024_v14  ;;  %3750 = vmatpush.bf16.msrb.mxu1 %v5771_v19  ;;  %v5134_v12 = vld [vmem:[%s7244_s6 + $0x5d0] sm:$0xf]  ;;  %v4623_v19 = vor.u32 %v6497_v8, %v4622_v7 }
 0x1a3   : > { %v6280_v17 = vld [vmem:[%s7244_s6 + $0xee8] sm:$0xf0]  ;;  %v6625_v13 = vld [vmem:[%s7244_s6 + $0x5ec] sm:$0xf0] }
 0x1a4   : > { %v6708_v21 = vld [vmem:[%s7244_s6 + $0x88c] sm:$0xf]  ;;  %v6283_v25 = vor.u32 %v6908_v16, %v6280_v17  ;;  %3763 = vmatpush.bf16.msrb.mxu2 %v6027_v20  ;;  %v5390_v16 = vld [vmem:[%s7244_s6 + $0x7d0] sm:$0xf]  ;;  %v4879_v20 = vor.u32 %v6561_v11, %v4878_v9 }
 0x1a5   : > { %v5480_v22 = vld [vmem:[%s7244_s6 + $0x8a8] sm:$0xf0]  ;;  %v6689_v17 = vld [vmem:[%s7244_s6 + $0x7ec] sm:$0xf0] }
 0x1a6   : > { %v6772_v23 = vld [vmem:[%s7244_s6 + $0xa8c] sm:$0xf]  ;;  %v5483_v38 = vor.u32 %v6708_v21, %v5480_v22  ;;  %3776 = vmatpush.bf16.msrb.mxu3 %v6283_v25  ;;  %v5135_v21 = vor.u32 %v6625_v13, %v5134_v12  ;;  %v4590_v22 = vld [vmem:[%s7244_s6 + $0x190] sm:$0xf]  ;;  %v5391_v25 = vor.u32 %v6689_v17, %v5390_v16 }
 0x1a7   : > { %v5736_v28 = vld [vmem:[%s7244_s6 + $0xaa8] sm:$0xf0]  ;;  %v4494_v7 = vld [vmem:[%s7244_s6 + $0xd0] sm:$0xf] }
 0x1a8   : > { %v6836_v29 = vld [vmem:[%s7244_s6 + $0xc8c] sm:$0xf]  ;;  %v5739_v44 = vor.u32 %v6772_v23, %v5736_v28  ;;  %3738 = vmatpush.bf16.msrb.mxu0 %v5483_v38  ;;  %v6489_v23 = vld [vmem:[%s7244_s6 + $0x1ac] sm:$0xf0] }
 0x1a9   : > { %v5992_v30 = vld [vmem:[%s7244_s6 + $0xca8] sm:$0xf0]  ;;  %v6553_v28 = vld [vmem:[%s7244_s6 + $0x3ac] sm:$0xf0] }
 0x1aa   : > { %v6900_v35 = vld [vmem:[%s7244_s6 + $0xe8c] sm:$0xf]  ;;  %v5995_v45 = vor.u32 %v6836_v29, %v5992_v30  ;;  %3751 = vmatpush.bf16.msrb.mxu1 %v5739_v44  ;;  %v5102_v29 = vld [vmem:[%s7244_s6 + $0x590] sm:$0xf] }
 0x1ab   : > { %v6248_v36 = vld [vmem:[%s7244_s6 + $0xea8] sm:$0xf0]  ;;  %v6617_v30 = vld [vmem:[%s7244_s6 + $0x5ac] sm:$0xf0] }
 0x1ac   : > { %v6700_v47 = vld [vmem:[%s7244_s6 + $0x84c] sm:$0xf]  ;;  %v6251_v51 = vor.u32 %v6900_v35, %v6248_v36  ;;  %3764 = vmatpush.bf16.msrb.mxu2 %v5995_v45  ;;  %v4591_v35 = vor.u32 %v6489_v23, %v4590_v22  ;;  %v4847_v36 = vor.u32 %v6553_v28, %v4846_v24  ;;  %v5103_v38 = vor.u32 %v6617_v30, %v5102_v29  ;;  %v6481_v44 = vld [vmem:[%s7244_s6 + $0x16c] sm:$0xf0] }
 0x1ad   : > { %v5448_v48 = vld [vmem:[%s7244_s6 + $0x868] sm:$0xf0]  ;;  %v4814_v45 = vld [vmem:[%s7244_s6 + $0x350] sm:$0xf] }
 0x1ae   : > { %v6764_v49 = vld [vmem:[%s7244_s6 + $0xa4c] sm:$0xf]  ;;  %v5451_v57 = vor.u32 %v6700_v47, %v5448_v48  ;;  %3777 = vmatpush.bf16.msrb.mxu3 %v6251_v51  ;;  %v5359_v47 = vor.u32 %v6681_v34, %v5358_v31  ;;  %v6545_v48 = vld [vmem:[%s7244_s6 + $0x36c] sm:$0xf0] }
 0x1af   : > { %v5704_v52 = vld [vmem:[%s7244_s6 + $0xa68] sm:$0xf0]  ;;  %v5326_v51 = vld [vmem:[%s7244_s6 + $0x750] sm:$0xf] }
 0x1b0   : > { %v6828_v53 = vld [vmem:[%s7244_s6 + $0xc4c] sm:$0xf]  ;;  %v5707_v60 = vor.u32 %v6764_v49, %v5704_v52  ;;  %3739 = vmatpush.bf16.msrb.mxu0 %v5451_v57  ;;  %v5070_v49 = vld [vmem:[%s7244_s6 + $0x550] sm:$0xf] }
 0x1b1   : > { %v5960_v54 = vld [vmem:[%s7244_s6 + $0xc68] sm:$0xf0]  ;;  %v6673_v52 = vld [vmem:[%s7244_s6 + $0x76c] sm:$0xf0] }
 0x1b2   : > { %v6892_v55 = vld [vmem:[%s7244_s6 + $0xe4c] sm:$0xf]  ;;  %v5963_v61 = vor.u32 %v6828_v53, %v5960_v54  ;;  %3752 = vmatpush.bf16.msrb.mxu1 %v5707_v60  ;;  %v4559_v53 = vor.u32 %v6481_v44, %v4558_v42  ;;  %v4815_v54 = vor.u32 %v6545_v48, %v4814_v45  ;;  %v6473_v57 = vld [vmem:[%s7244_s6 + $0x12c] sm:$0xf0] }
 0x1b3   : > { %v6216_v56 = vld [vmem:[%s7244_s6 + $0xe68] sm:$0xf0]  ;;  %v6537_v60 = vld [vmem:[%s7244_s6 + $0x32c] sm:$0xf0] }
 0x1b4   : > { %v6692_v58 = vld [vmem:[%s7244_s6 + $0x80c] sm:$0xf]  ;;  %v6219_v2 = vor.u32 %v6892_v55, %v6216_v56  ;;  %3765 = vmatpush.bf16.msrb.mxu2 %v5963_v61  ;;  %v5071_v55 = vor.u32 %v6609_v50, %v5070_v49  ;;  %v4526_v56 = vld [vmem:[%s7244_s6 + $0x110] sm:$0xf]  ;;  %v3549_v50 = vpop.f32.mrf.mxu1 }
 0x1b5   : > { %v5416_v59 = vld [vmem:[%s7244_s6 + $0x828] sm:$0xf0]  ;;  %v5038_v61 = vld [vmem:[%s7244_s6 + $0x510] sm:$0xf]  ;;  %v4527_v1 = vor.u32 %v6473_v57, %v4526_v56 }
 0x1b6   : > { %v6756_v62 = vld [vmem:[%s7244_s6 + $0xa0c] sm:$0xf]  ;;  %v5419_v10 = vor.u32 %v6692_v58, %v5416_v59  ;;  %3778 = vmatpush.bf16.msrb.mxu3 %v6219_v2  ;;  %v4782_v58 = vld [vmem:[%s7244_s6 + $0x310] sm:$0xf]  ;;  %v5327_v59 = vor.u32 %v6673_v52, %v5326_v51  ;;  %v3534_v2 = vpop.f32.mrf.mxu0 }
 0x1b7   : > { %v5672_v63 = vld [vmem:[%s7244_s6 + $0xa28] sm:$0xf0]  ;;  %v6465_v8 = vld [vmem:[%s7244_s6 + $0xec] sm:$0xf0] }
 0x1b8   : > { %v6820_v0 = vld [vmem:[%s7244_s6 + $0xc0c] sm:$0xf]  ;;  %v5675_v14 = vor.u32 %v6756_v62, %v5672_v63  ;;  %3740 = vmatpush.bf16.msrb.mxu0 %v5419_v10  ;;  %v6601_v62 = vld [vmem:[%s7244_s6 + $0x52c] sm:$0xf0] }
 0x1b9   : > { %v5928_v3 = vld [vmem:[%s7244_s6 + $0xc28] sm:$0xf0]  ;;  %v5294_v63 = vld [vmem:[%s7244_s6 + $0x710] sm:$0xf] }
 0x1ba   : > { %v6884_v4 = vld [vmem:[%s7244_s6 + $0xe0c] sm:$0xf]  ;;  %v5931_v15 = vor.u32 %v6820_v0, %v5928_v3  ;;  %3753 = vmatpush.bf16.msrb.mxu1 %v5675_v14  ;;  %v6665_v0 = vld [vmem:[%s7244_s6 + $0x72c] sm:$0xf0]  ;;  %v4783_v3 = vor.u32 %v6537_v60, %v4782_v58 }
 0x1bb   : > { %v6184_v5 = vld [vmem:[%s7244_s6 + $0xe28] sm:$0xf0]  ;;  %3741 = vmatmul.bf16.vlgmr.msrb.gmra.mxu0 %v7421_v40  ;;  %v4750_v9 = vld [vmem:[%s7244_s6 + $0x2d0] sm:$0xf]  ;;  %v5295_v10 = vor.u32 %v6665_v0, %v5294_v63 }
 0x1bc   : > { %v6187_v18 = vor.u32 %v6884_v4, %v6184_v5  ;;  %3766 = vmatpush.bf16.msrb.mxu2 %v5931_v15  ;;  %3785 = vmatpush.bf16.msra.mxu0 %v4623_v19  ;;  %v5039_v4 = vor.u32 %v6601_v62, %v5038_v61  ;;  %v3535_v5 = vadd.f32 %v3534_v2, %v7805_v39  ;;  %v6529_v11 = vld [vmem:[%s7244_s6 + $0x2ec] sm:$0xf0]  ;;  %v3560_v19 = vpop.f32.mrf.mxu2 }
 0x1bd   : > { %3754 = vmatmul.bf16.vlgmr.msrb.gmra.mxu1 %v7425_v43  ;;  %v5006_v12 = vld [vmem:[%s7244_s6 + $0x4d0] sm:$0xf]  ;;  %v4495_v39 = vor.u32 %v6465_v8, %v4494_v7  ;;  %v4751_v17 = vor.u32 %v6529_v11, %v4750_v9 }
 0x1be   : > { %3779 = vmatpush.bf16.msrb.mxu3 %v6187_v18  ;;  %3798 = vmatpush.bf16.msra.mxu1 %v4879_v20  ;;  %v6593_v13 = vld [vmem:[%s7244_s6 + $0x4ec] sm:$0xf0]  ;;  %v3548_v14 = vadd.f32 %v3547_v6, %v3535_v5  ;;  %v3536_v42 = vpop.f32.mrf.mxu0 }
 0x1bf   : > { %3767 = vmatmul.bf16.vlgmr.msrb.gmra.mxu2 %v7417_v37  ;;  %v5262_v15 = vld [vmem:[%s7244_s6 + $0x6d0] sm:$0xf]  ;;  %v5007_v18 = vor.u32 %v6593_v13, %v5006_v12 }
 0x1c0   : > { %3811 = vmatpush.bf16.msra.mxu2 %v5135_v21  ;;  %3786 = vmatpush.bf16.msra.mxu0 %v4591_v35  ;;  %v6657_v16 = vld [vmem:[%s7244_s6 + $0x6ec] sm:$0xf0]  ;;  %v3561_v24 = vadd.f32 %v3560_v19, %v3548_v14 }
 0x1c1   : > { %3780 = vmatmul.bf16.vlgmr.msrb.gmra.mxu3 %v7423_v41  ;;  %v4462_v20 = vld [vmem:[%s7244_s6 + $0x90] sm:$0xf]  ;;  %v5263_v23 = vor.u32 %v6657_v16, %v5262_v15 }
 0x1c2   : > { %3824 = vmatpush.bf16.msra.mxu3 %v5391_v25  ;;  %3799 = vmatpush.bf16.msra.mxu1 %v4847_v36  ;;  %v6457_v21 = vld [vmem:[%s7244_s6 + $0xac] sm:$0xf0]  ;;  %v3573_v25 = vpop.f32.mrf.mxu3 }
 0x1c3   : > { %v4718_v22 = vld [vmem:[%s7244_s6 + $0x290] sm:$0xf]  ;;  %v3574_v35 = vadd.f32 %v3573_v25, %v3561_v24  ;;  %v4463_v36 = vor.u32 %v6457_v21, %v4462_v20 }
 0x1c4   : > { %3812 = vmatpush.bf16.msra.mxu2 %v5103_v38  ;;  %3787 = vmatpush.bf16.msra.mxu0 %v4559_v53  ;;  %v6521_v28 = vld [vmem:[%s7244_s6 + $0x2ac] sm:$0xf0] }
 0x1c5   : > { %v4974_v29 = vld [vmem:[%s7244_s6 + $0x490] sm:$0xf]  ;;  %v4719_v44 = vor.u32 %v6521_v28, %v4718_v22  ;;  %v4209_v51 = vrot.slane %v3574_v35, 6 }
 0x1c6   : > { %3825 = vmatpush.bf16.msra.mxu3 %v5359_v47  ;;  %3800 = vmatpush.bf16.msra.mxu1 %v4815_v54  ;;  %v6585_v30 = vld [vmem:[%s7244_s6 + $0x4ac] sm:$0xf0] }
 0x1c7   : > { %v5230_v31 = vld [vmem:[%s7244_s6 + $0x690] sm:$0xf]  ;;  %v4975_v45 = vor.u32 %v6585_v30, %v4974_v29  ;;  %v7886_v57 = vsel %vm4215_vm0, %v7735_v46, %v4209_v51 }
 0x1c8   : > { %3813 = vmatpush.bf16.msra.mxu2 %v5071_v55  ;;  %3788 = vmatpush.bf16.msra.mxu0 %v4527_v1  ;;  %v6649_v34 = vld [vmem:[%s7244_s6 + $0x6ac] sm:$0xf0]  ;;  %v3562_v1 = vpop.f32.mrf.mxu2 }
 0x1c9   : > { %v4430_v38 = vld [vmem:[%s7244_s6 + $0x50] sm:$0xf]  ;;  %v5231_v52 = vor.u32 %v6649_v34, %v5230_v31  ;;  %v3586_v1 = vpop.f32.mrf.mxu0 }
 0x1ca   : > { %3826 = vmatpush.bf16.msra.mxu3 %v5327_v59  ;;  %3801 = vmatpush.bf16.msra.mxu1 %v4783_v3  ;;  %v6449_v47 = vld [vmem:[%s7244_s6 + $0x6c] sm:$0xf0]  ;;  %v3575_v6 = vpop.f32.mrf.mxu3 }
 0x1cb   : > { %v4686_v48 = vld [vmem:[%s7244_s6 + $0x250] sm:$0xf]  ;;  %v4431_v58 = vor.u32 %v6449_v47, %v4430_v38 }
 0x1cc   : > { %3814 = vmatpush.bf16.msra.mxu2 %v5039_v4  ;;  %3789 = vmatpush.bf16.msra.mxu0 %v4495_v39  ;;  %v6513_v49 = vld [vmem:[%s7244_s6 + $0x26c] sm:$0xf0] }
 0x1cd   : > { %v4942_v53 = vld [vmem:[%s7244_s6 + $0x450] sm:$0xf]  ;;  %v4687_v61 = vor.u32 %v6513_v49, %v4686_v48 }
 0x1ce   : > { %3827 = vmatpush.bf16.msra.mxu3 %v5295_v10  ;;  %3802 = vmatpush.bf16.msra.mxu1 %v4751_v17  ;;  %v6577_v54 = vld [vmem:[%s7244_s6 + $0x46c] sm:$0xf0] }
 0x1cf   : > { %v5198_v55 = vld [vmem:[%s7244_s6 + $0x650] sm:$0xf]  ;;  %v4943_v62 = vor.u32 %v6577_v54, %v4942_v53 }
 0x1d0   : > { %3815 = vmatpush.bf16.msra.mxu2 %v5007_v18  ;;  %v6641_v56 = vld [vmem:[%s7244_s6 + $0x66c] sm:$0xf0]  ;;  %3790 = vmatpush.bf16.msra.mxu0 %v4463_v36 }
 0x1d1   : > { %v4398_v59 = vld [vmem:[%s7244_s6 + $0x10] sm:$0xf]  ;;  %v5199_v2 = vor.u32 %v6641_v56, %v5198_v55 }
 0x1d2   : > { %3828 = vmatpush.bf16.msra.mxu3 %v5263_v23  ;;  %v6441_v60 = vld [vmem:[%s7244_s6 + $0x2c] sm:$0xf0]  ;;  %3803 = vmatpush.bf16.msra.mxu1 %v4719_v44 }
 0x1d3   : > { %v4654_v63 = vld [vmem:[%s7244_s6 + $0x210] sm:$0xf]  ;;  %v4399_v10 = vor.u32 %v6441_v60, %v4398_v59 }
 0x1d4   : > { %3816 = vmatpush.bf16.msra.mxu2 %v4975_v45  ;;  %v6505_v0 = vld [vmem:[%s7244_s6 + $0x22c] sm:$0xf0]  ;;  %3791 = vmatpush.bf16.msra.mxu0 %v4431_v58 }
 0x1d5   : > { %v4910_v46 = vld [vmem:[%s7244_s6 + $0x410] sm:$0xf]  ;;  %v4655_v14 = vor.u32 %v6505_v0, %v4654_v63 }
 0x1d6   : > { %3829 = vmatpush.bf16.msra.mxu3 %v5231_v52  ;;  %v6569_v3 = vld [vmem:[%s7244_s6 + $0x42c] sm:$0xf0]  ;;  %3804 = vmatpush.bf16.msra.mxu1 %v4687_v61 }
 0x1d7   : > { %v5166_v4 = vld [vmem:[%s7244_s6 + $0x610] sm:$0xf]  ;;  %v4911_v15 = vor.u32 %v6569_v3, %v4910_v46 }
 0x1d8   : > { %v6633_v5 = vld [vmem:[%s7244_s6 + $0x62c] sm:$0xf0]  ;;  %3817 = vmatpush.bf16.msra.mxu2 %v4943_v62  ;;  %3792 = vmatpush.bf16.msra.mxu0 %v4399_v10 }
 0x1d9   : > { %v5646_v7 = vld [vmem:[%s7244_s6 + $0x9d0] sm:$0xf]  ;;  %v5167_v17 = vor.u32 %v6633_v5, %v5166_v4 }
 0x1da   : > { %v6753_v8 = vld [vmem:[%s7244_s6 + $0x9ec] sm:$0xf0]  ;;  %3830 = vmatpush.bf16.msra.mxu3 %v5199_v2  ;;  %3805 = vmatpush.bf16.msra.mxu1 %v4655_v14 }
 0x1db   : > { %v5902_v9 = vld [vmem:[%s7244_s6 + $0xbd0] sm:$0xf]  ;;  %v5647_v18 = vor.u32 %v6753_v8, %v5646_v7  ;;  %3793 = vmatmul.bf16.vlgmr.msra.gmra.mxu0 %v7366_v27  ;;  %v3599_v7 = vpop.f32.mrf.mxu1 }
 0x1dc   : > { %v6817_v11 = vld [vmem:[%s7244_s6 + $0xbec] sm:$0xf0]  ;;  %3818 = vmatpush.bf16.msra.mxu2 %v4911_v15 }
 0x1dd   : > { %v6158_v12 = vld [vmem:[%s7244_s6 + $0xdd0] sm:$0xf]  ;;  %v5903_v19 = vor.u32 %v6817_v11, %v5902_v9  ;;  %3837 = vmatpush.bf16.msrb.mxu0 %v5647_v18  ;;  %3806 = vmatmul.bf16.vlgmr.msra.gmra.mxu1 %v7372_v33 }
 0x1de   : > { %v6881_v13 = vld [vmem:[%s7244_s6 + $0xdec] sm:$0xf0]  ;;  %3831 = vmatpush.bf16.msra.mxu3 %v5167_v17 }
 0x1df   : > { %v6414_v16 = vld [vmem:[%s7244_s6 + $0xfd0] sm:$0xf]  ;;  %v6159_v20 = vor.u32 %v6881_v13, %v6158_v12  ;;  %3850 = vmatpush.bf16.msrb.mxu1 %v5903_v19  ;;  %3819 = vmatmul.bf16.vlgmr.msra.gmra.mxu2 %v7364_v26  ;;  %v3600_v12 = vadd.f32 %v3599_v7, %v3586_v1 }
 0x1e0   : > { %v6945_v39 = vld [vmem:[%s7244_s6 + $0xfec] sm:$0xf0] }
 0x1e1   : > { %v5614_v21 = vld [vmem:[%s7244_s6 + $0x990] sm:$0xf]  ;;  %v6415_v24 = vor.u32 %v6945_v39, %v6414_v16  ;;  %3863 = vmatpush.bf16.msrb.mxu2 %v6159_v20  ;;  %3832 = vmatmul.bf16.vlgmr.msra.gmra.mxu3 %v7370_v32  ;;  %v3612_v20 = vpop.f32.mrf.mxu2 }
 0x1e2   : > { %v6745_v22 = vld [vmem:[%s7244_s6 + $0x9ac] sm:$0xf0] }
 0x1e3   : > { %v5870_v23 = vld [vmem:[%s7244_s6 + $0xb90] sm:$0xf]  ;;  %v5615_v34 = vor.u32 %v6745_v22, %v5614_v21  ;;  %3876 = vmatpush.bf16.msrb.mxu3 %v6415_v24 }
 0x1e4   : > { %v6809_v25 = vld [vmem:[%s7244_s6 + $0xbac] sm:$0xf0] }
 0x1e5   : > { %v6126_v28 = vld [vmem:[%s7244_s6 + $0xd90] sm:$0xf]  ;;  %v5871_v35 = vor.u32 %v6809_v25, %v5870_v23  ;;  %3838 = vmatpush.bf16.msrb.mxu0 %v5615_v34  ;;  %v3613_v25 = vadd.f32 %v3612_v20, %v3600_v12  ;;  %v6549_v20 = vld [vmem:[%s7244_s6 + $0x394] sm:$0xf] }
 0x1e6   : > { %v6873_v29 = vld [vmem:[%s7244_s6 + $0xdac] sm:$0xf0] }
 0x1e7   : > { %v6382_v30 = vld [vmem:[%s7244_s6 + $0xf90] sm:$0xf]  ;;  %v6127_v36 = vor.u32 %v6873_v29, %v6126_v28  ;;  %3851 = vmatpush.bf16.msrb.mxu1 %v5871_v35  ;;  %v3625_v28 = vpop.f32.mrf.mxu3  ;;  %v3588_v35 = vpop.f32.mrf.mxu0 }
 0x1e8   : > { %v6937_v31 = vld [vmem:[%s7244_s6 + $0xfac] sm:$0xf0]  ;;  %v7948_v34 = vadd.f32 %v3625_v28, %v3613_v25  ;;  %v6677_v25 = vld [vmem:[%s7244_s6 + $0x794] sm:$0xf] }
 0x1e9   : > { %v5582_v38 = vld [vmem:[%s7244_s6 + $0x950] sm:$0xf]  ;;  %v6383_v45 = vor.u32 %v6937_v31, %v6382_v30  ;;  %3864 = vmatpush.bf16.msrb.mxu2 %v6127_v36  ;;  %v5360_v28 = vld [vmem:[%s7244_s6 + $0x7b0] sm:$0xf0] }
 0x1ea   : > { %v6737_v42 = vld [vmem:[%s7244_s6 + $0x96c] sm:$0xf0]  ;;  %v6477_v35 = vld [vmem:[%s7244_s6 + $0x154] sm:$0xf] }
 0x1eb   : > { %v5838_v44 = vld [vmem:[%s7244_s6 + $0xb50] sm:$0xf]  ;;  %v5583_v52 = vor.u32 %v6737_v42, %v5582_v38  ;;  %3877 = vmatpush.bf16.msrb.mxu3 %v6383_v45 }
 0x1ec   : > { %v6801_v47 = vld [vmem:[%s7244_s6 + $0xb6c] sm:$0xf0] }
 0x1ed   : > { %v6094_v48 = vld [vmem:[%s7244_s6 + $0xd50] sm:$0xf]  ;;  %v5839_v53 = vor.u32 %v6801_v47, %v5838_v44  ;;  %3839 = vmatpush.bf16.msrb.mxu0 %v5583_v52  ;;  %v3601_v47 = vpop.f32.mrf.mxu1 }
 0x1ee   : > { %v6865_v49 = vld [vmem:[%s7244_s6 + $0xd6c] sm:$0xf0]  ;;  %v5072_v47 = vld [vmem:[%s7244_s6 + $0x570] sm:$0xf0] }
 0x1ef   : > { %v6350_v50 = vld [vmem:[%s7244_s6 + $0xf50] sm:$0xf]  ;;  %v6095_v54 = vor.u32 %v6865_v49, %v6094_v48  ;;  %3852 = vmatpush.bf16.msrb.mxu1 %v5839_v53 }
 0x1f0   : > { %v6929_v51 = vld [vmem:[%s7244_s6 + $0xf6c] sm:$0xf0] }
 0x1f1   : > { %v5550_v55 = vld [vmem:[%s7244_s6 + $0x910] sm:$0xf]  ;;  %v6351_v59 = vor.u32 %v6929_v51, %v6350_v50  ;;  %3865 = vmatpush.bf16.msrb.mxu2 %v6095_v54 }
 0x1f2   : > { %v6729_v56 = vld [vmem:[%s7244_s6 + $0x92c] sm:$0xf0] }
 0x1f3   : > { %v5806_v58 = vld [vmem:[%s7244_s6 + $0xb10] sm:$0xf]  ;;  %v5551_v46 = vor.u32 %v6729_v56, %v5550_v55  ;;  %3878 = vmatpush.bf16.msrb.mxu3 %v6351_v59 }
 0x1f4   : > { %v6793_v60 = vld [vmem:[%s7244_s6 + $0xb2c] sm:$0xf0] }
 0x1f5   : > { %v6062_v61 = vld [vmem:[%s7244_s6 + $0xd10] sm:$0xf]  ;;  %v5807_v2 = vor.u32 %v6793_v60, %v5806_v58  ;;  %3840 = vmatpush.bf16.msrb.mxu0 %v5551_v46 }
 0x1f6   : > { %v6857_v62 = vld [vmem:[%s7244_s6 + $0xd2c] sm:$0xf0] }
 0x1f7   : > { %v6318_v63 = vld [vmem:[%s7244_s6 + $0xf10] sm:$0xf]  ;;  %v6063_v3 = vor.u32 %v6857_v62, %v6062_v61  ;;  %3853 = vmatpush.bf16.msrb.mxu1 %v5807_v2 }
 0x1f8   : > { %v6921_v0 = vld [vmem:[%s7244_s6 + $0xf2c] sm:$0xf0] }
 0x1f9   : > { %v5518_v4 = vld [vmem:[%s7244_s6 + $0x8d0] sm:$0xf]  ;;  %v6319_v8 = vor.u32 %v6921_v0, %v6318_v63  ;;  %3866 = vmatpush.bf16.msrb.mxu2 %v6063_v3  ;;  %v3614_v63 = vpop.f32.mrf.mxu2  ;;  %v3627_v3 = vpop.f32.mrf.mxu3 }
 0x1fa   : > { %v6721_v5 = vld [vmem:[%s7244_s6 + $0x8ec] sm:$0xf0]  ;;  %v4496_v3 = vld [vmem:[%s7244_s6 + $0xf0] sm:$0xf0] }
 0x1fb   : > { %v5774_v6 = vld [vmem:[%s7244_s6 + $0xad0] sm:$0xf]  ;;  %v5519_v15 = vor.u32 %v6721_v5, %v5518_v4  ;;  %3879 = vmatpush.bf16.msrb.mxu3 %v6319_v8  ;;  %v6493_v4 = vld [vmem:[%s7244_s6 + $0x1d4] sm:$0xf] }
 0x1fc   : > { %v6785_v9 = vld [vmem:[%s7244_s6 + $0xaec] sm:$0xf0]  ;;  %v4624_v5 = vld [vmem:[%s7244_s6 + $0x1f0] sm:$0xf0] }
 0x1fd   : > { %v6030_v10 = vld [vmem:[%s7244_s6 + $0xcd0] sm:$0xf]  ;;  %v5775_v16 = vor.u32 %v6785_v9, %v5774_v6  ;;  %3841 = vmatpush.bf16.msrb.mxu0 %v5519_v15  ;;  %v6557_v6 = vld [vmem:[%s7244_s6 + $0x3d4] sm:$0xf] }
 0x1fe   : > { %v6849_v11 = vld [vmem:[%s7244_s6 + $0xcec] sm:$0xf0]  ;;  %v4880_v8 = vld [vmem:[%s7244_s6 + $0x3f0] sm:$0xf0] }
 0x1ff   : > { %v6286_v13 = vld [vmem:[%s7244_s6 + $0xed0] sm:$0xf]  ;;  %v6031_v39 = vor.u32 %v6849_v11, %v6030_v10  ;;  %3854 = vmatpush.bf16.msrb.mxu1 %v5775_v16  ;;  %v6621_v9 = vld [vmem:[%s7244_s6 + $0x5d4] sm:$0xf]  ;;  %v4627_v16 = vor.u32 %v6493_v4, %v4624_v5  ;;  %v8007_v5 = vpop.f32.mrf.mxu1 }
 0x200   : > { %v6913_v14 = vld [vmem:[%s7244_s6 + $0xeec] sm:$0xf0]  ;;  %v5136_v10 = vld [vmem:[%s7244_s6 + $0x5f0] sm:$0xf0] }
 0x201   : > { %v5486_v17 = vld [vmem:[%s7244_s6 + $0x890] sm:$0xf]  ;;  %v6287_v21 = vor.u32 %v6913_v14, %v6286_v13  ;;  %3867 = vmatpush.bf16.msrb.mxu2 %v6031_v39  ;;  %v6685_v13 = vld [vmem:[%s7244_s6 + $0x7d4] sm:$0xf]  ;;  %v4883_v39 = vor.u32 %v6557_v6, %v4880_v8 }
 0x202   : > { %v6713_v18 = vld [vmem:[%s7244_s6 + $0x8ac] sm:$0xf0]  ;;  %v5392_v14 = vld [vmem:[%s7244_s6 + $0x7f0] sm:$0xf0] }
 0x203   : > { %v5742_v19 = vld [vmem:[%s7244_s6 + $0xa90] sm:$0xf]  ;;  %v5487_v31 = vor.u32 %v6713_v18, %v5486_v17  ;;  %3880 = vmatpush.bf16.msrb.mxu3 %v6287_v21  ;;  %v5139_v17 = vor.u32 %v6621_v9, %v5136_v10  ;;  %v6485_v18 = vld [vmem:[%s7244_s6 + $0x194] sm:$0xf]  ;;  %v5395_v21 = vor.u32 %v6685_v13, %v5392_v14 }
 0x204   : > { %v6777_v22 = vld [vmem:[%s7244_s6 + $0xaac] sm:$0xf0]  ;;  %v6525_v4 = vld [vmem:[%s7244_s6 + $0x2d4] sm:$0xf] }
 0x205   : > { %v5998_v23 = vld [vmem:[%s7244_s6 + $0xc90] sm:$0xf]  ;;  %v5743_v36 = vor.u32 %v6777_v22, %v5742_v19  ;;  %3842 = vmatpush.bf16.msrb.mxu0 %v5487_v31  ;;  %v4592_v19 = vld [vmem:[%s7244_s6 + $0x1b0] sm:$0xf0] }
 0x206   : > { %v6841_v24 = vld [vmem:[%s7244_s6 + $0xcac] sm:$0xf0]  ;;  %v4848_v22 = vld [vmem:[%s7244_s6 + $0x3b0] sm:$0xf0] }
 0x207   : > { %v6254_v29 = vld [vmem:[%s7244_s6 + $0xe90] sm:$0xf]  ;;  %v5999_v38 = vor.u32 %v6841_v24, %v5998_v23  ;;  %3855 = vmatpush.bf16.msrb.mxu1 %v5743_v36  ;;  %v6613_v23 = vld [vmem:[%s7244_s6 + $0x594] sm:$0xf] }
 0x208   : > { %v6905_v30 = vld [vmem:[%s7244_s6 + $0xeac] sm:$0xf0]  ;;  %v5104_v24 = vld [vmem:[%s7244_s6 + $0x5b0] sm:$0xf0] }
 0x209   : > { %v5454_v42 = vld [vmem:[%s7244_s6 + $0x850] sm:$0xf]  ;;  %v6255_v48 = vor.u32 %v6905_v30, %v6254_v29  ;;  %3868 = vmatpush.bf16.msrb.mxu2 %v5999_v38  ;;  %v4595_v29 = vor.u32 %v6485_v18, %v4592_v19  ;;  %v4851_v30 = vor.u32 %v6549_v20, %v4848_v22  ;;  %v5107_v31 = vor.u32 %v6613_v23, %v5104_v24  ;;  %v4560_v36 = vld [vmem:[%s7244_s6 + $0x170] sm:$0xf0]  ;;  %v8022_v22 = vpop.f32.mrf.mxu3 }
 0x20a   : > { %v6705_v44 = vld [vmem:[%s7244_s6 + $0x86c] sm:$0xf0]  ;;  %v6541_v38 = vld [vmem:[%s7244_s6 + $0x354] sm:$0xf] }
 0x20b   : > { %v5710_v45 = vld [vmem:[%s7244_s6 + $0xa50] sm:$0xf]  ;;  %v5455_v54 = vor.u32 %v6705_v44, %v5454_v42  ;;  %3881 = vmatpush.bf16.msrb.mxu3 %v6255_v48  ;;  %v5363_v42 = vor.u32 %v6677_v25, %v5360_v28  ;;  %v4816_v44 = vld [vmem:[%s7244_s6 + $0x370] sm:$0xf0] }
 0x20c   : > { %v6769_v49 = vld [vmem:[%s7244_s6 + $0xa6c] sm:$0xf0]  ;;  %v6669_v48 = vld [vmem:[%s7244_s6 + $0x754] sm:$0xf] }
 0x20d   : > { %v5966_v50 = vld [vmem:[%s7244_s6 + $0xc50] sm:$0xf]  ;;  %v5711_v58 = vor.u32 %v6769_v49, %v5710_v45  ;;  %3843 = vmatpush.bf16.msrb.mxu0 %v5455_v54  ;;  %v6605_v45 = vld [vmem:[%s7244_s6 + $0x554] sm:$0xf] }
 0x20e   : > { %v6833_v51 = vld [vmem:[%s7244_s6 + $0xc6c] sm:$0xf0]  ;;  %v5328_v49 = vld [vmem:[%s7244_s6 + $0x770] sm:$0xf0] }
 0x20f   : > { %v6222_v52 = vld [vmem:[%s7244_s6 + $0xe50] sm:$0xf]  ;;  %v5967_v59 = vor.u32 %v6833_v51, %v5966_v50  ;;  %3856 = vmatpush.bf16.msrb.mxu1 %v5711_v58  ;;  %v4563_v50 = vor.u32 %v6477_v35, %v4560_v36  ;;  %v4819_v51 = vor.u32 %v6541_v38, %v4816_v44  ;;  %v4528_v54 = vld [vmem:[%s7244_s6 + $0x130] sm:$0xf0]  ;;  %v3653_v38 = vpop.f32.mrf.mxu1 }
 0x210   : > { %v6897_v53 = vld [vmem:[%s7244_s6 + $0xe6c] sm:$0xf0]  ;;  %v4784_v58 = vld [vmem:[%s7244_s6 + $0x330] sm:$0xf0] }
 0x211   : > { %v5422_v55 = vld [vmem:[%s7244_s6 + $0x810] sm:$0xf]  ;;  %v6223_v0 = vor.u32 %v6897_v53, %v6222_v52  ;;  %3869 = vmatpush.bf16.msrb.mxu2 %v5967_v59  ;;  %v5075_v52 = vor.u32 %v6605_v45, %v5072_v47  ;;  %v6469_v53 = vld [vmem:[%s7244_s6 + $0x114] sm:$0xf] }
 0x212   : > { %v6697_v56 = vld [vmem:[%s7244_s6 + $0x82c] sm:$0xf0]  ;;  %v6597_v59 = vld [vmem:[%s7244_s6 + $0x514] sm:$0xf]  ;;  %v4531_v63 = vor.u32 %v6469_v53, %v4528_v54 }
 0x213   : > { %v5678_v60 = vld [vmem:[%s7244_s6 + $0xa10] sm:$0xf]  ;;  %v5423_v7 = vor.u32 %v6697_v56, %v5422_v55  ;;  %3882 = vmatpush.bf16.msrb.mxu3 %v6223_v0  ;;  %v6533_v55 = vld [vmem:[%s7244_s6 + $0x314] sm:$0xf]  ;;  %v5331_v56 = vor.u32 %v6669_v48, %v5328_v49  ;;  %v8002_v0 = vpop.f32.mrf.mxu0 }
 0x214   : > { %v6761_v61 = vld [vmem:[%s7244_s6 + $0xa2c] sm:$0xf0]  ;;  %v6589_v8 = vld [vmem:[%s7244_s6 + $0x4d4] sm:$0xf] }
 0x215   : > { %v5934_v62 = vld [vmem:[%s7244_s6 + $0xc10] sm:$0xf]  ;;  %v5679_v11 = vor.u32 %v6761_v61, %v5678_v60  ;;  %3844 = vmatpush.bf16.msrb.mxu0 %v5423_v7  ;;  %v5040_v60 = vld [vmem:[%s7244_s6 + $0x530] sm:$0xf0] }
 0x216   : > { %v6825_v46 = vld [vmem:[%s7244_s6 + $0xc2c] sm:$0xf0]  ;;  %v6661_v61 = vld [vmem:[%s7244_s6 + $0x714] sm:$0xf] }
 0x217   : > { %v6190_v1 = vld [vmem:[%s7244_s6 + $0xe10] sm:$0xf]  ;;  %v5935_v12 = vor.u32 %v6825_v46, %v5934_v62  ;;  %3857 = vmatpush.bf16.msrb.mxu1 %v5679_v11  ;;  %v5296_v62 = vld [vmem:[%s7244_s6 + $0x730] sm:$0xf0]  ;;  %v4787_v46 = vor.u32 %v6533_v55, %v4784_v58 }
 0x218   : > { %v6889_v2 = vld [vmem:[%s7244_s6 + $0xe2c] sm:$0xf0]  ;;  %3845 = vmatmul.bf16.vlgmr.msrb.gmra.mxu0 %v7421_v40  ;;  %v5299_v6 = vor.u32 %v6661_v61, %v5296_v62  ;;  %v4752_v7 = vld [vmem:[%s7244_s6 + $0x2f0] sm:$0xf0] }
 0x219   : > { %v6191_v15 = vor.u32 %v6889_v2, %v6190_v1  ;;  %3870 = vmatpush.bf16.msrb.mxu2 %v5935_v12  ;;  %3889 = vmatpush.bf16.msra.mxu0 %v4627_v16  ;;  %v5043_v1 = vor.u32 %v6597_v59, %v5040_v60  ;;  %v6461_v2 = vld [vmem:[%s7244_s6 + $0xd4] sm:$0xf]  ;;  %v4755_v13 = vor.u32 %v6525_v4, %v4752_v7 }
 0x21a   : > { %3858 = vmatmul.bf16.vlgmr.msrb.gmra.mxu1 %v7425_v43  ;;  %v5008_v9 = vld [vmem:[%s7244_s6 + $0x4f0] sm:$0xf0]  ;;  %v4499_v12 = vor.u32 %v6461_v2, %v4496_v3 }
 0x21b   : > { %3883 = vmatpush.bf16.msrb.mxu3 %v6191_v15  ;;  %3902 = vmatpush.bf16.msra.mxu1 %v4883_v39  ;;  %v6653_v10 = vld [vmem:[%s7244_s6 + $0x6d4] sm:$0xf]  ;;  %v5011_v14 = vor.u32 %v6589_v8, %v5008_v9  ;;  %v3640_v28 = vpop.f32.mrf.mxu0 }
 0x21c   : > { %3871 = vmatmul.bf16.vlgmr.msrb.gmra.mxu2 %v7417_v37  ;;  %v5264_v11 = vld [vmem:[%s7244_s6 + $0x6f0] sm:$0xf0] }
 0x21d   : > { %3915 = vmatpush.bf16.msra.mxu2 %v5139_v17  ;;  %3890 = vmatpush.bf16.msra.mxu0 %v4595_v29  ;;  %v6453_v15 = vld [vmem:[%s7244_s6 + $0x94] sm:$0xf]  ;;  %v8017_v17 = vpop.f32.mrf.mxu2  ;;  %v5267_v18 = vor.u32 %v6653_v10, %v5264_v11 }
 0x21e   : > { %3884 = vmatmul.bf16.vlgmr.msrb.gmra.mxu3 %v7423_v41  ;;  %v4464_v16 = vld [vmem:[%s7244_s6 + $0xb0] sm:$0xf0] }
 0x21f   : > { %3928 = vmatpush.bf16.msra.mxu3 %v5395_v21  ;;  %3903 = vmatpush.bf16.msra.mxu1 %v4851_v30  ;;  %v6517_v39 = vld [vmem:[%s7244_s6 + $0x294] sm:$0xf]  ;;  %v4467_v25 = vor.u32 %v6453_v15, %v4464_v16 }
 0x220   : > { %v4720_v19 = vld [vmem:[%s7244_s6 + $0x2b0] sm:$0xf0] }
 0x221   : > { %3916 = vmatpush.bf16.msra.mxu2 %v5107_v31  ;;  %3891 = vmatpush.bf16.msra.mxu0 %v4563_v50  ;;  %v6581_v20 = vld [vmem:[%s7244_s6 + $0x494] sm:$0xf]  ;;  %v4723_v29 = vor.u32 %v6517_v39, %v4720_v19 }
 0x222   : > { %v4976_v21 = vld [vmem:[%s7244_s6 + $0x4b0] sm:$0xf0] }
 0x223   : > { %3929 = vmatpush.bf16.msra.mxu3 %v5363_v42  ;;  %3904 = vmatpush.bf16.msra.mxu1 %v4819_v51  ;;  %v6645_v23 = vld [vmem:[%s7244_s6 + $0x694] sm:$0xf]  ;;  %v4979_v30 = vor.u32 %v6581_v20, %v4976_v21 }
 0x224   : > { %v5232_v24 = vld [vmem:[%s7244_s6 + $0x6b0] sm:$0xf0] }
 0x225   : > { %3917 = vmatpush.bf16.msra.mxu2 %v5075_v52  ;;  %3892 = vmatpush.bf16.msra.mxu0 %v4531_v63  ;;  %v6445_v31 = vld [vmem:[%s7244_s6 + $0x54] sm:$0xf]  ;;  %v5235_v42 = vor.u32 %v6645_v23, %v5232_v24  ;;  %v3666_v59 = vpop.f32.mrf.mxu2 }
 0x226   : > { %v4432_v35 = vld [vmem:[%s7244_s6 + $0x70] sm:$0xf0] }
 0x227   : > { %3930 = vmatpush.bf16.msra.mxu3 %v5331_v56  ;;  %3905 = vmatpush.bf16.msra.mxu1 %v4787_v46  ;;  %v6509_v36 = vld [vmem:[%s7244_s6 + $0x254] sm:$0xf]  ;;  %v4435_v50 = vor.u32 %v6445_v31, %v4432_v35  ;;  %v3679_v46 = vpop.f32.mrf.mxu3 }
 0x228   : > { %v4688_v44 = vld [vmem:[%s7244_s6 + $0x270] sm:$0xf0]  ;;  %v8078_v46 = vpop.f32.mrf.mxu0 }
 0x229   : > { %3918 = vmatpush.bf16.msra.mxu2 %v5043_v1  ;;  %3893 = vmatpush.bf16.msra.mxu0 %v4499_v12  ;;  %v6573_v45 = vld [vmem:[%s7244_s6 + $0x454] sm:$0xf]  ;;  %v4691_v53 = vor.u32 %v6509_v36, %v4688_v44 }
 0x22a   : > { %v4944_v47 = vld [vmem:[%s7244_s6 + $0x470] sm:$0xf0] }
 0x22b   : > { %3931 = vmatpush.bf16.msra.mxu3 %v5299_v6  ;;  %3906 = vmatpush.bf16.msra.mxu1 %v4755_v13  ;;  %v6637_v48 = vld [vmem:[%s7244_s6 + $0x654] sm:$0xf]  ;;  %v4947_v54 = vor.u32 %v6573_v45, %v4944_v47 }
 0x22c   : > { %v5200_v49 = vld [vmem:[%s7244_s6 + $0x670] sm:$0xf0] }
 0x22d   : > { %3919 = vmatpush.bf16.msra.mxu2 %v5011_v14  ;;  %3894 = vmatpush.bf16.msra.mxu0 %v4467_v25  ;;  %v6437_v51 = vld [vmem:[%s7244_s6 + $0x14] sm:$0xf]  ;;  %v5203_v60 = vor.u32 %v6637_v48, %v5200_v49 }
 0x22e   : > { %v4400_v52 = vld [vmem:[%s7244_s6 + $0x30] sm:$0xf0] }
 0x22f   : > { %3932 = vmatpush.bf16.msra.mxu3 %v5267_v18  ;;  %3907 = vmatpush.bf16.msra.mxu1 %v4723_v29  ;;  %v6501_v55 = vld [vmem:[%s7244_s6 + $0x214] sm:$0xf]  ;;  %v4403_v4 = vor.u32 %v6437_v51, %v4400_v52 }
 0x230   : > { %v4656_v56 = vld [vmem:[%s7244_s6 + $0x230] sm:$0xf0] }
 0x231   : > { %3920 = vmatpush.bf16.msra.mxu2 %v4979_v30  ;;  %v6565_v58 = vld [vmem:[%s7244_s6 + $0x414] sm:$0xf]  ;;  %3895 = vmatpush.bf16.msra.mxu0 %v4435_v50  ;;  %v4659_v9 = vor.u32 %v6501_v55, %v4656_v56 }
 0x232   : > { %v4912_v61 = vld [vmem:[%s7244_s6 + $0x430] sm:$0xf0] }
 0x233   : > { %3933 = vmatpush.bf16.msra.mxu3 %v5235_v42  ;;  %v6629_v62 = vld [vmem:[%s7244_s6 + $0x614] sm:$0xf]  ;;  %3908 = vmatpush.bf16.msra.mxu1 %v4691_v53  ;;  %v4915_v10 = vor.u32 %v6565_v58, %v4912_v61 }
 0x234   : > { %v5168_v63 = vld [vmem:[%s7244_s6 + $0x630] sm:$0xf0] }
 0x235   : > { %v6749_v1 = vld [vmem:[%s7244_s6 + $0x9d4] sm:$0xf]  ;;  %3921 = vmatpush.bf16.msra.mxu2 %v4947_v54  ;;  %v5171_v13 = vor.u32 %v6629_v62, %v5168_v63  ;;  %3896 = vmatpush.bf16.msra.mxu0 %v4403_v4 }
 0x236   : > { %v5648_v2 = vld [vmem:[%s7244_s6 + $0x9f0] sm:$0xf0] }
 0x237   : > { %v6813_v3 = vld [vmem:[%s7244_s6 + $0xbd4] sm:$0xf]  ;;  %3934 = vmatpush.bf16.msra.mxu3 %v5203_v60  ;;  %v5651_v14 = vor.u32 %v6749_v1, %v5648_v2  ;;  %3909 = vmatpush.bf16.msra.mxu1 %v4659_v9 }
 0x238   : > { %v5904_v6 = vld [vmem:[%s7244_s6 + $0xbf0] sm:$0xf0]  ;;  %3897 = vmatmul.bf16.vlgmr.msra.gmra.mxu0 %v7366_v27 }
 0x239   : > { %v6877_v7 = vld [vmem:[%s7244_s6 + $0xdd4] sm:$0xf]  ;;  %v5907_v15 = vor.u32 %v6813_v3, %v5904_v6  ;;  %3922 = vmatpush.bf16.msra.mxu2 %v4915_v10  ;;  %3941 = vmatpush.bf16.msrb.mxu0 %v5651_v14 }
 0x23a   : > { %v6160_v8 = vld [vmem:[%s7244_s6 + $0xdf0] sm:$0xf0]  ;;  %3910 = vmatmul.bf16.vlgmr.msra.gmra.mxu1 %v7372_v33 }
 0x23b   : > { %v6941_v11 = vld [vmem:[%s7244_s6 + $0xfd4] sm:$0xf]  ;;  %v6163_v16 = vor.u32 %v6877_v7, %v6160_v8  ;;  %3935 = vmatpush.bf16.msra.mxu3 %v5171_v13  ;;  %3954 = vmatpush.bf16.msrb.mxu1 %v5907_v15  ;;  %v8083_v7 = vpop.f32.mrf.mxu1 }
 0x23c   : > { %v6416_v12 = vld [vmem:[%s7244_s6 + $0xff0] sm:$0xf0]  ;;  %3923 = vmatmul.bf16.vlgmr.msra.gmra.mxu2 %v7364_v26 }
 0x23d   : > { %v6741_v39 = vld [vmem:[%s7244_s6 + $0x994] sm:$0xf]  ;;  %v6419_v20 = vor.u32 %v6941_v11, %v6416_v12  ;;  %3967 = vmatpush.bf16.msrb.mxu2 %v6163_v16 }
 0x23e   : > { %v5616_v18 = vld [vmem:[%s7244_s6 + $0x9b0] sm:$0xf0]  ;;  %3936 = vmatmul.bf16.vlgmr.msra.gmra.mxu3 %v7370_v32 }
 0x23f   : > { %v6805_v19 = vld [vmem:[%s7244_s6 + $0xb94] sm:$0xf]  ;;  %v5619_v29 = vor.u32 %v6741_v39, %v5616_v18  ;;  %3980 = vmatpush.bf16.msrb.mxu3 %v6419_v20  ;;  %v8093_v20 = vpop.f32.mrf.mxu2 }
 0x240   : > { %v5872_v21 = vld [vmem:[%s7244_s6 + $0xbb0] sm:$0xf0] }
 0x241   : > { %v6869_v23 = vld [vmem:[%s7244_s6 + $0xd94] sm:$0xf]  ;;  %v5875_v30 = vor.u32 %v6805_v19, %v5872_v21  ;;  %3942 = vmatpush.bf16.msrb.mxu0 %v5619_v29 }
 0x242   : > { %v6128_v24 = vld [vmem:[%s7244_s6 + $0xdb0] sm:$0xf0] }
 0x243   : > { %v6933_v25 = vld [vmem:[%s7244_s6 + $0xf94] sm:$0xf]  ;;  %v6131_v31 = vor.u32 %v6869_v23, %v6128_v24  ;;  %3955 = vmatpush.bf16.msrb.mxu1 %v5875_v30 }
 0x244   : > { %v6384_v28 = vld [vmem:[%s7244_s6 + $0xfb0] sm:$0xf0] }
 0x245   : > { %v6733_v35 = vld [vmem:[%s7244_s6 + $0x954] sm:$0xf]  ;;  %v6387_v42 = vor.u32 %v6933_v25, %v6384_v28  ;;  %3968 = vmatpush.bf16.msrb.mxu2 %v6131_v31  ;;  %v8098_v28 = vpop.f32.mrf.mxu3 }
 0x246   : > { %v5584_v36 = vld [vmem:[%s7244_s6 + $0x970] sm:$0xf0] }
 0x247   : > { %v6797_v38 = vld [vmem:[%s7244_s6 + $0xb54] sm:$0xf]  ;;  %v5587_v50 = vor.u32 %v6733_v35, %v5584_v36  ;;  %3981 = vmatpush.bf16.msrb.mxu3 %v6387_v42  ;;  %v3692_v35 = vpop.f32.mrf.mxu0 }
 0x248   : > { %v5840_v44 = vld [vmem:[%s7244_s6 + $0xb70] sm:$0xf0] }
 0x249   : > { %v6861_v45 = vld [vmem:[%s7244_s6 + $0xd54] sm:$0xf]  ;;  %v5843_v51 = vor.u32 %v6797_v38, %v5840_v44  ;;  %3943 = vmatpush.bf16.msrb.mxu0 %v5587_v50 }
 0x24a   : > { %v6096_v47 = vld [vmem:[%s7244_s6 + $0xd70] sm:$0xf0] }
 0x24b   : > { %v6925_v48 = vld [vmem:[%s7244_s6 + $0xf54] sm:$0xf]  ;;  %v6099_v52 = vor.u32 %v6861_v45, %v6096_v47  ;;  %3956 = vmatpush.bf16.msrb.mxu1 %v5843_v51  ;;  %v3705_v47 = vpop.f32.mrf.mxu1 }
 0x24c   : > { %v6352_v49 = vld [vmem:[%s7244_s6 + $0xf70] sm:$0xf0] }
 0x24d   : > { %v6725_v53 = vld [vmem:[%s7244_s6 + $0x914] sm:$0xf]  ;;  %v6355_v56 = vor.u32 %v6925_v48, %v6352_v49  ;;  %3969 = vmatpush.bf16.msrb.mxu2 %v6099_v52 }
 0x24e   : > { %v5552_v54 = vld [vmem:[%s7244_s6 + $0x930] sm:$0xf0] }
 0x24f   : > { %v6789_v55 = vld [vmem:[%s7244_s6 + $0xb14] sm:$0xf]  ;;  %v5555_v63 = vor.u32 %v6725_v53, %v5552_v54  ;;  %3982 = vmatpush.bf16.msrb.mxu3 %v6355_v56 }
 0x250   : > { %v5808_v58 = vld [vmem:[%s7244_s6 + $0xb30] sm:$0xf0] }
 0x251   : > { %v6853_v59 = vld [vmem:[%s7244_s6 + $0xd14] sm:$0xf]  ;;  %v5811_v1 = vor.u32 %v6789_v55, %v5808_v58  ;;  %3944 = vmatpush.bf16.msrb.mxu0 %v5555_v63  ;;  %v3718_v63 = vpop.f32.mrf.mxu2 }
 0x252   : > { %v6064_v60 = vld [vmem:[%s7244_s6 + $0xd30] sm:$0xf0]  ;;  %v6474_v63 = vld [vmem:[%s7244_s6 + $0x134] sm:$0xf0] }
 0x253   : > { %v6917_v61 = vld [vmem:[%s7244_s6 + $0xf14] sm:$0xf]  ;;  %v6067_v2 = vor.u32 %v6853_v59, %v6064_v60  ;;  %3957 = vmatpush.bf16.msrb.mxu1 %v5811_v1 }
 0x254   : > { %v6320_v62 = vld [vmem:[%s7244_s6 + $0xf30] sm:$0xf0] }
 0x255   : > { %v6717_v3 = vld [vmem:[%s7244_s6 + $0x8d4] sm:$0xf]  ;;  %v6323_v8 = vor.u32 %v6917_v61, %v6320_v62  ;;  %3970 = vmatpush.bf16.msrb.mxu2 %v6067_v2 }
 0x256   : > { %v5520_v4 = vld [vmem:[%s7244_s6 + $0x8f0] sm:$0xf0] }
 0x257   : > { %v6781_v6 = vld [vmem:[%s7244_s6 + $0xad4] sm:$0xf]  ;;  %v5523_v14 = vor.u32 %v6717_v3, %v5520_v4  ;;  %3983 = vmatpush.bf16.msrb.mxu3 %v6323_v8  ;;  %v4630_v8 = vld [vmem:[%s7244_s6 + $0x1d8] sm:$0xf] }
 0x258   : > { %v5776_v9 = vld [vmem:[%s7244_s6 + $0xaf0] sm:$0xf0] }
 0x259   : > { %v6845_v10 = vld [vmem:[%s7244_s6 + $0xcd4] sm:$0xf]  ;;  %v5779_v15 = vor.u32 %v6781_v6, %v5776_v9  ;;  %3945 = vmatpush.bf16.msrb.mxu0 %v5523_v14  ;;  %v3731_v6 = vpop.f32.mrf.mxu3  ;;  %v6498_v9 = vld [vmem:[%s7244_s6 + $0x1f4] sm:$0xf0] }
 0x25a   : > { %v6032_v11 = vld [vmem:[%s7244_s6 + $0xcf0] sm:$0xf0]  ;;  %v6626_v14 = vld [vmem:[%s7244_s6 + $0x5f4] sm:$0xf0] }
 0x25b   : > { %v6909_v12 = vld [vmem:[%s7244_s6 + $0xed4] sm:$0xf]  ;;  %v6035_v16 = vor.u32 %v6845_v10, %v6032_v11  ;;  %3958 = vmatpush.bf16.msrb.mxu1 %v5779_v15  ;;  %v4886_v10 = vld [vmem:[%s7244_s6 + $0x3d8] sm:$0xf] }
 0x25c   : > { %v6288_v13 = vld [vmem:[%s7244_s6 + $0xef0] sm:$0xf0]  ;;  %v5302_v6 = vld [vmem:[%s7244_s6 + $0x718] sm:$0xf] }
 0x25d   : > { %v6709_v39 = vld [vmem:[%s7244_s6 + $0x894] sm:$0xf]  ;;  %v6291_v21 = vor.u32 %v6909_v12, %v6288_v13  ;;  %3971 = vmatpush.bf16.msrb.mxu2 %v6035_v16  ;;  %v6562_v12 = vld [vmem:[%s7244_s6 + $0x3f4] sm:$0xf0] }
 0x25e   : > { %v5488_v18 = vld [vmem:[%s7244_s6 + $0x8b0] sm:$0xf0]  ;;  %v5142_v13 = vld [vmem:[%s7244_s6 + $0x5d8] sm:$0xf] }
 0x25f   : > { %v6773_v19 = vld [vmem:[%s7244_s6 + $0xa94] sm:$0xf]  ;;  %v5491_v31 = vor.u32 %v6709_v39, %v5488_v18  ;;  %3984 = vmatpush.bf16.msrb.mxu3 %v6291_v21  ;;  %v5398_v39 = vld [vmem:[%s7244_s6 + $0x7d8] sm:$0xf]  ;;  %v4631_v21 = vor.u32 %v6498_v9, %v4630_v8 }
 0x260   : > { %v5744_v23 = vld [vmem:[%s7244_s6 + $0xab0] sm:$0xf0]  ;;  %v6690_v18 = vld [vmem:[%s7244_s6 + $0x7f4] sm:$0xf0] }
 0x261   : > { %v6837_v24 = vld [vmem:[%s7244_s6 + $0xc94] sm:$0xf]  ;;  %v5747_v36 = vor.u32 %v6773_v19, %v5744_v23  ;;  %3946 = vmatpush.bf16.msrb.mxu0 %v5491_v31  ;;  %v3704_v23 = vadd.f32 %v8083_v7, %v8078_v46  ;;  %v4854_v31 = vld [vmem:[%s7244_s6 + $0x398] sm:$0xf]  ;;  %v5399_v35 = vor.u32 %v6690_v18, %v5398_v39  ;;  %v3639_v46 = vadd.f32 %v8002_v0, %v7948_v34 }
 0x262   : > { %v6000_v25 = vld [vmem:[%s7244_s6 + $0xcb0] sm:$0xf0]  ;;  %v6546_v0 = vld [vmem:[%s7244_s6 + $0x374] sm:$0xf0] }
 0x263   : > { %v6901_v29 = vld [vmem:[%s7244_s6 + $0xe94] sm:$0xf]  ;;  %v6003_v38 = vor.u32 %v6837_v24, %v6000_v25  ;;  %3959 = vmatpush.bf16.msrb.mxu1 %v5747_v36  ;;  %v4887_v24 = vor.u32 %v6562_v12, %v4886_v10  ;;  %v5143_v25 = vor.u32 %v6626_v14, %v5142_v13  ;;  %v6554_v36 = vld [vmem:[%s7244_s6 + $0x3b4] sm:$0xf0]  ;;  %v3717_v47 = vadd.f32 %v8093_v20, %v3704_v23  ;;  %v3742_v10 = vpop.f32.mrf.mxu0  ;;  %v3755_v14 = vpop.f32.mrf.mxu1 }
 0x264   : > { %v6256_v30 = vld [vmem:[%s7244_s6 + $0xeb0] sm:$0xf0]  ;;  %v5334_v20 = vld [vmem:[%s7244_s6 + $0x758] sm:$0xf] }
 0x265   : > { %v6701_v42 = vld [vmem:[%s7244_s6 + $0x854] sm:$0xf]  ;;  %v6259_v48 = vor.u32 %v6901_v29, %v6256_v30  ;;  %3972 = vmatpush.bf16.msrb.mxu2 %v6003_v38  ;;  %v4598_v29 = vld [vmem:[%s7244_s6 + $0x198] sm:$0xf] }
 0x266   : > { %v5456_v44 = vld [vmem:[%s7244_s6 + $0x870] sm:$0xf0]  ;;  %v6490_v30 = vld [vmem:[%s7244_s6 + $0x1b4] sm:$0xf0] }
 0x267   : > { %v6765_v45 = vld [vmem:[%s7244_s6 + $0xa54] sm:$0xf]  ;;  %v5459_v54 = vor.u32 %v6701_v42, %v5456_v44  ;;  %3985 = vmatpush.bf16.msrb.mxu3 %v6259_v48  ;;  %v5110_v38 = vld [vmem:[%s7244_s6 + $0x598] sm:$0xf]  ;;  %v4599_v7 = vor.u32 %v6490_v30, %v4598_v29  ;;  %v4855_v48 = vor.u32 %v6554_v36, %v4854_v31  ;;  %v3768_v36 = vpop.f32.mrf.mxu2 }
 0x268   : > { %v5712_v49 = vld [vmem:[%s7244_s6 + $0xa70] sm:$0xf0]  ;;  %v6618_v42 = vld [vmem:[%s7244_s6 + $0x5b4] sm:$0xf0] }
 0x269   : > { %v6829_v50 = vld [vmem:[%s7244_s6 + $0xc54] sm:$0xf]  ;;  %v5715_v58 = vor.u32 %v6765_v45, %v5712_v49  ;;  %3947 = vmatpush.bf16.msrb.mxu0 %v5459_v54  ;;  %v5366_v44 = vld [vmem:[%s7244_s6 + $0x798] sm:$0xf]  ;;  %v5111_v49 = vor.u32 %v6618_v42, %v5110_v38 }
 0x26a   : > { %v5968_v51 = vld [vmem:[%s7244_s6 + $0xc70] sm:$0xf0]  ;;  %v6682_v45 = vld [vmem:[%s7244_s6 + $0x7b4] sm:$0xf0] }
 0x26b   : > { %v6893_v52 = vld [vmem:[%s7244_s6 + $0xe54] sm:$0xf]  ;;  %v5971_v59 = vor.u32 %v6829_v50, %v5968_v51  ;;  %3960 = vmatpush.bf16.msrb.mxu1 %v5715_v58  ;;  %v4566_v50 = vld [vmem:[%s7244_s6 + $0x158] sm:$0xf]  ;;  %v5367_v34 = vor.u32 %v6682_v45, %v5366_v44 }
 0x26c   : > { %v6224_v53 = vld [vmem:[%s7244_s6 + $0xe70] sm:$0xf0]  ;;  %v6482_v51 = vld [vmem:[%s7244_s6 + $0x174] sm:$0xf0] }
 0x26d   : > { %v6693_v55 = vld [vmem:[%s7244_s6 + $0x814] sm:$0xf]  ;;  %v6227_v1 = vor.u32 %v6893_v52, %v6224_v53  ;;  %3973 = vmatpush.bf16.msrb.mxu2 %v5971_v59  ;;  %v4822_v52 = vld [vmem:[%s7244_s6 + $0x358] sm:$0xf]  ;;  %v4567_v58 = vor.u32 %v6482_v51, %v4566_v50  ;;  %v3730_v59 = vadd.f32 %v8098_v28, %v3717_v47 }
 0x26e   : > { %v5424_v56 = vld [vmem:[%s7244_s6 + $0x830] sm:$0xf0]  ;;  %v5078_v53 = vld [vmem:[%s7244_s6 + $0x558] sm:$0xf] }
 0x26f   : > { %v6757_v60 = vld [vmem:[%s7244_s6 + $0xa14] sm:$0xf]  ;;  %v5427_v11 = vor.u32 %v6693_v55, %v5424_v56  ;;  %3986 = vmatpush.bf16.msrb.mxu3 %v6227_v1  ;;  %v6610_v54 = vld [vmem:[%s7244_s6 + $0x574] sm:$0xf0]  ;;  %v3652_v56 = vadd.f32 %v8007_v5, %v3639_v46  ;;  %v3743_v13 = vadd.f32 %v3742_v10, %v3730_v59  ;;  %v3757_v59 = vpop.f32.mrf.mxu1 }
 0x270   : > { %v5680_v61 = vld [vmem:[%s7244_s6 + $0xa30] sm:$0xf0]  ;;  %v6674_v55 = vld [vmem:[%s7244_s6 + $0x774] sm:$0xf0] }
 0x271   : > { %v6821_v62 = vld [vmem:[%s7244_s6 + $0xc14] sm:$0xf]  ;;  %v5683_v15 = vor.u32 %v6757_v60, %v5680_v61  ;;  %3948 = vmatpush.bf16.msrb.mxu0 %v5427_v11  ;;  %v4823_v60 = vor.u32 %v6546_v0, %v4822_v52  ;;  %v5079_v61 = vor.u32 %v6610_v54, %v5078_v53  ;;  %v4790_v1 = vld [vmem:[%s7244_s6 + $0x318] sm:$0xf]  ;;  %v3665_v28 = vadd.f32 %v8017_v17, %v3652_v56  ;;  %v3744_v53 = vpop.f32.mrf.mxu0 }
 0x272   : > { %v5936_v2 = vld [vmem:[%s7244_s6 + $0xc30] sm:$0xf0]  ;;  %v6538_v5 = vld [vmem:[%s7244_s6 + $0x334] sm:$0xf0]  ;;  %v3756_v23 = vadd.f32 %v3755_v14, %v3743_v13 }
 0x273   : > { %v6885_v3 = vld [vmem:[%s7244_s6 + $0xe14] sm:$0xf]  ;;  %v5939_v16 = vor.u32 %v6821_v62, %v5936_v2  ;;  %3961 = vmatpush.bf16.msrb.mxu1 %v5683_v15  ;;  %v4534_v62 = vld [vmem:[%s7244_s6 + $0x118] sm:$0xf]  ;;  %v5335_v2 = vor.u32 %v6674_v55, %v5334_v20  ;;  %v4791_v11 = vor.u32 %v6538_v5, %v4790_v1  ;;  %v3678_v29 = vadd.f32 %v8022_v22, %v3665_v28 }
 0x274   : > { %v6192_v4 = vld [vmem:[%s7244_s6 + $0xe30] sm:$0xf0]  ;;  %3949 = vmatmul.bf16.vlgmr.msrb.gmra.mxu0 %v7421_v40  ;;  %v6666_v8 = vld [vmem:[%s7244_s6 + $0x734] sm:$0xf0]  ;;  %v4535_v9 = vor.u32 %v6474_v63, %v4534_v62  ;;  %v3769_v46 = vadd.f32 %v3768_v36, %v3756_v23 }
 0x275   : > { %v6195_v19 = vor.u32 %v6885_v3, %v6192_v4  ;;  %3974 = vmatpush.bf16.msrb.mxu2 %v5939_v16  ;;  %3993 = vmatpush.bf16.msra.mxu0 %v4631_v21  ;;  %v5046_v3 = vld [vmem:[%s7244_s6 + $0x518] sm:$0xf]  ;;  %v5303_v18 = vor.u32 %v6666_v8, %v5302_v6  ;;  %v4210_v51 = vrot.slane %v3678_v29, 4  ;;  %v264_v1 = vld [vmem:[#allocation2] sm:$0xff] }
 0x276   : > { %3962 = vmatmul.bf16.vlgmr.msrb.gmra.mxu1 %v7425_v43  ;;  %v6602_v4 = vld [vmem:[%s7244_s6 + $0x534] sm:$0xf0] }
 0x277   : > { %3987 = vmatpush.bf16.msrb.mxu3 %v6195_v19  ;;  %4006 = vmatpush.bf16.msra.mxu1 %v4887_v24  ;;  %v5047_v12 = vor.u32 %v6602_v4, %v5046_v3  ;;  %v4502_v15 = vld [vmem:[%s7244_s6 + $0xd8] sm:$0xf] }
 0x278   : > { %3975 = vmatmul.bf16.vlgmr.msrb.gmra.mxu2 %v7417_v37  ;;  %v6466_v16 = vld [vmem:[%s7244_s6 + $0xf4] sm:$0xf0] }
 0x279   : > { %4019 = vmatpush.bf16.msra.mxu2 %v5143_v25  ;;  %3994 = vmatpush.bf16.msra.mxu0 %v4599_v7  ;;  %v4758_v39 = vld [vmem:[%s7244_s6 + $0x2d8] sm:$0xf]  ;;  %v4503_v30 = vor.u32 %v6466_v16, %v4502_v15  ;;  %v3781_v7 = vpop.f32.mrf.mxu3  ;;  %v3770_v15 = vpop.f32.mrf.mxu2 }
 0x27a   : > { %3988 = vmatmul.bf16.vlgmr.msrb.gmra.mxu3 %v7423_v41  ;;  %v6530_v17 = vld [vmem:[%s7244_s6 + $0x2f4] sm:$0xf0]  ;;  %v3782_v52 = vadd.f32 %v3781_v7, %v3769_v46 }
 0x27b   : > { %4032 = vmatpush.bf16.msra.mxu3 %v5399_v35  ;;  %4007 = vmatpush.bf16.msra.mxu1 %v4855_v48  ;;  %v5014_v19 = vld [vmem:[%s7244_s6 + $0x4d8] sm:$0xf]  ;;  %v4759_v31 = vor.u32 %v6530_v17, %v4758_v39 }
 0x27c   : > { %v6594_v21 = vld [vmem:[%s7244_s6 + $0x4f4] sm:$0xf0] }
 0x27d   : > { %4020 = vmatpush.bf16.msra.mxu2 %v5111_v49  ;;  %3995 = vmatpush.bf16.msra.mxu0 %v4567_v58  ;;  %v5270_v24 = vld [vmem:[%s7244_s6 + $0x6d8] sm:$0xf]  ;;  %v5015_v35 = vor.u32 %v6594_v21, %v5014_v19 }
 0x27e   : > { %v6658_v25 = vld [vmem:[%s7244_s6 + $0x6f4] sm:$0xf0] }
 0x27f   : > { %4033 = vmatpush.bf16.msra.mxu3 %v5367_v34  ;;  %4008 = vmatpush.bf16.msra.mxu1 %v4823_v60  ;;  %v4470_v38 = vld [vmem:[%s7244_s6 + $0x98] sm:$0xf]  ;;  %v5271_v45 = vor.u32 %v6658_v25, %v5270_v24  ;;  %v4211_v60 = vrot.slane %v3782_v52, 2 }
 0x280   : > { %v6458_v42 = vld [vmem:[%s7244_s6 + $0xb4] sm:$0xf0] }
 0x281   : > { %4021 = vmatpush.bf16.msra.mxu2 %v5079_v61  ;;  %3996 = vmatpush.bf16.msra.mxu0 %v4535_v9  ;;  %v4726_v44 = vld [vmem:[%s7244_s6 + $0x298] sm:$0xf]  ;;  %v4471_v34 = vor.u32 %v6458_v42, %v4470_v38  ;;  %v4218_v3 = vsel %vm4217_vm1, %v4210_v51, %v4211_v60  ;;  %v3783_v19 = vpop.f32.mrf.mxu3 }
 0x282   : > { %v6522_v22 = vld [vmem:[%s7244_s6 + $0x2b4] sm:$0xf0]  ;;  %v4220_v9 = vsel %vm4219_vm2, %v7886_v57, %v4218_v3 }
 0x283   : > { %4034 = vmatpush.bf16.msra.mxu3 %v5335_v2  ;;  %4009 = vmatpush.bf16.msra.mxu1 %v4791_v11  ;;  %v4982_v47 = vld [vmem:[%s7244_s6 + $0x498] sm:$0xf]  ;;  %v4727_v54 = vor.u32 %v6522_v22, %v4726_v44  ;;  %v4226_v16 = vadd.f32 %v4220_v9, %v264_v1 }
 0x284   : > { %v6586_v48 = vld [vmem:[%s7244_s6 + $0x4b4] sm:$0xf0] }
 0x285   : > { %4022 = vmatpush.bf16.msra.mxu2 %v5047_v12  ;;  %v5238_v49 = vld [vmem:[%s7244_s6 + $0x698] sm:$0xf]  ;;  %3997 = vmatpush.bf16.msra.mxu0 %v4503_v30  ;;  %v4983_v20 = vor.u32 %v6586_v48, %v4982_v47  ;;  %4228 = vst [vmem:[#allocation2] sm:$0xff] %v4226_v16 }
 0x286   : > { %v6650_v50 = vld [vmem:[%s7244_s6 + $0x6b4] sm:$0xf0] }
 0x287   : > { %4035 = vmatpush.bf16.msra.mxu3 %v5303_v18  ;;  %v4438_v0 = vld [vmem:[%s7244_s6 + $0x58] sm:$0xf]  ;;  %4010 = vmatpush.bf16.msra.mxu1 %v4759_v31  ;;  %v5239_v61 = vor.u32 %v6650_v50, %v5238_v49 }
 0x288   : > { %v6450_v55 = vld [vmem:[%s7244_s6 + $0x74] sm:$0xf0] }
 0x289   : > { %4023 = vmatpush.bf16.msra.mxu2 %v5015_v35  ;;  %v4694_v56 = vld [vmem:[%s7244_s6 + $0x258] sm:$0xf]  ;;  %3998 = vmatpush.bf16.msra.mxu0 %v4471_v34  ;;  %v4439_v4 = vor.u32 %v6450_v55, %v4438_v0 }
 0x28a   : > { %v6514_v58 = vld [vmem:[%s7244_s6 + $0x274] sm:$0xf0] }
 0x28b   : > { %4036 = vmatpush.bf16.msra.mxu3 %v5271_v45  ;;  %v4950_v62 = vld [vmem:[%s7244_s6 + $0x458] sm:$0xf]  ;;  %4011 = vmatpush.bf16.msra.mxu1 %v4727_v54  ;;  %v4695_v10 = vor.u32 %v6514_v58, %v4694_v56 }
 0x28c   : > { %v6578_v63 = vld [vmem:[%s7244_s6 + $0x474] sm:$0xf0] }
 0x28d   : > { %v5206_v2 = vld [vmem:[%s7244_s6 + $0x658] sm:$0xf]  ;;  %4024 = vmatpush.bf16.msra.mxu2 %v4983_v20  ;;  %v4951_v11 = vor.u32 %v6578_v63, %v4950_v62  ;;  %3999 = vmatpush.bf16.msra.mxu0 %v4439_v4 }
 0x28e   : > { %v6642_v5 = vld [vmem:[%s7244_s6 + $0x674] sm:$0xf0] }
 0x28f   : > { %v4406_v6 = vld [vmem:[%s7244_s6 + $0x18] sm:$0xf]  ;;  %4037 = vmatpush.bf16.msra.mxu3 %v5239_v61  ;;  %v5207_v39 = vor.u32 %v6642_v5, %v5206_v2  ;;  %4012 = vmatpush.bf16.msra.mxu1 %v4695_v10 }
 0x290   : > { %v6442_v8 = vld [vmem:[%s7244_s6 + $0x34] sm:$0xf0] }
 0x291   : > { %v4662_v28 = vld [vmem:[%s7244_s6 + $0x218] sm:$0xf]  ;;  %v4407_v25 = vor.u32 %v6442_v8, %v4406_v6  ;;  %4025 = vmatpush.bf16.msra.mxu2 %v4951_v11 }
 0x292   : > { %v6506_v12 = vld [vmem:[%s7244_s6 + $0x234] sm:$0xf0] }
 0x293   : > { %v4918_v13 = vld [vmem:[%s7244_s6 + $0x418] sm:$0xf]  ;;  %v4663_v31 = vor.u32 %v6506_v12, %v4662_v28  ;;  %4038 = vmatpush.bf16.msra.mxu3 %v5207_v39  ;;  %4000 = vmatpush.bf16.msra.mxu0 %v4407_v25 }
 0x294   : > { %v6570_v14 = vld [vmem:[%s7244_s6 + $0x434] sm:$0xf0] }
 0x295   : > { %v5174_v18 = vld [vmem:[%s7244_s6 + $0x618] sm:$0xf]  ;;  %v4919_v35 = vor.u32 %v6570_v14, %v4918_v13  ;;  %4013 = vmatpush.bf16.msra.mxu1 %v4663_v31  ;;  %v3794_v14 = vpop.f32.mrf.mxu0 }
 0x296   : > { %v6634_v17 = vld [vmem:[%s7244_s6 + $0x634] sm:$0xf0]  ;;  %4001 = vmatmul.bf16.vlgmr.msra.gmra.mxu0 %v7366_v27 }
 0x297   : > { %v5654_v57 = vld [vmem:[%s7244_s6 + $0x9d8] sm:$0xf]  ;;  %v5175_v42 = vor.u32 %v6634_v17, %v5174_v18  ;;  %4026 = vmatpush.bf16.msra.mxu2 %v4919_v35 }
 0x298   : > { %v6754_v21 = vld [vmem:[%s7244_s6 + $0x9f4] sm:$0xf0]  ;;  %4014 = vmatmul.bf16.vlgmr.msra.gmra.mxu1 %v7372_v33 }
 0x299   : > { %v5910_v23 = vld [vmem:[%s7244_s6 + $0xbd8] sm:$0xf]  ;;  %v5655_v44 = vor.u32 %v6754_v21, %v5654_v57  ;;  %4039 = vmatpush.bf16.msra.mxu3 %v5175_v42  ;;  %v3807_v57 = vpop.f32.mrf.mxu1 }
 0x29a   : > { %v6818_v24 = vld [vmem:[%s7244_s6 + $0xbf4] sm:$0xf0]  ;;  %4027 = vmatmul.bf16.vlgmr.msra.gmra.mxu2 %v7364_v26  ;;  %v3808_v25 = vadd.f32 %v3807_v57, %v3794_v14  ;;  %v4888_v57 = vld [vmem:[%s7244_s6 + $0x3f8] sm:$0xf0] }
 0x29b   : > { %v6166_v29 = vld [vmem:[%s7244_s6 + $0xdd8] sm:$0xf]  ;;  %v5911_v45 = vor.u32 %v6818_v24, %v5910_v23  ;;  %4045 = vmatpush.bf16.msrb.mxu0 %v5655_v44 }
 0x29c   : > { %v6882_v30 = vld [vmem:[%s7244_s6 + $0xdf4] sm:$0xf0]  ;;  %4040 = vmatmul.bf16.vlgmr.msra.gmra.mxu3 %v7370_v32 }
 0x29d   : > { %v6422_v36 = vld [vmem:[%s7244_s6 + $0xfd8] sm:$0xf]  ;;  %v6167_v46 = vor.u32 %v6882_v30, %v6166_v29  ;;  %4058 = vmatpush.bf16.msrb.mxu1 %v5911_v45  ;;  %v3820_v45 = vpop.f32.mrf.mxu2 }
 0x29e   : > { %v6946_v38 = vld [vmem:[%s7244_s6 + $0xff4] sm:$0xf0] }
 0x29f   : > { %v5622_v7 = vld [vmem:[%s7244_s6 + $0x998] sm:$0xf]  ;;  %v6423_v48 = vor.u32 %v6946_v38, %v6422_v36  ;;  %4071 = vmatpush.bf16.msrb.mxu2 %v6167_v46 }
 0x2a0   : > { %v6746_v22 = vld [vmem:[%s7244_s6 + $0x9b4] sm:$0xf0] }
 0x2a1   : > { %v5878_v47 = vld [vmem:[%s7244_s6 + $0xb98] sm:$0xf]  ;;  %v5623_v0 = vor.u32 %v6746_v22, %v5622_v7  ;;  %4084 = vmatpush.bf16.msrb.mxu3 %v6423_v48  ;;  %v3821_v48 = vadd.f32 %v3820_v45, %v3808_v25  ;;  %v6686_v25 = vld [vmem:[%s7244_s6 + $0x7dc] sm:$0xf] }
 0x2a2   : > { %v6810_v49 = vld [vmem:[%s7244_s6 + $0xbb4] sm:$0xf0] }
 0x2a3   : > { %v6134_v50 = vld [vmem:[%s7244_s6 + $0xd98] sm:$0xf]  ;;  %v5879_v53 = vor.u32 %v6810_v49, %v5878_v47  ;;  %4046 = vmatpush.bf16.msrb.mxu0 %v5623_v0  ;;  %v3833_v49 = vpop.f32.mrf.mxu3  ;;  %v3796_v0 = vpop.f32.mrf.mxu0 }
 0x2a4   : > { %v6874_v51 = vld [vmem:[%s7244_s6 + $0xdb4] sm:$0xf0]  ;;  %v4568_v0 = vld [vmem:[%s7244_s6 + $0x178] sm:$0xf0] }
 0x2a5   : > { %v6390_v52 = vld [vmem:[%s7244_s6 + $0xf98] sm:$0xf]  ;;  %v6135_v54 = vor.u32 %v6874_v51, %v6134_v50  ;;  %4059 = vmatpush.bf16.msrb.mxu1 %v5879_v53 }
 0x2a6   : > { %v6938_v34 = vld [vmem:[%s7244_s6 + $0xfb4] sm:$0xf0] }
 0x2a7   : > { %v5590_v20 = vld [vmem:[%s7244_s6 + $0x958] sm:$0xf]  ;;  %v6391_v58 = vor.u32 %v6938_v34, %v6390_v52  ;;  %4072 = vmatpush.bf16.msrb.mxu2 %v6135_v54  ;;  %v8250_v34 = vadd.f32 %v3833_v49, %v3821_v48  ;;  %v5368_v48 = vld [vmem:[%s7244_s6 + $0x7b8] sm:$0xf0] }
 0x2a8   : > { %v6738_v55 = vld [vmem:[%s7244_s6 + $0x974] sm:$0xf0] }
 0x2a9   : > { %v5846_v56 = vld [vmem:[%s7244_s6 + $0xb58] sm:$0xf]  ;;  %v5591_v1 = vor.u32 %v6738_v55, %v5590_v20  ;;  %4085 = vmatpush.bf16.msrb.mxu3 %v6391_v58  ;;  %v3809_v58 = vpop.f32.mrf.mxu1 }
 0x2aa   : > { %v6802_v59 = vld [vmem:[%s7244_s6 + $0xb74] sm:$0xf0]  ;;  %v6670_v58 = vld [vmem:[%s7244_s6 + $0x75c] sm:$0xf] }
 0x2ab   : > { %v6102_v60 = vld [vmem:[%s7244_s6 + $0xd58] sm:$0xf]  ;;  %v5847_v2 = vor.u32 %v6802_v59, %v5846_v56  ;;  %4047 = vmatpush.bf16.msrb.mxu0 %v5591_v1 }
 0x2ac   : > { %v6866_v61 = vld [vmem:[%s7244_s6 + $0xd74] sm:$0xf0] }
 0x2ad   : > { %v6358_v62 = vld [vmem:[%s7244_s6 + $0xf58] sm:$0xf]  ;;  %v6103_v5 = vor.u32 %v6866_v61, %v6102_v60  ;;  %4060 = vmatpush.bf16.msrb.mxu1 %v5847_v2 }
 0x2ae   : > { %v6930_v63 = vld [vmem:[%s7244_s6 + $0xf74] sm:$0xf0] }
 0x2af   : > { %v5558_v3 = vld [vmem:[%s7244_s6 + $0x918] sm:$0xf]  ;;  %v6359_v8 = vor.u32 %v6930_v63, %v6358_v62  ;;  %4073 = vmatpush.bf16.msrb.mxu2 %v6103_v5 }
 0x2b0   : > { %v6730_v4 = vld [vmem:[%s7244_s6 + $0x934] sm:$0xf0] }
 0x2b1   : > { %v5814_v6 = vld [vmem:[%s7244_s6 + $0xb18] sm:$0xf]  ;;  %v5559_v13 = vor.u32 %v6730_v4, %v5558_v3  ;;  %4086 = vmatpush.bf16.msrb.mxu3 %v6359_v8 }
 0x2b2   : > { %v6794_v28 = vld [vmem:[%s7244_s6 + $0xb34] sm:$0xf0] }
 0x2b3   : > { %v6070_v9 = vld [vmem:[%s7244_s6 + $0xd18] sm:$0xf]  ;;  %v5815_v15 = vor.u32 %v6794_v28, %v5814_v6  ;;  %4048 = vmatpush.bf16.msrb.mxu0 %v5559_v13 }
 0x2b4   : > { %v6858_v10 = vld [vmem:[%s7244_s6 + $0xd34] sm:$0xf0] }
 0x2b5   : > { %v6326_v11 = vld [vmem:[%s7244_s6 + $0xf18] sm:$0xf]  ;;  %v6071_v16 = vor.u32 %v6858_v10, %v6070_v9  ;;  %4061 = vmatpush.bf16.msrb.mxu1 %v5815_v15  ;;  %v3822_v10 = vpop.f32.mrf.mxu2  ;;  %v3835_v15 = vpop.f32.mrf.mxu3 }
 0x2b6   : > { %v6922_v12 = vld [vmem:[%s7244_s6 + $0xf34] sm:$0xf0]  ;;  %v3846_v10 = vpop.f32.mrf.mxu0  ;;  %v6526_v15 = vld [vmem:[%s7244_s6 + $0x2dc] sm:$0xf] }
 0x2b7   : > { %v5526_v39 = vld [vmem:[%s7244_s6 + $0x8d8] sm:$0xf]  ;;  %v6327_v19 = vor.u32 %v6922_v12, %v6326_v11  ;;  %4074 = vmatpush.bf16.msrb.mxu2 %v6071_v16  ;;  %v6494_v16 = vld [vmem:[%s7244_s6 + $0x1dc] sm:$0xf] }
 0x2b8   : > { %v6722_v18 = vld [vmem:[%s7244_s6 + $0x8f4] sm:$0xf0] }
 0x2b9   : > { %v5782_v17 = vld [vmem:[%s7244_s6 + $0xad8] sm:$0xf]  ;;  %v5527_v31 = vor.u32 %v6722_v18, %v5526_v39  ;;  %4087 = vmatpush.bf16.msrb.mxu3 %v6327_v19  ;;  %v4632_v39 = vld [vmem:[%s7244_s6 + $0x1f8] sm:$0xf0] }
 0x2ba   : > { %v6786_v21 = vld [vmem:[%s7244_s6 + $0xaf4] sm:$0xf0]  ;;  %v6558_v18 = vld [vmem:[%s7244_s6 + $0x3dc] sm:$0xf] }
 0x2bb   : > { %v6038_v23 = vld [vmem:[%s7244_s6 + $0xcd8] sm:$0xf]  ;;  %v5783_v35 = vor.u32 %v6786_v21, %v5782_v17  ;;  %4049 = vmatpush.bf16.msrb.mxu0 %v5527_v31  ;;  %v6622_v19 = vld [vmem:[%s7244_s6 + $0x5dc] sm:$0xf]  ;;  %v4635_v31 = vor.u32 %v6494_v16, %v4632_v39  ;;  %v3847_v16 = vadd.f32 %v3846_v10, %v8250_v34  ;;  %v3859_v39 = vpop.f32.mrf.mxu1 }
 0x2bc   : > { %v6850_v24 = vld [vmem:[%s7244_s6 + $0xcf4] sm:$0xf0]  ;;  %v5144_v21 = vld [vmem:[%s7244_s6 + $0x5f8] sm:$0xf0] }
 0x2bd   : > { %v6294_v29 = vld [vmem:[%s7244_s6 + $0xed8] sm:$0xf]  ;;  %v6039_v36 = vor.u32 %v6850_v24, %v6038_v23  ;;  %4062 = vmatpush.bf16.msrb.mxu1 %v5783_v35  ;;  %v4891_v35 = vor.u32 %v6558_v18, %v4888_v57  ;;  %v6590_v57 = vld [vmem:[%s7244_s6 + $0x4dc] sm:$0xf] }
 0x2be   : > { %v6914_v30 = vld [vmem:[%s7244_s6 + $0xef4] sm:$0xf0]  ;;  %v6630_v10 = vld [vmem:[%s7244_s6 + $0x61c] sm:$0xf] }
 0x2bf   : > { %v5494_v38 = vld [vmem:[%s7244_s6 + $0x898] sm:$0xf]  ;;  %v6295_v46 = vor.u32 %v6914_v30, %v6294_v29  ;;  %4075 = vmatpush.bf16.msrb.mxu2 %v6039_v36  ;;  %v5400_v29 = vld [vmem:[%s7244_s6 + $0x7f8] sm:$0xf0]  ;;  %v5147_v36 = vor.u32 %v6622_v19, %v5144_v21 }
 0x2c0   : > { %v6714_v42 = vld [vmem:[%s7244_s6 + $0x8b4] sm:$0xf0]  ;;  %v5403_v45 = vor.u32 %v6686_v25, %v5400_v29  ;;  %v5016_v19 = vld [vmem:[%s7244_s6 + $0x4f8] sm:$0xf0] }
 0x2c1   : > { %v5750_v44 = vld [vmem:[%s7244_s6 + $0xa98] sm:$0xf]  ;;  %v5495_v52 = vor.u32 %v6714_v42, %v5494_v38  ;;  %4088 = vmatpush.bf16.msrb.mxu3 %v6295_v46  ;;  %v6486_v38 = vld [vmem:[%s7244_s6 + $0x19c] sm:$0xf]  ;;  %v5019_v29 = vor.u32 %v6590_v57, %v5016_v19 }
 0x2c2   : > { %v6778_v7 = vld [vmem:[%s7244_s6 + $0xab4] sm:$0xf0]  ;;  %v4600_v42 = vld [vmem:[%s7244_s6 + $0x1b8] sm:$0xf0] }
 0x2c3   : > { %v6006_v22 = vld [vmem:[%s7244_s6 + $0xc98] sm:$0xf]  ;;  %v5751_v53 = vor.u32 %v6778_v7, %v5750_v44  ;;  %4050 = vmatpush.bf16.msrb.mxu0 %v5495_v52  ;;  %v6550_v44 = vld [vmem:[%s7244_s6 + $0x39c] sm:$0xf]  ;;  %v4603_v49 = vor.u32 %v6486_v38, %v4600_v42 }
 0x2c4   : > { %v6842_v47 = vld [vmem:[%s7244_s6 + $0xcb4] sm:$0xf0]  ;;  %v4856_v46 = vld [vmem:[%s7244_s6 + $0x3b8] sm:$0xf0] }
 0x2c5   : > { %v6262_v50 = vld [vmem:[%s7244_s6 + $0xe98] sm:$0xf]  ;;  %v6007_v54 = vor.u32 %v6842_v47, %v6006_v22  ;;  %4063 = vmatpush.bf16.msrb.mxu1 %v5751_v53  ;;  %v6614_v7 = vld [vmem:[%s7244_s6 + $0x59c] sm:$0xf] }
 0x2c6   : > { %v6906_v51 = vld [vmem:[%s7244_s6 + $0xeb4] sm:$0xf0]  ;;  %v5112_v22 = vld [vmem:[%s7244_s6 + $0x5b8] sm:$0xf0] }
 0x2c7   : > { %v5462_v20 = vld [vmem:[%s7244_s6 + $0x858] sm:$0xf]  ;;  %v6263_v59 = vor.u32 %v6906_v51, %v6262_v50  ;;  %4076 = vmatpush.bf16.msrb.mxu2 %v6007_v54  ;;  %v6678_v47 = vld [vmem:[%s7244_s6 + $0x79c] sm:$0xf]  ;;  %v4859_v50 = vor.u32 %v6550_v44, %v4856_v46  ;;  %v5115_v51 = vor.u32 %v6614_v7, %v5112_v22  ;;  %v3885_v7 = vpop.f32.mrf.mxu3 }
 0x2c8   : > { %v6706_v55 = vld [vmem:[%s7244_s6 + $0x874] sm:$0xf0]  ;;  %v6478_v52 = vld [vmem:[%s7244_s6 + $0x15c] sm:$0xf]  ;;  %v5371_v54 = vor.u32 %v6678_v47, %v5368_v48 }
 0x2c9   : > { %v5718_v56 = vld [vmem:[%s7244_s6 + $0xa58] sm:$0xf]  ;;  %v5463_v2 = vor.u32 %v6706_v55, %v5462_v20  ;;  %4089 = vmatpush.bf16.msrb.mxu3 %v6263_v59  ;;  %v6542_v53 = vld [vmem:[%s7244_s6 + $0x35c] sm:$0xf] }
 0x2ca   : > { %v6770_v60 = vld [vmem:[%s7244_s6 + $0xa74] sm:$0xf0]  ;;  %v4824_v20 = vld [vmem:[%s7244_s6 + $0x378] sm:$0xf0] }
 0x2cb   : > { %v5974_v61 = vld [vmem:[%s7244_s6 + $0xc58] sm:$0xf]  ;;  %v5719_v4 = vor.u32 %v6770_v60, %v5718_v56  ;;  %4051 = vmatpush.bf16.msrb.mxu0 %v5463_v2  ;;  %v6606_v55 = vld [vmem:[%s7244_s6 + $0x55c] sm:$0xf]  ;;  %v4571_v60 = vor.u32 %v6478_v52, %v4568_v0 }
 0x2cc   : > { %v6834_v62 = vld [vmem:[%s7244_s6 + $0xc74] sm:$0xf0]  ;;  %v5080_v56 = vld [vmem:[%s7244_s6 + $0x578] sm:$0xf0] }
 0x2cd   : > { %v6230_v63 = vld [vmem:[%s7244_s6 + $0xe58] sm:$0xf]  ;;  %v5975_v6 = vor.u32 %v6834_v62, %v5974_v61  ;;  %4064 = vmatpush.bf16.msrb.mxu1 %v5719_v4  ;;  %v5336_v59 = vld [vmem:[%s7244_s6 + $0x778] sm:$0xf0]  ;;  %v4827_v61 = vor.u32 %v6542_v53, %v4824_v20  ;;  %v5083_v62 = vor.u32 %v6606_v55, %v5080_v56  ;;  %v3861_v20 = vpop.f32.mrf.mxu1 }
 0x2ce   : > { %v6898_v1 = vld [vmem:[%s7244_s6 + $0xe74] sm:$0xf0]  ;;  %v6534_v2 = vld [vmem:[%s7244_s6 + $0x31c] sm:$0xf] }
 0x2cf   : > { %v5430_v5 = vld [vmem:[%s7244_s6 + $0x818] sm:$0xf]  ;;  %v6231_v11 = vor.u32 %v6898_v1, %v6230_v63  ;;  %4077 = vmatpush.bf16.msrb.mxu2 %v5975_v6  ;;  %v6470_v63 = vld [vmem:[%s7244_s6 + $0x11c] sm:$0xf] }
 0x2d0   : > { %v6698_v3 = vld [vmem:[%s7244_s6 + $0x834] sm:$0xf0]  ;;  %v4536_v1 = vld [vmem:[%s7244_s6 + $0x138] sm:$0xf0] }
 0x2d1   : > { %v5686_v8 = vld [vmem:[%s7244_s6 + $0xa18] sm:$0xf]  ;;  %v5431_v17 = vor.u32 %v6698_v3, %v5430_v5  ;;  %4090 = vmatpush.bf16.msrb.mxu3 %v6231_v11  ;;  %v5339_v5 = vor.u32 %v6670_v58, %v5336_v59  ;;  %v4792_v3 = vld [vmem:[%s7244_s6 + $0x338] sm:$0xf0] }
 0x2d2   : > { %v6762_v28 = vld [vmem:[%s7244_s6 + $0xa34] sm:$0xf0]  ;;  %v6598_v4 = vld [vmem:[%s7244_s6 + $0x51c] sm:$0xf]  ;;  %v4795_v11 = vor.u32 %v6534_v2, %v4792_v3 }
 0x2d3   : > { %v5942_v9 = vld [vmem:[%s7244_s6 + $0xc18] sm:$0xf]  ;;  %v5687_v23 = vor.u32 %v6762_v28, %v5686_v8  ;;  %4052 = vmatpush.bf16.msrb.mxu0 %v5431_v17  ;;  %v5048_v6 = vld [vmem:[%s7244_s6 + $0x538] sm:$0xf0] }
 0x2d4   : > { %v6826_v12 = vld [vmem:[%s7244_s6 + $0xc34] sm:$0xf0]  ;;  %v6662_v8 = vld [vmem:[%s7244_s6 + $0x71c] sm:$0xf] }
 0x2d5   : > { %v6198_v13 = vld [vmem:[%s7244_s6 + $0xe18] sm:$0xf]  ;;  %v5943_v24 = vor.u32 %v6826_v12, %v5942_v9  ;;  %4065 = vmatpush.bf16.msrb.mxu1 %v5687_v23  ;;  %v5304_v28 = vld [vmem:[%s7244_s6 + $0x738] sm:$0xf0]  ;;  %v4539_v9 = vor.u32 %v6470_v63, %v4536_v1  ;;  %v5051_v12 = vor.u32 %v6598_v4, %v5048_v6 }
 0x2d6   : > { %v6890_v14 = vld [vmem:[%s7244_s6 + $0xe34] sm:$0xf0]  ;;  %4053 = vmatmul.bf16.vlgmr.msrb.gmra.mxu0 %v7421_v40  ;;  %v5307_v18 = vor.u32 %v6662_v8, %v5304_v28  ;;  %v4760_v17 = vld [vmem:[%s7244_s6 + $0x2f8] sm:$0xf0] }
 0x2d7   : > { %v6199_v30 = vor.u32 %v6890_v14, %v6198_v13  ;;  %4078 = vmatpush.bf16.msrb.mxu2 %v5943_v24  ;;  %4097 = vmatpush.bf16.msra.mxu0 %v4635_v31  ;;  %v6462_v13 = vld [vmem:[%s7244_s6 + $0xdc] sm:$0xf]  ;;  %v3860_v24 = vadd.f32 %v3859_v39, %v3847_v16  ;;  %v4763_v34 = vor.u32 %v6526_v15, %v4760_v17 }
 0x2d8   : > { %4066 = vmatmul.bf16.vlgmr.msrb.gmra.mxu1 %v7425_v43  ;;  %v4504_v14 = vld [vmem:[%s7244_s6 + $0xf8] sm:$0xf0] }
 0x2d9   : > { %4091 = vmatpush.bf16.msrb.mxu3 %v6199_v30  ;;  %4110 = vmatpush.bf16.msra.mxu1 %v4891_v35  ;;  %v6654_v21 = vld [vmem:[%s7244_s6 + $0x6dc] sm:$0xf]  ;;  %v4507_v25 = vor.u32 %v6462_v13, %v4504_v14 }
 0x2da   : > { %4079 = vmatmul.bf16.vlgmr.msrb.gmra.mxu2 %v7417_v37  ;;  %v5272_v23 = vld [vmem:[%s7244_s6 + $0x6f8] sm:$0xf0] }
 0x2db   : > { %4123 = vmatpush.bf16.msra.mxu2 %v5147_v36  ;;  %4098 = vmatpush.bf16.msra.mxu0 %v4603_v49  ;;  %v6454_v30 = vld [vmem:[%s7244_s6 + $0x9c] sm:$0xf]  ;;  %v3872_v36 = vpop.f32.mrf.mxu2  ;;  %v5275_v38 = vor.u32 %v6654_v21, %v5272_v23 }
 0x2dc   : > { %4092 = vmatmul.bf16.vlgmr.msrb.gmra.mxu3 %v7423_v41  ;;  %v4472_v31 = vld [vmem:[%s7244_s6 + $0xb8] sm:$0xf0]  ;;  %v3873_v46 = vadd.f32 %v3872_v36, %v3860_v24 }
 0x2dd   : > { %4136 = vmatpush.bf16.msra.mxu3 %v5403_v45  ;;  %4111 = vmatpush.bf16.msra.mxu1 %v4859_v50  ;;  %v6518_v35 = vld [vmem:[%s7244_s6 + $0x29c] sm:$0xf]  ;;  %v4475_v48 = vor.u32 %v6454_v30, %v4472_v31  ;;  %v3848_v50 = vpop.f32.mrf.mxu0 }
 0x2de   : > { %v4728_v42 = vld [vmem:[%s7244_s6 + $0x2b8] sm:$0xf0]  ;;  %v8321_v49 = vadd.f32 %v3885_v7, %v3873_v46 }
 0x2df   : > { %4124 = vmatpush.bf16.msra.mxu2 %v5115_v51  ;;  %4099 = vmatpush.bf16.msra.mxu0 %v4571_v60  ;;  %v6582_v44 = vld [vmem:[%s7244_s6 + $0x49c] sm:$0xf]  ;;  %v4731_v51 = vor.u32 %v6518_v35, %v4728_v42 }
 0x2e0   : > { %v4984_v45 = vld [vmem:[%s7244_s6 + $0x4b8] sm:$0xf0] }
 0x2e1   : > { %4137 = vmatpush.bf16.msra.mxu3 %v5371_v54  ;;  %4112 = vmatpush.bf16.msra.mxu1 %v4827_v61  ;;  %v6646_v22 = vld [vmem:[%s7244_s6 + $0x69c] sm:$0xf]  ;;  %v4987_v52 = vor.u32 %v6582_v44, %v4984_v45 }
 0x2e2   : > { %v5240_v47 = vld [vmem:[%s7244_s6 + $0x6b8] sm:$0xf0] }
 0x2e3   : > { %4125 = vmatpush.bf16.msra.mxu2 %v5083_v62  ;;  %4100 = vmatpush.bf16.msra.mxu0 %v4539_v9  ;;  %v6446_v0 = vld [vmem:[%s7244_s6 + $0x5c] sm:$0xf]  ;;  %v5243_v55 = vor.u32 %v6646_v22, %v5240_v47  ;;  %v3874_v8 = vpop.f32.mrf.mxu2 }
 0x2e4   : > { %v4440_v53 = vld [vmem:[%s7244_s6 + $0x78] sm:$0xf0] }
 0x2e5   : > { %4138 = vmatpush.bf16.msra.mxu3 %v5339_v5  ;;  %4113 = vmatpush.bf16.msra.mxu1 %v4795_v11  ;;  %v6510_v54 = vld [vmem:[%s7244_s6 + $0x25c] sm:$0xf]  ;;  %v4443_v62 = vor.u32 %v6446_v0, %v4440_v53 }
 0x2e6   : > { %v4696_v56 = vld [vmem:[%s7244_s6 + $0x278] sm:$0xf0] }
 0x2e7   : > { %4126 = vmatpush.bf16.msra.mxu2 %v5051_v12  ;;  %4101 = vmatpush.bf16.msra.mxu0 %v4507_v25  ;;  %v6574_v58 = vld [vmem:[%s7244_s6 + $0x45c] sm:$0xf]  ;;  %v4699_v2 = vor.u32 %v6510_v54, %v4696_v56  ;;  %v3887_v12 = vpop.f32.mrf.mxu3 }
 0x2e8   : > { %v4952_v59 = vld [vmem:[%s7244_s6 + $0x478] sm:$0xf0] }
 0x2e9   : > { %4139 = vmatpush.bf16.msra.mxu3 %v5307_v18  ;;  %4114 = vmatpush.bf16.msra.mxu1 %v4763_v34  ;;  %v6638_v60 = vld [vmem:[%s7244_s6 + $0x65c] sm:$0xf]  ;;  %v4955_v5 = vor.u32 %v6574_v58, %v4952_v59 }
 0x2ea   : > { %v5208_v61 = vld [vmem:[%s7244_s6 + $0x678] sm:$0xf0] }
 0x2eb   : > { %4127 = vmatpush.bf16.msra.mxu2 %v5019_v29  ;;  %4102 = vmatpush.bf16.msra.mxu0 %v4475_v48  ;;  %v6438_v63 = vld [vmem:[%s7244_s6 + $0x1c] sm:$0xf]  ;;  %v5211_v28 = vor.u32 %v6638_v60, %v5208_v61 }
 0x2ec   : > { %v4408_v1 = vld [vmem:[%s7244_s6 + $0x38] sm:$0xf0] }
 0x2ed   : > { %4140 = vmatpush.bf16.msra.mxu3 %v5275_v38  ;;  %4115 = vmatpush.bf16.msra.mxu1 %v4731_v51  ;;  %v6502_v3 = vld [vmem:[%s7244_s6 + $0x21c] sm:$0xf]  ;;  %v4411_v16 = vor.u32 %v6438_v63, %v4408_v1 }
 0x2ee   : > { %v4664_v4 = vld [vmem:[%s7244_s6 + $0x238] sm:$0xf0] }
 0x2ef   : > { %4128 = vmatpush.bf16.msra.mxu2 %v4987_v52  ;;  %v6566_v6 = vld [vmem:[%s7244_s6 + $0x41c] sm:$0xf]  ;;  %4103 = vmatpush.bf16.msra.mxu0 %v4443_v62  ;;  %v4667_v57 = vor.u32 %v6502_v3, %v4664_v4 }
 0x2f0   : > { %v4920_v9 = vld [vmem:[%s7244_s6 + $0x438] sm:$0xf0] }
 0x2f1   : > { %4141 = vmatpush.bf16.msra.mxu3 %v5243_v55  ;;  %v5176_v11 = vld [vmem:[%s7244_s6 + $0x638] sm:$0xf0]  ;;  %4116 = vmatpush.bf16.msra.mxu1 %v4699_v2  ;;  %v4923_v19 = vor.u32 %v6566_v6, %v4920_v9  ;;  %v3911_v9 = vpop.f32.mrf.mxu1 }
 0x2f2   : > { %v6750_v13 = vld [vmem:[%s7244_s6 + $0x9dc] sm:$0xf]  ;;  %v5179_v24 = vor.u32 %v6630_v10, %v5176_v11 }
 0x2f3   : > { %v5656_v14 = vld [vmem:[%s7244_s6 + $0x9f8] sm:$0xf0]  ;;  %4129 = vmatpush.bf16.msra.mxu2 %v4955_v5  ;;  %4104 = vmatpush.bf16.msra.mxu0 %v4411_v16  ;;  %v3898_v5 = vpop.f32.mrf.mxu0 }
 0x2f4   : > { %v6814_v15 = vld [vmem:[%s7244_s6 + $0xbdc] sm:$0xf]  ;;  %v5659_v25 = vor.u32 %v6750_v13, %v5656_v14  ;;  %v3912_v14 = vadd.f32 %v3911_v9, %v3898_v5 }
 0x2f5   : > { %v5912_v39 = vld [vmem:[%s7244_s6 + $0xbf8] sm:$0xf0]  ;;  %4142 = vmatpush.bf16.msra.mxu3 %v5211_v28  ;;  %4117 = vmatpush.bf16.msra.mxu1 %v4667_v57 }
 0x2f6   : > { %v6878_v18 = vld [vmem:[%s7244_s6 + $0xddc] sm:$0xf]  ;;  %v5915_v34 = vor.u32 %v6814_v15, %v5912_v39  ;;  %4105 = vmatmul.bf16.vlgmr.msra.gmra.mxu0 %v7366_v27 }
 0x2f7   : > { %v6168_v17 = vld [vmem:[%s7244_s6 + $0xdf8] sm:$0xf0]  ;;  %4130 = vmatpush.bf16.msra.mxu2 %v4923_v19  ;;  %4149 = vmatpush.bf16.msrb.mxu0 %v5659_v25 }
 0x2f8   : > { %v6942_v21 = vld [vmem:[%s7244_s6 + $0xfdc] sm:$0xf]  ;;  %v6171_v29 = vor.u32 %v6878_v18, %v6168_v17  ;;  %4118 = vmatmul.bf16.vlgmr.msra.gmra.mxu1 %v7372_v33 }
 0x2f9   : > { %v6424_v23 = vld [vmem:[%s7244_s6 + $0xff8] sm:$0xf0]  ;;  %4143 = vmatpush.bf16.msra.mxu3 %v5179_v24  ;;  %4162 = vmatpush.bf16.msrb.mxu1 %v5915_v34 }
 0x2fa   : > { %v6742_v30 = vld [vmem:[%s7244_s6 + $0x99c] sm:$0xf]  ;;  %v6427_v36 = vor.u32 %v6942_v21, %v6424_v23  ;;  %4131 = vmatmul.bf16.vlgmr.msra.gmra.mxu2 %v7364_v26  ;;  %v3924_v23 = vpop.f32.mrf.mxu2 }
 0x2fb   : > { %v5624_v31 = vld [vmem:[%s7244_s6 + $0x9b8] sm:$0xf0]  ;;  %4175 = vmatpush.bf16.msrb.mxu2 %v6171_v29 }
 0x2fc   : > { %v6806_v35 = vld [vmem:[%s7244_s6 + $0xb9c] sm:$0xf]  ;;  %v5627_v7 = vor.u32 %v6742_v30, %v5624_v31  ;;  %4144 = vmatmul.bf16.vlgmr.msra.gmra.mxu3 %v7370_v32  ;;  %v3925_v30 = vadd.f32 %v3924_v23, %v3912_v14  ;;  %v3937_v31 = vpop.f32.mrf.mxu3 }
 0x2fd   : > { %v5880_v38 = vld [vmem:[%s7244_s6 + $0xbb8] sm:$0xf0]  ;;  %4188 = vmatpush.bf16.msrb.mxu3 %v6427_v36 }
 0x2fe   : > { %v6870_v42 = vld [vmem:[%s7244_s6 + $0xd9c] sm:$0xf]  ;;  %v5883_v22 = vor.u32 %v6806_v35, %v5880_v38  ;;  %4150 = vmatpush.bf16.msrb.mxu0 %v5627_v7 }
 0x2ff   : > { %v6136_v44 = vld [vmem:[%s7244_s6 + $0xdb8] sm:$0xf0] }
 0x300   : > { %v6934_v45 = vld [vmem:[%s7244_s6 + $0xf9c] sm:$0xf]  ;;  %v6139_v47 = vor.u32 %v6870_v42, %v6136_v44  ;;  %4163 = vmatpush.bf16.msrb.mxu1 %v5883_v22  ;;  %v3938_v42 = vadd.f32 %v3937_v31, %v3925_v30  ;;  %v3900_v44 = vpop.f32.mrf.mxu0 }
 0x301   : > { %v6392_v46 = vld [vmem:[%s7244_s6 + $0xfb8] sm:$0xf0] }
 0x302   : > { %v6734_v48 = vld [vmem:[%s7244_s6 + $0x95c] sm:$0xf]  ;;  %v6395_v52 = vor.u32 %v6934_v45, %v6392_v46  ;;  %4176 = vmatpush.bf16.msrb.mxu2 %v6139_v47 }
 0x303   : > { %v5592_v50 = vld [vmem:[%s7244_s6 + $0x978] sm:$0xf0] }
 0x304   : > { %v6798_v51 = vld [vmem:[%s7244_s6 + $0xb5c] sm:$0xf]  ;;  %v5595_v56 = vor.u32 %v6734_v48, %v5592_v50  ;;  %4189 = vmatpush.bf16.msrb.mxu3 %v6395_v52  ;;  %v3913_v48 = vpop.f32.mrf.mxu1 }
 0x305   : > { %v5848_v0 = vld [vmem:[%s7244_s6 + $0xb78] sm:$0xf0] }
 0x306   : > { %v6862_v53 = vld [vmem:[%s7244_s6 + $0xd5c] sm:$0xf]  ;;  %v5851_v26 = vor.u32 %v6798_v51, %v5848_v0  ;;  %4151 = vmatpush.bf16.msrb.mxu0 %v5595_v56 }
 0x307   : > { %v6104_v54 = vld [vmem:[%s7244_s6 + $0xd78] sm:$0xf0] }
 0x308   : > { %v6926_v20 = vld [vmem:[%s7244_s6 + $0xf5c] sm:$0xf]  ;;  %v6107_v58 = vor.u32 %v6862_v53, %v6104_v54  ;;  %4164 = vmatpush.bf16.msrb.mxu1 %v5851_v26 }
 0x309   : > { %v6360_v55 = vld [vmem:[%s7244_s6 + $0xf78] sm:$0xf0] }
 0x30a   : > { %v6726_v59 = vld [vmem:[%s7244_s6 + $0x91c] sm:$0xf]  ;;  %v6363_v27 = vor.u32 %v6926_v20, %v6360_v55  ;;  %4177 = vmatpush.bf16.msrb.mxu2 %v6107_v58 }
 0x30b   : > { %v5560_v60 = vld [vmem:[%s7244_s6 + $0x938] sm:$0xf0] }
 0x30c   : > { %v6790_v61 = vld [vmem:[%s7244_s6 + $0xb1c] sm:$0xf]  ;;  %v5563_v33 = vor.u32 %v6726_v59, %v5560_v60  ;;  %4190 = vmatpush.bf16.msrb.mxu3 %v6363_v27  ;;  %v3926_v60 = vpop.f32.mrf.mxu2 }
 0x30d   : > { %v5816_v62 = vld [vmem:[%s7244_s6 + $0xb38] sm:$0xf0] }
 0x30e   : > { %v6854_v32 = vld [vmem:[%s7244_s6 + $0xd1c] sm:$0xf]  ;;  %v5819_v3 = vor.u32 %v6790_v61, %v5816_v62  ;;  %4152 = vmatpush.bf16.msrb.mxu0 %v5563_v33 }
 0x30f   : > { %v6072_v63 = vld [vmem:[%s7244_s6 + $0xd38] sm:$0xf0] }
 0x310   : > { %v6918_v1 = vld [vmem:[%s7244_s6 + $0xf1c] sm:$0xf]  ;;  %v6075_v4 = vor.u32 %v6854_v32, %v6072_v63  ;;  %4165 = vmatpush.bf16.msrb.mxu1 %v5819_v3  ;;  %v3939_v63 = vpop.f32.mrf.mxu3 }
 0x311   : > { %v6328_v2 = vld [vmem:[%s7244_s6 + $0xf38] sm:$0xf0] }
 0x312   : > { %v6718_v6 = vld [vmem:[%s7244_s6 + $0x8dc] sm:$0xf]  ;;  %v6331_v10 = vor.u32 %v6918_v1, %v6328_v2  ;;  %4178 = vmatpush.bf16.msrb.mxu2 %v6075_v4 }
 0x313   : > { %v5528_v8 = vld [vmem:[%s7244_s6 + $0x8f8] sm:$0xf0] }
 0x314   : > { %v6782_v28 = vld [vmem:[%s7244_s6 + $0xadc] sm:$0xf]  ;;  %v5531_v39 = vor.u32 %v6718_v6, %v5528_v8  ;;  %4191 = vmatpush.bf16.msrb.mxu3 %v6331_v10  ;;  %v3950_v6 = vpop.f32.mrf.mxu0  ;;  %v3976_v10 = vpop.f32.mrf.mxu2 }
 0x315   : > { %v5784_v11 = vld [vmem:[%s7244_s6 + $0xaf8] sm:$0xf0]  ;;  %v3951_v8 = vadd.f32 %v3950_v6, %v3938_v42 }
 0x316   : > { %v6846_v12 = vld [vmem:[%s7244_s6 + $0xcdc] sm:$0xf]  ;;  %v5787_v18 = vor.u32 %v6782_v28, %v5784_v11  ;;  %4153 = vmatpush.bf16.msrb.mxu0 %v5531_v39  ;;  %v3963_v28 = vpop.f32.mrf.mxu1 }
 0x317   : > { %v6040_v13 = vld [vmem:[%s7244_s6 + $0xcf8] sm:$0xf0]  ;;  %v3964_v9 = vadd.f32 %v3963_v28, %v3951_v8 }
 0x318   : > { %v6910_v15 = vld [vmem:[%s7244_s6 + $0xedc] sm:$0xf]  ;;  %v6043_v17 = vor.u32 %v6846_v12, %v6040_v13  ;;  %4166 = vmatpush.bf16.msrb.mxu1 %v5787_v18  ;;  %v3989_v12 = vpop.f32.mrf.mxu3 }
 0x319   : > { %v6296_v16 = vld [vmem:[%s7244_s6 + $0xef8] sm:$0xf0]  ;;  %v3977_v11 = vadd.f32 %v3976_v10, %v3964_v9 }
 0x31a   : > { %v6710_v57 = vld [vmem:[%s7244_s6 + $0x89c] sm:$0xf]  ;;  %v6299_v24 = vor.u32 %v6910_v15, %v6296_v16  ;;  %4179 = vmatpush.bf16.msrb.mxu2 %v6043_v17 }
 0x31b   : > { %v5496_v19 = vld [vmem:[%s7244_s6 + $0x8b8] sm:$0xf0]  ;;  %v3990_v13 = vadd.f32 %v3989_v12, %v3977_v11 }
 0x31c   : > { %v6774_v21 = vld [vmem:[%s7244_s6 + $0xa9c] sm:$0xf]  ;;  %v5499_v38 = vor.u32 %v6710_v57, %v5496_v19  ;;  %4192 = vmatpush.bf16.msrb.mxu3 %v6299_v24  ;;  %v3952_v14 = vpop.f32.mrf.mxu0  ;;  %v3978_v39 = vpop.f32.mrf.mxu2 }
 0x31d   : > { %v5752_v25 = vld [vmem:[%s7244_s6 + $0xab8] sm:$0xf0]  ;;  %v4212_v16 = vrot.slane %v3990_v13, 6 }
 0x31e   : > { %v6838_v34 = vld [vmem:[%s7244_s6 + $0xc9c] sm:$0xf]  ;;  %v5755_v45 = vor.u32 %v6774_v21, %v5752_v25  ;;  %4154 = vmatpush.bf16.msrb.mxu0 %v5499_v38  ;;  %v3965_v15 = vpop.f32.mrf.mxu1 }
 0x31f   : > { %v6008_v29 = vld [vmem:[%s7244_s6 + $0xcb8] sm:$0xf0] }
 0x320   : > { %v6902_v35 = vld [vmem:[%s7244_s6 + $0xe9c] sm:$0xf]  ;;  %v6011_v46 = vor.u32 %v6838_v34, %v6008_v29  ;;  %4167 = vmatpush.bf16.msrb.mxu1 %v5755_v45 }
 0x321   : > { %v6264_v36 = vld [vmem:[%s7244_s6 + $0xeb8] sm:$0xf0] }
 0x322   : > { %v6702_v7 = vld [vmem:[%s7244_s6 + $0x85c] sm:$0xf]  ;;  %v6267_v50 = vor.u32 %v6902_v35, %v6264_v36  ;;  %4180 = vmatpush.bf16.msrb.mxu2 %v6011_v46 }
 0x323   : > { %v5464_v22 = vld [vmem:[%s7244_s6 + $0x878] sm:$0xf0] }
 0x324   : > { %v6766_v47 = vld [vmem:[%s7244_s6 + $0xa5c] sm:$0xf]  ;;  %v5467_v20 = vor.u32 %v6702_v7, %v5464_v22  ;;  %4193 = vmatpush.bf16.msrb.mxu3 %v6267_v50  ;;  %v4002_v18 = vpop.f32.mrf.mxu0 }
 0x325   : > { %v5720_v51 = vld [vmem:[%s7244_s6 + $0xa78] sm:$0xf0] }
 0x326   : > { %v6830_v52 = vld [vmem:[%s7244_s6 + $0xc5c] sm:$0xf]  ;;  %v5723_v55 = vor.u32 %v6766_v47, %v5720_v51  ;;  %4155 = vmatpush.bf16.msrb.mxu0 %v5467_v20 }
 0x327   : > { %v5976_v0 = vld [vmem:[%s7244_s6 + $0xc78] sm:$0xf0] }
 0x328   : > { %v6894_v53 = vld [vmem:[%s7244_s6 + $0xe5c] sm:$0xf]  ;;  %v5979_v56 = vor.u32 %v6830_v52, %v5976_v0  ;;  %4168 = vmatpush.bf16.msrb.mxu1 %v5723_v55 }
 0x329   : > { %v6232_v54 = vld [vmem:[%s7244_s6 + $0xe78] sm:$0xf0] }
 0x32a   : > { %v6694_v26 = vld [vmem:[%s7244_s6 + $0x81c] sm:$0xf]  ;;  %v6235_v61 = vor.u32 %v6894_v53, %v6232_v54  ;;  %4181 = vmatpush.bf16.msrb.mxu2 %v5979_v56 }
 0x32b   : > { %v5432_v58 = vld [vmem:[%s7244_s6 + $0x838] sm:$0xf0] }
 0x32c   : > { %v6758_v59 = vld [vmem:[%s7244_s6 + $0xa1c] sm:$0xf]  ;;  %v5435_v33 = vor.u32 %v6694_v26, %v5432_v58  ;;  %4194 = vmatpush.bf16.msrb.mxu3 %v6235_v61  ;;  %v4004_v23 = vpop.f32.mrf.mxu0 }
 0x32d   : > { %v5688_v27 = vld [vmem:[%s7244_s6 + $0xa38] sm:$0xf0] }
 0x32e   : > { %v6822_v62 = vld [vmem:[%s7244_s6 + $0xc1c] sm:$0xf]  ;;  %v5691_v5 = vor.u32 %v6758_v59, %v5688_v27  ;;  %4156 = vmatpush.bf16.msrb.mxu0 %v5435_v33 }
 0x32f   : > { %v5944_v32 = vld [vmem:[%s7244_s6 + $0xc38] sm:$0xf0] }
 0x330   : > { %v6886_v1 = vld [vmem:[%s7244_s6 + $0xe1c] sm:$0xf]  ;;  %v5947_v3 = vor.u32 %v6822_v62, %v5944_v32  ;;  %4169 = vmatpush.bf16.msrb.mxu1 %v5691_v5 }
 0x331   : > { %v6200_v2 = vld [vmem:[%s7244_s6 + $0xe38] sm:$0xf0]  ;;  %4157 = vmatmul.bf16.vlgmr.msrb.gmra.mxu0 %v7421_v40  ;;  %v4221_v40 = vsel %vm4215_vm0, %v8321_v49, %v4212_v16 }
 0x332   : > { %v6203_v4 = vor.u32 %v6886_v1, %v6200_v2  ;;  %4182 = vmatpush.bf16.msrb.mxu2 %v5947_v3  ;;  %v265_v33 = vld [vmem:[#allocation2 + $0x8] sm:$0xff] }
 0x333   : > { %4170 = vmatmul.bf16.vlgmr.msrb.gmra.mxu1 %v7425_v43  ;;  %v3991_v43 = vpop.f32.mrf.mxu3 }
 0x334   : > { %4195 = vmatpush.bf16.msrb.mxu3 %v6203_v4 }
 0x335   : > { %4183 = vmatmul.bf16.vlgmr.msrb.gmra.mxu2 %v7417_v37  ;;  %v4015_v37 = vpop.f32.mrf.mxu1 }
 0x336   : > { %v4016_v17 = vadd.f32 %v4015_v37, %v4002_v18 }
 0x337   : > { %4196 = vmatmul.bf16.vlgmr.msrb.gmra.mxu3 %v7423_v41  ;;  %v4028_v41 = vpop.f32.mrf.mxu2 }
 0x338   : > { %v4029_v57 = vadd.f32 %v4028_v41, %v4016_v17 }
 0x33b   : > { %v4041_v19 = vpop.f32.mrf.mxu3 }
 0x33c   : > { %v4042_v21 = vadd.f32 %v4041_v19, %v4029_v57 }
 0x33d   : > { %v4017_v24 = vpop.f32.mrf.mxu1 }
 0x33f   : > { %v4030_v25 = vpop.f32.mrf.mxu2 }
 0x343   : > { %v4043_v34 = vpop.f32.mrf.mxu3 }
 0x353   : > { %v4054_v29 = vpop.f32.mrf.mxu0 }
 0x354   : > { %v4055_v52 = vadd.f32 %v4054_v29, %v4042_v21 }
 0x355   : > { %v4067_v30 = vpop.f32.mrf.mxu1 }
 0x356   : > { %v4068_v53 = vadd.f32 %v4067_v30, %v4055_v52 }
 0x35b   : > { %v4056_v36 = vpop.f32.mrf.mxu0 }
 0x35d   : > { %v4080_v31 = vpop.f32.mrf.mxu2  ;;  %v4069_v38 = vpop.f32.mrf.mxu1 }
 0x35e   : > { %v4081_v26 = vadd.f32 %v4080_v31, %v4068_v53 }
 0x35f   : > { %v4093_v35 = vpop.f32.mrf.mxu3 }
 0x360   : > { %v4094_v60 = vadd.f32 %v4093_v35, %v4081_v26 }
 0x362   : > { %v4213_v1 = vrot.slane %v4094_v60, 4 }
 0x365   : > { %v4082_v49 = vpop.f32.mrf.mxu2 }
 0x367   : > { %v4095_v42 = vpop.f32.mrf.mxu3 }
 0x373   : > { %v4106_v44 = vpop.f32.mrf.mxu0 }
 0x375   : > { %v4119_v45 = vpop.f32.mrf.mxu1 }
 0x376   : > { %v4120_v51 = vadd.f32 %v4119_v45, %v4106_v44 }
 0x37b   : > { %v4108_v22 = vpop.f32.mrf.mxu0 }
 0x37d   : > { %v4132_v46 = vpop.f32.mrf.mxu2  ;;  %v4121_v47 = vpop.f32.mrf.mxu1 }
 0x37e   : > { %v4133_v0 = vadd.f32 %v4132_v46, %v4120_v51 }
 0x37f   : > { %v4145_v7 = vpop.f32.mrf.mxu3 }
 0x380   : > { %v4146_v54 = vadd.f32 %v4145_v7, %v4133_v0 }
 0x385   : > { %v4134_v48 = vpop.f32.mrf.mxu2 }
 0x387   : > { %v4147_v50 = vpop.f32.mrf.mxu3 }
 0x3ae   : > { %v4158_v20 = vpop.f32.mrf.mxu0 }
 0x3af   : > { %v4159_v56 = vadd.f32 %v4158_v20, %v4146_v54 }
 0x3b0   : > { %v4171_v55 = vpop.f32.mrf.mxu1 }
 0x3b1   : > { %v4172_v58 = vadd.f32 %v4171_v55, %v4159_v56 }
 0x3b6   : > { %v4160_v62 = vpop.f32.mrf.mxu0 }
 0x3b8   : > { %v4184_v59 = vpop.f32.mrf.mxu2  ;;  %v4173_v32 = vpop.f32.mrf.mxu1 }
 0x3b9   : > { %v4185_v61 = vadd.f32 %v4184_v59, %v4172_v58 }
 0x3ba   : > { %v4197_v27 = vpop.f32.mrf.mxu3 }
 0x3bb   : > { %v4198_v63 = vadd.f32 %v4197_v27, %v4185_v61 }
 0x3bd   : > { %v4214_v2 = vrot.slane %v4198_v63, 2 }
 0x3bf   : > { %v4222_v5 = vsel %vm4217_vm1, %v4213_v1, %v4214_v2  ;;  %4233 = sbr.rel (%p6428_p3) target bundleno = 977 (0x3d1), region = 48 }
 0x3c0   : > { %v4223_v3 = vsel %vm4219_vm2, %v4221_v40, %v4222_v5  ;;  %v4186_v4 = vpop.f32.mrf.mxu2 }
 0x3c1   : > { %v4227_v6 = vadd.f32 %v4223_v3, %v265_v33 }
 0x3c2   : > { %v4199_v8 = vpop.f32.mrf.mxu3 }
 0x3c3   : > { %4229 = vst [vmem:[#allocation2 + $0x8] sm:$0xff] %v4227_v6 }
 0x3c4   : > { %v4236_v28 = vld [vmem:[#allocation5] sm:$0xff]  ;;  %v4234_v40 = vld [vmem:[#allocation2] sm:$0xff] }
 0x3c5   : > { %v4238_v9 = vperm.slane %v4236_v28, 0  ;;  %v4239_v10 = vperm.slane %v4236_v28, 1  ;;  %v4240_v11 = vperm.slane %v4236_v28, 2  ;;  %v4241_v12 = vperm.slane %v4236_v28, 3 }
 0x3c6   : > { %v4242_v13 = vperm.slane %v4236_v28, 4  ;;  %v4243_v14 = vperm.slane %v4236_v28, 5  ;;  %v4244_v15 = vperm.slane %v4236_v28, 6  ;;  %v4245_v16 = vperm.slane %v4236_v28, 7 }
 0x3c7   : > { %v4246_v39 = vrot.slane %v4239_v10, 6  ;;  %v4247_v43 = vrot.slane %v4240_v11, 4  ;;  %v4248_v18 = vrot.slane %v4241_v12, 2 }
 0x3c8   : > { %v4249_v37 = vrot.slane %v4243_v14, 6  ;;  %v4250_v17 = vrot.slane %v4244_v15, 4  ;;  %v4251_v41 = vrot.slane %v4245_v16, 2 }
 0x3c9   : > { %v4252_v57 = vsel %vm4215_vm0, %v4238_v9, %v4246_v39  ;;  %v4253_v19 = vsel %vm4217_vm1, %v4247_v43, %v4248_v18 }
 0x3ca   : > { %v4235_v21 = vld [vmem:[#allocation2 + $0x8] sm:$0xff]  ;;  %v4254_v23 = vsel %vm4219_vm2, %v4252_v57, %v4253_v19  ;;  %v4255_v24 = vsel %vm4215_vm0, %v4242_v13, %v4249_v37  ;;  %v4256_v25 = vsel %vm4217_vm1, %v4250_v17, %v4251_v41 }
 0x3cb   : > { %v4260_v34 = vadd.f32 %v4254_v23, %v4234_v40  ;;  %v4257_v29 = vsel %vm4219_vm2, %v4255_v24, %v4256_v25 }
 0x3cc   : > { %v4261_v30 = vadd.f32 %v4257_v29, %v4235_v21 }
 0x3cd   : > { %v4262_v31 = vmax.f32 %v4260_v34, 0.0 }
 0x3ce   : > { %v4263_v35 = vmax.f32 %v4261_v30, 0.0 }
 0x3cf   : > { %4264 = vst [vmem:[%s8449_s3] sm:$0xff] %v4262_v31 }
 0x3d0   : > { %4265 = vst [vmem:[%s8449_s3 + $0x8] sm:$0xff] %v4263_v35 }
 0x3d1 PF: > { %s17_s17 = sadd.s32 1, %s7130_s17   ;;  %s8455_s12 = smov %s7114_s13 }
 0x3d2   : > { %p14_p4 = scmp.ge.s32.totalorder %s17_s17, 4   ;;  %s8456_s13 = smov %s7118_s14 }
 0x3d3   : > { %s8457_s14 = smov %s7237_s21  ;;  %s8458_s15 = smov %s7126_s16 }
 0x3d4   : > { %s8459_s16 = smov %s8461_s30  ;;  %16 = sbr.rel (!%p14_p4) target bundleno = 5 (0x5), region = 89 }
 0x3d9   :  { %4288 = vsyncpa [#allocation4], 1 }
 0x3da   :  { %4290 = vsyncpa [#allocation4 + $0x1], 1 }
 0x3db   :  { %4291 = vsyncpa [#allocation6], 1 }

</bundles_post_ra>
